<compile_context>
chip_gen: v5e
topology: v5e:2x2
jax: 0.10.0
libtpu: 0.0.40
codegen_flags: <defaults>
</compile_context>

<pallas_src>
import functools
from typing import NamedTuple

import jax
import jax.numpy as jnp
import numpy as np
from jax.experimental import pallas as pl
from jax.experimental.pallas import tpu as pltpu


def _round_up(a, b):
    return (a + b - 1) // b * b


# --------------------------------------------------------------------------
# Hardware introspection (cached, narrow try/except around probes only).
# --------------------------------------------------------------------------
class _HwInfo(NamedTuple):
    vmem_cap_bytes: int
    num_tensorcores: int
    mxu_cols: int
    is_v5e: bool


@functools.lru_cache(maxsize=None)
def _tpu_hw() -> _HwInfo:
    kind = ""
    try:
        kind = getattr(jax.devices()[0], "device_kind", "").lower()
    except Exception:  # pure introspection fallback; never masks kernel errors
        kind = ""
    is_v7 = "v7" in kind
    is_v5e = ("v5e" in kind) or ("v5 lite" in kind) or ("v5lite" in kind)
    vmem_cap = None
    try:
        vmem_cap = int(pltpu.get_tpu_info().vmem_capacity_bytes)
    except Exception:  # introspection fallback only
        vmem_cap = None
    if not vmem_cap or vmem_cap <= 0:
        vmem_cap = (64 if is_v7 else 128) * 2**20
    num_tc = 2 if is_v7 else 1
    mxu_cols = 128 if is_v5e else 256
    return _HwInfo(vmem_cap, num_tc, mxu_cols, is_v5e)


@functools.lru_cache(maxsize=None)
def _buffered_single_supported() -> bool:
    """Feature-detect pipeline_mode=pl.Buffered(1) once (probe compile only)."""
    if not hasattr(pl, "Buffered"):
        return False

    def _probe_kernel(x_ref, o_ref):
        o_ref[...] = x_ref[...]

    try:
        fn = pl.pallas_call(
            _probe_kernel,
            out_shape=jax.ShapeDtypeStruct((16, 128), jnp.float32),
            grid=(2,),
            in_specs=[pl.BlockSpec((8, 128), lambda i: (0, 0),
                                   pipeline_mode=pl.Buffered(1))],
            out_specs=pl.BlockSpec((8, 128), lambda i: (i, 0)),
        )
        jax.jit(fn).lower(jnp.zeros((8, 128), jnp.float32)).compile()
        return True
    except Exception:
        # Probe-only fallback: the real SineLayer kernel is never wrapped in a
        # catch-all, so genuine lowering / OOM / shape errors still surface.
        return False


# --------------------------------------------------------------------------
# Kernel
# --------------------------------------------------------------------------
def _sine_layer_kernel(x_ref, w_ref, b_ref, o_ref, *, apply_sine):
    # x_ref: (tm, K) io_dtype   w_ref: (K, tn) io_dtype
    # b_ref: (1, tn) f32        o_ref: (tm, tn) out_dtype
    acc = jnp.dot(x_ref[...], w_ref[...], preferred_element_type=jnp.float32)
    acc = acc + b_ref[...]            # f32 epilogue (bias already omega-scaled)
    if apply_sine:                    # static python bool -> baked into kernel
        acc = jnp.sin(acc)            # omega_0 already folded into W and b
    o_ref[...] = acc.astype(o_ref.dtype)


# --------------------------------------------------------------------------
# Parameter preparation (omega folding + transpose + lane-dense N padding)
# --------------------------------------------------------------------------
class SineLayerParams(NamedTuple):
    w_kn: jax.Array        # (K, N_pad) io_dtype, omega folded in, pre-transposed
    bias_row: jax.Array    # (1, N_pad) f32, omega folded in, zero in padding
    out_features: int      # original N (padding sliced off after the kernel)
    is_last: bool


def prepare_sine_layer_params(weight, bias, *, omega_0=30.0, is_first=False,
                              is_last=False, io_dtype=None, lane_pad=128):
    """Fold omega_0 into (W, b), transpose to (K, N) and pad N to a lane multiple.

    weight: (out_features, in_features) as in torch.nn.Linear; bias: (out,).
    sin(omega*(x@W.T + b)) == sin(x@(omega*W).T + omega*b).
    """
    n_out, k_in = weight.shape
    if io_dtype is None:
        # bf16 only pays off on bandwidth-starved v5e, and only for hidden
        # layers (first-layer coordinates / last-layer outputs stay f32).
        hw = _tpu_hw()
        io_dtype = (jnp.bfloat16 if (hw.is_v5e and not is_first and not is_last)
                    else jnp.float32)
    scale = 1.0 if is_last else float(omega_0)
    w = jnp.asarray(weight, jnp.float32) * scale            # (N, K)
    b = jnp.asarray(bias, jnp.float32) * scale               # (N,)
    n_pad = _round_up(max(n_out, lane_pad), lane_pad)         # lane-dense output
    if n_pad != n_out:
        w = jnp.pad(w, ((0, n_pad - n_out), (0, 0)))
        b = jnp.pad(b, ((0, n_pad - n_out),))
    w_kn = w.T.astype(io_dtype)                               # (K, N_pad)
    b_row = b.reshape(1, n_pad)                               # (1, N_pad) f32
    return SineLayerParams(w_kn=w_kn, bias_row=b_row,
                           out_features=int(n_out), is_last=bool(is_last))


# --------------------------------------------------------------------------
# Tile selection
# --------------------------------------------------------------------------
def _pick_tiles(M, K, N, in_bytes, out_bytes, vmem_budget, tm_max,
                num_tc, n_quantum, weight_buffers):
    lane_ok = (N % 128 == 0)
    # N tile: keep the full weight resident when it fits ~1/3 of the budget
    # at its actual buffer count (1x when single-buffered, 2x otherwise).
    if (weight_buffers * K * N * in_bytes <= vmem_budget // 3
            or N <= 128 or not lane_ok):
        tn = N
        wbuf = weight_buffers
    else:
        wbuf = 2                      # N-tiled weight streams -> double buffer
        target = max((vmem_budget // 3) // (wbuf * K * in_bytes), 128)
        tn_cap = max((target // 128) * 128, 128)

        def _best_divisor(q):
            t = (tn_cap // q) * q
            while t >= q and N % t:
                t -= q
            return t if (t >= q and N % t == 0) else 0

        # Prefer full MXU-width multiples (256 on v6e/v7x), fall back to 128.
        tn = _best_divisor(n_quantum) or _best_divisor(128) or N

    # M tile: largest multiple of 8 that fits the remaining budget.
    resident = wbuf * (K * tn * in_bytes + tn * 4)
    per_row = 2 * (K * in_bytes + tn * out_bytes)   # double-buffered x/out tiles
    tm = max(vmem_budget - resident, 8 * per_row) // per_row
    tm = int(min(tm, tm_max))
    tm = max(8, (tm // 8) * 8)
    tm = min(tm, _round_up(M, 8))
    # Split rows across cores only when the chip actually has 2 TensorCores.
    if num_tc >= 2 and pl.cdiv(M, tm) < num_tc and M > 8:
        tm = max(8, _round_up(pl.cdiv(M, num_tc), 8))
    return tm, tn, wbuf


# --------------------------------------------------------------------------
# Forward
# --------------------------------------------------------------------------
def sine_layer_forward(x, params: SineLayerParams, *, out_dtype=None,
                       tm_max=None, vmem_budget_bytes=None):
    """x: (M, K); params from prepare_sine_layer_params (omega folded in)."""
    hw = _tpu_hw()
    w_kn, bias_row = params.w_kn, params.bias_row

    M, K = x.shape
    Kw, N = w_kn.shape
    assert K == Kw and bias_row.shape == (1, N)

    io_dtype = w_kn.dtype
    if out_dtype is None:
        out_dtype = x.dtype
    if x.dtype != io_dtype:
        x = x.astype(io_dtype)
    bias_row = bias_row.astype(jnp.float32)

    small_vmem = hw.vmem_cap_bytes <= 64 * 2**20          # v7x-class parts
    if vmem_budget_bytes is None:
        vmem_budget_bytes = 24 * 2**20 if small_vmem else 56 * 2**20
    if tm_max is None:
        tm_max = 1024 if small_vmem else 2048

    in_bytes = jnp.dtype(io_dtype).itemsize
    out_bytes = jnp.dtype(out_dtype).itemsize

    wf = 1 if _buffered_single_supported() else 2
    tm, tn, wbuf = _pick_tiles(M, K, N, in_bytes, out_bytes, vmem_budget_bytes,
                               tm_max, hw.num_tensorcores, hw.mxu_cols, wf)
    use_single = (wbuf == 1) and (tn == N)

    # Ragged edge block along M is handled by the pipeline -> no pad / slice.
    grid_m = pl.cdiv(M, tm)
    grid_n = N // tn

    # VMEM limit tied to the actual tile footprint, capped per generation.
    need = (2 * tm * K * in_bytes + 2 * tm * tn * out_bytes
            + wbuf * (K * tn * in_bytes + tn * 4))
    hard_cap = min(hw.vmem_cap_bytes * 5 // 8, hw.vmem_cap_bytes - 16 * 2**20)
    vmem_limit = int(min(hard_cap, max(need + 4 * 2**20, 16 * 2**20)))

    kernel = functools.partial(_sine_layer_kernel, apply_sine=not params.is_last)
    inv = dict(pipeline_mode=pl.Buffered(1)) if use_single else {}

    out = pl.pallas_call(
        kernel,
        out_shape=jax.ShapeDtypeStruct((M, N), out_dtype),
        grid_spec=pltpu.PrefetchScalarGridSpec(
            num_scalar_prefetch=0,
            grid=(grid_m, grid_n),
            in_specs=[
                pl.BlockSpec((tm, K), lambda i, j: (i, 0)),          # x rows
                pl.BlockSpec((K, tn), lambda i, j: (0, j), **inv),   # weight
                pl.BlockSpec((1, tn), lambda i, j: (0, j), **inv),   # bias
            ],
            out_specs=pl.BlockSpec((tm, tn), lambda i, j: (i, j)),
        ),
        compiler_params=pltpu.CompilerParams(
            dimension_semantics=("parallel", "parallel"),
            vmem_limit_bytes=vmem_limit,
        ),
    )(x, w_kn, bias_row)

    if params.out_features != N:
        out = out[:, :params.out_features]   # strip lane padding (tiny copy)
    return out


# --------------------------------------------------------------------------
# Deterministic re-implementation of SineLayer.init_weights()
# --------------------------------------------------------------------------
def init_sine_layer_params(key, in_features, out_features, *,
                           is_first=False, omega_0=30.0, first_omega=30000.0):
    kw, kb = jax.random.split(key)
    if is_first:
        w_bound = np.sqrt(6.0 / in_features) / first_omega
    else:
        w_bound = np.sqrt(6.0 / in_features) / omega_0
    weight = jax.random.uniform(
        kw, (out_features, in_features), jnp.float32, -w_bound, w_bound)
    # nn.Linear default bias init (module does not override the bias).
    b_bound = 1.0 / np.sqrt(in_features)
    bias = jax.random.uniform(kb, (out_features,), jnp.float32, -b_bound, b_bound)
    return weight, bias


if __name__ == "__main__":
    key = jax.random.PRNGKey(0)
    k_x, k1, k2 = jax.random.split(key, 3)

    # Small shapes; batch deliberately NOT a tile multiple to exercise the
    # ragged-edge (no host pad/slice) path.
    batch, in_features, hidden, out_features = 250, 64, 128, 1
    omega_0 = 30.0

    x = jax.random.normal(k_x, (batch, in_features), jnp.float32)
    w1, b1 = init_sine_layer_params(k1, in_features, hidden, is_first=True,
                                    omega_0=omega_0, first_omega=30000.0)
    w2, b2 = init_sine_layer_params(k2, hidden, out_features, is_first=False,
                                    omega_0=omega_0)

    # --- first (sine) layer, f32 IO (strict check) ---------------------------
    p1 = prepare_sine_layer_params(w1, b1, omega_0=omega_0, is_first=True,
                                   is_last=False, io_dtype=jnp.float32)
    h = jax.block_until_ready(sine_layer_forward(x, p1))
    ref_h = np.sin(omega_0 * (np.asarray(x, np.float64)
                              @ np.asarray(w1, np.float64).T
                              + np.asarray(b1, np.float64)))
    np.testing.assert_allclose(np.asarray(h, np.float64), ref_h,
                               rtol=1e-5, atol=1e-5)

    # --- last (linear, no sine) layer: out_features=1 lane-padded to 128 -----
    p2 = prepare_sine_layer_params(w2, b2, omega_0=omega_0, is_last=True,
                                   io_dtype=jnp.float32)
    y = jax.block_until_ready(sine_layer_forward(h, p2))
    assert y.shape == (batch, out_features)
    ref_y = (np.asarray(h, np.float64) @ np.asarray(w2, np.float64).T
             + np.asarray(b2, np.float64))
    np.testing.assert_allclose(np.asarray(y, np.float64), ref_y,
                               rtol=1e-3, atol=1e-6)

    # --- hidden sine layer, explicit bf16 IO (v5e bandwidth path) ------------
    p1_bf = prepare_sine_layer_params(w1, b1, omega_0=omega_0, is_first=False,
                                      is_last=False, io_dtype=jnp.bfloat16)
    h_bf = jax.block_until_ready(
        sine_layer_forward(x, p1_bf, out_dtype=jnp.bfloat16))
    ref_bf = jnp.sin(x.astype(jnp.bfloat16).astype(jnp.float32)
                     @ p1_bf.w_kn.astype(jnp.float32) + p1_bf.bias_row)
    np.testing.assert_allclose(np.asarray(h_bf, np.float32),
                               np.asarray(ref_bf), rtol=2e-2, atol=2e-3)

    print("KERNEL_OK")
</pallas_src>

<mosaic_0001>
module attributes {stable_mosaic.version = 11 : i64} {
  func.func @_sine_layer_kernel(%arg0: i32, %arg1: i32, %arg2: memref<256x64xf32, #tpu.memory_space<vmem>>, %arg3: memref<64x128xf32, #tpu.memory_space<vmem>>, %arg4: memref<1x128xf32, #tpu.memory_space<vmem>>, %arg5: memref<256x128xf32, #tpu.memory_space<vmem>>) attributes {dimension_semantics = [#tpu.dimension_semantics<parallel>, #tpu.dimension_semantics<parallel>], iteration_bounds = array<i64: 1, 1>, scalar_prefetch = 0 : i64, scratch_operands = 0 : i64, tpu.core_type = #tpu.core_type<tc>, window_params = [{transform_indices = @transform_0, window_bounds = array<i64: 256, 64>}, {transform_indices = @transform_1, window_bounds = array<i64: 64, 128>}, {transform_indices = @transform_2, window_bounds = array<i64: 1, 128>}, {transform_indices = @transform_3, window_bounds = array<i64: 256, 128>}]} {
    %c0 = arith.constant 0 : index
    %c0_0 = arith.constant 0 : index
    %0 = vector.load %arg2[%c0, %c0_0] : memref<256x64xf32, #tpu.memory_space<vmem>>, vector<256x64xf32>
    %c0_1 = arith.constant 0 : index
    %c0_2 = arith.constant 0 : index
    %1 = vector.load %arg3[%c0_1, %c0_2] : memref<64x128xf32, #tpu.memory_space<vmem>>, vector<64x128xf32>
    %cst = arith.constant dense<0.000000e+00> : vector<256x128xf32>
    %2 = tpu.matmul %0, %1, %cst {dimension_numbers = #tpu.dot_dimension_numbers<[1], [0], [0], [1], [0, 0, 1, 1], [], []>} : vector<256x64xf32>, vector<64x128xf32>, vector<256x128xf32> -> vector<256x128xf32>
    %c0_3 = arith.constant 0 : index
    %c0_4 = arith.constant 0 : index
    %3 = vector.load %arg4[%c0_3, %c0_4] : memref<1x128xf32, #tpu.memory_space<vmem>>, vector<1x128xf32>
    %4 = vector.broadcast %3 : vector<1x128xf32> to vector<256x128xf32>
    %5 = arith.addf %2, %4 : vector<256x128xf32>
    %6 = math.sin %5 : vector<256x128xf32>
    %c0_5 = arith.constant 0 : index
    %c0_6 = arith.constant 0 : index
    %7 = vector.load %arg5[%c0_5, %c0_6] : memref<256x128xf32, #tpu.memory_space<vmem>>, vector<256x128xf32>
    tpu.vector_store %arg5[%c0_5, %c0_6], %6 {strides = array<i32>} : memref<256x128xf32, #tpu.memory_space<vmem>>, vector<256x128xf32>,
    return
  }
  func.func @transform_0(%arg0: i32, %arg1: i32) -> (i32, i32) {
    %c0_i32 = arith.constant 0 : i32
    %c0_i32_0 = arith.constant 0 : i32
    return %arg0, %c0_i32 : i32, i32
  }
  func.func @transform_1(%arg0: i32, %arg1: i32) -> (i32, i32) {
    %c0_i32 = arith.constant 0 : i32
    %c0_i32_0 = arith.constant 0 : i32
    return %c0_i32, %arg1 : i32, i32
  }
  func.func @transform_2(%arg0: i32, %arg1: i32) -> (i32, i32) {
    %c0_i32 = arith.constant 0 : i32
    %c0_i32_0 = arith.constant 0 : i32
    return %c0_i32, %arg1 : i32, i32
  }
  func.func @transform_3(%arg0: i32, %arg1: i32) -> (i32, i32) {
    %c0_i32 = arith.constant 0 : i32
    return %arg0, %arg1 : i32, i32
  }
}

</mosaic_0001>

<bundles_post_ra>
// kernel: tpu_custom_call.1
= control target key start
LH: loop header
LB: loop body
LE: loop exit
PB: predicated region body
PF: predicated region fallthrough
CT: control target
= control target key end

     0   :  { %s9086_s0 = inlined_call_operand.vmem [shape: f32[250,64], index: 0, kind: input, shape index: {}]   ;;  %s9087_s1 = inlined_call_operand.vmem [shape: f32[64,128], index: 1, kind: input, shape index: {}]   ;;  %s9088_s2 = inlined_call_operand.vmem [shape: f32[1,128], index: 2, kind: input, shape index: {}]   ;;  %s9089_s3 = inlined_call_operand.hbm [shape: f32[250,128], index: 3, kind: output, shape index: {}]  }
   0x1   :  { %v54_v0 = vld [vmem:[%s9087_s1 + $0x38] sm:$0xff]  ;;  %v53_v1 = vld [vmem:[%s9087_s1 + $0x30] sm:$0xff]  ;;  %v52_v2 = vld [vmem:[%s9087_s1 + $0x28] sm:$0xff] }
   0x2   :  { %164 = vmatpush.msra.mxu0 %v54_v0  ;;  %5407 = vmatpush.msra.mxu1 %v54_v0  ;;  %v51_v3 = vld [vmem:[%s9087_s1 + $0x20] sm:$0xff]  ;;  %v50_v4 = vld [vmem:[%s9087_s1 + $0x18] sm:$0xff] }
   0x3   :  { %5408 = vmatpush.msra.mxu2 %v54_v0  ;;  %5409 = vmatpush.msra.mxu3 %v54_v0 }
   0x4   :  { %165 = vmatpush.msra.mxu0 %v53_v1  ;;  %5410 = vmatpush.msra.mxu1 %v53_v1 }
   0x5   :  { %5411 = vmatpush.msra.mxu2 %v53_v1  ;;  %5412 = vmatpush.msra.mxu3 %v53_v1 }
   0x6   :  { %166 = vmatpush.msra.mxu0 %v52_v2  ;;  %5413 = vmatpush.msra.mxu1 %v52_v2 }
   0x7   :  { %5414 = vmatpush.msra.mxu2 %v52_v2  ;;  %5415 = vmatpush.msra.mxu3 %v52_v2 }
   0x8   :  { %167 = vmatpush.msra.mxu0 %v51_v3  ;;  %5416 = vmatpush.msra.mxu1 %v51_v3 }
   0x9   :  { %8 = vsyncpa [#allocation3], 0  ;;  %5417 = vmatpush.msra.mxu2 %v51_v3  ;;  %5418 = vmatpush.msra.mxu3 %v51_v3  ;;  %v49_v5 = vld [vmem:[%s9087_s1 + $0x10] sm:$0xff]  ;;  %v48_v6 = vld [vmem:[%s9087_s1 + $0x8] sm:$0xff]  ;;  %vm59_vm0 = vcmask 523264   ;;  %s5267_s26 = sshll.u32 %s9089_s3, 4  ;;  %s5268_s26 = int_to_ptr.hbm [resolvable:$true] %s5267_s26 }
   0xa   :  { %168 = vmatpush.msra.mxu0 %v50_v4  ;;  %5419 = vmatpush.msra.mxu1 %v50_v4  ;;  %v47_v7 = vld [vmem:[%s9087_s1] sm:$0xff]  ;;  %v16_v12 = vld [vmem:[%s9086_s0 + $0x8] sm:$0xff]  ;;  %v17_v16 = vld [vmem:[%s9086_s0 + $0x10] sm:$0xff]  ;;  %s5483_s27 = smov 128   ;;  %s5484_s28 = smov 8  }
   0xb   :  { %5420 = vmatpush.msra.mxu2 %v50_v4  ;;  %5421 = vmatpush.msra.mxu3 %v50_v4  ;;  %v15_v8 = vld [vmem:[%s9086_s0] sm:$0xff]  ;;  %v24_v13 = vld [vmem:[%s9086_s0 + $0x48] sm:$0xff]  ;;  %v25_v17 = vld [vmem:[%s9086_s0 + $0x50] sm:$0xff]  ;;  %v5475_v4 = vmov 683565275  }
   0xc   :  { %169 = vmatpush.msra.mxu0 %v49_v5  ;;  %5422 = vmatpush.msra.mxu1 %v49_v5  ;;  %v23_v9 = vld [vmem:[%s9086_s0 + $0x40] sm:$0xff]  ;;  %v32_v14 = vld [vmem:[%s9086_s0 + $0x88] sm:$0xff]  ;;  %v33_v18 = vld [vmem:[%s9086_s0 + $0x90] sm:$0xff] }
   0xd   :  { %5423 = vmatpush.msra.mxu2 %v49_v5  ;;  %5424 = vmatpush.msra.mxu3 %v49_v5  ;;  %v31_v10 = vld [vmem:[%s9086_s0 + $0x80] sm:$0xff]  ;;  %v40_v15 = vld [vmem:[%s9086_s0 + $0xc8] sm:$0xff]  ;;  %v41_v19 = vld [vmem:[%s9086_s0 + $0xd0] sm:$0xff] }
   0xe   :  { %170 = vmatpush.msra.mxu0 %v48_v6  ;;  %5425 = vmatpush.msra.mxu1 %v48_v6  ;;  %v39_v11 = vld [vmem:[%s9086_s0 + $0xc0] sm:$0xff]  ;;  %v18_v20 = vld [vmem:[%s9086_s0 + $0x18] sm:$0xff]  ;;  %v20_v28 = vld [vmem:[%s9086_s0 + $0x28] sm:$0xff] }
   0xf   :  { %5426 = vmatpush.msra.mxu2 %v48_v6  ;;  %5427 = vmatpush.msra.mxu3 %v48_v6  ;;  %v26_v21 = vld [vmem:[%s9086_s0 + $0x58] sm:$0xff]  ;;  %v19_v24 = vld [vmem:[%s9086_s0 + $0x20] sm:$0xff]  ;;  %v28_v29 = vld [vmem:[%s9086_s0 + $0x68] sm:$0xff]  ;;  %v5476_v6 = vmov 2475754826  }
  0x10   :  { %171 = vmatpush.msra.mxu0 %v47_v7  ;;  %5428 = vmatpush.msra.mxu1 %v47_v7  ;;  %v34_v22 = vld [vmem:[%s9086_s0 + $0x98] sm:$0xff]  ;;  %v27_v25 = vld [vmem:[%s9086_s0 + $0x60] sm:$0xff]  ;;  %v36_v30 = vld [vmem:[%s9086_s0 + $0xa8] sm:$0xff] }
  0x11   :  { %5429 = vmatpush.msra.mxu2 %v47_v7  ;;  %5430 = vmatpush.msra.mxu3 %v47_v7  ;;  %v42_v23 = vld [vmem:[%s9086_s0 + $0xd8] sm:$0xff]  ;;  %v35_v26 = vld [vmem:[%s9086_s0 + $0xa0] sm:$0xff]  ;;  %v44_v31 = vld [vmem:[%s9086_s0 + $0xe8] sm:$0xff] }
  0x12   :  { %5279 = vmatmul.msk.f32.vlgmr.msra.gmra.mxu0 %vm59_vm0, %v15_v8  ;;  %5287 = vmatmul.msk.f32.vlgmr.msra.gmra.mxu1 %vm59_vm0, %v23_v9  ;;  %v43_v27 = vld [vmem:[%s9086_s0 + $0xe0] sm:$0xff]  ;;  %v21_v32 = vld [vmem:[%s9086_s0 + $0x30] sm:$0xff]  ;;  %v22_v36 = vld [vmem:[%s9086_s0 + $0x38] sm:$0xff]  ;;  %v5477_v8 = vmov 2131351028  }
  0x13   :  { %5295 = vmatmul.msk.f32.vlgmr.msra.gmra.mxu2 %vm59_vm0, %v31_v10  ;;  %5303 = vmatmul.msk.f32.vlgmr.msra.gmra.mxu3 %vm59_vm0, %v39_v11  ;;  %v29_v33 = vld [vmem:[%s9086_s0 + $0x70] sm:$0xff]  ;;  %v30_v37 = vld [vmem:[%s9086_s0 + $0x78] sm:$0xff]  ;;  %v5660_v40 = vld [vmem:[%s9088_s2] ss:$0 sm:$0xff]  ;;  %v5478_v10 = vmov 2102212464  }
  0x14   :  { %v37_v34 = vld [vmem:[%s9086_s0 + $0xb0] sm:$0xff]  ;;  %v38_v38 = vld [vmem:[%s9086_s0 + $0xb8] sm:$0xff] }
  0x15   :  { %v45_v35 = vld [vmem:[%s9086_s0 + $0xf0] sm:$0xff]  ;;  %v46_v39 = vld [vmem:[%s9086_s0 + $0xf8] sm:$0xff] }
  0x1a   :  { %5280 = vmatmul.msk.f32.gmra.mxu0 %vm59_vm0, %v16_v12  ;;  %5288 = vmatmul.msk.f32.gmra.mxu1 %vm59_vm0, %v24_v13  ;;  %v5479_v12 = vmov 920167782  }
  0x1b   :  { %5296 = vmatmul.msk.f32.gmra.mxu2 %vm59_vm0, %v32_v14  ;;  %5304 = vmatmul.msk.f32.gmra.mxu3 %vm59_vm0, %v40_v15 }
  0x22   :  { %5281 = vmatmul.msk.f32.gmra.mxu0 %vm59_vm0, %v17_v16  ;;  %5289 = vmatmul.msk.f32.gmra.mxu1 %vm59_vm0, %v25_v17 }
  0x23   :  { %5297 = vmatmul.msk.f32.gmra.mxu2 %vm59_vm0, %v33_v18  ;;  %5305 = vmatmul.msk.f32.gmra.mxu3 %vm59_vm0, %v41_v19 }
  0x2a   :  { %5282 = vmatmul.msk.f32.gmra.mxu0 %vm59_vm0, %v18_v20  ;;  %5290 = vmatmul.msk.f32.gmra.mxu1 %vm59_vm0, %v26_v21  ;;  %v5480_v21 = vmov 1326507024  }
  0x2b   :  { %5298 = vmatmul.msk.f32.gmra.mxu2 %vm59_vm0, %v34_v22  ;;  %5306 = vmatmul.msk.f32.gmra.mxu3 %vm59_vm0, %v42_v23 }
  0x32   :  { %5283 = vmatmul.msk.f32.gmra.mxu0 %vm59_vm0, %v19_v24  ;;  %5291 = vmatmul.msk.f32.gmra.mxu1 %vm59_vm0, %v27_v25 }
  0x33   :  { %5299 = vmatmul.msk.f32.gmra.mxu2 %vm59_vm0, %v35_v26  ;;  %5307 = vmatmul.msk.f32.gmra.mxu3 %vm59_vm0, %v43_v27 }
  0x3a   :  { %5284 = vmatmul.msk.f32.gmra.mxu0 %vm59_vm0, %v20_v28  ;;  %5292 = vmatmul.msk.f32.gmra.mxu1 %vm59_vm0, %v28_v29 }
  0x3b   :  { %5300 = vmatmul.msk.f32.gmra.mxu2 %vm59_vm0, %v36_v30  ;;  %5308 = vmatmul.msk.f32.gmra.mxu3 %vm59_vm0, %v44_v31 }
  0x42   :  { %5285 = vmatmul.msk.f32.gmra.mxu0 %vm59_vm0, %v21_v32  ;;  %5293 = vmatmul.msk.f32.gmra.mxu1 %vm59_vm0, %v29_v33 }
  0x43   :  { %5301 = vmatmul.msk.f32.gmra.mxu2 %vm59_vm0, %v37_v34  ;;  %5309 = vmatmul.msk.f32.gmra.mxu3 %vm59_vm0, %v45_v35 }
  0x4a   :  { %5286 = vmatmul.msk.f32.gmra.mxu0 %vm59_vm0, %v22_v36  ;;  %5294 = vmatmul.msk.f32.gmra.mxu1 %vm59_vm0, %v30_v37 }
  0x4b   :  { %5302 = vmatmul.msk.f32.gmra.mxu2 %vm59_vm0, %v38_v38  ;;  %5310 = vmatmul.msk.f32.gmra.mxu3 %vm59_vm0, %v46_v39 }
  0x8f   :  { %v173_v41 = vpop.f32.mrf.mxu0  ;;  %v197_v42 = vpop.f32.mrf.mxu1 }
  0x90   :  { %v5663_v43 = vadd.f32 %v5660_v40, %v173_v41  ;;  %v5666_v44 = vadd.f32 %v5660_v40, %v197_v42 }
  0x92   :  { %v269_v45 = vand.u32 2147483647, %v5663_v43  ;;  %v272_v46 = vand.u32 2139095040, %v5663_v43  ;;  %v1509_v47 = vand.u32 2147483647, %v5666_v44  ;;  %v1512_v48 = vand.u32 2139095040, %v5666_v44 }
  0x94   :  { %v273_v49 = vshrl.u32 %v272_v46, 23  ;;  %v276_v50 = vand.u32 8388607, %v269_v45  ;;  %v1513_v51 = vshrl.u32 %v1512_v48, 23  ;;  %v1516_v55 = vand.u32 8388607, %v1509_v47 }
  0x96   :  { %v5311_v52 = vadd.s32 4294967169, %v273_v49  ;;  %v277_v53 = vor.u32 8388608, %v276_v50  ;;  %v5335_v54 = vadd.s32 4294967169, %v1513_v51  ;;  %v221_v58 = vpop.f32.mrf.mxu2  ;;  %v1517_v61 = vor.u32 8388608, %v1516_v55 }
  0x97   :  { %v5683_v2 = vadd.f32 %v5660_v40, %v221_v58 }
  0x98   :  { %v279_v56 = vadd.s32 1, %v5311_v52  ;;  %v1519_v57 = vadd.s32 1, %v5335_v54  ;;  %v5676_v60 = vshll.u32 %v277_v53, 8  ;;  %v5691_v15 = vshll.u32 %v1517_v61, 8 }
  0x99   :  { %v2752_v29 = vand.u32 2139095040, %v5683_v2 }
  0x9a   :  { %vm280_vm1 = vcmp.gt.s32.totalorder %v279_v56, 0  ;;  %vm1520_vm2 = vcmp.gt.s32.totalorder %v1519_v57, 0  ;;  %v318_v14 = vand.u32 65535, %v5676_v60  ;;  %v319_v19 = vshrl.u32 %v5676_v60, 16 }
  0x9b   :  { %v281_v59 = vsel %vm280_vm1, %v279_v56, 0  ;;  %v1521_v63 = vsel %vm1520_vm2, %v1519_v57, 0  ;;  %v5735_v49 = vand.u32 65535, %v5691_v15 }
  0x9c   :  { %v283_v62 = vand.u32 31, %v281_v59  ;;  %v5678_v0 = vshrl.u32 %v281_v59, 5  ;;  %v5680_v1 = vand.u32 31, %v1521_v63  ;;  %v5741_v56 = vshrl.u32 %v1521_v63, 5 }
  0x9e   :  { %v284_v3 = vsub.s32 32, %v283_v62  ;;  %v286_v5 = vshll.u32 %v5475_v4, %v283_v62  ;;  %v289_v7 = vshll.u32 %v5476_v6, %v283_v62  ;;  %v292_v9 = vshll.u32 %v5477_v8, %v283_v62 }
  0x9f   :  { %v295_v11 = vshll.u32 %v5478_v10, %v283_v62  ;;  %v298_v13 = vshll.u32 %v5479_v12, %v283_v62  ;;  %vm301_vm3 = vcmp.lt.s32.totalorder %v5678_v0, 1  ;;  %vm304_vm4 = vcmp.lt.s32.totalorder %v5678_v0, 4 }
  0xa0   :  { %v287_v16 = vshrl.u32 %v5476_v6, %v284_v3  ;;  %v290_v17 = vshrl.u32 %v5477_v8, %v284_v3  ;;  %v293_v18 = vshrl.u32 %v5478_v10, %v284_v3  ;;  %v296_v20 = vshrl.u32 %v5479_v12, %v284_v3 }
  0xa1   :  { %v299_v22 = vshrl.u32 %v5480_v21, %v284_v3  ;;  %v5702_v26 = vsub.s32 32, %v5680_v1  ;;  %vm303_vm5 = vcmp.lt.s32.totalorder %v5678_v0, 3  ;;  %v285_v30 = vshrl.u32 %v5475_v4, %v284_v3 }
  0xa2   :  { %v288_v23 = vor.u32 %v287_v16, %v286_v5  ;;  %v291_v24 = vor.u32 %v290_v17, %v289_v7  ;;  %v294_v25 = vor.u32 %v293_v18, %v292_v9  ;;  %v297_v27 = vor.u32 %v296_v20, %v295_v11 }
  0xa3   :  { %v300_v28 = vor.u32 %v299_v22, %v298_v13  ;;  %vm302_vm6 = vcmp.lt.s32.totalorder %v5678_v0, 2  ;;  %v1526_v35 = vshll.u32 %v5475_v4, %v5680_v1  ;;  %v1529_v36 = vshll.u32 %v5476_v6, %v5680_v1 }
  0xa4   :  { %v309_v31 = vsel %vm301_vm3, %v288_v23, %v291_v24  ;;  %v313_v32 = vsel %vm301_vm3, %v291_v24, %v294_v25  ;;  %v310_v33 = vsel %vm304_vm4, %v297_v27, 920167782  ;;  %v306_v37 = vsel %vm304_vm4, %v294_v25, 2102212464 }
  0xa5   :  { %v314_v34 = vsel %vm304_vm4, %v300_v28, 1326507024  ;;  %v311_v38 = vsel %vm303_vm5, %v294_v25, %v310_v33  ;;  %v1527_v41 = vshrl.u32 %v5476_v6, %v5702_v26  ;;  %v1530_v48 = vshrl.u32 %v5477_v8, %v5702_v26 }
  0xa6   :  { %v315_v39 = vsel %vm303_vm5, %v297_v27, %v314_v34  ;;  %v312_v42 = vsel %vm302_vm6, %v309_v31, %v311_v38  ;;  %v305_v54 = vsel %vm301_vm3, %v285_v30, %v288_v23  ;;  %v307_v55 = vsel %vm303_vm5, %v291_v24, %v306_v37 }
  0xa7   :  { %v316_v46 = vsel %vm302_vm6, %v313_v32, %v315_v39  ;;  %v342_v52 = vand.u32 65535, %v312_v42  ;;  %v343_v53 = vshrl.u32 %v312_v42, 16  ;;  %v5743_v57 = vor.u32 %v1527_v41, %v1526_v35 }
  0xa8   :  { %v320_v50 = vand.u32 65535, %v316_v46  ;;  %v321_v51 = vshrl.u32 %v316_v46, 16  ;;  %v5745_v61 = vor.u32 %v1530_v48, %v1529_v36  ;;  %v1532_v62 = vshll.u32 %v5477_v8, %v5680_v1 }
  0xa9   :  { %v345_v5 = vmul.u32 %v343_v53, %v318_v14  ;;  %v346_v7 = vmul.u32 %v342_v52, %v319_v19  ;;  %v1533_v9 = vshrl.u32 %v5478_v10, %v5702_v26  ;;  %v344_v16 = vmul.u32 %v342_v52, %v318_v14 }
  0xaa   :  { %v323_v58 = vmul.u32 %v321_v51, %v318_v14  ;;  %v324_v59 = vmul.u32 %v320_v50, %v319_v19  ;;  %v322_v3 = vmul.u32 %v320_v50, %v318_v14  ;;  %v325_v11 = vmul.u32 %v321_v51, %v319_v19 }
  0xab   :  { %v347_v63 = vmul.u32 %v343_v53, %v319_v19  ;;  %v348_v22 = vshll.u32 %v345_v5, 16  ;;  %v350_v24 = vshll.u32 %v346_v7, 16  ;;  %v1535_v25 = vshll.u32 %v5478_v10, %v5680_v1 }
  0xac   :  { %v326_v13 = vshll.u32 %v323_v58, 16  ;;  %v327_v17 = vshrl.u32 %v323_v58, 16  ;;  %v328_v18 = vshll.u32 %v324_v59, 16  ;;  %v329_v20 = vshrl.u32 %v324_v59, 16 }
  0xad   :  { %v5481_v27 = vmov 0   ;;  %vm352_vm8 = vc.u32 %v344_v16, %v348_v22  ;;  %v354_v30 = vadd.s32 %v348_v22, %v344_v16  ;;  %v1536_v31 = vshrl.u32 %v5479_v12, %v5702_v26 }
  0xae   :  { %vm330_vm7 = vc.u32 %v322_v3, %v326_v13  ;;  %v332_v23 = vadd.s32 %v326_v13, %v322_v3  ;;  %v353_v19 = vsel %vm352_vm8, 1, %v5481_v27  ;;  %v1538_v32 = vshll.u32 %v5479_v12, %v5680_v1 }
  0xaf   :  { %v331_v28 = vsel %vm330_vm7, 1, %v5481_v27  ;;  %v355_v34 = vadd.s32 %v353_v19, %v347_v63  ;;  %vm356_vm10 = vc.u32 %v354_v30, %v350_v24  ;;  %v1534_v35 = vor.u32 %v1533_v9, %v1532_v62 }
  0xb0   :  { %v333_v14 = vadd.s32 %v331_v28, %v325_v11  ;;  %vm334_vm9 = vc.u32 %v332_v23, %v328_v18  ;;  %v357_v37 = vsel %vm356_vm10, 1, %v5481_v27  ;;  %v1537_v38 = vor.u32 %v1536_v31, %v1535_v25 }
  0xb1   :  { %v335_v33 = vsel %vm334_vm9, 1, %v5481_v27  ;;  %v1539_v39 = vshrl.u32 %v5480_v21, %v5702_v26  ;;  %v349_v41 = vshrl.u32 %v345_v5, 16  ;;  %v359_v42 = vadd.s32 %v357_v37, %v355_v34 }
  0xb2   :  { %v337_v36 = vadd.s32 %v335_v33, %v333_v14  ;;  %vm1541_vm11 = vcmp.lt.s32.totalorder %v5741_v56, 1  ;;  %vm1543_vm12 = vcmp.lt.s32.totalorder %v5741_v56, 3  ;;  %v351_v1 = vshrl.u32 %v346_v7, 16 }
  0xb3   :  { %v1540_v48 = vor.u32 %v1539_v39, %v1538_v32  ;;  %vm1544_vm13 = vcmp.lt.s32.totalorder %v5741_v56, 4  ;;  %v5766_v50 = vadd.s32 %v354_v30, %v350_v24  ;;  %v360_v51 = vadd.s32 %v359_v42, %v349_v41 }
  0xb4   :  { %v338_v46 = vadd.s32 %v337_v36, %v327_v17  ;;  %v1549_v52 = vsel %vm1541_vm11, %v5743_v57, %v5745_v61  ;;  %v1550_v53 = vsel %vm1544_vm13, %v1537_v38, 920167782  ;;  %vm1542_vm14 = vcmp.lt.s32.totalorder %v5741_v56, 2 }
  0xb5   :  { %v1551_v59 = vsel %vm1543_vm12, %v1534_v35, %v1550_v53  ;;  %v1553_v62 = vsel %vm1541_vm11, %v5745_v61, %v1534_v35  ;;  %v308_v3 = vsel %vm302_vm6, %v305_v54, %v307_v55  ;;  %v361_v5 = vadd.s32 %v360_v51, %v351_v1 }
  0xb6   :  { %v5774_v58 = vadd.s32 %v338_v46, %v329_v20  ;;  %v1552_v7 = vsel %vm1542_vm14, %v1549_v52, %v1551_v59  ;;  %v1554_v9 = vsel %vm1544_vm13, %v1540_v48, 1326507024  ;;  %v1559_v13 = vshrl.u32 %v5691_v15, 16 }
  0xb7   :  { %v1555_v11 = vsel %vm1543_vm12, %v1537_v38, %v1554_v9  ;;  %v1582_v16 = vand.u32 65535, %v1552_v7  ;;  %v365_v63 = vadd.s32 1, %v361_v5  ;;  %v1583_v54 = vshrl.u32 %v1552_v7, 16 }
  0xb8   :  { %vm364_vm15 = vc.u32 %v5774_v58, %v5766_v50  ;;  %v1556_v0 = vsel %vm1542_vm14, %v1553_v62, %v1555_v11  ;;  %v2753_v55 = vshrl.u32 %v2752_v29, 23  ;;  %v362_v17 = vmul.u32 %v5676_v60, %v308_v3 }
  0xb9   :  { %v1560_v18 = vand.u32 65535, %v1556_v0  ;;  %v1561_v20 = vshrl.u32 %v1556_v0, 16  ;;  %v2749_v22 = vand.u32 2147483647, %v5683_v2  ;;  %v366_v23 = vsel %vm364_vm15, %v365_v63, %v361_v5 }
  0xba   :  { %v1525_v24 = vshrl.u32 %v5475_v4, %v5702_v26  ;;  %v1585_v25 = vmul.u32 %v1583_v54, %v5735_v49  ;;  %v1586_v28 = vmul.u32 %v1582_v16, %v1559_v13  ;;  %v367_v30 = vadd.s32 %v366_v23, %v362_v17 }
  0xbb   :  { %v1546_v31 = vsel %vm1544_vm13, %v1534_v35, 2102212464  ;;  %v1563_v14 = vmul.u32 %v1561_v20, %v5735_v49  ;;  %v1564_v29 = vmul.u32 %v1560_v18, %v1559_v13  ;;  %v1584_v60 = vmul.u32 %v1582_v16, %v5735_v49 }
  0xbc   :  { %v1587_v19 = vmul.u32 %v1583_v54, %v1559_v13  ;;  %v1588_v32 = vshll.u32 %v1585_v25, 16  ;;  %v5359_v33 = vadd.s32 4294967169, %v2753_v55  ;;  %v368_v34 = vadd.s32 536870912, %v367_v30 }
  0xbd   :  { %v1562_v36 = vmul.u32 %v1560_v18, %v5735_v49  ;;  %v1565_v37 = vmul.u32 %v1561_v20, %v1559_v13  ;;  %v1566_v26 = vshll.u32 %v1563_v14, 16  ;;  %v1568_v38 = vshll.u32 %v1564_v29, 16 }
  0xbe   :  { %v1590_v39 = vshll.u32 %v1586_v28, 16  ;;  %vm1592_vm0 = vc.u32 %v1584_v60, %v1588_v32  ;;  %v1594_v41 = vadd.s32 %v1588_v32, %v1584_v60  ;;  %v369_v42 = vshrl.u32 %v368_v34, 30 }
  0xbf   :  { %vm1570_vm1 = vc.u32 %v1562_v36, %v1566_v26  ;;  %v1572_v35 = vadd.s32 %v1566_v26, %v1562_v36  ;;  %v1593_v46 = vsel %vm1592_vm0, 1, %v5481_v27  ;;  %v2756_v51 = vand.u32 8388607, %v2749_v22 }
  0xc0   :  { %v1571_v1 = vsel %vm1570_vm1, 1, %v5481_v27  ;;  %v1595_v48 = vadd.s32 %v1593_v46, %v1587_v19  ;;  %vm1596_vm2 = vc.u32 %v1594_v41, %v1590_v39  ;;  %v370_v52 = vshll.u32 %v369_v42, 30 }
  0xc1   :  { %v1545_v49 = vsel %vm1541_vm11, %v1525_v24, %v5743_v57  ;;  %v1573_v53 = vadd.s32 %v1571_v1, %v1565_v37  ;;  %vm1574_vm3 = vc.u32 %v1572_v35, %v1568_v38  ;;  %v1547_v59 = vsel %vm1543_vm12, %v5745_v61, %v1546_v31 }
  0xc2   :  { %v1575_v62 = vsel %vm1574_vm3, 1, %v5481_v27  ;;  %v1597_v3 = vsel %vm1596_vm2, 1, %v5481_v27  ;;  %v2759_v5 = vadd.s32 1, %v5359_v33  ;;  %v371_v7 = vsub.s32 %v367_v30, %v370_v52 }
  0xc3   :  { %v1567_v9 = vshrl.u32 %v1563_v14, 16  ;;  %v1577_v11 = vadd.s32 %v1575_v62, %v1573_v53  ;;  %v1599_v13 = vadd.s32 %v1597_v3, %v1595_v48  ;;  %vm271_vm4 = vcmp.lt.s32.totalorder %v5663_v43, 0 }
  0xc4   :  { %v393_v16 = vsub.s32 4, %v369_v42  ;;  %v1589_v63 = vshrl.u32 %v1585_v25, 16  ;;  %vm2760_vm5 = vcmp.gt.s32.totalorder %v2759_v5, 0  ;;  %vm372_vm6 = vcmp.lt.s32.totalorder %v371_v7, 0 }
  0xc5   :  { %v373_v57 = vsub.s32 0, %v371_v7  ;;  %v1569_v0 = vshrl.u32 %v1564_v29, 16  ;;  %v1578_v54 = vadd.s32 %v1577_v11, %v1567_v9  ;;  %v1548_v61 = vsel %vm1542_vm14, %v1545_v49, %v1547_v59 }
  0xc6   :  { %v1591_v55 = vshrl.u32 %v1586_v28, 16  ;;  %v1600_v17 = vadd.s32 %v1599_v13, %v1589_v63  ;;  %v2761_v18 = vsel %vm2760_vm5, %v2759_v5, 0  ;;  %v5824_v24 = vadd.s32 %v1594_v41, %v1590_v39 }
  0xc7   :  { %v374_v20 = vsel %vm372_vm6, %v373_v57, %v371_v7  ;;  %v5822_v23 = vadd.s32 %v1578_v54, %v1569_v0  ;;  %v2757_v30 = vor.u32 8388608, %v2756_v51  ;;  %v394_v25 = vsel %vm271_vm4, %v393_v16, %v369_v42 }
  0xc8   :  { %v375_v31 = vclz %v374_v20  ;;  %v1601_v14 = vadd.s32 %v1600_v17, %v1591_v55  ;;  %v2763_v60 = vand.u32 31, %v2761_v18  ;;  %vm5830_vm7 = vcmp.le.f32.partialorder %v269_v45, 0.7853982 }
  0xc9   :  { %v363_v28 = vadd.s32 %v5766_v50, %v5774_v58  ;;  %v1602_v29 = vmul.u32 %v5691_v15, %v1548_v61  ;;  %vm1604_vm8 = vc.u32 %v5822_v23, %v5824_v24  ;;  %v396_v34 = vsel %vm5830_vm7, 0, %v394_v25 }
  0xca   :  { %v5312_v19 = vadd.s32 4294967294, %v375_v31  ;;  %v1605_v32 = vadd.s32 1, %v1601_v14  ;;  %v2764_v33 = vsub.s32 32, %v2763_v60  ;;  %v5841_v36 = vshrl.u32 %v2761_v18, 5 }
  0xcb   :  { %v2766_v45 = vshll.u32 %v5475_v4, %v2763_v60  ;;  %v5844_v37 = vshll.u32 %v2757_v30, 8  ;;  %v2769_v15 = vshll.u32 %v5476_v6, %v2763_v60  ;;  %v2772_v41 = vshll.u32 %v5477_v8, %v2763_v60 }
  0xcc   :  { %vm5313_vm9 = vcmp.lt.s32.totalorder %v5312_v19, 0  ;;  %v1606_v26 = vsel %vm1604_vm8, %v1605_v32, %v1601_v14  ;;  %v2767_v50 = vshrl.u32 %v5476_v6, %v2764_v33  ;;  %v2770_v39 = vshrl.u32 %v5477_v8, %v2764_v33 }
  0xcd   :  { %v378_v58 = vsel %vm5313_vm9, 0, %v5312_v19  ;;  %v1607_v38 = vadd.s32 %v1606_v26, %v1602_v29  ;;  %v2773_v46 = vshrl.u32 %v5478_v10, %v2764_v33  ;;  %v2775_v1 = vshll.u32 %v5478_v10, %v2763_v60  ;;  %v245_v26 = vpop.f32.mrf.mxu3 }
  0xce   :  { %v379_v42 = vsub.s32 32, %v378_v58  ;;  %v383_v35 = vsub.s32 4294967266, %v378_v58  ;;  %v380_v48 = vshll.u32 %v371_v7, %v378_v58  ;;  %v2768_v52 = vor.u32 %v2767_v50, %v2766_v45 }
  0xcf   :  { %v1608_v51 = vadd.s32 536870912, %v1607_v38  ;;  %v2776_v49 = vshrl.u32 %v5479_v12, %v2764_v33  ;;  %v2771_v62 = vor.u32 %v2770_v39, %v2769_v15  ;;  %v2779_v3 = vshrl.u32 %v5480_v21, %v2764_v33 }
  0xd0   :  { %v381_v53 = vshrl.u32 %v363_v28, %v379_v42  ;;  %v384_v59 = vadd.s32 127, %v383_v35  ;;  %v413_v5 = vadd.s32 3, %v396_v34  ;;  %v2774_v63 = vor.u32 %v2773_v46, %v2772_v41 }
  0xd1   :  { %v1609_v9 = vshrl.u32 %v1608_v51, 30  ;;  %v2777_v11 = vor.u32 %v2776_v49, %v2775_v1  ;;  %v2778_v57 = vshll.u32 %v5479_v12, %v2763_v60  ;;  %vm1511_vm10 = vcmp.lt.s32.totalorder %v5666_v44, 0 }
  0xd2   :  { %v382_v13 = vor.u32 %v381_v53, %v380_v48  ;;  %v385_v16 = vshll.u32 %v384_v59, 23  ;;  %vm2781_vm11 = vcmp.lt.s32.totalorder %v5841_v36, 1  ;;  %v2798_v0 = vand.u32 65535, %v5844_v37 }
  0xd3   :  { %v1610_v7 = vshll.u32 %v1609_v9, 30  ;;  %v2799_v54 = vshrl.u32 %v5844_v37, 16  ;;  %v2780_v55 = vor.u32 %v2779_v3, %v2778_v57  ;;  %vm2784_vm12 = vcmp.lt.s32.totalorder %v5841_v36, 4 }
  0xd4   :  { %v386_v61 = vor.u32 4788187, %v385_v16  ;;  %v2789_v17 = vsel %vm2781_vm11, %v2768_v52, %v2771_v62  ;;  %v5862_v18 = vand.u32 3, %v413_v5  ;;  %vm2783_vm13 = vcmp.lt.s32.totalorder %v5841_v36, 3 }
  0xd5   :  { %v5864_v20 = vsub.s32 %v1607_v38, %v1610_v7  ;;  %v2790_v30 = vsel %vm2784_vm12, %v2777_v11, 920167782  ;;  %v389_v25 = vcvt.s32.f32 %v382_v13  ;;  %vm2782_vm14 = vcmp.lt.s32.totalorder %v5841_v36, 2 }
  0xd6   :  { %v387_v31 = vand.u32 2147483647, %v386_v61  ;;  %v2791_v14 = vsel %vm2783_vm13, %v2774_v63, %v2790_v30  ;;  %v2765_v28 = vshrl.u32 %v5475_v4, %v2764_v33  ;;  %v1633_v32 = vsub.s32 4, %v1609_v9 }
  0xd7   :  { %vm1612_vm15 = vcmp.lt.s32.totalorder %v5864_v20, 0  ;;  %v1613_v60 = vsub.s32 0, %v5864_v20  ;;  %v2792_v29 = vsel %vm2782_vm14, %v2789_v17, %v2791_v14  ;;  %v2793_v34 = vsel %vm2781_vm11, %v2771_v62, %v2774_v63 }
  0xd8   :  { %v390_v19 = vmul.f32 %v389_v25, %v387_v31  ;;  %v2794_v45 = vsel %vm2784_vm12, %v2780_v55, 1326507024  ;;  %v2786_v15 = vsel %vm2784_vm12, %v2774_v63, 2102212464  ;;  %v2822_v58 = vand.u32 65535, %v2792_v29 }
  0xd9   :  { %v1614_v50 = vsel %vm1612_vm15, %v1613_v60, %v5864_v20  ;;  %v2795_v33 = vsel %vm2783_vm13, %v2777_v11, %v2794_v45  ;;  %v2823_v42 = vshrl.u32 %v2792_v29, 16  ;;  %v1603_v35 = vadd.s32 %v5824_v24, %v5822_v23 }
  0xda   :  { %v391_v38 = vxor.u32 2147483648, %v390_v19  ;;  %v1615_v39 = vclz %v1614_v50  ;;  %v2796_v41 = vsel %vm2782_vm14, %v2793_v34, %v2795_v33  ;;  %v5892_v46 = vsel %vm2781_vm11, %v2765_v28, %v2768_v52 }
  0xdb   :  { %v2800_v1 = vand.u32 65535, %v2796_v41  ;;  %v5895_v48 = vadd.f32 %v5660_v40, %v245_v26  ;;  %v5901_v53 = vsel %vm1511_vm10, %v1633_v32, %v1609_v9  ;;  %v2801_v59 = vshrl.u32 %v2796_v41, 16 }
  0xdc   :  { %v392_v51 = vsel %vm271_vm4, %v391_v38, %v390_v19  ;;  %v5336_v49 = vadd.s32 4294967294, %v1615_v39  ;;  %v5910_v24 = vsel %vm2783_vm13, %v2771_v62, %v2786_v15  ;;  %v2824_v3 = vmul.u32 %v2822_v58, %v2798_v0 }
  0xdd   :  { %v5906_v23 = vsel %vm5830_vm7, %v5663_v43, %v392_v51  ;;  %v2804_v52 = vmul.u32 %v2800_v1, %v2799_v54  ;;  %v2803_v11 = vmul.u32 %v2801_v59, %v2798_v0  ;;  %v5914_v13 = vmul.u32 %v2823_v42, %v2798_v0 }
  0xde   :  { %v397_v5 = vmul.f32 %v5906_v23, %v5906_v23  ;;  %vm5337_vm0 = vcmp.lt.s32.totalorder %v5336_v49, 0  ;;  %v2802_v16 = vmul.u32 %v2800_v1, %v2798_v0  ;;  %v2805_v63 = vmul.u32 %v2801_v59, %v2799_v54 }
  0xdf   :  { %v1618_v9 = vsel %vm5337_vm0, 0, %v5336_v49  ;;  %v5916_v57 = vmul.u32 %v2822_v58, %v2799_v54  ;;  %v2808_v55 = vshll.u32 %v2804_v52, 16  ;;  %v2806_v17 = vshll.u32 %v2803_v11, 16 }
  0xe0   :  { %v398_v56 = vmul.f32 -0.001358992, %v397_v5  ;;  %v405_v7 = vmul.f32 -0.00019511016, %v397_v5  ;;  %v1619_v61 = vsub.s32 32, %v1618_v9  ;;  %v1623_v62 = vsub.s32 4294967266, %v1618_v9 }
  0xe1   :  { %v2809_v30 = vshrl.u32 %v2804_v52, 16  ;;  %v2827_v31 = vmul.u32 %v2823_v42, %v2799_v54  ;;  %v1620_v60 = vshll.u32 %v5864_v20, %v1618_v9  ;;  %vm2810_vm1 = vc.u32 %v2802_v16, %v2806_v17 }
  0xe2   :  { %v399_v25 = vadd.f32 0.041655596, %v398_v56  ;;  %v406_v14 = vadd.f32 0.008332121, %v405_v7  ;;  %v1621_v28 = vshrl.u32 %v1603_v35, %v1619_v61  ;;  %v1624_v29 = vadd.s32 127, %v1623_v62 }
  0xe3   :  { %v2812_v19 = vadd.s32 %v2806_v17, %v2802_v16  ;;  %v2828_v0 = vshll.u32 %v5914_v13, 16  ;;  %v2811_v26 = vsel %vm2810_vm1, 1, %v5481_v27  ;;  %vm5923_vm2 = vcmp.le.f32.partialorder %v1509_v47, 0.7853982 }
  0xe4   :  { %v400_v32 = vmul.f32 %v399_v25, %v397_v5  ;;  %v407_v34 = vmul.f32 %v406_v14, %v397_v5  ;;  %v1622_v45 = vor.u32 %v1621_v28, %v1620_v60  ;;  %v1625_v54 = vshll.u32 %v1624_v29, 23 }
  0xe5   :  { %v2807_v15 = vshrl.u32 %v2803_v11, 16  ;;  %v2813_v20 = vadd.s32 %v2811_v26, %v2805_v63  ;;  %vm2814_vm3 = vc.u32 %v2812_v19, %v2808_v55  ;;  %v2830_v39 = vshll.u32 %v5916_v57, 16 }
  0xe6   :  { %v401_v33 = vadd.f32 -0.4999988, %v400_v32  ;;  %v408_v58 = vadd.f32 -0.16666654, %v407_v34  ;;  %v2815_v38 = vsel %vm2814_vm3, 1, %v5481_v27  ;;  %vm416_vm4 = vcmp.eq.s32.totalorder %v5862_v18, 0 }
  0xe7   :  { %v1626_v41 = vor.u32 4788187, %v1625_v54  ;;  %v2817_v42 = vadd.s32 %v2815_v38, %v2813_v20  ;;  %vm2832_vm5 = vc.u32 %v2824_v3, %v2828_v0  ;;  %v2834_v35 = vadd.s32 %v2828_v0, %v2824_v3  ;;  %v176_v38 = vpop.f32.mrf.mxu0 }
  0xe8   :  { %v402_v47 = vmul.f32 %v401_v33, %v397_v5  ;;  %v409_v1 = vmul.f32 %v408_v58, %v397_v5  ;;  %vm415_vm6 = vcmp.lt.s32.totalorder %v5862_v18, 2  ;;  %v1629_v51 = vcvt.s32.f32 %v1622_v45 }
  0xe9   :  { %v2833_v49 = vsel %vm2832_vm5, 1, %v5481_v27  ;;  %vm412_vm7 = vweird.f32 %v5663_v43  ;;  %v1627_v59 = vand.u32 2147483647, %v1626_v41  ;;  %v2818_v52 = vadd.s32 %v2817_v42, %v2807_v15 }
  0xea   :  { %v2835_v11 = vadd.s32 %v2833_v49, %v2827_v31  ;;  %vm2836_vm8 = vc.u32 %v2834_v35, %v2830_v39  ;;  %v403_v9 = vadd.f32 1.0, %v402_v47  ;;  %v410_v16 = vadd.f32 1.0, %v409_v1 }
  0xeb   :  { %v2829_v63 = vshrl.u32 %v5914_v13, 16  ;;  %v2837_v56 = vsel %vm2836_vm8, 1, %v5481_v27  ;;  %v1630_v3 = vmul.f32 %v1629_v51, %v1627_v59  ;;  %v2819_v7 = vadd.s32 %v2818_v52, %v2809_v30 }
  0xec   :  { %v2839_v5 = vadd.s32 %v2837_v56, %v2835_v11  ;;  %v3989_v61 = vand.u32 2147483647, %v5895_v48  ;;  %v411_v55 = vmul.f32 %v410_v16, %v5906_v23  ;;  %vm419_vm9 = vcmp.eq.s32.totalorder %v5862_v18, 2 }
  0xed   :  { %v420_v62 = vxor.u32 2147483648, %v403_v9  ;;  %v3992_v17 = vand.u32 2139095040, %v5895_v48  ;;  %v1631_v31 = vxor.u32 2147483648, %v1630_v3  ;;  %v2831_v25 = vshrl.u32 %v5916_v57, 16 }
  0xee   :  { %v2838_v14 = vadd.s32 %v2834_v35, %v2830_v39  ;;  %v2840_v60 = vadd.s32 %v2839_v5, %v2829_v63  ;;  %v417_v13 = vxor.u32 2147483648, %v411_v55  ;;  %v1636_v30 = vsel %vm5923_vm2, 0, %v5901_v53 }
  0xef   :  { %v2788_v23 = vsel %vm2782_vm14, %v5892_v46, %v5910_v24  ;;  %v3993_v28 = vshrl.u32 %v3992_v17, 23  ;;  %v1632_v29 = vsel %vm1511_vm10, %v1631_v31, %v1630_v3  ;;  %v3996_v57 = vand.u32 8388607, %v3989_v61 }
  0xf0   :  { %v2841_v19 = vadd.s32 %v2840_v60, %v2831_v25  ;;  %vm2844_vm11 = vc.u32 %v2819_v7, %v2838_v14  ;;  %v418_v0 = vsel %vm416_vm4, %v403_v9, %v417_v13  ;;  %v421_v53 = vsel %vm419_vm9, %v420_v62, %v411_v55 }
  0xf1   :  { %v1635_v36 = vsel %vm5923_vm2, %v5666_v44, %v1632_v29  ;;  %v5383_v46 = vadd.s32 4294967169, %v3993_v28  ;;  %v422_v24 = vsel %vm415_vm6, %v418_v0, %v421_v53  ;;  %v1653_v34 = vadd.s32 3, %v1636_v30 }
  0xf2   :  { %v1637_v32 = vmul.f32 %v1635_v36, %v1635_v36  ;;  %v2845_v45 = vadd.s32 1, %v2841_v19  ;;  %v423_v26 = vsel %vm412_vm7, nan, %v422_v24  ;;  %v2842_v54 = vmul.u32 %v5844_v37, %v2788_v23 }
  0xf3   :  { %v3997_v15 = vor.u32 8388608, %v3996_v57  ;;  %v3999_v20 = vadd.s32 1, %v5383_v46  ;;  %5229 = vst [vmem:[#allocation2] sm:$0xff] %v423_v26  ;;  %v1654_v42 = vand.u32 3, %v1653_v34  ;;  %v5967_v37 = vadd.f32 %v5660_v40, %v176_v38 }
  0xf4   :  { %v1638_v33 = vmul.f32 -0.001358992, %v1637_v32  ;;  %v1645_v58 = vmul.f32 -0.00019511016, %v1637_v32  ;;  %v2846_v50 = vsel %vm2844_vm11, %v2845_v45, %v2841_v19  ;;  %vm2751_vm12 = vcmp.lt.s32.totalorder %v5683_v2, 0 }
  0xf5   :  { %v2847_v39 = vadd.s32 %v2846_v50, %v2842_v54  ;;  %vm4000_vm10 = vcmp.gt.s32.totalorder %v3999_v20, 0  ;;  %v5964_v43 = vshll.u32 %v3997_v15, 8  ;;  %vm5974_vm13 = vcmp.le.f32.partialorder %v2749_v22, 0.7853982 }
  0xf6   :  { %v1639_v18 = vadd.f32 0.041655596, %v1638_v33  ;;  %v1646_v41 = vadd.f32 0.008332121, %v1645_v58  ;;  %v4001_v35 = vsel %vm4000_vm10, %v3999_v20, 0  ;;  %v5978_v63 = vadd.s32 %v2838_v14, %v2819_v7 }
  0xf7   :  { %v2848_v47 = vadd.s32 536870912, %v2847_v39  ;;  %v4003_v1 = vand.u32 31, %v4001_v35  ;;  %v424_v40 = vand.u32 2147483647, %v5967_v37  ;;  %vm1656_vm14 = vcmp.eq.s32.totalorder %v1654_v42, 0 }
  0xf8   :  { %v1640_v51 = vmul.f32 %v1639_v18, %v1637_v32  ;;  %v1647_v49 = vmul.f32 %v1646_v41, %v1637_v32  ;;  %vm1659_vm15 = vcmp.eq.s32.totalorder %v1654_v42, 2  ;;  %v5981_v3 = vshrl.u32 %v4001_v35, 5 }
  0xf9   :  { %v2849_v59 = vshrl.u32 %v2848_v47, 30  ;;  %v5970_v52 = vsub.s32 32, %v4003_v1  ;;  %v5984_v5 = vand.u32 65535, %v5964_v43  ;;  %v427_v55 = vand.u32 2139095040, %v5967_v37 }
  0xfa   :  { %v1641_v11 = vadd.f32 -0.4999988, %v1640_v51  ;;  %v1648_v9 = vadd.f32 -0.16666654, %v1647_v49  ;;  %vm1655_vm0 = vcmp.lt.s32.totalorder %v1654_v42, 2  ;;  %v5988_v31 = vshrl.u32 %v5964_v43, 16 }
  0xfb   :  { %v2850_v56 = vshll.u32 %v2849_v59, 30  ;;  %v2873_v22 = vsub.s32 4, %v2849_v59  ;;  %vm1652_vm1 = vweird.f32 %v5666_v44  ;;  %v4006_v25 = vshll.u32 %v5475_v4, %v4003_v1 }
  0xfc   :  { %v1642_v62 = vmul.f32 %v1641_v11, %v1637_v32  ;;  %v1649_v17 = vmul.f32 %v1648_v9, %v1637_v32  ;;  %v4007_v14 = vshrl.u32 %v5476_v6, %v5970_v52  ;;  %v4010_v60 = vshrl.u32 %v5477_v8, %v5970_v52 }
  0xfd   :  { %v2851_v7 = vsub.s32 %v2847_v39, %v2850_v56  ;;  %v4009_v23 = vshll.u32 %v5476_v6, %v4003_v1  ;;  %v4016_v28 = vshrl.u32 %v5479_v12, %v5970_v52  ;;  %v4012_v19 = vshll.u32 %v5477_v8, %v4003_v1 }
  0xfe   :  { %v1643_v13 = vadd.f32 1.0, %v1642_v62  ;;  %v1650_v30 = vadd.f32 1.0, %v1649_v17  ;;  %v4013_v57 = vshrl.u32 %v5478_v10, %v5970_v52  ;;  %v2874_v46 = vsel %vm2751_vm12, %v2873_v22, %v2849_v59 }
  0xff   :  { %vm2852_vm2 = vcmp.lt.s32.totalorder %v2851_v7, 0  ;;  %v2853_v29 = vsub.s32 0, %v2851_v7  ;;  %v4015_v24 = vshll.u32 %v5478_v10, %v4003_v1  ;;  %v4008_v34 = vor.u32 %v4007_v14, %v4006_v25 }
 0x100   :  { %v1651_v0 = vmul.f32 %v1650_v30, %v1635_v36  ;;  %v1660_v53 = vxor.u32 2147483648, %v1643_v13  ;;  %v4011_v45 = vor.u32 %v4010_v60, %v4009_v23  ;;  %v4019_v26 = vshrl.u32 %v5480_v21, %v5970_v52 }
 0x101   :  { %v2854_v32 = vsel %vm2852_vm2, %v2853_v29, %v2851_v7  ;;  %v4017_v20 = vor.u32 %v4016_v28, %v4015_v24  ;;  %v428_v33 = vshrl.u32 %v427_v55, 23  ;;  %v2876_v58 = vsel %vm5974_vm13, 0, %v2874_v46 }
 0x102   :  { %v1657_v54 = vxor.u32 2147483648, %v1651_v0  ;;  %v2855_v15 = vclz %v2854_v32  ;;  %v4014_v36 = vor.u32 %v4013_v57, %v4012_v19  ;;  %v4018_v50 = vshll.u32 %v5479_v12, %v4003_v1 }
 0x103   :  { %v6012_v38 = vand.u32 8388607, %v424_v40  ;;  %v1661_v18 = vsel %vm1659_vm15, %v1660_v53, %v1651_v0  ;;  %vm4021_vm3 = vcmp.lt.s32.totalorder %v5981_v3, 1  ;;  %vm4024_vm4 = vcmp.lt.s32.totalorder %v5981_v3, 4 }
 0x104   :  { %v1658_v39 = vsel %vm1656_vm14, %v1643_v13, %v1657_v54  ;;  %v5360_v41 = vadd.s32 4294967294, %v2855_v15  ;;  %v4020_v47 = vor.u32 %v4019_v26, %v4018_v50  ;;  %v4029_v51 = vsel %vm4021_vm3, %v4008_v34, %v4011_v45 }
 0x105   :  { %v1662_v35 = vsel %vm1655_vm0, %v1658_v39, %v1661_v18  ;;  %vm4023_vm6 = vcmp.lt.s32.totalorder %v5981_v3, 3  ;;  %v4030_v49 = vsel %vm4024_vm4, %v4017_v20, 920167782  ;;  %v2893_v11 = vadd.s32 3, %v2876_v58 }
 0x106   :  { %v1663_v1 = vsel %vm1652_vm1, nan, %v1662_v35  ;;  %vm5361_vm5 = vcmp.lt.s32.totalorder %v5360_v41, 0  ;;  %vm4022_vm7 = vcmp.lt.s32.totalorder %v5981_v3, 2  ;;  %v4031_v42 = vsel %vm4023_vm6, %v4014_v36, %v4030_v49 }
 0x107   :  { %5237 = vst [vmem:[#allocation2 + $0x40] sm:$0xff] %v1663_v1  ;;  %v2858_v59 = vsel %vm5361_vm5, 0, %v5360_v41  ;;  %v4032_v44 = vsel %vm4022_vm7, %v4029_v51, %v4031_v42  ;;  %v4033_v55 = vsel %vm4021_vm3, %v4011_v45, %v4014_v36  ;;  %v4005_v62 = vshrl.u32 %v5475_v4, %v5970_v52 }
 0x108   :  { %v2859_v9 = vsub.s32 32, %v2858_v59  ;;  %v2863_v56 = vsub.s32 4294967266, %v2858_v59  ;;  %v4034_v17 = vsel %vm4024_vm4, %v4020_v47, 1326507024  ;;  %v4062_v22 = vand.u32 65535, %v4032_v44 }
 0x109   :  { %v4063_v25 = vshrl.u32 %v4032_v44, 16  ;;  %v2860_v14 = vshll.u32 %v2851_v7, %v2858_v59  ;;  %v4035_v30 = vsel %vm4023_vm6, %v4017_v20, %v4034_v17  ;;  %v6040_v23 = vand.u32 3, %v2893_v11 }
 0x10a   :  { %v2861_v60 = vshrl.u32 %v5978_v63, %v2859_v9  ;;  %v2864_v13 = vadd.s32 127, %v2863_v56  ;;  %v4026_v28 = vsel %vm4024_vm4, %v4014_v36, 2102212464  ;;  %v4036_v52 = vsel %vm4022_vm7, %v4033_v55, %v4035_v30 }
 0x10b   :  { %v4065_v29 = vmul.u32 %v4063_v25, %v5984_v5  ;;  %v4040_v0 = vand.u32 65535, %v4036_v52  ;;  %v4041_v7 = vshrl.u32 %v4036_v52, 16  ;;  %v4025_v63 = vsel %vm4021_vm3, %v4005_v62, %v4008_v34 }
 0x10c   :  { %v2862_v19 = vor.u32 %v2861_v60, %v2860_v14  ;;  %v2865_v57 = vshll.u32 %v2864_v13, 23  ;;  %v4064_v53 = vmul.u32 %v4062_v22, %v5984_v5  ;;  %v4066_v46 = vmul.u32 %v4062_v22, %v5988_v31 }
 0x10d   :  { %v4068_v24 = vshll.u32 %v4065_v29, 16  ;;  %v4027_v26 = vsel %vm4023_vm6, %v4011_v45, %v4026_v28  ;;  %v4043_v54 = vmul.u32 %v4041_v7, %v5984_v5  ;;  %v5314_v15 = vadd.s32 4294967169, %v428_v33 }
 0x10e   :  { %v2866_v32 = vor.u32 4788187, %v2865_v57  ;;  %v2869_v20 = vcvt.s32.f32 %v2862_v19  ;;  %v4044_v58 = vmul.u32 %v4040_v0, %v5988_v31  ;;  %v4067_v36 = vmul.u32 %v4063_v25, %v5988_v31 }
 0x10f   :  { %vm4072_vm8 = vc.u32 %v4064_v53, %v4068_v24  ;;  %v4042_v34 = vmul.u32 %v4040_v0, %v5984_v5  ;;  %v4046_v39 = vshll.u32 %v4043_v54, 16  ;;  %v4045_v41 = vmul.u32 %v4041_v7, %v5988_v31 }
 0x110   :  { %v2867_v50 = vand.u32 2147483647, %v2866_v32  ;;  %v4073_v18 = vsel %vm4072_vm8, 1, %v5481_v27  ;;  %v4070_v35 = vshll.u32 %v4066_v46, 16  ;;  %v4074_v47 = vadd.s32 %v4068_v24, %v4064_v53 }
 0x111   :  { %v4075_v45 = vadd.s32 %v4073_v18, %v4067_v36  ;;  %v4048_v1 = vshll.u32 %v4044_v58, 16  ;;  %vm4050_vm9 = vc.u32 %v4042_v34, %v4046_v39  ;;  %v4052_v33 = vadd.s32 %v4046_v39, %v4042_v34 }
 0x112   :  { %v2870_v51 = vmul.f32 %v2869_v20, %v2867_v50  ;;  %v4028_v49 = vsel %vm4022_vm7, %v4025_v63, %v4027_v26  ;;  %v4051_v59 = vsel %vm4050_vm9, 1, %v5481_v27  ;;  %vm4076_vm11 = vc.u32 %v4074_v47, %v4070_v35 }
 0x113   :  { %v434_v11 = vadd.s32 1, %v5314_v15  ;;  %v4053_v42 = vadd.s32 %v4051_v59, %v4045_v41  ;;  %vm4054_vm10 = vc.u32 %v4052_v33, %v4048_v1  ;;  %v4077_v9 = vsel %vm4076_vm11, 1, %v5481_v27 }
 0x114   :  { %v2871_v5 = vxor.u32 2147483648, %v2870_v51  ;;  %v4055_v31 = vsel %vm4054_vm10, 1, %v5481_v27  ;;  %v4069_v56 = vshrl.u32 %v4065_v29, 16  ;;  %v4079_v44 = vadd.s32 %v4077_v9, %v4075_v45 }
 0x115   :  { %vm435_vm14 = vcmp.gt.s32.totalorder %v434_v11, 0  ;;  %v4047_v62 = vshrl.u32 %v4043_v54, 16  ;;  %v4057_v3 = vadd.s32 %v4055_v31, %v4053_v42  ;;  %v4071_v25 = vshrl.u32 %v4066_v46, 16 }
 0x116   :  { %v2872_v55 = vsel %vm2751_vm12, %v2871_v5, %v2870_v51  ;;  %v436_v17 = vsel %vm435_vm14, %v434_v11, 0  ;;  %v4080_v14 = vadd.s32 %v4079_v44, %v4069_v56  ;;  %v4049_v30 = vshrl.u32 %v4044_v58, 16 }
 0x117   :  { %v2875_v22 = vsel %vm5974_vm13, %v5683_v2, %v2872_v55  ;;  %v438_v60 = vand.u32 31, %v436_v17  ;;  %v4058_v28 = vadd.s32 %v4057_v3, %v4047_v62  ;;  %v4082_v52 = vmul.u32 %v5964_v43, %v4028_v49 }
 0x118   :  { %v2877_v13 = vmul.f32 %v2875_v22, %v2875_v22  ;;  %v4081_v29 = vadd.s32 %v4080_v14, %v4071_v25  ;;  %v432_v19 = vor.u32 8388608, %v6012_v38  ;;  %v6076_v16 = vadd.s32 %v4074_v47, %v4070_v35 }
 0x119   :  { %v6071_v57 = vsub.s32 32, %v438_v60  ;;  %v441_v0 = vshll.u32 %v5475_v4, %v438_v60  ;;  %v6074_v53 = vadd.s32 %v4058_v28, %v4049_v30  ;;  %v444_v32 = vshll.u32 %v5476_v6, %v438_v60 }
 0x11a   :  { %v2878_v7 = vmul.f32 -0.001358992, %v2877_v13  ;;  %v2885_v63 = vmul.f32 -0.00019511016, %v2877_v13  ;;  %v4085_v46 = vadd.s32 1, %v4081_v29  ;;  %v447_v54 = vshll.u32 %v5477_v8, %v438_v60 }
 0x11b   :  { %v442_v24 = vshrl.u32 %v5476_v6, %v6071_v57  ;;  %v445_v43 = vshrl.u32 %v5477_v8, %v6071_v57  ;;  %vm4084_vm12 = vc.u32 %v6074_v53, %v6076_v16  ;;  %v6086_v20 = vshrl.u32 %v436_v17, 5 }
 0x11c   :  { %v2879_v38 = vadd.f32 0.041655596, %v2878_v7  ;;  %v2886_v26 = vadd.f32 0.008332121, %v2885_v63  ;;  %v4086_v15 = vsel %vm4084_vm12, %v4085_v46, %v4081_v29  ;;  %v448_v36 = vshrl.u32 %v5478_v10, %v6071_v57 }
 0x11d   :  { %v6088_v58 = vor.u32 %v442_v24, %v441_v0  ;;  %v4087_v39 = vadd.s32 %v4086_v15, %v4082_v52  ;;  %v450_v18 = vshll.u32 %v5478_v10, %v438_v60  ;;  %v6093_v41 = vor.u32 %v445_v43, %v444_v32 }
 0x11e   :  { %v2880_v50 = vmul.f32 %v2879_v38, %v2877_v13  ;;  %v2887_v34 = vmul.f32 %v2886_v26, %v2877_v13  ;;  %v451_v35 = vshrl.u32 %v5479_v12, %v6071_v57  ;;  %v453_v47 = vshll.u32 %v5479_v12, %v438_v60 }
 0x11f   :  { %v454_v45 = vshrl.u32 %v5480_v21, %v6071_v57  ;;  %v4088_v33 = vadd.s32 536870912, %v4087_v39  ;;  %v449_v49 = vor.u32 %v448_v36, %v447_v54  ;;  %vm456_vm13 = vcmp.lt.s32.totalorder %v6086_v20, 1 }
 0x120   :  { %v2881_v51 = vadd.f32 -0.4999988, %v2880_v50  ;;  %v2888_v1 = vadd.f32 -0.16666654, %v2887_v34  ;;  %v452_v59 = vor.u32 %v451_v35, %v450_v18  ;;  %vm458_vm15 = vcmp.lt.s32.totalorder %v6086_v20, 3 }
 0x121   :  { %v455_v11 = vor.u32 %v454_v45, %v453_v47  ;;  %v6102_v9 = vshrl.u32 %v4088_v33, 30  ;;  %vm459_vm0 = vcmp.lt.s32.totalorder %v6086_v20, 4  ;;  %vm2895_vm1 = vcmp.lt.s32.totalorder %v6040_v23, 2 }
 0x122   :  { %v2882_v5 = vmul.f32 %v2881_v51, %v2877_v13  ;;  %v2889_v42 = vmul.f32 %v2888_v1, %v2877_v13  ;;  %v465_v31 = vsel %vm459_vm0, %v452_v59, 920167782  ;;  %v6108_v56 = vshll.u32 %v432_v19, 8 }
 0x123   :  { %v4090_v62 = vshll.u32 %v6102_v9, 30  ;;  %v464_v3 = vsel %vm456_vm13, %v6088_v58, %v6093_v41  ;;  %vm2896_vm2 = vcmp.eq.s32.totalorder %v6040_v23, 0  ;;  %vm457_vm3 = vcmp.lt.s32.totalorder %v6086_v20, 2 }
 0x124   :  { %v2883_v44 = vadd.f32 1.0, %v2882_v5  ;;  %v2890_v55 = vadd.f32 1.0, %v2889_v42  ;;  %v466_v17 = vsel %vm458_vm15, %v449_v49, %v465_v31  ;;  %v469_v25 = vsel %vm459_vm0, %v455_v11, 1326507024 }
 0x125   :  { %v4091_v13 = vsub.s32 %v4087_v39, %v4090_v62  ;;  %v468_v30 = vsel %vm456_vm13, %v6093_v41, %v449_v49  ;;  %vm2899_vm4 = vcmp.eq.s32.totalorder %v6040_v23, 2  ;;  %v467_v28 = vsel %vm457_vm3, %v464_v3, %v466_v17 }
 0x126   :  { %v2891_v14 = vmul.f32 %v2890_v55, %v2875_v22  ;;  %v2900_v60 = vxor.u32 2147483648, %v2883_v44  ;;  %v470_v52 = vsel %vm458_vm15, %v452_v59, %v469_v25  ;;  %v473_v29 = vand.u32 65535, %v6108_v56 }
 0x127   :  { %vm4092_vm5 = vcmp.lt.s32.totalorder %v4091_v13, 0  ;;  %v4093_v0 = vsub.s32 0, %v4091_v13  ;;  %v474_v22 = vshrl.u32 %v6108_v56, 16  ;;  %v440_v63 = vshrl.u32 %v5475_v4, %v6071_v57 }
 0x128   :  { %v2897_v19 = vxor.u32 2147483648, %v2891_v14  ;;  %v2901_v7 = vsel %vm2899_vm4, %v2900_v60, %v2891_v14  ;;  %v471_v46 = vsel %vm457_vm3, %v468_v30, %v470_v52  ;;  %v497_v24 = vand.u32 65535, %v467_v28  ;;  %v200_v30 = vpop.f32.mrf.mxu1 }
 0x129   :  { %v4094_v43 = vsel %vm4092_vm5, %v4093_v0, %v4091_v13  ;;  %v475_v38 = vand.u32 65535, %v471_v46  ;;  %v476_v26 = vshrl.u32 %v471_v46, 16  ;;  %vm2892_vm6 = vweird.f32 %v5683_v2  ;;  %v224_v0 = vpop.f32.mrf.mxu2 }
 0x12a   :  { %v2898_v32 = vsel %vm2896_vm2, %v2883_v44, %v2897_v19  ;;  %v4095_v15 = vclz %v4094_v43  ;;  %v498_v36 = vshrl.u32 %v467_v28, 16  ;;  %v4083_v39 = vadd.s32 %v6076_v16, %v6074_v53 }
 0x12b   :  { %v2902_v54 = vsel %vm2895_vm1, %v2898_v32, %v2901_v7  ;;  %v478_v34 = vmul.u32 %v476_v26, %v473_v29  ;;  %v479_v57 = vmul.u32 %v475_v38, %v474_v22  ;;  %v460_v35 = vsel %vm456_vm13, %v440_v63, %v6088_v58  ;;  %v6159_v32 = vld [vmem:[%s9088_s2] ss:$0 sm:$0xff] }
 0x12c   :  { %v2903_v50 = vsel %vm2892_vm6, nan, %v2902_v54  ;;  %v5384_v18 = vadd.s32 4294967294, %v4095_v15  ;;  %v461_v2 = vsel %vm459_vm0, %v449_v49, 2102212464  ;;  %v477_v47 = vmul.u32 %v475_v38, %v473_v29 }
 0x12d   :  { %5245 = vst [vmem:[#allocation2 + $0x80] sm:$0xff] %v2903_v50  ;;  %v481_v23 = vshll.u32 %v478_v34, 16  ;;  %v499_v45 = vmul.u32 %v497_v24, %v473_v29  ;;  %v480_v51 = vmul.u32 %v476_v26, %v474_v22  ;;  %v483_v1 = vshll.u32 %v479_v57, 16 }
 0x12e   :  { %vm5385_vm7 = vcmp.lt.s32.totalorder %v5384_v18, 0  ;;  %v500_v33 = vmul.u32 %v498_v36, %v473_v29  ;;  %v501_v5 = vmul.u32 %v497_v24, %v474_v22  ;;  %vm3991_vm9 = vcmp.lt.s32.totalorder %v5895_v48, 0 }
 0x12f   :  { %v4098_v59 = vsel %vm5385_vm7, 0, %v5384_v18  ;;  %vm485_vm8 = vc.u32 %v477_v47, %v481_v23  ;;  %v487_v11 = vadd.s32 %v481_v23, %v477_v47  ;;  %v482_v42 = vshrl.u32 %v478_v34, 16 }
 0x130   :  { %v4099_v53 = vsub.s32 32, %v4098_v59  ;;  %v4103_v16 = vsub.s32 4294967266, %v4098_v59  ;;  %v486_v58 = vsel %vm485_vm8, 1, %v5481_v27  ;;  %v502_v49 = vmul.u32 %v498_v36, %v474_v22 }
 0x131   :  { %v488_v31 = vadd.s32 %v486_v58, %v480_v51  ;;  %vm489_vm11 = vc.u32 %v487_v11, %v483_v1  ;;  %v503_v44 = vshll.u32 %v500_v33, 16  ;;  %v4100_v55 = vshll.u32 %v4091_v13, %v4098_v59 }
 0x132   :  { %v4101_v62 = vshrl.u32 %v4083_v39, %v4099_v53  ;;  %v4104_v3 = vadd.s32 127, %v4103_v16  ;;  %v490_v17 = vsel %vm489_vm11, 1, %v5481_v27  ;;  %v505_v14 = vshll.u32 %v501_v5, 16 }
 0x133   :  { %v492_v25 = vadd.s32 %v490_v17, %v488_v31  ;;  %vm507_vm10 = vc.u32 %v499_v45, %v503_v44  ;;  %v509_v60 = vadd.s32 %v503_v44, %v499_v45  ;;  %v4113_v29 = vsub.s32 4, %v6102_v9 }
 0x134   :  { %v4102_v28 = vor.u32 %v4101_v62, %v4100_v55  ;;  %v4105_v52 = vshll.u32 %v4104_v3, 23  ;;  %v508_v19 = vsel %vm507_vm10, 1, %v5481_v27  ;;  %v462_v13 = vsel %vm458_vm15, %v6093_v41, %v461_v2 }
 0x135   :  { %v493_v22 = vadd.s32 %v492_v25, %v482_v42  ;;  %v510_v7 = vadd.s32 %v508_v19, %v502_v49  ;;  %vm511_vm14 = vc.u32 %v509_v60, %v505_v14  ;;  %v484_v46 = vshrl.u32 %v479_v57, 16 }
 0x136   :  { %v4106_v63 = vor.u32 4788187, %v4105_v52  ;;  %v512_v24 = vsel %vm511_vm14, 1, %v5481_v27  ;;  %v6162_v43 = vadd.f32 %v6159_v32, %v200_v30  ;;  %v4109_v38 = vcvt.s32.f32 %v4102_v28 }
 0x137   :  { %v504_v26 = vshrl.u32 %v500_v33, 16  ;;  %v514_v54 = vadd.s32 %v512_v24, %v510_v7  ;;  %v6165_v41 = vadd.f32 %v6159_v32, %v224_v0  ;;  %v494_v36 = vadd.s32 %v493_v22, %v484_v46 }
 0x138   :  { %v4107_v15 = vand.u32 2147483647, %v4106_v63  ;;  %v1664_v50 = vand.u32 2147483647, %v6162_v43  ;;  %v1667_v34 = vand.u32 2139095040, %v6162_v43  ;;  %v4114_v57 = vsel %vm3991_vm9, %v4113_v29, %v6102_v9 }
 0x139   :  { %v506_v39 = vshrl.u32 %v501_v5, 16  ;;  %v515_v18 = vadd.s32 %v514_v54, %v504_v26  ;;  %v513_v47 = vadd.s32 %v509_v60, %v505_v14  ;;  %vm3990_vm12 = vcmp.le.f32.partialorder %v3989_v61, 0.7853982 }
 0x13a   :  { %v4110_v2 = vmul.f32 %v4109_v38, %v4107_v15  ;;  %v1668_v23 = vshrl.u32 %v1667_v34, 23  ;;  %v1671_v45 = vand.u32 8388607, %v1664_v50  ;;  %v463_v51 = vsel %vm457_vm3, %v460_v35, %v462_v13 }
 0x13b   :  { %v516_v1 = vadd.s32 %v515_v18, %v506_v39  ;;  %v2907_v33 = vand.u32 2139095040, %v6165_v41  ;;  %v4116_v11 = vsel %vm3990_vm12, 0, %v4114_v57  ;;  %vm519_vm13 = vc.u32 %v494_v36, %v513_v47 }
 0x13c   :  { %v4111_v59 = vxor.u32 2147483648, %v4110_v2  ;;  %v5338_v9 = vadd.s32 4294967169, %v1668_v23  ;;  %v1672_v53 = vor.u32 8388608, %v1671_v45  ;;  %v517_v42 = vmul.u32 %v6108_v56, %v463_v51 }
 0x13d   :  { %v520_v5 = vadd.s32 1, %v516_v1  ;;  %v4133_v31 = vadd.s32 3, %v4116_v11  ;;  %v2908_v35 = vshrl.u32 %v2907_v33, 23  ;;  %v6187_v29 = vadd.s32 %v513_v47, %v494_v36 }
 0x13e   :  { %v4112_v16 = vsel %vm3991_vm9, %v4111_v59, %v4110_v2  ;;  %v1674_v58 = vadd.s32 1, %v5338_v9  ;;  %v6183_v62 = vshll.u32 %v1672_v53, 8  ;;  %v2904_v13 = vand.u32 2147483647, %v6165_v41 }
 0x13f   :  { %v4115_v61 = vsel %vm3990_vm12, %v5895_v48, %v4112_v16  ;;  %v521_v20 = vsel %vm519_vm13, %v520_v5, %v516_v1  ;;  %v6185_v14 = vand.u32 3, %v4133_v31  ;;  %v5362_v30 = vadd.s32 4294967169, %v2908_v35 }
 0x140   :  { %v4117_v49 = vmul.f32 %v4115_v61, %v4115_v61  ;;  %v522_v44 = vadd.s32 %v521_v20, %v517_v42  ;;  %vm1675_vm15 = vcmp.gt.s32.totalorder %v1674_v58, 0  ;;  %v6190_v0 = vand.u32 65535, %v6183_v62 }
 0x141   :  { %v1676_v55 = vsel %vm1675_vm15, %v1674_v58, 0  ;;  %vm426_vm0 = vcmp.lt.s32.totalorder %v5967_v37, 0  ;;  %v6195_v46 = vshrl.u32 %v6183_v62, 16  ;;  %vm4139_vm1 = vcmp.eq.s32.totalorder %v6185_v14, 2 }
 0x142   :  { %v4118_v3 = vmul.f32 -0.001358992, %v4117_v49  ;;  %v4125_v17 = vmul.f32 -0.00019511016, %v4117_v49  ;;  %v523_v25 = vadd.s32 536870912, %v522_v44  ;;  %v1678_v60 = vand.u32 31, %v1676_v55 }
 0x143   :  { %v6198_v24 = vshrl.u32 %v1676_v55, 5  ;;  %v6202_v54 = vadd.s32 1, %v5362_v30  ;;  %vm4136_vm2 = vcmp.eq.s32.totalorder %v6185_v14, 0  ;;  %vm4135_vm3 = vcmp.lt.s32.totalorder %v6185_v14, 2 }
 0x144   :  { %v4119_v56 = vadd.f32 0.041655596, %v4118_v3  ;;  %v4126_v28 = vadd.f32 0.008332121, %v4125_v17  ;;  %v524_v52 = vshrl.u32 %v523_v25, 30  ;;  %v1679_v19 = vsub.s32 32, %v1678_v60 }
 0x145   :  { %v1681_v38 = vshll.u32 %v5475_v4, %v1678_v60  ;;  %v1684_v57 = vshll.u32 %v5476_v6, %v1678_v60  ;;  %v1687_v2 = vshll.u32 %v5477_v8, %v1678_v60  ;;  %vm4132_vm5 = vweird.f32 %v5895_v48 }
 0x146   :  { %v4120_v22 = vmul.f32 %v4119_v56, %v4117_v49  ;;  %v4127_v7 = vmul.f32 %v4126_v28, %v4117_v49  ;;  %v525_v63 = vshll.u32 %v524_v52, 30  ;;  %v1682_v26 = vshrl.u32 %v5476_v6, %v1679_v19 }
 0x147   :  { %v548_v39 = vsub.s32 4, %v524_v52  ;;  %v1685_v18 = vshrl.u32 %v5477_v8, %v1679_v19  ;;  %v1688_v47 = vshrl.u32 %v5478_v10, %v1679_v19  ;;  %v1690_v33 = vshll.u32 %v5478_v10, %v1678_v60 }
 0x148   :  { %v4121_v15 = vadd.f32 -0.4999988, %v4120_v22  ;;  %v4128_v36 = vadd.f32 -0.16666654, %v4127_v7  ;;  %v6204_v34 = vsub.s32 %v522_v44, %v525_v63  ;;  %v1683_v1 = vor.u32 %v1682_v26, %v1681_v38 }
 0x149   :  { %v1691_v59 = vshrl.u32 %v5479_v12, %v1679_v19  ;;  %v1693_v11 = vshll.u32 %v5479_v12, %v1678_v60  ;;  %v1694_v16 = vshrl.u32 %v5480_v21, %v1679_v19  ;;  %vm6222_vm6 = vcmp.le.f32.partialorder %v424_v40, 0.7853982 }
 0x14a   :  { %v4122_v23 = vmul.f32 %v4121_v15, %v4117_v49  ;;  %v4129_v45 = vmul.f32 %v4128_v36, %v4117_v49  ;;  %vm527_vm4 = vcmp.lt.s32.totalorder %v6204_v34, 0  ;;  %v528_v51 = vsub.s32 0, %v6204_v34 }
 0x14b   :  { %v1686_v31 = vor.u32 %v1685_v18, %v1684_v57  ;;  %v1689_v20 = vor.u32 %v1688_v47, %v1687_v2  ;;  %v1692_v35 = vor.u32 %v1691_v59, %v1690_v33  ;;  %v1680_v55 = vshrl.u32 %v5475_v4, %v1679_v19 }
 0x14c   :  { %v4123_v9 = vadd.f32 1.0, %v4122_v23  ;;  %v4130_v5 = vadd.f32 1.0, %v4129_v45  ;;  %v529_v53 = vsel %vm527_vm4, %v528_v51, %v6204_v34  ;;  %vm1696_vm7 = vcmp.lt.s32.totalorder %v6198_v24, 1 }
 0x14d   :  { %v530_v58 = vclz %v529_v53  ;;  %v549_v17 = vsel %vm426_vm0, %v548_v39, %v524_v52  ;;  %vm1697_vm8 = vcmp.lt.s32.totalorder %v6198_v24, 2  ;;  %vm1698_vm9 = vcmp.lt.s32.totalorder %v6198_v24, 3 }
 0x14e   :  { %v4131_v49 = vmul.f32 %v4130_v5, %v4115_v61  ;;  %v4140_v44 = vxor.u32 2147483648, %v4123_v9  ;;  %v1695_v60 = vor.u32 %v1694_v16, %v1693_v11  ;;  %vm1699_vm11 = vcmp.lt.s32.totalorder %v6198_v24, 4 }
 0x14f   :  { %v5315_v3 = vadd.s32 4294967294, %v530_v58  ;;  %v1701_v61 = vsel %vm1699_vm11, %v1689_v20, 2102212464  ;;  %v1704_v30 = vsel %vm1696_vm7, %v1683_v1, %v1686_v31  ;;  %v1705_v56 = vsel %vm1699_vm11, %v1692_v35, 920167782 }
 0x150   :  { %v4137_v40 = vxor.u32 2147483648, %v4131_v49  ;;  %v4141_v25 = vsel %vm4139_vm1, %v4140_v44, %v4131_v49  ;;  %v1700_v19 = vsel %vm1696_vm7, %v1680_v55, %v1683_v1  ;;  %v1706_v22 = vsel %vm1698_vm9, %v1689_v20, %v1705_v56 }
 0x151   :  { %vm5316_vm10 = vcmp.lt.s32.totalorder %v5315_v3, 0  ;;  %v1702_v26 = vsel %vm1698_vm9, %v1686_v31, %v1701_v61  ;;  %v1707_v57 = vsel %vm1697_vm8, %v1704_v30, %v1706_v22  ;;  %v1708_v39 = vsel %vm1696_vm7, %v1686_v31, %v1689_v20 }
 0x152   :  { %v4138_v28 = vsel %vm4136_vm2, %v4123_v9, %v4137_v40  ;;  %v533_v52 = vsel %vm5316_vm10, 0, %v5315_v3  ;;  %v1709_v2 = vsel %vm1699_vm11, %v1695_v60, 1326507024  ;;  %v1737_v47 = vand.u32 65535, %v1707_v57 }
 0x153   :  { %v4142_v7 = vsel %vm4135_vm3, %v4138_v28, %v4141_v25  ;;  %v534_v63 = vsub.s32 32, %v533_v52  ;;  %v538_v38 = vsub.s32 4294967266, %v533_v52  ;;  %v535_v36 = vshll.u32 %v6204_v34, %v533_v52 }
 0x154   :  { %v4143_v15 = vsel %vm4132_vm5, nan, %v4142_v7  ;;  %v551_v48 = vsel %vm6222_vm6, 0, %v549_v17  ;;  %v6265_v34 = vsel %vm1697_vm8, %v1700_v19, %v1702_v26  ;;  %v1710_v23 = vsel %vm1698_vm9, %v1692_v35, %v1709_v2 }
 0x155   :  { %5253 = vst [vmem:[#allocation2 + $0xc0] sm:$0xff] %v4143_v15  ;;  %v536_v14 = vshrl.u32 %v6187_v29, %v534_v63  ;;  %v539_v18 = vadd.s32 127, %v538_v38  ;;  %v1738_v45 = vshrl.u32 %v1707_v57, 16  ;;  %v1711_v29 = vsel %vm1697_vm8, %v1708_v39, %v1710_v23 }
 0x156   :  { %vm2915_vm14 = vcmp.gt.s32.totalorder %v6202_v54, 0  ;;  %v1715_v33 = vand.u32 65535, %v1711_v29  ;;  %v1716_v59 = vshrl.u32 %v1711_v29, 16  ;;  %v1741_v9 = vmul.u32 %v1737_v47, %v6195_v46 }
 0x157   :  { %v537_v51 = vor.u32 %v536_v14, %v535_v36  ;;  %v540_v1 = vshll.u32 %v539_v18, 23  ;;  %v1740_v11 = vmul.u32 %v1738_v45, %v6190_v0  ;;  %v6274_v53 = vadd.s32 3, %v551_v48 }
 0x158   :  { %v1757_v16 = vmul.u32 %v6183_v62, %v6265_v34  ;;  %v6280_v58 = vand.u32 8388607, %v2904_v13  ;;  %v1718_v24 = vmul.u32 %v1716_v59, %v6190_v0  ;;  %v1719_v31 = vmul.u32 %v1715_v33, %v6195_v46 }
 0x159   :  { %v541_v5 = vor.u32 4788187, %v540_v1  ;;  %v1739_v20 = vmul.u32 %v1737_v47, %v6190_v0  ;;  %v2916_v35 = vsel %vm2915_vm14, %v6202_v54, 0  ;;  %v544_v44 = vcvt.s32.f32 %v537_v51 }
 0x15a   :  { %v1742_v55 = vmul.u32 %v1738_v45, %v6195_v46  ;;  %v1743_v3 = vshll.u32 %v1740_v11, 16  ;;  %v1717_v17 = vmul.u32 %v1715_v33, %v6190_v0  ;;  %v1720_v40 = vmul.u32 %v1716_v59, %v6195_v46 }
 0x15b   :  { %v542_v49 = vand.u32 2147483647, %v541_v5  ;;  %v1721_v25 = vshll.u32 %v1718_v24, 16  ;;  %v1745_v60 = vshll.u32 %v1741_v9, 16  ;;  %v1723_v30 = vshll.u32 %v1719_v31, 16 }
 0x15c   :  { %vm1747_vm12 = vc.u32 %v1739_v20, %v1743_v3  ;;  %v1749_v56 = vadd.s32 %v1743_v3, %v1739_v20  ;;  %v2918_v54 = vand.u32 31, %v2916_v35  ;;  %v1744_v0 = vshrl.u32 %v1740_v11, 16 }
 0x15d   :  { %v545_v61 = vmul.f32 %v544_v44, %v542_v49  ;;  %vm1725_vm13 = vc.u32 %v1717_v17, %v1721_v25  ;;  %v1727_v28 = vadd.s32 %v1721_v25, %v1717_v17  ;;  %v1748_v52 = vsel %vm1747_vm12, 1, %v5481_v27 }
 0x15e   :  { %v1726_v22 = vsel %vm1725_vm13, 1, %v5481_v27  ;;  %v1750_v7 = vadd.s32 %v1748_v52, %v1742_v55  ;;  %vm1751_vm15 = vc.u32 %v1749_v56, %v1745_v60  ;;  %v6295_v36 = vsub.s32 32, %v2918_v54 }
 0x15f   :  { %v546_v19 = vxor.u32 2147483648, %v545_v61  ;;  %v1728_v63 = vadd.s32 %v1726_v22, %v1720_v40  ;;  %vm1729_vm1 = vc.u32 %v1727_v28, %v1723_v30  ;;  %v1752_v46 = vsel %vm1751_vm15, 1, %v5481_v27 }
 0x160   :  { %v1730_v26 = vsel %vm1729_vm1, 1, %v5481_v27  ;;  %v1754_v15 = vadd.s32 %v1752_v46, %v1750_v7  ;;  %v1722_v39 = vshrl.u32 %v1718_v24, 16  ;;  %v6300_v18 = vshrl.u32 %v2916_v35, 5 }
 0x161   :  { %v547_v38 = vsel %vm426_vm0, %v546_v19, %v545_v61  ;;  %v1732_v14 = vadd.s32 %v1730_v26, %v1728_v63  ;;  %v1724_v47 = vshrl.u32 %v1719_v31, 16  ;;  %v1746_v48 = vshrl.u32 %v1741_v9, 16 }
 0x162   :  { %v550_v57 = vsel %vm6222_vm6, %v5967_v37, %v547_v38  ;;  %v1755_v23 = vadd.s32 %v1754_v15, %v1744_v0  ;;  %v6302_v51 = vadd.s32 %v1749_v56, %v1745_v60  ;;  %v2921_v1 = vshll.u32 %v5475_v4, %v2918_v54 }
 0x163   :  { %v552_v2 = vmul.f32 %v550_v57, %v550_v57  ;;  %v1733_v45 = vadd.s32 %v1732_v14, %v1722_v39  ;;  %v2924_v29 = vshll.u32 %v5476_v6, %v2918_v54  ;;  %v2922_v42 = vshrl.u32 %v5476_v6, %v6295_v36 }
 0x164   :  { %v1756_v11 = vadd.s32 %v1755_v23, %v1746_v48  ;;  %v2925_v24 = vshrl.u32 %v5477_v8, %v6295_v36  ;;  %v2928_v9 = vshrl.u32 %v5478_v10, %v6295_v36  ;;  %v2930_v31 = vshll.u32 %v5478_v10, %v2918_v54 }
 0x165   :  { %v553_v33 = vmul.f32 -0.001358992, %v552_v2  ;;  %v560_v59 = vmul.f32 -0.00019511016, %v552_v2  ;;  %v6308_v5 = vadd.s32 %v1733_v45, %v1724_v47  ;;  %v2931_v44 = vshrl.u32 %v5479_v12, %v6295_v36 }
 0x166   :  { %v1760_v49 = vadd.s32 1, %v1756_v11  ;;  %v2927_v55 = vshll.u32 %v5477_v8, %v2918_v54  ;;  %v2933_v3 = vshll.u32 %v5479_v12, %v2918_v54  ;;  %v2934_v17 = vshrl.u32 %v5480_v21, %v6295_v36 }
 0x167   :  { %v554_v20 = vadd.f32 0.041655596, %v553_v33  ;;  %v561_v35 = vadd.f32 0.008332121, %v560_v59  ;;  %vm1759_vm0 = vc.u32 %v6308_v5, %v6302_v51  ;;  %v2932_v61 = vor.u32 %v2931_v44, %v2930_v31 }
 0x168   :  { %v1761_v60 = vsel %vm1759_vm0, %v1760_v49, %v1756_v11  ;;  %v6326_v56 = vor.u32 %v2922_v42, %v2921_v1  ;;  %v6328_v28 = vor.u32 %v2925_v24, %v2924_v29  ;;  %v6330_v52 = vor.u32 %v2928_v9, %v2927_v55 }
 0x169   :  { %v555_v40 = vmul.f32 %v554_v20, %v552_v2  ;;  %v562_v25 = vmul.f32 %v561_v35, %v552_v2  ;;  %v1762_v30 = vadd.s32 %v1761_v60, %v1757_v16  ;;  %v2935_v54 = vor.u32 %v2934_v17, %v2933_v3 }
 0x16a   :  { %v569_v7 = vand.u32 3, %v6274_v53  ;;  %v2912_v0 = vor.u32 8388608, %v6280_v58  ;;  %vm2939_vm2 = vcmp.lt.s32.totalorder %v6300_v18, 4  ;;  %vm2936_vm3 = vcmp.lt.s32.totalorder %v6300_v18, 1 }
 0x16b   :  { %v556_v19 = vadd.f32 -0.4999988, %v555_v40  ;;  %v563_v22 = vadd.f32 -0.16666654, %v562_v25  ;;  %v1763_v63 = vadd.s32 536870912, %v1762_v30  ;;  %vm2938_vm4 = vcmp.lt.s32.totalorder %v6300_v18, 3 }
 0x16c   :  { %v2945_v62 = vsel %vm2939_vm2, %v2932_v61, 920167782  ;;  %v2944_v53 = vsel %vm2936_vm3, %v6326_v56, %v6328_v28  ;;  %v2948_v16 = vsel %vm2936_vm3, %v6328_v28, %v6330_v52  ;;  %v2949_v39 = vsel %vm2939_vm2, %v2935_v54, 1326507024 }
 0x16d   :  { %v557_v46 = vmul.f32 %v556_v19, %v552_v2  ;;  %v564_v38 = vmul.f32 %v563_v22, %v552_v2  ;;  %v6338_v34 = vshrl.u32 %v1763_v63, 30  ;;  %v2946_v15 = vsel %vm2938_vm4, %v6330_v52, %v2945_v62 }
 0x16e   :  { %vm2937_vm5 = vcmp.lt.s32.totalorder %v6300_v18, 2  ;;  %v2950_v2 = vsel %vm2938_vm4, %v2932_v61, %v2949_v39  ;;  %v6358_v47 = vshll.u32 %v2912_v0, 8  ;;  %vm567_vm6 = vweird.f32 %v5967_v37 }
 0x16f   :  { %v558_v58 = vadd.f32 1.0, %v557_v46  ;;  %v565_v26 = vadd.f32 1.0, %v564_v38  ;;  %v1765_v14 = vshll.u32 %v6338_v34, 30  ;;  %v2951_v45 = vsel %vm2937_vm5, %v2948_v16, %v2950_v2 }
 0x170   :  { %vm570_vm7 = vcmp.lt.s32.totalorder %v569_v7, 2  ;;  %vm571_vm8 = vcmp.eq.s32.totalorder %v569_v7, 0  ;;  %v2947_v29 = vsel %vm2937_vm5, %v2944_v53, %v2946_v15  ;;  %vm574_vm9 = vcmp.eq.s32.totalorder %v569_v7, 2 }
 0x171   :  { %v566_v48 = vmul.f32 %v565_v26, %v550_v57  ;;  %v575_v23 = vxor.u32 2147483648, %v558_v58  ;;  %v1766_v1 = vsub.s32 %v1762_v30, %v1765_v14  ;;  %v2954_v59 = vshrl.u32 %v6358_v47, 16  ;;  %v248_v26 = vpop.f32.mrf.mxu3 }
 0x172   :  { %v2955_v11 = vand.u32 65535, %v2951_v45  ;;  %v2953_v57 = vand.u32 65535, %v6358_v47  ;;  %v2956_v24 = vshrl.u32 %v2951_v45, 16  ;;  %v2977_v35 = vand.u32 65535, %v2947_v29 }
 0x173   :  { %v572_v33 = vxor.u32 2147483648, %v566_v48  ;;  %vm1767_vm11 = vcmp.lt.s32.totalorder %v1766_v1, 0  ;;  %v1768_v42 = vsub.s32 0, %v1766_v1  ;;  %v576_v31 = vsel %vm574_vm9, %v575_v23, %v566_v48 }
 0x174   :  { %v2959_v20 = vmul.u32 %v2955_v11, %v2954_v59  ;;  %v2958_v55 = vmul.u32 %v2956_v24, %v2953_v57  ;;  %v2978_v3 = vshrl.u32 %v2947_v29, 16  ;;  %v2920_v25 = vshrl.u32 %v5475_v4, %v6295_v36 }
 0x175   :  { %v573_v9 = vsel %vm571_vm8, %v558_v58, %v572_v33  ;;  %v1769_v44 = vsel %vm1767_vm11, %v1768_v42, %v1766_v1  ;;  %v2957_v60 = vmul.u32 %v2955_v11, %v2953_v57  ;;  %v1758_v30 = vadd.s32 %v6302_v51, %v6308_v5 }
 0x176   :  { %v577_v49 = vsel %vm570_vm7, %v573_v9, %v576_v31  ;;  %v1770_v40 = vclz %v1769_v44  ;;  %v2961_v61 = vshll.u32 %v2958_v55, 16  ;;  %v2960_v22 = vmul.u32 %v2956_v24, %v2954_v59 }
 0x177   :  { %v578_v17 = vsel %vm567_vm6, nan, %v577_v49  ;;  %v2963_v54 = vshll.u32 %v2959_v20, 16  ;;  %v2980_v63 = vmul.u32 %v2978_v3, %v2953_v57  ;;  %v2981_v0 = vmul.u32 %v2977_v35, %v2954_v59 }
 0x178   :  { %5230 = vst [vmem:[#allocation2 + $0x8] sm:$0xff] %v578_v17  ;;  %v5339_v19 = vadd.s32 4294967294, %v1770_v40  ;;  %vm2965_vm10 = vc.u32 %v2957_v60, %v2961_v61  ;;  %v2967_v7 = vadd.s32 %v2961_v61, %v2957_v60  ;;  %v2941_v37 = vsel %vm2939_vm2, %v6330_v52, 2102212464 }
 0x179   :  { %v2962_v46 = vshrl.u32 %v2958_v55, 16  ;;  %v2966_v36 = vsel %vm2965_vm10, 1, %v5481_v27  ;;  %v2983_v53 = vshll.u32 %v2980_v63, 16  ;;  %v2979_v58 = vmul.u32 %v2977_v35, %v2953_v57  ;;  %v179_v55 = vpop.f32.mrf.mxu0 }
 0x17a   :  { %vm5340_vm14 = vcmp.lt.s32.totalorder %v5339_v19, 0  ;;  %v2968_v62 = vadd.s32 %v2966_v36, %v2960_v22  ;;  %vm2969_vm12 = vc.u32 %v2967_v7, %v2963_v54  ;;  %v2982_v14 = vmul.u32 %v2978_v3, %v2954_v59 }
 0x17b   :  { %v1773_v38 = vsel %vm5340_vm14, 0, %v5339_v19  ;;  %v2970_v16 = vsel %vm2969_vm12, 1, %v5481_v27  ;;  %v2985_v2 = vshll.u32 %v2981_v0, 16  ;;  %vm2987_vm13 = vc.u32 %v2979_v58, %v2983_v53 }
 0x17c   :  { %v1774_v51 = vsub.s32 32, %v1773_v38  ;;  %v1778_v5 = vsub.s32 4294967266, %v1773_v38  ;;  %v1775_v15 = vshll.u32 %v1766_v1, %v1773_v38  ;;  %v2972_v39 = vadd.s32 %v2970_v16, %v2968_v62 }
 0x17d   :  { %v2989_v52 = vadd.s32 %v2983_v53, %v2979_v58  ;;  %v1788_v45 = vsub.s32 4, %v6338_v34  ;;  %v2988_v33 = vsel %vm2987_vm13, 1, %v5481_v27  ;;  %v6382_v11 = vadd.f32 %v6159_v32, %v248_v26 }
 0x17e   :  { %v1776_v48 = vshrl.u32 %v1758_v30, %v1774_v51  ;;  %v1779_v23 = vadd.s32 127, %v1778_v5  ;;  %v2973_v29 = vadd.s32 %v2972_v39, %v2962_v46  ;;  %v2990_v57 = vadd.s32 %v2988_v33, %v2982_v14 }
 0x17f   :  { %vm2991_vm15 = vc.u32 %v2989_v52, %v2985_v2  ;;  %vm1666_vm1 = vcmp.lt.s32.totalorder %v6162_v43, 0  ;;  %v2964_v1 = vshrl.u32 %v2959_v20, 16  ;;  %v4144_v9 = vand.u32 2147483647, %v6382_v11 }
 0x180   :  { %v1777_v42 = vor.u32 %v1776_v48, %v1775_v15  ;;  %v1780_v24 = vshll.u32 %v1779_v23, 23  ;;  %v2992_v59 = vsel %vm2991_vm15, 1, %v5481_v27  ;;  %v2940_v35 = vsel %vm2936_vm3, %v2920_v25, %v6326_v56 }
 0x181   :  { %v2984_v49 = vshrl.u32 %v2980_v63, 16  ;;  %v2994_v44 = vadd.s32 %v2992_v59, %v2990_v57  ;;  %v1789_v3 = vsel %vm1666_vm1, %v1788_v45, %v6338_v34  ;;  %v2942_v20 = vsel %vm2938_vm4, %v6328_v28, %v2941_v37 }
 0x182   :  { %v1781_v31 = vor.u32 4788187, %v1780_v24  ;;  %v2974_v17 = vadd.s32 %v2973_v29, %v2964_v1  ;;  %v4147_v40 = vand.u32 2139095040, %v6382_v11  ;;  %v1784_v61 = vcvt.s32.f32 %v1777_v42 }
 0x183   :  { %v2986_v30 = vshrl.u32 %v2981_v0, 16  ;;  %v2995_v19 = vadd.s32 %v2994_v44, %v2984_v49  ;;  %v2993_v22 = vadd.s32 %v2989_v52, %v2985_v2  ;;  %v4151_v25 = vand.u32 8388607, %v4144_v9 }
 0x184   :  { %v1782_v60 = vand.u32 2147483647, %v1781_v31  ;;  %v4148_v56 = vshrl.u32 %v4147_v40, 23  ;;  %v6400_v54 = vadd.f32 %v6159_v32, %v179_v55  ;;  %v2943_v7 = vsel %vm2937_vm5, %v2940_v35, %v2942_v20 }
 0x185   :  { %v2996_v28 = vadd.s32 %v2995_v19, %v2986_v30  ;;  %vm1665_vm0 = vcmp.le.f32.partialorder %v1664_v50, 0.7853982  ;;  %vm2999_vm2 = vc.u32 %v2974_v17, %v2993_v22  ;;  %v2997_v36 = vmul.u32 %v6358_v47, %v2943_v7 }
 0x186   :  { %v1785_v34 = vmul.f32 %v1784_v61, %v1782_v60  ;;  %v5386_v63 = vadd.s32 4294967169, %v4148_v56  ;;  %v1791_v37 = vsel %vm1665_vm0, 0, %v1789_v3  ;;  %v4152_v38 = vor.u32 8388608, %v4151_v25 }
 0x187   :  { %v3000_v46 = vadd.s32 1, %v2996_v28  ;;  %v582_v32 = vand.u32 2139095040, %v6400_v54  ;;  %v1808_v5 = vadd.s32 3, %v1791_v37  ;;  %vm2906_vm4 = vcmp.lt.s32.totalorder %v6165_v41, 0 }
 0x188   :  { %v1786_v0 = vxor.u32 2147483648, %v1785_v34  ;;  %v4154_v62 = vadd.s32 1, %v5386_v63  ;;  %v6411_v39 = vshll.u32 %v4152_v38, 8  ;;  %v6416_v33 = vadd.s32 %v2993_v22, %v2974_v17 }
 0x189   :  { %v3001_v18 = vsel %vm2999_vm2, %v3000_v46, %v2996_v28  ;;  %v583_v47 = vshrl.u32 %v582_v32, 23  ;;  %v6413_v48 = vand.u32 3, %v1808_v5  ;;  %v579_v42 = vand.u32 2147483647, %v6400_v54 }
 0x18a   :  { %v1787_v53 = vsel %vm1666_vm1, %v1786_v0, %v1785_v34  ;;  %v3002_v16 = vadd.s32 %v3001_v18, %v2997_v36  ;;  %vm4155_vm3 = vcmp.gt.s32.totalorder %v4154_v62, 0  ;;  %v6420_v57 = vand.u32 65535, %v6411_v39 }
 0x18b   :  { %v1790_v51 = vsel %vm1665_vm0, %v6162_v43, %v1787_v53  ;;  %v4156_v58 = vsel %vm4155_vm3, %v4154_v62, 0  ;;  %v6423_v1 = vshrl.u32 %v6411_v39, 16  ;;  %v6425_v59 = vadd.s32 4294967169, %v583_v47 }
 0x18c   :  { %v1792_v50 = vmul.f32 %v1790_v51, %v1790_v51  ;;  %v3003_v26 = vadd.s32 536870912, %v3002_v16  ;;  %v4158_v15 = vand.u32 31, %v4156_v58  ;;  %v6427_v49 = vshrl.u32 %v4156_v58, 5 }
 0x18d   :  { %vm1814_vm5 = vcmp.eq.s32.totalorder %v6413_v48, 2  ;;  %vm1811_vm6 = vcmp.eq.s32.totalorder %v6413_v48, 0  ;;  %vm1810_vm8 = vcmp.lt.s32.totalorder %v6413_v48, 2  ;;  %vm1807_vm9 = vweird.f32 %v6162_v43 }
 0x18e   :  { %v1793_v14 = vmul.f32 -0.001358992, %v1792_v50  ;;  %v1800_v2 = vmul.f32 -0.00019511016, %v1792_v50  ;;  %v3004_v23 = vshrl.u32 %v3003_v26, 30  ;;  %v4159_v52 = vsub.s32 32, %v4158_v15 }
 0x18f   :  { %v4161_v3 = vshll.u32 %v5475_v4, %v4158_v15  ;;  %v4164_v20 = vshll.u32 %v5476_v6, %v4158_v15  ;;  %v4167_v61 = vshll.u32 %v5477_v8, %v4158_v15  ;;  %v4170_v28 = vshll.u32 %v5478_v10, %v4158_v15 }
 0x190   :  { %v1794_v45 = vadd.f32 0.041655596, %v1793_v14  ;;  %v1801_v29 = vadd.f32 0.008332121, %v1800_v2  ;;  %v3005_v24 = vshll.u32 %v3004_v23, 30  ;;  %v4162_v44 = vshrl.u32 %v5476_v6, %v4159_v52 }
 0x191   :  { %v4165_v17 = vshrl.u32 %v5477_v8, %v4159_v52  ;;  %v4168_v30 = vshrl.u32 %v5478_v10, %v4159_v52  ;;  %v3028_v22 = vsub.s32 4, %v3004_v23  ;;  %v4171_v56 = vshrl.u32 %v5479_v12, %v4159_v52 }
 0x192   :  { %v1795_v31 = vmul.f32 %v1794_v45, %v1792_v50  ;;  %v1802_v35 = vmul.f32 %v1801_v29, %v1792_v50  ;;  %v6430_v55 = vsub.s32 %v3002_v16, %v3005_v24  ;;  %v4163_v7 = vor.u32 %v4162_v44, %v4161_v3 }
 0x193   :  { %v4166_v0 = vor.u32 %v4165_v17, %v4164_v20  ;;  %v4173_v37 = vshll.u32 %v5479_v12, %v4158_v15  ;;  %v4174_v46 = vshrl.u32 %v5480_v21, %v4159_v52  ;;  %v4169_v32 = vor.u32 %v4168_v30, %v4167_v61 }
 0x194   :  { %v1796_v40 = vadd.f32 -0.4999988, %v1795_v31  ;;  %v1803_v60 = vadd.f32 -0.16666654, %v1802_v35  ;;  %vm3007_vm7 = vcmp.lt.s32.totalorder %v6430_v55, 0  ;;  %v3008_v19 = vsub.s32 0, %v6430_v55 }
 0x195   :  { %v6450_v53 = vsel %vm2906_vm4, %v3028_v22, %v3004_v23  ;;  %v4160_v18 = vshrl.u32 %v5475_v4, %v4159_v52  ;;  %v4172_v5 = vor.u32 %v4171_v56, %v4170_v28  ;;  %v4175_v16 = vor.u32 %v4174_v46, %v4173_v37 }
 0x196   :  { %v1797_v25 = vmul.f32 %v1796_v40, %v1792_v50  ;;  %v1804_v34 = vmul.f32 %v1803_v60, %v1792_v50  ;;  %v3009_v63 = vsel %vm3007_vm7, %v3008_v19, %v6430_v55  ;;  %vm4176_vm11 = vcmp.lt.s32.totalorder %v6427_v49, 1 }
 0x197   :  { %v3010_v62 = vclz %v3009_v63  ;;  %vm6456_vm10 = vcmp.le.f32.partialorder %v2904_v13, 0.7853982  ;;  %vm4177_vm14 = vcmp.lt.s32.totalorder %v6427_v49, 2  ;;  %vm4178_vm12 = vcmp.lt.s32.totalorder %v6427_v49, 3 }
 0x198   :  { %v1798_v36 = vadd.f32 1.0, %v1797_v25  ;;  %v1805_v38 = vadd.f32 1.0, %v1804_v34  ;;  %vm4179_vm13 = vcmp.lt.s32.totalorder %v6427_v49, 4  ;;  %v4180_v47 = vsel %vm4176_vm11, %v4160_v18, %v4163_v7 }
 0x199   :  { %v5363_v26 = vadd.s32 4294967294, %v3010_v62  ;;  %v4188_v2 = vsel %vm4176_vm11, %v4166_v0, %v4169_v32  ;;  %v4185_v45 = vsel %vm4179_vm13, %v4172_v5, 920167782  ;;  %v4189_v13 = vsel %vm4179_vm13, %v4175_v16, 1326507024 }
 0x19a   :  { %v1806_v50 = vmul.f32 %v1805_v38, %v1790_v51  ;;  %v1815_v58 = vxor.u32 2147483648, %v1798_v36  ;;  %v4184_v51 = vsel %vm4176_vm11, %v4163_v7, %v4166_v0  ;;  %v4181_v35 = vsel %vm4179_vm13, %v4169_v32, 2102212464 }
 0x19b   :  { %vm5364_vm15 = vcmp.lt.s32.totalorder %v5363_v26, 0  ;;  %v4186_v20 = vsel %vm4178_vm12, %v4169_v32, %v4185_v45  ;;  %v4190_v17 = vsel %vm4178_vm12, %v4172_v5, %v4189_v13  ;;  %v4182_v48 = vsel %vm4178_vm12, %v4166_v0, %v4181_v35 }
 0x19c   :  { %v1812_v14 = vxor.u32 2147483648, %v1806_v50  ;;  %v1816_v23 = vsel %vm1814_vm5, %v1815_v58, %v1806_v50  ;;  %v3013_v52 = vsel %vm5364_vm15, 0, %v5363_v26  ;;  %v4187_v30 = vsel %vm4177_vm14, %v4184_v51, %v4186_v20 }
 0x19d   :  { %v3014_v24 = vsub.s32 32, %v3013_v52  ;;  %v3018_v31 = vsub.s32 4294967266, %v3013_v52  ;;  %v3015_v3 = vshll.u32 %v6430_v55, %v3013_v52  ;;  %v4191_v55 = vsel %vm4177_vm14, %v4188_v2, %v4190_v17 }
 0x19e   :  { %v1813_v29 = vsel %vm1811_vm6, %v1798_v36, %v1812_v14  ;;  %v4217_v19 = vand.u32 65535, %v4187_v30  ;;  %v4218_v22 = vshrl.u32 %v4187_v30, 16  ;;  %v4195_v34 = vand.u32 65535, %v4191_v55 }
 0x19f   :  { %v1817_v44 = vsel %vm1810_vm8, %v1813_v29, %v1816_v23  ;;  %v3016_v60 = vshrl.u32 %v6416_v33, %v3014_v24  ;;  %v3019_v61 = vadd.s32 127, %v3018_v31  ;;  %v4196_v43 = vshrl.u32 %v4191_v55, 16 }
 0x1a0   :  { %v1818_v40 = vsel %vm1807_vm9, nan, %v1817_v44  ;;  %v4220_v7 = vmul.u32 %v4218_v22, %v6420_v57  ;;  %v4221_v33 = vmul.u32 %v4217_v19, %v6423_v1  ;;  %v6487_v28 = vand.u32 8388607, %v579_v42 }
 0x1a1   :  { %5238 = vst [vmem:[#allocation2 + $0x48] sm:$0xff] %v1818_v40  ;;  %v3017_v56 = vor.u32 %v3016_v60, %v3015_v3  ;;  %v3020_v25 = vshll.u32 %v3019_v61, 23  ;;  %v589_v63 = vadd.s32 1, %v6425_v59  ;;  %v3031_v37 = vsel %vm6456_vm10, 0, %v6450_v53 }
 0x1a2   :  { %v6495_v46 = vsel %vm4177_vm14, %v4180_v47, %v4182_v48  ;;  %v4198_v36 = vmul.u32 %v4196_v43, %v6420_v57  ;;  %v4199_v38 = vmul.u32 %v4195_v34, %v6423_v1  ;;  %v4219_v62 = vmul.u32 %v4217_v19, %v6420_v57 }
 0x1a3   :  { %v3021_v0 = vor.u32 4788187, %v3020_v25  ;;  %v4222_v32 = vmul.u32 %v4218_v22, %v6423_v1  ;;  %v4223_v18 = vshll.u32 %v4220_v7, 16  ;;  %v3024_v59 = vcvt.s32.f32 %v3017_v56 }
 0x1a4   :  { %v4197_v16 = vmul.u32 %v4195_v34, %v6420_v57  ;;  %v4201_v50 = vshll.u32 %v4198_v36, 16  ;;  %v4200_v53 = vmul.u32 %v4196_v43, %v6423_v1  ;;  %v4203_v58 = vshll.u32 %v4199_v38, 16 }
 0x1a5   :  { %v3022_v5 = vand.u32 2147483647, %v3021_v0  ;;  %v4225_v49 = vshll.u32 %v4221_v33, 16  ;;  %vm4227_vm1 = vc.u32 %v4219_v62, %v4223_v18  ;;  %v4229_v2 = vadd.s32 %v4223_v18, %v4219_v62 }
 0x1a6   :  { %vm4205_vm0 = vc.u32 %v4197_v16, %v4201_v50  ;;  %v4207_v47 = vadd.s32 %v4201_v50, %v4197_v16  ;;  %v4228_v14 = vsel %vm4227_vm1, 1, %v5481_v27  ;;  %vm590_vm2 = vcmp.gt.s32.totalorder %v589_v63, 0 }
 0x1a7   :  { %v3025_v26 = vmul.f32 %v3024_v59, %v3022_v5  ;;  %v4206_v51 = vsel %vm4205_vm0, 1, %v5481_v27  ;;  %v4230_v23 = vadd.s32 %v4228_v14, %v4222_v32  ;;  %v591_v57 = vsel %vm590_vm2, %v589_v63, 0 }
 0x1a8   :  { %v4208_v45 = vadd.s32 %v4206_v51, %v4200_v53  ;;  %vm4209_vm3 = vc.u32 %v4207_v47, %v4203_v58  ;;  %v3048_v13 = vadd.s32 3, %v3031_v37  ;;  %v4202_v29 = vshrl.u32 %v4198_v36, 16 }
 0x1a9   :  { %v3026_v52 = vxor.u32 2147483648, %v3025_v26  ;;  %v4210_v1 = vsel %vm4209_vm3, 1, %v5481_v27  ;;  %vm4231_vm5 = vc.u32 %v4229_v2, %v4225_v49  ;;  %v593_v44 = vand.u32 31, %v591_v57 }
 0x1aa   :  { %v4212_v31 = vadd.s32 %v4210_v1, %v4208_v45  ;;  %v4232_v35 = vsel %vm4231_vm5, 1, %v5481_v27  ;;  %v4224_v20 = vshrl.u32 %v4220_v7, 16  ;;  %v4237_v40 = vmul.u32 %v6411_v39, %v6495_v46 }
 0x1ab   :  { %v3027_v24 = vsel %vm2906_vm4, %v3026_v52, %v3025_v26  ;;  %v4234_v17 = vadd.s32 %v4232_v35, %v4230_v23  ;;  %v4204_v61 = vshrl.u32 %v4199_v38, 16  ;;  %v594_v48 = vsub.s32 32, %v593_v44 }
 0x1ac   :  { %v3030_v3 = vsel %vm6456_vm10, %v6165_v41, %v3027_v24  ;;  %v4213_v30 = vadd.s32 %v4212_v31, %v4202_v29  ;;  %v4226_v55 = vshrl.u32 %v4221_v33, 16  ;;  %v6514_v19 = vadd.s32 %v4229_v2, %v4225_v49 }
 0x1ad   :  { %v3032_v60 = vmul.f32 %v3030_v3, %v3030_v3  ;;  %v4235_v22 = vadd.s32 %v4234_v17, %v4224_v20  ;;  %v599_v56 = vshll.u32 %v5476_v6, %v593_v44  ;;  %v6519_v15 = vshrl.u32 %v591_v57, 5 }
 0x1ae   :  { %v6517_v43 = vadd.s32 %v4213_v30, %v4204_v61  ;;  %v600_v63 = vshrl.u32 %v5477_v8, %v594_v48  ;;  %v602_v39 = vshll.u32 %v5477_v8, %v593_v44  ;;  %v603_v0 = vshrl.u32 %v5478_v10, %v594_v48 }
 0x1af   :  { %v3033_v25 = vmul.f32 -0.001358992, %v3032_v60  ;;  %v3040_v34 = vmul.f32 -0.00019511016, %v3032_v60  ;;  %v4236_v7 = vadd.s32 %v4235_v22, %v4226_v55  ;;  %v605_v46 = vshll.u32 %v5478_v10, %v593_v44 }
 0x1b0   :  { %vm4239_vm4 = vc.u32 %v6517_v43, %v6514_v19  ;;  %v596_v38 = vshll.u32 %v5475_v4, %v593_v44  ;;  %v597_v62 = vshrl.u32 %v5476_v6, %v594_v48  ;;  %v6529_v32 = vor.u32 %v600_v63, %v599_v56 }
 0x1b1   :  { %v3034_v37 = vadd.f32 0.041655596, %v3033_v25  ;;  %v3041_v33 = vadd.f32 0.008332121, %v3040_v34  ;;  %v4240_v36 = vadd.s32 1, %v4236_v7  ;;  %v606_v59 = vshrl.u32 %v5479_v12, %v594_v48 }
 0x1b2   :  { %v608_v16 = vshll.u32 %v5479_v12, %v593_v44  ;;  %v6533_v53 = vor.u32 %v603_v0, %v602_v39  ;;  %v609_v58 = vshrl.u32 %v5480_v21, %v594_v48  ;;  %vm614_vm6 = vcmp.lt.s32.totalorder %v6519_v15, 4 }
 0x1b3   :  { %v3035_v18 = vmul.f32 %v3034_v37, %v3032_v60  ;;  %v3042_v5 = vmul.f32 %v3041_v33, %v3032_v60  ;;  %v4241_v50 = vsel %vm4239_vm4, %v4240_v36, %v4236_v7  ;;  %v607_v14 = vor.u32 %v606_v59, %v605_v46 }
 0x1b4   :  { %v4242_v47 = vadd.s32 %v4241_v50, %v4237_v40  ;;  %v587_v51 = vor.u32 8388608, %v6487_v28  ;;  %v598_v2 = vor.u32 %v597_v62, %v596_v38  ;;  %v610_v23 = vor.u32 %v609_v58, %v608_v16 }
 0x1b5   :  { %v3036_v49 = vadd.f32 -0.4999988, %v3035_v18  ;;  %v3043_v26 = vadd.f32 -0.16666654, %v3042_v5  ;;  %vm611_vm7 = vcmp.lt.s32.totalorder %v6519_v15, 1  ;;  %vm613_vm8 = vcmp.lt.s32.totalorder %v6519_v15, 3 }
 0x1b6   :  { %v4243_v57 = vadd.s32 536870912, %v4242_v47  ;;  %v3049_v29 = vand.u32 3, %v3048_v13  ;;  %v620_v1 = vsel %vm614_vm6, %v607_v14, 920167782  ;;  %v624_v24 = vsel %vm614_vm6, %v610_v23, 1326507024 }
 0x1b7   :  { %v3037_v52 = vmul.f32 %v3036_v49, %v3032_v60  ;;  %v3044_v45 = vmul.f32 %v3043_v26, %v3032_v60  ;;  %v623_v28 = vsel %vm611_vm7, %v6529_v32, %v6533_v53  ;;  %v619_v20 = vsel %vm611_vm7, %v598_v2, %v6529_v32 }
 0x1b8   :  { %v6544_v44 = vshrl.u32 %v4243_v57, 30  ;;  %v621_v13 = vsel %vm613_vm8, %v6533_v53, %v620_v1  ;;  %v625_v17 = vsel %vm613_vm8, %v607_v14, %v624_v24  ;;  %v6558_v40 = vshll.u32 %v587_v51, 8 }
 0x1b9   :  { %v3038_v31 = vadd.f32 1.0, %v3037_v52  ;;  %v3045_v35 = vadd.f32 1.0, %v3044_v45  ;;  %vm612_vm9 = vcmp.lt.s32.totalorder %v6519_v15, 2  ;;  %vm3050_vm11 = vcmp.lt.s32.totalorder %v3049_v29, 2 }
 0x1ba   :  { %v4245_v30 = vshll.u32 %v6544_v44, 30  ;;  %vm3051_vm10 = vcmp.eq.s32.totalorder %v3049_v29, 0  ;;  %vm3054_vm14 = vcmp.eq.s32.totalorder %v3049_v29, 2  ;;  %v626_v55 = vsel %vm612_vm9, %v623_v28, %v625_v17 }
 0x1bb   :  { %v3046_v60 = vmul.f32 %v3045_v35, %v3030_v3  ;;  %v3055_v61 = vxor.u32 2147483648, %v3038_v31  ;;  %v595_v25 = vshrl.u32 %v5475_v4, %v594_v48  ;;  %v622_v34 = vsel %vm612_vm9, %v619_v20, %v621_v13  ;;  %v203_v20 = vpop.f32.mrf.mxu1 }
 0x1bc   :  { %v4246_v56 = vsub.s32 %v4242_v47, %v4245_v30  ;;  %v628_v3 = vand.u32 65535, %v6558_v40  ;;  %v629_v7 = vshrl.u32 %v6558_v40, 16  ;;  %v630_v63 = vand.u32 65535, %v626_v55 }
 0x1bd   :  { %v3052_v22 = vxor.u32 2147483648, %v3046_v60  ;;  %v631_v39 = vshrl.u32 %v626_v55, 16  ;;  %v3056_v37 = vsel %vm3054_vm14, %v3055_v61, %v3046_v60  ;;  %vm3047_vm13 = vweird.f32 %v6165_v41 }
 0x1be   :  { %vm4247_vm12 = vcmp.lt.s32.totalorder %v4246_v56, 0  ;;  %v4248_v33 = vsub.s32 0, %v4246_v56  ;;  %v634_v38 = vmul.u32 %v630_v63, %v629_v7  ;;  %v652_v18 = vand.u32 65535, %v622_v34 }
 0x1bf   :  { %v3053_v0 = vsel %vm3051_vm10, %v3038_v31, %v3052_v22  ;;  %v633_v36 = vmul.u32 %v631_v39, %v628_v3  ;;  %v653_v5 = vshrl.u32 %v622_v34, 16  ;;  %v632_v16 = vmul.u32 %v630_v63, %v628_v3 }
 0x1c0   :  { %v3057_v46 = vsel %vm3050_vm11, %v3053_v0, %v3056_v37  ;;  %v4249_v62 = vsel %vm4247_vm12, %v4248_v33, %v4246_v56  ;;  %v4238_v58 = vadd.s32 %v6514_v19, %v6517_v43  ;;  %v615_v49 = vsel %vm611_vm7, %v595_v25, %v598_v2 }
 0x1c1   :  { %v3058_v48 = vsel %vm3047_vm13, nan, %v3057_v46  ;;  %v4250_v59 = vclz %v4249_v62  ;;  %v636_v50 = vshll.u32 %v633_v36, 16  ;;  %v635_v26 = vmul.u32 %v631_v39, %v629_v7 }
 0x1c2   :  { %5246 = vst [vmem:[#allocation2 + $0x88] sm:$0xff] %v3058_v48  ;;  %v638_v47 = vshll.u32 %v634_v38, 16  ;;  %vm4146_vm1 = vcmp.lt.s32.totalorder %v6382_v11, 0  ;;  %v4268_v51 = vsub.s32 4, %v6544_v44  ;;  %v655_v52 = vmul.u32 %v653_v5, %v628_v3 }
 0x1c3   :  { %v5387_v41 = vadd.s32 4294967294, %v4250_v59  ;;  %vm640_vm15 = vc.u32 %v632_v16, %v636_v50  ;;  %v642_v14 = vadd.s32 %v636_v50, %v632_v16  ;;  %v656_v45 = vmul.u32 %v652_v18, %v629_v7  ;;  %v227_v50 = vpop.f32.mrf.mxu2 }
 0x1c4   :  { %v641_v23 = vsel %vm640_vm15, 1, %v5481_v27  ;;  %v637_v57 = vshrl.u32 %v633_v36, 16  ;;  %v654_v2 = vmul.u32 %v652_v18, %v628_v3  ;;  %v658_v1 = vshll.u32 %v655_v52, 16  ;;  %v6586_v3 = vld [vmem:[%s9088_s2] ss:$0 sm:$0xff] }
 0x1c5   :  { %vm5388_vm0 = vcmp.lt.s32.totalorder %v5387_v41, 0  ;;  %v643_v29 = vadd.s32 %v641_v23, %v635_v26  ;;  %vm644_vm2 = vc.u32 %v642_v14, %v638_v47  ;;  %v657_v28 = vmul.u32 %v653_v5, %v629_v7 }
 0x1c6   :  { %v4253_v19 = vsel %vm5388_vm0, 0, %v5387_v41  ;;  %v645_v43 = vsel %vm644_vm2, 1, %v5481_v27  ;;  %v660_v17 = vshll.u32 %v656_v45, 16  ;;  %vm662_vm3 = vc.u32 %v654_v2, %v658_v1 }
 0x1c7   :  { %v4254_v24 = vsub.s32 32, %v4253_v19  ;;  %v4258_v31 = vsub.s32 4294967266, %v4253_v19  ;;  %v647_v35 = vadd.s32 %v645_v43, %v643_v29  ;;  %v4255_v13 = vshll.u32 %v4246_v56, %v4253_v19 }
 0x1c8   :  { %v664_v60 = vadd.s32 %v658_v1, %v654_v2  ;;  %v663_v22 = vsel %vm662_vm3, 1, %v5481_v27  ;;  %v616_v25 = vsel %vm614_vm6, %v6533_v53, 2102212464  ;;  %v6589_v56 = vadd.f32 %v6586_v3, %v203_v20 }
 0x1c9   :  { %v4256_v61 = vshrl.u32 %v4238_v58, %v4254_v24  ;;  %v4259_v30 = vadd.s32 127, %v4258_v31  ;;  %v648_v55 = vadd.s32 %v647_v35, %v637_v57  ;;  %v665_v34 = vadd.s32 %v663_v22, %v657_v28 }
 0x1ca   :  { %vm666_vm5 = vc.u32 %v664_v60, %v660_v17  ;;  %v639_v39 = vshrl.u32 %v634_v38, 16  ;;  %v659_v37 = vshrl.u32 %v655_v52, 16  ;;  %v1819_v46 = vand.u32 2147483647, %v6589_v56 }
 0x1cb   :  { %v4257_v7 = vor.u32 %v4256_v61, %v4255_v13  ;;  %v4260_v63 = vshll.u32 %v4259_v30, 23  ;;  %v667_v0 = vsel %vm666_vm5, 1, %v5481_v27  ;;  %v1822_v53 = vand.u32 2139095040, %v6589_v56 }
 0x1cc   :  { %v669_v33 = vadd.s32 %v667_v0, %v665_v34  ;;  %v4269_v48 = vsel %vm4146_vm1, %v4268_v51, %v6544_v44  ;;  %v617_v62 = vsel %vm613_vm8, %v6529_v32, %v616_v25  ;;  %v649_v18 = vadd.s32 %v648_v55, %v639_v39 }
 0x1cd   :  { %v4261_v36 = vor.u32 4788187, %v4260_v63  ;;  %v661_v5 = vshrl.u32 %v656_v45, 16  ;;  %v1823_v59 = vshrl.u32 %v1822_v53, 23  ;;  %v1826_v16 = vand.u32 8388607, %v1819_v46 }
 0x1ce   :  { %v670_v38 = vadd.s32 %v669_v33, %v659_v37  ;;  %v4264_v26 = vcvt.s32.f32 %v4257_v7  ;;  %v668_v41 = vadd.s32 %v664_v60, %v660_v17  ;;  %vm6604_vm4 = vcmp.le.f32.partialorder %v4144_v9, 0.7853982 }
 0x1cf   :  { %v4262_v58 = vand.u32 2147483647, %v4261_v36  ;;  %v618_v32 = vsel %vm612_vm9, %v615_v49, %v617_v62  ;;  %v5341_v14 = vadd.s32 4294967169, %v1823_v59  ;;  %v4271_v23 = vsel %vm6604_vm4, 0, %v4269_v48 }
 0x1d0   :  { %v671_v44 = vadd.s32 %v670_v38, %v661_v5  ;;  %vm674_vm6 = vc.u32 %v649_v18, %v668_v41  ;;  %v6613_v52 = vadd.f32 %v6586_v3, %v227_v50  ;;  %v1827_v57 = vor.u32 8388608, %v1826_v16 }
 0x1d1   :  { %v4265_v51 = vmul.f32 %v4264_v26, %v4262_v58  ;;  %v1829_v29 = vadd.s32 1, %v5341_v14  ;;  %v672_v19 = vmul.u32 %v6558_v40, %v618_v32  ;;  %v4288_v43 = vadd.s32 3, %v4271_v23 }
 0x1d2   :  { %v675_v45 = vadd.s32 1, %v671_v44  ;;  %v3062_v24 = vand.u32 2139095040, %v6613_v52  ;;  %v6624_v28 = vshll.u32 %v1827_v57, 8  ;;  %v3059_v40 = vand.u32 2147483647, %v6613_v52 }
 0x1d3   :  { %v4266_v9 = vxor.u32 2147483648, %v4265_v51  ;;  %vm1830_vm7 = vcmp.gt.s32.totalorder %v1829_v29, 0  ;;  %v6629_v17 = vand.u32 3, %v4288_v43  ;;  %v6631_v60 = vadd.s32 %v668_v41, %v649_v18 }
 0x1d4   :  { %v676_v2 = vsel %vm674_vm6, %v675_v45, %v671_v44  ;;  %v1831_v1 = vsel %vm1830_vm7, %v1829_v29, 0  ;;  %v3063_v25 = vshrl.u32 %v3062_v24, 23  ;;  %v6636_v63 = vand.u32 65535, %v6624_v28 }
 0x1d5   :  { %v4267_v15 = vsel %vm4146_vm1, %v4266_v9, %v4265_v51  ;;  %v677_v49 = vadd.s32 %v676_v2, %v672_v19  ;;  %v1833_v35 = vand.u32 31, %v1831_v1  ;;  %v6640_v39 = vand.u32 8388607, %v3059_v40 }
 0x1d6   :  { %v6622_v31 = vsel %vm6604_vm4, %v6382_v11, %v4267_v15  ;;  %v6643_v53 = vshrl.u32 %v6624_v28, 16  ;;  %vm581_vm8 = vcmp.lt.s32.totalorder %v6400_v54, 0  ;;  %v6652_v16 = vshrl.u32 %v1831_v1, 5 }
 0x1d7   :  { %v4272_v20 = vmul.f32 %v6622_v31, %v6622_v31  ;;  %v678_v13 = vadd.s32 536870912, %v677_v49  ;;  %v1834_v61 = vsub.s32 32, %v1833_v35  ;;  %v1836_v34 = vshll.u32 %v5475_v4, %v1833_v35 }
 0x1d8   :  { %v1839_v36 = vshll.u32 %v5476_v6, %v1833_v35  ;;  %v1845_v62 = vshll.u32 %v5478_v10, %v1833_v35  ;;  %vm4294_vm9 = vcmp.eq.s32.totalorder %v6629_v17, 2  ;;  %v1842_v26 = vshll.u32 %v5477_v8, %v1833_v35 }
 0x1d9   :  { %v4273_v30 = vmul.f32 -0.001358992, %v4272_v20  ;;  %v4280_v55 = vmul.f32 -0.00019511016, %v4272_v20  ;;  %v679_v22 = vshrl.u32 %v678_v13, 30  ;;  %v1837_v7 = vshrl.u32 %v5476_v6, %v1834_v61 }
 0x1da   :  { %v1840_v48 = vshrl.u32 %v5477_v8, %v1834_v61  ;;  %v1846_v18 = vshrl.u32 %v5479_v12, %v1834_v61  ;;  %v1843_v41 = vshrl.u32 %v5478_v10, %v1834_v61  ;;  %vm4291_vm10 = vcmp.eq.s32.totalorder %v6629_v17, 0 }
 0x1db   :  { %v4274_v0 = vadd.f32 0.041655596, %v4273_v30  ;;  %v4281_v37 = vadd.f32 0.008332121, %v4280_v55  ;;  %v680_v33 = vshll.u32 %v679_v22, 30  ;;  %v703_v50 = vsub.s32 4, %v679_v22 }
 0x1dc   :  { %v6655_v58 = vor.u32 %v1837_v7, %v1836_v34  ;;  %v6662_v14 = vor.u32 %v1840_v48, %v1839_v36  ;;  %v1847_v51 = vor.u32 %v1846_v18, %v1845_v62  ;;  %v1848_v23 = vshll.u32 %v5479_v12, %v1833_v35 }
 0x1dd   :  { %v4275_v5 = vmul.f32 %v4274_v0, %v4272_v20  ;;  %v4282_v38 = vmul.f32 %v4281_v37, %v4272_v20  ;;  %v6650_v59 = vsub.s32 %v677_v49, %v680_v33  ;;  %v1849_v45 = vshrl.u32 %v5480_v21, %v1834_v61 }
 0x1de   :  { %vm4290_vm14 = vcmp.lt.s32.totalorder %v6629_v17, 2  ;;  %vm1851_vm12 = vcmp.lt.s32.totalorder %v6652_v16, 1  ;;  %vm4287_vm13 = vweird.f32 %v6382_v11  ;;  %v1844_v43 = vor.u32 %v1843_v41, %v1842_v26 }
 0x1df   :  { %v4276_v47 = vadd.f32 -0.4999988, %v4275_v5  ;;  %v4283_v32 = vadd.f32 -0.16666654, %v4282_v38  ;;  %vm682_vm11 = vcmp.lt.s32.totalorder %v6650_v59, 0  ;;  %v683_v44 = vsub.s32 0, %v6650_v59 }
 0x1e0   :  { %vm1854_vm15 = vcmp.lt.s32.totalorder %v6652_v16, 4  ;;  %v5365_v2 = vadd.s32 4294967169, %v3063_v25  ;;  %vm1853_vm1 = vcmp.lt.s32.totalorder %v6652_v16, 3  ;;  %v3067_v1 = vor.u32 8388608, %v6640_v39 }
 0x1e1   :  { %v4277_v57 = vmul.f32 %v4276_v47, %v4272_v20  ;;  %v4284_v29 = vmul.f32 %v4283_v32, %v4272_v20  ;;  %v684_v9 = vsel %vm682_vm11, %v683_v44, %v6650_v59  ;;  %vm6675_vm0 = vcmp.le.f32.partialorder %v579_v42, 0.7853982 }
 0x1e2   :  { %v685_v19 = vclz %v684_v9  ;;  %v1835_v20 = vshrl.u32 %v5475_v4, %v1834_v61  ;;  %v1850_v13 = vor.u32 %v1849_v45, %v1848_v23  ;;  %v1859_v30 = vsel %vm1851_vm12, %v6655_v58, %v6662_v14 }
 0x1e3   :  { %v4278_v15 = vadd.f32 1.0, %v4277_v57  ;;  %v4285_v49 = vadd.f32 1.0, %v4284_v29  ;;  %v6687_v34 = vsel %vm581_vm8, %v703_v50, %v679_v22  ;;  %v1860_v42 = vsel %vm1854_vm15, %v1847_v51, 920167782 }
 0x1e4   :  { %v5318_v35 = vadd.s32 4294967294, %v685_v19  ;;  %vm1852_vm3 = vcmp.lt.s32.totalorder %v6652_v16, 2  ;;  %v1861_v61 = vsel %vm1853_vm1, %v1844_v43, %v1860_v42  ;;  %v1863_v7 = vsel %vm1851_vm12, %v6662_v14, %v1844_v43 }
 0x1e5   :  { %v4286_v55 = vmul.f32 %v4285_v49, %v6622_v31  ;;  %v4295_v25 = vxor.u32 2147483648, %v4278_v15  ;;  %v1862_v22 = vsel %vm1852_vm3, %v1859_v30, %v1861_v61  ;;  %v1864_v62 = vsel %vm1854_vm15, %v1850_v13, 1326507024 }
 0x1e6   :  { %vm5319_vm2 = vcmp.lt.s32.totalorder %v5318_v35, 0  ;;  %v1865_v5 = vsel %vm1853_vm1, %v1847_v51, %v1864_v62  ;;  %v1892_v38 = vand.u32 65535, %v1862_v22  ;;  %v1893_v50 = vshrl.u32 %v1862_v22, 16 }
 0x1e7   :  { %v4292_v0 = vxor.u32 2147483648, %v4286_v55  ;;  %v4296_v31 = vsel %vm4294_vm9, %v4295_v25, %v4286_v55  ;;  %v688_v37 = vsel %vm5319_vm2, 0, %v5318_v35  ;;  %v3069_v45 = vadd.s32 1, %v5365_v2 }
 0x1e8   :  { %v689_v33 = vsub.s32 32, %v688_v37  ;;  %v690_v36 = vshll.u32 %v6650_v59, %v688_v37  ;;  %v693_v48 = vsub.s32 4294967266, %v688_v37  ;;  %v1866_v59 = vsel %vm1852_vm3, %v1863_v7, %v1865_v5 }
 0x1e9   :  { %v4293_v18 = vsel %vm4291_vm10, %v4278_v15, %v4292_v0  ;;  %v1870_v44 = vand.u32 65535, %v1866_v59  ;;  %v1871_v23 = vshrl.u32 %v1866_v59, 16  ;;  %v1895_v29 = vmul.u32 %v1893_v50, %v6636_v63 }
 0x1ea   :  { %v4297_v26 = vsel %vm4290_vm14, %v4293_v18, %v4296_v31  ;;  %v691_v41 = vshrl.u32 %v6631_v60, %v689_v33  ;;  %v694_v47 = vadd.s32 127, %v693_v48  ;;  %v1896_v17 = vmul.u32 %v1892_v38, %v6643_v53 }
 0x1eb   :  { %v4298_v32 = vsel %vm4287_vm13, nan, %v4297_v26  ;;  %v706_v60 = vsel %vm6675_vm0, 0, %v6687_v34  ;;  %v1855_v9 = vsel %vm1851_vm12, %v1835_v20, %v6655_v58  ;;  %v1873_v11 = vmul.u32 %v1871_v23, %v6636_v63 }
 0x1ec   :  { %5254 = vst [vmem:[#allocation2 + $0xc8] sm:$0xff] %v4298_v32  ;;  %v692_v57 = vor.u32 %v691_v41, %v690_v36  ;;  %v695_v51 = vshll.u32 %v694_v47, 23  ;;  %v1874_v19 = vmul.u32 %v1870_v44, %v6643_v53  ;;  %v1856_v15 = vsel %vm1854_vm15, %v1844_v43, 2102212464 }
 0x1ed   :  { %v1894_v49 = vmul.u32 %v1892_v38, %v6636_v63  ;;  %v1898_v35 = vshll.u32 %v1895_v29, 16  ;;  %v1872_v30 = vmul.u32 %v1870_v44, %v6636_v63  ;;  %v1875_v55 = vmul.u32 %v1871_v23, %v6643_v53 }
 0x1ee   :  { %v696_v2 = vor.u32 4788187, %v695_v51  ;;  %v699_v13 = vcvt.s32.f32 %v692_v57  ;;  %v1876_v25 = vshll.u32 %v1873_v11, 16  ;;  %v1878_v42 = vshll.u32 %v1874_v19, 16 }
 0x1ef   :  { %v1897_v58 = vmul.u32 %v1893_v50, %v6643_v53  ;;  %v1900_v20 = vshll.u32 %v1896_v17, 16  ;;  %vm1902_vm4 = vc.u32 %v1894_v49, %v1898_v35  ;;  %v1904_v7 = vadd.s32 %v1898_v35, %v1894_v49 }
 0x1f0   :  { %v697_v34 = vand.u32 2147483647, %v696_v2  ;;  %vm1880_vm5 = vc.u32 %v1872_v30, %v1876_v25  ;;  %v1882_v61 = vadd.s32 %v1876_v25, %v1872_v30  ;;  %v1857_v43 = vsel %vm1853_vm1, %v6662_v14, %v1856_v15 }
 0x1f1   :  { %v1881_v31 = vsel %vm1880_vm5, 1, %v5481_v27  ;;  %v1903_v63 = vsel %vm1902_vm4, 1, %v5481_v27  ;;  %vm1906_vm7 = vc.u32 %v1904_v7, %v1900_v20  ;;  %v1877_v53 = vshrl.u32 %v1873_v11, 16 }
 0x1f2   :  { %v700_v0 = vmul.f32 %v699_v13, %v697_v34  ;;  %v1883_v37 = vadd.s32 %v1881_v31, %v1875_v55  ;;  %vm1884_vm6 = vc.u32 %v1882_v61, %v1878_v42  ;;  %v1905_v22 = vadd.s32 %v1903_v63, %v1897_v58 }
 0x1f3   :  { %v1885_v36 = vsel %vm1884_vm6, 1, %v5481_v27  ;;  %v1907_v48 = vsel %vm1906_vm7, 1, %v5481_v27  ;;  %v1899_v18 = vshrl.u32 %v1895_v29, 16  ;;  %vm3070_vm9 = vcmp.gt.s32.totalorder %v3069_v45, 0 }
 0x1f4   :  { %v701_v33 = vxor.u32 2147483648, %v700_v0  ;;  %v1887_v62 = vadd.s32 %v1885_v36, %v1883_v37  ;;  %v1909_v5 = vadd.s32 %v1907_v48, %v1905_v22  ;;  %v723_v38 = vadd.s32 3, %v706_v60 }
 0x1f5   :  { %v1879_v50 = vshrl.u32 %v1874_v19, 16  ;;  %v3071_v26 = vsel %vm3070_vm9, %v3069_v45, 0  ;;  %v1901_v59 = vshrl.u32 %v1896_v17, 16  ;;  %v1858_v23 = vsel %vm1852_vm3, %v1855_v9, %v1857_v43 }
 0x1f6   :  { %v702_v14 = vsel %vm581_vm8, %v701_v33, %v700_v0  ;;  %v1888_v47 = vadd.s32 %v1887_v62, %v1877_v53  ;;  %v1910_v32 = vadd.s32 %v1909_v5, %v1899_v18  ;;  %v3073_v57 = vand.u32 31, %v3071_v26 }
 0x1f7   :  { %v705_v41 = vsel %vm6675_vm0, %v6400_v54, %v702_v14  ;;  %v6747_v29 = vadd.s32 %v1904_v7, %v1900_v20  ;;  %v6749_v45 = vand.u32 3, %v723_v38  ;;  %v1912_v24 = vmul.u32 %v6624_v28, %v1858_v23 }
 0x1f8   :  { %v707_v44 = vmul.f32 %v705_v41, %v705_v41  ;;  %v6745_v51 = vadd.s32 %v1888_v47, %v1879_v50  ;;  %v1911_v11 = vadd.s32 %v1910_v32, %v1901_v59  ;;  %v6751_v2 = vsub.s32 32, %v3073_v57 }
 0x1f9   :  { %v6758_v16 = vshll.u32 %v3067_v1, 8  ;;  %v6760_v49 = vshrl.u32 %v3071_v26, 5  ;;  %v3076_v30 = vshll.u32 %v5475_v4, %v3073_v57  ;;  %v3079_v34 = vshll.u32 %v5476_v6, %v3073_v57 }
 0x1fa   :  { %v708_v60 = vmul.f32 -0.001358992, %v707_v44  ;;  %v715_v19 = vmul.f32 -0.00019511016, %v707_v44  ;;  %vm1914_vm8 = vc.u32 %v6745_v51, %v6747_v29  ;;  %v1915_v17 = vadd.s32 1, %v1911_v11 }
 0x1fb   :  { %v3077_v35 = vshrl.u32 %v5476_v6, %v6751_v2  ;;  %v3080_v28 = vshrl.u32 %v5477_v8, %v6751_v2  ;;  %v3083_v55 = vshrl.u32 %v5478_v10, %v6751_v2  ;;  %v3082_v58 = vshll.u32 %v5477_v8, %v3073_v57 }
 0x1fc   :  { %v709_v9 = vadd.f32 0.041655596, %v708_v60  ;;  %v716_v15 = vadd.f32 0.008332121, %v715_v19  ;;  %v1916_v13 = vsel %vm1914_vm8, %v1915_v17, %v1911_v11  ;;  %v3085_v20 = vshll.u32 %v5478_v10, %v3073_v57 }
 0x1fd   :  { %v1917_v1 = vadd.s32 %v1916_v13, %v1912_v24  ;;  %v6770_v42 = vor.u32 %v3077_v35, %v3076_v30  ;;  %v3086_v61 = vshrl.u32 %v5479_v12, %v6751_v2  ;;  %v6776_v31 = vor.u32 %v3080_v28, %v3079_v34 }
 0x1fe   :  { %v710_v25 = vmul.f32 %v709_v9, %v707_v44  ;;  %v717_v39 = vmul.f32 %v716_v15, %v707_v44  ;;  %v3084_v63 = vor.u32 %v3083_v55, %v3082_v58  ;;  %v3088_v22 = vshll.u32 %v5479_v12, %v3073_v57  ;;  %v251_v55 = vpop.f32.mrf.mxu3 }
 0x1ff   :  { %v1918_v43 = vadd.s32 536870912, %v1917_v1  ;;  %v3087_v37 = vor.u32 %v3086_v61, %v3085_v20  ;;  %v3089_v33 = vshrl.u32 %v5480_v21, %v6751_v2  ;;  %vm3094_vm11 = vcmp.lt.s32.totalorder %v6760_v49, 4 }
 0x200   :  { %v711_v7 = vadd.f32 -0.4999988, %v710_v25  ;;  %v718_v0 = vadd.f32 -0.16666654, %v717_v39  ;;  %vm3091_vm10 = vcmp.lt.s32.totalorder %v6760_v49, 1  ;;  %vm3093_vm14 = vcmp.lt.s32.totalorder %v6760_v49, 3 }
 0x201   :  { %v6781_v48 = vshrl.u32 %v1918_v43, 30  ;;  %v3090_v62 = vor.u32 %v3089_v33, %v3088_v22  ;;  %v3100_v18 = vsel %vm3094_vm11, %v3087_v37, 920167782  ;;  %v3099_v50 = vsel %vm3091_vm10, %v6770_v42, %v6776_v31 }
 0x202   :  { %v712_v53 = vmul.f32 %v711_v7, %v707_v44  ;;  %v719_v36 = vmul.f32 %v718_v0, %v707_v44  ;;  %vm725_vm12 = vcmp.lt.s32.totalorder %v6749_v45, 2  ;;  %vm3092_vm13 = vcmp.lt.s32.totalorder %v6760_v49, 2 }
 0x203   :  { %v1920_v38 = vshll.u32 %v6781_v48, 30  ;;  %v3101_v26 = vsel %vm3093_vm14, %v3084_v63, %v3100_v18  ;;  %v3104_v47 = vsel %vm3094_vm11, %v3090_v62, 1326507024  ;;  %v3103_v23 = vsel %vm3091_vm10, %v6776_v31, %v3084_v63 }
 0x204   :  { %v713_v5 = vadd.f32 1.0, %v712_v53  ;;  %v720_v14 = vadd.f32 1.0, %v719_v36  ;;  %vm726_vm15 = vcmp.eq.s32.totalorder %v6749_v45, 0  ;;  %vm729_vm1 = vcmp.eq.s32.totalorder %v6749_v45, 2 }
 0x205   :  { %v1921_v44 = vsub.s32 %v1917_v1, %v1920_v38  ;;  %v3102_v57 = vsel %vm3092_vm13, %v3099_v50, %v3101_v26  ;;  %v3105_v11 = vsel %vm3093_vm14, %v3087_v37, %v3104_v47  ;;  %v3109_v9 = vshrl.u32 %v6758_v16, 16 }
 0x206   :  { %v721_v59 = vmul.f32 %v720_v14, %v705_v41  ;;  %v730_v32 = vxor.u32 2147483648, %v713_v5  ;;  %v3108_v41 = vand.u32 65535, %v6758_v16  ;;  %v3106_v17 = vsel %vm3092_vm13, %v3103_v23, %v3105_v11 }
 0x207   :  { %vm1922_vm0 = vcmp.lt.s32.totalorder %v1921_v44, 0  ;;  %v1923_v19 = vsub.s32 0, %v1921_v44  ;;  %v3132_v15 = vand.u32 65535, %v3102_v57  ;;  %v3110_v30 = vand.u32 65535, %v3106_v17 }
 0x208   :  { %v727_v60 = vxor.u32 2147483648, %v721_v59  ;;  %v731_v24 = vsel %vm729_vm1, %v730_v32, %v721_v59  ;;  %v3111_v28 = vshrl.u32 %v3106_v17, 16  ;;  %vm722_vm2 = vweird.f32 %v6400_v54 }
 0x209   :  { %v1924_v13 = vsel %vm1922_vm0, %v1923_v19, %v1921_v44  ;;  %v3133_v1 = vshrl.u32 %v3102_v57, 16  ;;  %v3114_v20 = vmul.u32 %v3110_v30, %v3109_v9  ;;  %v1913_v61 = vadd.s32 %v6747_v29, %v6745_v51 }
 0x20a   :  { %v728_v35 = vsel %vm726_vm15, %v713_v5, %v727_v60  ;;  %v1925_v39 = vclz %v1924_v13  ;;  %v3113_v58 = vmul.u32 %v3111_v28, %v3108_v41  ;;  %v3075_v0 = vshrl.u32 %v5475_v4, %v6751_v2 }
 0x20b   :  { %v732_v25 = vsel %vm725_vm12, %v728_v35, %v731_v24  ;;  %v6820_v43 = vadd.f32 %v6586_v3, %v251_v55  ;;  %v3096_v54 = vsel %vm3094_vm11, %v3084_v63, 2102212464  ;;  %v3112_v45 = vmul.u32 %v3110_v30, %v3108_v41 }
 0x20c   :  { %v733_v34 = vsel %vm722_vm2, nan, %v732_v25  ;;  %v5342_v7 = vadd.s32 4294967294, %v1925_v39  ;;  %v3116_v37 = vshll.u32 %v3113_v58, 16  ;;  %v3134_v22 = vmul.u32 %v3132_v15, %v3108_v41 }
 0x20d   :  { %5231 = vst [vmem:[#allocation2 + $0x10] sm:$0xff] %v733_v34  ;;  %v3115_v33 = vmul.u32 %v3111_v28, %v3109_v9  ;;  %v3118_v53 = vshll.u32 %v3114_v20, 16  ;;  %v3135_v36 = vmul.u32 %v3133_v1, %v3108_v41  ;;  %vm1821_vm5 = vcmp.lt.s32.totalorder %v6589_v56, 0 }
 0x20e   :  { %vm5343_vm3 = vcmp.lt.s32.totalorder %v5342_v7, 0  ;;  %vm3120_vm4 = vc.u32 %v3112_v45, %v3116_v37  ;;  %v3122_v29 = vadd.s32 %v3116_v37, %v3112_v45  ;;  %v3136_v62 = vmul.u32 %v3132_v15, %v3109_v9 }
 0x20f   :  { %v1928_v51 = vsel %vm5343_vm3, 0, %v5342_v7  ;;  %v3117_v5 = vshrl.u32 %v3113_v58, 16  ;;  %v3121_v14 = vsel %vm3120_vm4, 1, %v5481_v27  ;;  %v3137_v63 = vmul.u32 %v3133_v1, %v3109_v9 }
 0x210   :  { %v1929_v2 = vsub.s32 32, %v1928_v51  ;;  %v1933_v18 = vsub.s32 4294967266, %v1928_v51  ;;  %v3123_v38 = vadd.s32 %v3121_v14, %v3115_v33  ;;  %vm3124_vm6 = vc.u32 %v3122_v29, %v3118_v53 }
 0x211   :  { %v3138_v50 = vshll.u32 %v3135_v36, 16  ;;  %v1930_v26 = vshll.u32 %v1921_v44, %v1928_v51  ;;  %v3125_v32 = vsel %vm3124_vm6, 1, %v5481_v27  ;;  %v3140_v57 = vshll.u32 %v3136_v62, 16 }
 0x212   :  { %v1931_v47 = vshrl.u32 %v1913_v61, %v1929_v2  ;;  %v1934_v59 = vadd.s32 127, %v1933_v18  ;;  %v3127_v23 = vadd.s32 %v3125_v32, %v3123_v38  ;;  %v1943_v41 = vsub.s32 4, %v6781_v48 }
 0x213   :  { %vm3142_vm7 = vc.u32 %v3134_v22, %v3138_v50  ;;  %v3144_v11 = vadd.s32 %v3138_v50, %v3134_v22  ;;  %v3095_v17 = vsel %vm3091_vm10, %v3075_v0, %v6770_v42  ;;  %v3119_v35 = vshrl.u32 %v3114_v20, 16 }
 0x214   :  { %v1932_v60 = vor.u32 %v1931_v47, %v1930_v26  ;;  %v1935_v19 = vshll.u32 %v1934_v59, 23  ;;  %v3143_v24 = vsel %vm3142_vm7, 1, %v5481_v27  ;;  %v3128_v9 = vadd.s32 %v3127_v23, %v3117_v5 }
 0x215   :  { %v3145_v44 = vadd.s32 %v3143_v24, %v3137_v63  ;;  %vm3146_vm9 = vc.u32 %v3144_v11, %v3140_v57  ;;  %v4299_v30 = vand.u32 2147483647, %v6820_v43  ;;  %v3097_v28 = vsel %vm3093_vm14, %v6776_v31, %v3096_v54  ;;  %v182_v31 = vpop.f32.mrf.mxu0 }
 0x216   :  { %v1936_v15 = vor.u32 4788187, %v1935_v19  ;;  %v3147_v13 = vsel %vm3146_vm9, 1, %v5481_v27  ;;  %v3139_v55 = vshrl.u32 %v3135_v36, 16  ;;  %v4302_v39 = vand.u32 2139095040, %v6820_v43 }
 0x217   :  { %v3149_v25 = vadd.s32 %v3147_v13, %v3145_v44  ;;  %v1939_v34 = vcvt.s32.f32 %v1932_v60  ;;  %v1944_v42 = vsel %vm1821_vm5, %v1943_v41, %v6781_v48  ;;  %v3129_v58 = vadd.s32 %v3128_v9, %v3119_v35 }
 0x218   :  { %v1937_v1 = vand.u32 2147483647, %v1936_v15  ;;  %v3141_v20 = vshrl.u32 %v3136_v62, 16  ;;  %v4303_v7 = vshrl.u32 %v4302_v39, 23  ;;  %v4306_v0 = vand.u32 8388607, %v4299_v30 }
 0x219   :  { %v3150_v61 = vadd.s32 %v3149_v25, %v3139_v55  ;;  %v3148_v37 = vadd.s32 %v3144_v11, %v3140_v57  ;;  %vm6845_vm8 = vcmp.le.f32.partialorder %v1819_v46, 0.7853982  ;;  %v3098_v22 = vsel %vm3092_vm13, %v3095_v17, %v3097_v28 }
 0x21a   :  { %v1940_v45 = vmul.f32 %v1939_v34, %v1937_v1  ;;  %v5389_v33 = vadd.s32 4294967169, %v4303_v7  ;;  %v1946_v36 = vsel %vm6845_vm8, 0, %v1944_v42  ;;  %v4307_v29 = vor.u32 8388608, %v4306_v0 }
 0x21b   :  { %v3151_v48 = vadd.s32 %v3150_v61, %v3141_v20  ;;  %vm3154_vm11 = vc.u32 %v3129_v58, %v3148_v37  ;;  %v6854_v2 = vadd.f32 %v6586_v3, %v182_v31  ;;  %v3152_v18 = vmul.u32 %v6758_v16, %v3098_v22 }
 0x21c   :  { %v1941_v53 = vxor.u32 2147483648, %v1940_v45  ;;  %v4309_v62 = vadd.s32 1, %v5389_v33  ;;  %v1963_v38 = vadd.s32 3, %v1946_v36  ;;  %v6862_v47 = vshll.u32 %v4307_v29, 8 }
 0x21d   :  { %v3155_v51 = vadd.s32 1, %v3151_v48  ;;  %v737_v3 = vand.u32 2139095040, %v6854_v2  ;;  %v6869_v41 = vadd.s32 %v3148_v37, %v3129_v58  ;;  %vm1962_vm1 = vweird.f32 %v6589_v56 }
 0x21e   :  { %v1942_v46 = vsel %vm1821_vm5, %v1941_v53, %v1940_v45  ;;  %vm4310_vm10 = vcmp.gt.s32.totalorder %v4309_v62, 0  ;;  %v6865_v60 = vand.u32 3, %v1963_v38  ;;  %v6872_v24 = vand.u32 65535, %v6862_v47 }
 0x21f   :  { %v1945_v49 = vsel %vm6845_vm8, %v6589_v56, %v1942_v46  ;;  %v3156_v5 = vsel %vm3154_vm11, %v3155_v51, %v3151_v48  ;;  %v4311_v50 = vsel %vm4310_vm10, %v4309_v62, 0  ;;  %v6875_v17 = vshrl.u32 %v6862_v47, 16 }
 0x220   :  { %v1947_v14 = vmul.f32 %v1945_v49, %v1945_v49  ;;  %v3157_v63 = vadd.s32 %v3156_v5, %v3152_v18  ;;  %v4313_v26 = vand.u32 31, %v4311_v50  ;;  %v6877_v9 = vshrl.u32 %v737_v3, 23 }
 0x221   :  { %v6880_v13 = vshrl.u32 %v4311_v50, 5  ;;  %vm1969_vm14 = vcmp.eq.s32.totalorder %v6865_v60, 2  ;;  %vm1966_vm12 = vcmp.eq.s32.totalorder %v6865_v60, 0  ;;  %vm1965_vm13 = vcmp.lt.s32.totalorder %v6865_v60, 2 }
 0x222   :  { %v1948_v59 = vmul.f32 -0.001358992, %v1947_v14  ;;  %v1955_v32 = vmul.f32 -0.00019511016, %v1947_v14  ;;  %v3158_v23 = vadd.s32 536870912, %v3157_v63  ;;  %v4314_v57 = vsub.s32 32, %v4313_v26 }
 0x223   :  { %v4316_v28 = vshll.u32 %v5475_v4, %v4313_v26  ;;  %v4319_v20 = vshll.u32 %v5476_v6, %v4313_v26  ;;  %v4322_v61 = vshll.u32 %v5477_v8, %v4313_v26  ;;  %v4325_v7 = vshll.u32 %v5478_v10, %v4313_v26 }
 0x224   :  { %v1949_v16 = vadd.f32 0.041655596, %v1948_v59  ;;  %v1956_v11 = vadd.f32 0.008332121, %v1955_v32  ;;  %v6867_v19 = vshrl.u32 %v3158_v23, 30  ;;  %v4317_v55 = vshrl.u32 %v5476_v6, %v4314_v57 }
 0x225   :  { %v4320_v25 = vshrl.u32 %v5477_v8, %v4314_v57  ;;  %v4323_v39 = vshrl.u32 %v5478_v10, %v4314_v57  ;;  %v4326_v58 = vshrl.u32 %v5479_v12, %v4314_v57  ;;  %v4329_v0 = vshrl.u32 %v5480_v21, %v4314_v57 }
 0x226   :  { %v1950_v44 = vmul.f32 %v1949_v16, %v1947_v14  ;;  %v1957_v15 = vmul.f32 %v1956_v11, %v1947_v14  ;;  %v3160_v35 = vshll.u32 %v6867_v19, 30  ;;  %v4318_v54 = vor.u32 %v4317_v55, %v4316_v28 }
 0x227   :  { %v4321_v22 = vor.u32 %v4320_v25, %v4319_v20  ;;  %v4324_v48 = vor.u32 %v4323_v39, %v4322_v61  ;;  %v4328_v33 = vshll.u32 %v5479_v12, %v4313_v26  ;;  %v4327_v29 = vor.u32 %v4326_v58, %v4325_v7 }
 0x228   :  { %v1951_v1 = vadd.f32 -0.4999988, %v1950_v44  ;;  %v1958_v34 = vadd.f32 -0.16666654, %v1957_v15  ;;  %v6887_v42 = vsub.s32 %v3157_v63, %v3160_v35  ;;  %v3183_v46 = vsub.s32 4, %v6867_v19 }
 0x229   :  { %v4315_v18 = vshrl.u32 %v5475_v4, %v4314_v57  ;;  %v4330_v5 = vor.u32 %v4329_v0, %v4328_v33  ;;  %vm4331_vm0 = vcmp.lt.s32.totalorder %v6880_v13, 1  ;;  %vm4332_vm2 = vcmp.lt.s32.totalorder %v6880_v13, 2 }
 0x22a   :  { %v1952_v45 = vmul.f32 %v1951_v1, %v1947_v14  ;;  %v1959_v37 = vmul.f32 %v1958_v34, %v1947_v14  ;;  %vm3162_vm15 = vcmp.lt.s32.totalorder %v6887_v42, 0  ;;  %v3163_v31 = vsub.s32 0, %v6887_v42 }
 0x22b   :  { %vm3061_vm3 = vcmp.lt.s32.totalorder %v6613_v52, 0  ;;  %vm4333_vm5 = vcmp.lt.s32.totalorder %v6880_v13, 3  ;;  %vm4334_vm4 = vcmp.lt.s32.totalorder %v6880_v13, 4  ;;  %v4339_v50 = vsel %vm4331_vm0, %v4318_v54, %v4321_v22 }
 0x22c   :  { %v1953_v53 = vadd.f32 1.0, %v1952_v45  ;;  %v1960_v36 = vadd.f32 1.0, %v1959_v37  ;;  %v3164_v51 = vsel %vm3162_vm15, %v3163_v31, %v6887_v42  ;;  %v4335_v3 = vsel %vm4331_vm0, %v4315_v18, %v4318_v54 }
 0x22d   :  { %v3165_v62 = vclz %v3164_v51  ;;  %v4336_v59 = vsel %vm4334_vm4, %v4324_v48, 2102212464  ;;  %v4340_v32 = vsel %vm4334_vm4, %v4327_v29, 920167782  ;;  %v4343_v57 = vsel %vm4331_vm0, %v4321_v22, %v4324_v48 }
 0x22e   :  { %v1961_v14 = vmul.f32 %v1960_v36, %v1945_v49  ;;  %v1970_v38 = vxor.u32 2147483648, %v1953_v53  ;;  %v4341_v23 = vsel %vm4333_vm5, %v4324_v48, %v4340_v32  ;;  %v4344_v15 = vsel %vm4334_vm4, %v4330_v5, 1326507024 }
 0x22f   :  { %v5366_v63 = vadd.s32 4294967294, %v3165_v62  ;;  %v4342_v44 = vsel %vm4332_vm2, %v4339_v50, %v4341_v23  ;;  %v4337_v25 = vsel %vm4333_vm5, %v4321_v22, %v4336_v59  ;;  %v4345_v1 = vsel %vm4333_vm5, %v4327_v29, %v4344_v15 }
 0x230   :  { %v1967_v26 = vxor.u32 2147483648, %v1961_v14  ;;  %v1971_v49 = vsel %vm1969_vm14, %v1970_v38, %v1961_v14  ;;  %v4372_v34 = vand.u32 65535, %v4342_v44  ;;  %v4373_v58 = vshrl.u32 %v4342_v44, 16 }
 0x231   :  { %vm5367_vm6 = vcmp.lt.s32.totalorder %v5366_v63, 0  ;;  %v4346_v7 = vsel %vm4332_vm2, %v4343_v57, %v4345_v1  ;;  %v734_v56 = vand.u32 2147483647, %v6854_v2  ;;  %v5320_v48 = vadd.s32 4294967169, %v6877_v9 }
 0x232   :  { %v1968_v16 = vsel %vm1966_vm12, %v1953_v53, %v1967_v26  ;;  %v3168_v11 = vsel %vm5367_vm6, 0, %v5366_v63  ;;  %v4350_v0 = vand.u32 65535, %v4346_v7  ;;  %v4351_v45 = vshrl.u32 %v4346_v7, 16 }
 0x233   :  { %v1972_v35 = vsel %vm1965_vm13, %v1968_v16, %v1971_v49  ;;  %v3169_v28 = vsub.s32 32, %v3168_v11  ;;  %v3173_v55 = vsub.s32 4294967266, %v3168_v11  ;;  %v3170_v20 = vshll.u32 %v6887_v42, %v3168_v11 }
 0x234   :  { %v1973_v39 = vsel %vm1962_vm1, nan, %v1972_v35  ;;  %v4375_v37 = vmul.u32 %v4373_v58, %v6872_v24  ;;  %v4376_v22 = vmul.u32 %v4372_v34, %v6875_v17  ;;  %v6939_v42 = vsel %vm4332_vm2, %v4335_v3, %v4337_v25 }
 0x235   :  { %5239 = vst [vmem:[#allocation2 + $0x50] sm:$0xff] %v1973_v39  ;;  %v3171_v61 = vshrl.u32 %v6869_v41, %v3169_v28  ;;  %v3174_v60 = vadd.s32 127, %v3173_v55  ;;  %v6935_v41 = vsel %vm3061_vm3, %v3183_v46, %v6867_v19  ;;  %v4353_v33 = vmul.u32 %v4351_v45, %v6872_v24 }
 0x236   :  { %v4354_v53 = vmul.u32 %v4350_v0, %v6875_v17  ;;  %vm6945_vm7 = vcmp.le.f32.partialorder %v3059_v40, 0.7853982  ;;  %v4374_v51 = vmul.u32 %v4372_v34, %v6872_v24  ;;  %v4377_v19 = vmul.u32 %v4373_v58, %v6875_v17 }
 0x237   :  { %v3172_v31 = vor.u32 %v3171_v61, %v3170_v20  ;;  %v3175_v54 = vshll.u32 %v3174_v60, 23  ;;  %v4378_v29 = vshll.u32 %v4375_v37, 16  ;;  %v4352_v13 = vmul.u32 %v4350_v0, %v6872_v24 }
 0x238   :  { %v4355_v46 = vmul.u32 %v4351_v45, %v6875_v17  ;;  %v4356_v18 = vshll.u32 %v4353_v33, 16  ;;  %v4358_v14 = vshll.u32 %v4354_v53, 16  ;;  %v4380_v38 = vshll.u32 %v4376_v22, 16 }
 0x239   :  { %v3176_v9 = vor.u32 4788187, %v3175_v54  ;;  %v3179_v62 = vcvt.s32.f32 %v3172_v31  ;;  %vm4382_vm9 = vc.u32 %v4374_v51, %v4378_v29  ;;  %v4384_v50 = vadd.s32 %v4378_v29, %v4374_v51 }
 0x23a   :  { %vm4360_vm8 = vc.u32 %v4352_v13, %v4356_v18  ;;  %v4362_v40 = vadd.s32 %v4356_v18, %v4352_v13  ;;  %v4383_v63 = vsel %vm4382_vm9, 1, %v5481_v27  ;;  %v744_v32 = vadd.s32 1, %v5320_v48 }
 0x23b   :  { %v3177_v5 = vand.u32 2147483647, %v3176_v9  ;;  %v4361_v3 = vsel %vm4360_vm8, 1, %v5481_v27  ;;  %v4385_v59 = vadd.s32 %v4383_v63, %v4377_v19  ;;  %v4379_v24 = vshrl.u32 %v4375_v37, 16 }
 0x23c   :  { %v4363_v49 = vadd.s32 %v4361_v3, %v4355_v46  ;;  %vm4364_vm11 = vc.u32 %v4362_v40, %v4358_v14  ;;  %vm4386_vm10 = vc.u32 %v4384_v50, %v4380_v38  ;;  %vm745_vm14 = vcmp.gt.s32.totalorder %v744_v32, 0 }
 0x23d   :  { %v3180_v26 = vmul.f32 %v3179_v62, %v3177_v5  ;;  %v4365_v23 = vsel %vm4364_vm11, 1, %v5481_v27  ;;  %v4387_v57 = vsel %vm4386_vm10, 1, %v5481_v27  ;;  %v4357_v16 = vshrl.u32 %v4353_v33, 16 }
 0x23e   :  { %v4367_v11 = vadd.s32 %v4365_v23, %v4363_v49  ;;  %v4389_v44 = vadd.s32 %v4387_v57, %v4385_v59  ;;  %v746_v15 = vsel %vm745_vm14, %v744_v32, 0  ;;  %v4359_v28 = vshrl.u32 %v4354_v53, 16 }
 0x23f   :  { %v3181_v17 = vxor.u32 2147483648, %v3180_v26  ;;  %v741_v55 = vand.u32 8388607, %v734_v56  ;;  %v748_v25 = vand.u32 31, %v746_v15  ;;  %v4381_v34 = vshrl.u32 %v4376_v22, 16 }
 0x240   :  { %v4368_v1 = vadd.s32 %v4367_v11, %v4357_v16  ;;  %v4390_v58 = vadd.s32 %v4389_v44, %v4379_v24  ;;  %v3186_v20 = vsel %vm6945_vm7, 0, %v6935_v41  ;;  %v4392_v60 = vmul.u32 %v6862_v47, %v6939_v42 }
 0x241   :  { %v3182_v35 = vsel %vm3061_vm3, %v3181_v17, %v3180_v26  ;;  %v6969_v7 = vsub.s32 32, %v748_v25  ;;  %v6973_v45 = vadd.s32 %v4384_v50, %v4380_v38  ;;  %v6975_v31 = vshrl.u32 %v746_v15, 5 }
 0x242   :  { %v3185_v39 = vsel %vm6945_vm7, %v6613_v52, %v3182_v35  ;;  %v6971_v0 = vadd.s32 %v4368_v1, %v4359_v28  ;;  %v4391_v37 = vadd.s32 %v4390_v58, %v4381_v34  ;;  %v751_v48 = vshll.u32 %v5475_v4, %v748_v25 }
 0x243   :  { %v3187_v61 = vmul.f32 %v3185_v39, %v3185_v39  ;;  %v754_v33 = vshll.u32 %v5476_v6, %v748_v25  ;;  %v755_v47 = vshrl.u32 %v5477_v8, %v6969_v7  ;;  %v760_v42 = vshll.u32 %v5478_v10, %v748_v25 }
 0x244   :  { %vm4394_vm12 = vc.u32 %v6971_v0, %v6973_v45  ;;  %v4395_v41 = vadd.s32 1, %v4391_v37  ;;  %v757_v9 = vshll.u32 %v5477_v8, %v748_v25  ;;  %v758_v51 = vshrl.u32 %v5478_v10, %v6969_v7 }
 0x245   :  { %v3188_v54 = vmul.f32 -0.001358992, %v3187_v61  ;;  %v3195_v22 = vmul.f32 -0.00019511016, %v3187_v61  ;;  %v752_v29 = vshrl.u32 %v5476_v6, %v6969_v7  ;;  %v761_v62 = vshrl.u32 %v5479_v12, %v6969_v7 }
 0x246   :  { %v4396_v19 = vsel %vm4394_vm12, %v4395_v41, %v4391_v37  ;;  %v763_v13 = vshll.u32 %v5479_v12, %v748_v25  ;;  %v742_v14 = vor.u32 8388608, %v741_v55  ;;  %v3203_v38 = vadd.s32 3, %v3186_v20 }
 0x247   :  { %v3189_v53 = vadd.f32 0.041655596, %v3188_v54  ;;  %v3196_v36 = vadd.f32 0.008332121, %v3195_v22  ;;  %v4397_v5 = vadd.s32 %v4396_v19, %v4392_v60  ;;  %v6992_v40 = vor.u32 %v755_v47, %v754_v33 }
 0x248   :  { %v762_v63 = vor.u32 %v761_v62, %v760_v42  ;;  %v764_v50 = vshrl.u32 %v5480_v21, %v6969_v7  ;;  %v759_v32 = vor.u32 %v758_v51, %v757_v9  ;;  %v6996_v49 = vor.u32 %v752_v29, %v751_v48  ;;  %v206_v29 = vpop.f32.mrf.mxu1 }
 0x249   :  { %v3190_v46 = vmul.f32 %v3189_v53, %v3187_v61  ;;  %v3197_v18 = vmul.f32 %v3196_v36, %v3187_v61  ;;  %v4398_v59 = vadd.s32 536870912, %v4397_v5  ;;  %vm766_vm13 = vcmp.lt.s32.totalorder %v6975_v31, 1 }
 0x24a   :  { %v765_v24 = vor.u32 %v764_v50, %v763_v13  ;;  %vm769_vm15 = vcmp.lt.s32.totalorder %v6975_v31, 4  ;;  %vm768_vm1 = vcmp.lt.s32.totalorder %v6975_v31, 3  ;;  %v3204_v16 = vand.u32 3, %v3203_v38 }
 0x24b   :  { %v3191_v26 = vadd.f32 -0.4999988, %v3190_v46  ;;  %v3198_v3 = vadd.f32 -0.16666654, %v3197_v18  ;;  %v7000_v57 = vshrl.u32 %v4398_v59, 30  ;;  %v778_v55 = vsel %vm766_vm13, %v6992_v40, %v759_v32 }
 0x24c   :  { %v775_v11 = vsel %vm769_vm15, %v762_v63, 920167782  ;;  %v779_v44 = vsel %vm769_vm15, %v765_v24, 1326507024  ;;  %v774_v25 = vsel %vm766_vm13, %v6996_v49, %v6992_v40  ;;  %v7019_v58 = vshll.u32 %v742_v14, 8 }
 0x24d   :  { %v3192_v17 = vmul.f32 %v3191_v26, %v3187_v61  ;;  %v3199_v23 = vmul.f32 %v3198_v3, %v3187_v61  ;;  %v4400_v28 = vshll.u32 %v7000_v57, 30  ;;  %v776_v1 = vsel %vm768_vm1, %v759_v32, %v775_v11  ;;  %v7039_v3 = vld [vmem:[%s9088_s2] ss:$0 sm:$0xff] }
 0x24e   :  { %v780_v34 = vsel %vm768_vm1, %v762_v63, %v779_v44  ;;  %vm767_vm0 = vcmp.lt.s32.totalorder %v6975_v31, 2  ;;  %vm3205_vm2 = vcmp.lt.s32.totalorder %v3204_v16, 2  ;;  %vm3206_vm3 = vcmp.eq.s32.totalorder %v3204_v16, 0 }
 0x24f   :  { %v3193_v15 = vadd.f32 1.0, %v3192_v17  ;;  %v3200_v35 = vadd.f32 1.0, %v3199_v23  ;;  %v4401_v60 = vsub.s32 %v4397_v5, %v4400_v28  ;;  %v781_v37 = vsel %vm767_vm0, %v778_v55, %v780_v34 }
 0x250   :  { %v777_v48 = vsel %vm767_vm0, %v774_v25, %v776_v1  ;;  %vm3209_vm4 = vcmp.eq.s32.totalorder %v3204_v16, 2  ;;  %v783_v33 = vand.u32 65535, %v7019_v58  ;;  %v785_v41 = vand.u32 65535, %v781_v37 }
 0x251   :  { %v3201_v20 = vmul.f32 %v3200_v35, %v3185_v39  ;;  %v3210_v61 = vxor.u32 2147483648, %v3193_v15  ;;  %vm4402_vm5 = vcmp.lt.s32.totalorder %v4401_v60, 0  ;;  %v4403_v22 = vsub.s32 0, %v4401_v60 }
 0x252   :  { %v786_v39 = vshrl.u32 %v781_v37, 16  ;;  %v784_v36 = vshrl.u32 %v7019_v58, 16  ;;  %vm3202_vm6 = vweird.f32 %v6613_v52  ;;  %v808_v19 = vshrl.u32 %v777_v48, 16 }
 0x253   :  { %v3207_v54 = vxor.u32 2147483648, %v3201_v20  ;;  %v3211_v42 = vsel %vm3209_vm4, %v3210_v61, %v3201_v20  ;;  %v4404_v53 = vsel %vm4402_vm5, %v4403_v22, %v4401_v60  ;;  %v807_v18 = vand.u32 65535, %v777_v48 }
 0x254   :  { %v4405_v51 = vclz %v4404_v53  ;;  %v788_v13 = vmul.u32 %v786_v39, %v783_v33  ;;  %v789_v46 = vmul.u32 %v785_v41, %v784_v36  ;;  %v4393_v5 = vadd.s32 %v6973_v45, %v6971_v0 }
 0x255   :  { %v3208_v47 = vsel %vm3206_vm3, %v3193_v15, %v3207_v54  ;;  %v750_v38 = vshrl.u32 %v5475_v4, %v6969_v7  ;;  %v771_v52 = vsel %vm769_vm15, %v759_v32, 2102212464  ;;  %v787_v63 = vmul.u32 %v785_v41, %v783_v33 }
 0x256   :  { %v3212_v9 = vsel %vm3205_vm2, %v3208_v47, %v3211_v42  ;;  %v5390_v14 = vadd.s32 4294967294, %v4405_v51  ;;  %v790_v50 = vmul.u32 %v786_v39, %v784_v36  ;;  %v791_v26 = vshll.u32 %v788_v13, 16 }
 0x257   :  { %v3213_v62 = vsel %vm3202_vm6, nan, %v3212_v9  ;;  %v7042_v59 = vadd.f32 %v7039_v3, %v206_v29  ;;  %v792_v0 = vshrl.u32 %v788_v13, 16  ;;  %v793_v45 = vshll.u32 %v789_v46, 16 }
 0x258   :  { %5247 = vst [vmem:[#allocation2 + $0x90] sm:$0xff] %v3213_v62  ;;  %vm5391_vm7 = vcmp.lt.s32.totalorder %v5390_v14, 0  ;;  %v810_v24 = vmul.u32 %v808_v19, %v783_v33  ;;  %vm4301_vm9 = vcmp.lt.s32.totalorder %v6820_v43, 0  ;;  %vm795_vm8 = vc.u32 %v787_v63, %v791_v26 }
 0x259   :  { %v4408_v7 = vsel %vm5391_vm7, 0, %v5390_v14  ;;  %v797_v32 = vadd.s32 %v791_v26, %v787_v63  ;;  %v811_v17 = vmul.u32 %v807_v18, %v784_v36  ;;  %v796_v11 = vsel %vm795_vm8, 1, %v5481_v27 }
 0x25a   :  { %v4409_v23 = vsub.s32 32, %v4408_v7  ;;  %v4413_v16 = vsub.s32 4294967266, %v4408_v7  ;;  %v809_v44 = vmul.u32 %v807_v18, %v783_v33  ;;  %v798_v15 = vadd.s32 %v796_v11, %v790_v50 }
 0x25b   :  { %vm799_vm11 = vc.u32 %v797_v32, %v793_v45  ;;  %v812_v35 = vmul.u32 %v808_v19, %v784_v36  ;;  %v813_v28 = vshll.u32 %v810_v24, 16  ;;  %v4410_v55 = vshll.u32 %v4401_v60, %v4408_v7 }
 0x25c   :  { %v4411_v25 = vshrl.u32 %v4393_v5, %v4409_v23  ;;  %v4414_v1 = vadd.s32 127, %v4413_v16  ;;  %v800_v34 = vsel %vm799_vm11, 1, %v5481_v27  ;;  %v815_v61 = vshll.u32 %v811_v17, 16 }
 0x25d   :  { %v802_v20 = vadd.s32 %v800_v34, %v798_v15  ;;  %vm817_vm10 = vc.u32 %v809_v44, %v813_v28  ;;  %v819_v37 = vadd.s32 %v813_v28, %v809_v44  ;;  %v4423_v48 = vsub.s32 4, %v7000_v57 }
 0x25e   :  { %v4412_v54 = vor.u32 %v4411_v25, %v4410_v55  ;;  %v4415_v22 = vshll.u32 %v4414_v1, 23  ;;  %v818_v41 = vsel %vm817_vm10, 1, %v5481_v27  ;;  %v1974_v47 = vand.u32 2147483647, %v7042_v59 }
 0x25f   :  { %v803_v33 = vadd.s32 %v802_v20, %v792_v0  ;;  %v820_v39 = vadd.s32 %v818_v41, %v812_v35  ;;  %vm821_vm14 = vc.u32 %v819_v37, %v815_v61  ;;  %v770_v42 = vsel %vm766_vm13, %v750_v38, %v6996_v49 }
 0x260   :  { %v4416_v60 = vor.u32 4788187, %v4415_v22  ;;  %v794_v53 = vshrl.u32 %v789_v46, 16  ;;  %v822_v36 = vsel %vm821_vm14, 1, %v5481_v27  ;;  %v772_v9 = vsel %vm768_vm1, %v6992_v40, %v771_v52  ;;  %v230_v40 = vpop.f32.mrf.mxu2 }
 0x261   :  { %v814_v51 = vshrl.u32 %v810_v24, 16  ;;  %v824_v19 = vadd.s32 %v822_v36, %v820_v39  ;;  %v1977_v29 = vand.u32 2139095040, %v7042_v59  ;;  %v4419_v13 = vcvt.s32.f32 %v4412_v54 }
 0x262   :  { %v4417_v62 = vand.u32 2147483647, %v4416_v60  ;;  %v4424_v18 = vsel %vm4301_vm9, %v4423_v48, %v7000_v57  ;;  %v804_v5 = vadd.s32 %v803_v33, %v794_v53  ;;  %v816_v14 = vshrl.u32 %v811_v17, 16 }
 0x263   :  { %v825_v49 = vadd.s32 %v824_v19, %v814_v51  ;;  %v1978_v46 = vshrl.u32 %v1977_v29, 23  ;;  %v1981_v38 = vand.u32 8388607, %v1974_v47  ;;  %v823_v50 = vadd.s32 %v819_v37, %v815_v61 }
 0x264   :  { %v4420_v63 = vmul.f32 %v4419_v13, %v4417_v62  ;;  %vm4300_vm12 = vcmp.le.f32.partialorder %v4299_v30, 0.7853982  ;;  %v773_v52 = vsel %vm767_vm0, %v770_v42, %v772_v9  ;;  %v7068_v17 = vadd.f32 %v7039_v3, %v230_v40 }
 0x265   :  { %v826_v26 = vadd.s32 %v825_v49, %v816_v14  ;;  %v5344_v0 = vadd.s32 4294967169, %v1978_v46  ;;  %v4426_v57 = vsel %vm4300_vm12, 0, %v4424_v18  ;;  %vm829_vm13 = vc.u32 %v804_v5, %v823_v50 }
 0x266   :  { %v4421_v45 = vxor.u32 2147483648, %v4420_v63  ;;  %v1982_v7 = vor.u32 8388608, %v1981_v38  ;;  %v827_v16 = vmul.u32 %v7019_v58, %v773_v52  ;;  %v4443_v31 = vadd.s32 3, %v4426_v57 }
 0x267   :  { %v830_v24 = vadd.s32 1, %v826_v26  ;;  %v1984_v32 = vadd.s32 1, %v5344_v0  ;;  %v3217_v25 = vand.u32 2139095040, %v7068_v17  ;;  %v7079_v22 = vadd.s32 %v823_v50, %v804_v5 }
 0x268   :  { %v4422_v23 = vsel %vm4301_vm9, %v4421_v45, %v4420_v63  ;;  %v7074_v55 = vshll.u32 %v1982_v7, 8  ;;  %v7077_v61 = vand.u32 3, %v4443_v31  ;;  %v3214_v39 = vand.u32 2147483647, %v7068_v17 }
 0x269   :  { %v4425_v30 = vsel %vm4300_vm12, %v6820_v43, %v4422_v23  ;;  %v831_v11 = vsel %vm829_vm13, %v830_v24, %v826_v26  ;;  %vm1985_vm15 = vcmp.gt.s32.totalorder %v1984_v32, 0  ;;  %v3218_v60 = vshrl.u32 %v3217_v25, 23 }
 0x26a   :  { %v4427_v44 = vmul.f32 %v4425_v30, %v4425_v30  ;;  %v832_v15 = vadd.s32 %v831_v11, %v827_v16  ;;  %v1986_v35 = vsel %vm1985_vm15, %v1984_v32, 0  ;;  %v7083_v33 = vand.u32 65535, %v7074_v55 }
 0x26b   :  { %v1988_v28 = vand.u32 31, %v1986_v35  ;;  %vm736_vm1 = vcmp.lt.s32.totalorder %v6854_v2, 0  ;;  %vm4449_vm0 = vcmp.eq.s32.totalorder %v7077_v61, 2  ;;  %v7095_v14 = vshrl.u32 %v1986_v35, 5 }
 0x26c   :  { %v4428_v1 = vmul.f32 -0.001358992, %v4427_v44  ;;  %v4435_v34 = vmul.f32 -0.00019511016, %v4427_v44  ;;  %v833_v20 = vadd.s32 536870912, %v832_v15  ;;  %vm4446_vm2 = vcmp.eq.s32.totalorder %v7077_v61, 0 }
 0x26d   :  { %v1989_v37 = vsub.s32 32, %v1988_v28  ;;  %v1991_v41 = vshll.u32 %v5475_v4, %v1988_v28  ;;  %v1994_v9 = vshll.u32 %v5476_v6, %v1988_v28  ;;  %v2000_v29 = vshll.u32 %v5478_v10, %v1988_v28 }
 0x26e   :  { %v4429_v58 = vadd.f32 0.041655596, %v4428_v1  ;;  %v4436_v54 = vadd.f32 0.008332121, %v4435_v34  ;;  %v834_v48 = vshrl.u32 %v833_v20, 30  ;;  %v1997_v49 = vshll.u32 %v5477_v8, %v1988_v28 }
 0x26f   :  { %v1992_v51 = vshrl.u32 %v5476_v6, %v1989_v37  ;;  %v1995_v19 = vshrl.u32 %v5477_v8, %v1989_v37  ;;  %v2001_v62 = vshrl.u32 %v5479_v12, %v1989_v37  ;;  %v1998_v46 = vshrl.u32 %v5478_v10, %v1989_v37 }
 0x270   :  { %v4430_v42 = vmul.f32 %v4429_v58, %v4427_v44  ;;  %v4437_v53 = vmul.f32 %v4436_v54, %v4427_v44  ;;  %v835_v36 = vshll.u32 %v834_v48, 30  ;;  %v2003_v38 = vshll.u32 %v5479_v12, %v1988_v28 }
 0x271   :  { %v2004_v63 = vshrl.u32 %v5480_v21, %v1989_v37  ;;  %vm4445_vm3 = vcmp.lt.s32.totalorder %v7077_v61, 2  ;;  %vm4442_vm4 = vweird.f32 %v6820_v43  ;;  %v858_v26 = vsub.s32 4, %v834_v48 }
 0x272   :  { %v4431_v13 = vadd.f32 -0.4999988, %v4430_v42  ;;  %v4438_v18 = vadd.f32 -0.16666654, %v4437_v53  ;;  %v7093_v5 = vsub.s32 %v832_v15, %v835_v36  ;;  %v1993_v0 = vor.u32 %v1992_v51, %v1991_v41 }
 0x273   :  { %v1996_v45 = vor.u32 %v1995_v19, %v1994_v9  ;;  %v2002_v57 = vor.u32 %v2001_v62, %v2000_v29  ;;  %vm2006_vm6 = vcmp.lt.s32.totalorder %v7095_v14, 1  ;;  %v1999_v16 = vor.u32 %v1998_v46, %v1997_v49 }
 0x274   :  { %v4432_v50 = vmul.f32 %v4431_v13, %v4427_v44  ;;  %v4439_v40 = vmul.f32 %v4438_v18, %v4427_v44  ;;  %vm837_vm5 = vcmp.lt.s32.totalorder %v7093_v5, 0  ;;  %v838_v52 = vsub.s32 0, %v7093_v5 }
 0x275   :  { %vm2009_vm7 = vcmp.lt.s32.totalorder %v7095_v14, 4  ;;  %v2024_v31 = vshrl.u32 %v7074_v55, 16  ;;  %vm7112_vm9 = vcmp.le.f32.partialorder %v734_v56, 0.7853982  ;;  %v2005_v35 = vor.u32 %v2004_v63, %v2003_v38 }
 0x276   :  { %v4433_v24 = vadd.f32 1.0, %v4432_v50  ;;  %v4440_v7 = vadd.f32 1.0, %v4439_v40  ;;  %v839_v32 = vsel %vm837_vm5, %v838_v52, %v7093_v5  ;;  %vm2008_vm8 = vcmp.lt.s32.totalorder %v7095_v14, 3 }
 0x277   :  { %v840_v23 = vclz %v839_v32  ;;  %v1990_v25 = vshrl.u32 %v5475_v4, %v1989_v37  ;;  %v2014_v1 = vsel %vm2006_vm6, %v1993_v0, %v1996_v45  ;;  %v5368_v34 = vadd.s32 4294967169, %v3218_v60 }
 0x278   :  { %v4441_v11 = vmul.f32 %v4440_v7, %v4425_v30  ;;  %v4450_v44 = vxor.u32 2147483648, %v4433_v24  ;;  %v7122_v30 = vsel %vm736_vm1, %v858_v26, %v834_v48  ;;  %vm2007_vm11 = vcmp.lt.s32.totalorder %v7095_v14, 2 }
 0x279   :  { %v5321_v28 = vadd.s32 4294967294, %v840_v23  ;;  %v2015_v56 = vsel %vm2009_vm7, %v2002_v57, 920167782  ;;  %v2018_v54 = vsel %vm2006_vm6, %v1996_v45, %v1999_v16  ;;  %v2019_v42 = vsel %vm2009_vm7, %v2005_v35, 1326507024 }
 0x27a   :  { %v4447_v20 = vxor.u32 2147483648, %v4441_v11  ;;  %v4451_v58 = vsel %vm4449_vm0, %v4450_v44, %v4441_v11  ;;  %v2016_v37 = vsel %vm2008_vm8, %v1999_v16, %v2015_v56  ;;  %v2011_v51 = vsel %vm2009_vm7, %v1999_v16, 2102212464 }
 0x27b   :  { %vm5322_vm10 = vcmp.lt.s32.totalorder %v5321_v28, 0  ;;  %v2017_v60 = vsel %vm2007_vm11, %v2014_v1, %v2016_v37  ;;  %v2020_v29 = vsel %vm2008_vm8, %v2002_v57, %v2019_v42  ;;  %v3224_v43 = vadd.s32 1, %v5368_v34 }
 0x27c   :  { %v4448_v41 = vsel %vm4446_vm2, %v4433_v24, %v4447_v20  ;;  %v843_v48 = vsel %vm5322_vm10, 0, %v5321_v28  ;;  %v2047_v62 = vand.u32 65535, %v2017_v60  ;;  %v2048_v13 = vshrl.u32 %v2017_v60, 16 }
 0x27d   :  { %v4452_v53 = vsel %vm4445_vm3, %v4448_v41, %v4451_v58  ;;  %v844_v36 = vsub.s32 32, %v843_v48  ;;  %v848_v9 = vsub.s32 4294967266, %v843_v48  ;;  %v845_v18 = vshll.u32 %v7093_v5, %v843_v48 }
 0x27e   :  { %v4453_v19 = vsel %vm4442_vm4, nan, %v4452_v53  ;;  %v2021_v46 = vsel %vm2007_vm11, %v2018_v54, %v2020_v29  ;;  %v2050_v50 = vmul.u32 %v2048_v13, %v7083_v33  ;;  %v861_v26 = vsel %vm7112_vm9, 0, %v7122_v30 }
 0x27f   :  { %5255 = vst [vmem:[#allocation2 + $0xd0] sm:$0xff] %v4453_v19  ;;  %v846_v49 = vshrl.u32 %v7079_v22, %v844_v36  ;;  %v849_v61 = vadd.s32 127, %v848_v9  ;;  %v2025_v38 = vand.u32 65535, %v2021_v46  ;;  %v2026_v63 = vshrl.u32 %v2021_v46, 16 }
 0x280   :  { %v2051_v57 = vmul.u32 %v2047_v62, %v2024_v31  ;;  %v2010_v5 = vsel %vm2006_vm6, %v1990_v25, %v1993_v0  ;;  %v2012_v22 = vsel %vm2008_vm8, %v1996_v45, %v2011_v51  ;;  %v2049_v23 = vmul.u32 %v2047_v62, %v7083_v33 }
 0x281   :  { %v847_v40 = vor.u32 %v846_v49, %v845_v18  ;;  %v850_v52 = vshll.u32 %v849_v61, 23  ;;  %v2028_v24 = vmul.u32 %v2026_v63, %v7083_v33  ;;  %v2029_v7 = vmul.u32 %v2025_v38, %v2024_v31 }
 0x282   :  { %v2052_v16 = vmul.u32 %v2048_v13, %v2024_v31  ;;  %v2053_v11 = vshll.u32 %v2050_v50, 16  ;;  %v2027_v35 = vmul.u32 %v2025_v38, %v7083_v33  ;;  %v2030_v28 = vmul.u32 %v2026_v63, %v2024_v31 }
 0x283   :  { %v851_v32 = vor.u32 4788187, %v850_v52  ;;  %v854_v44 = vcvt.s32.f32 %v847_v40  ;;  %v2031_v1 = vshll.u32 %v2028_v24, 16  ;;  %v2033_v20 = vshll.u32 %v2029_v7, 16 }
 0x284   :  { %v2055_v30 = vshll.u32 %v2051_v57, 16  ;;  %vm2057_vm14 = vc.u32 %v2049_v23, %v2053_v11  ;;  %v2059_v25 = vadd.s32 %v2053_v11, %v2049_v23  ;;  %vm3225_vm13 = vcmp.gt.s32.totalorder %v3224_v43, 0 }
 0x285   :  { %v852_v34 = vand.u32 2147483647, %v851_v32  ;;  %vm2035_vm12 = vc.u32 %v2027_v35, %v2031_v1  ;;  %v2037_v0 = vadd.s32 %v2031_v1, %v2027_v35  ;;  %v2058_v45 = vsel %vm2057_vm14, 1, %v5481_v27 }
 0x286   :  { %v2036_v58 = vsel %vm2035_vm12, 1, %v5481_v27  ;;  %v2060_v37 = vadd.s32 %v2058_v45, %v2052_v16  ;;  %v2054_v41 = vshrl.u32 %v2050_v50, 16  ;;  %vm2061_vm0 = vc.u32 %v2059_v25, %v2055_v30 }
 0x287   :  { %v855_v56 = vmul.f32 %v854_v44, %v852_v34  ;;  %v2038_v54 = vadd.s32 %v2036_v58, %v2030_v28  ;;  %vm2039_vm15 = vc.u32 %v2037_v0, %v2033_v20  ;;  %v2062_v48 = vsel %vm2061_vm0, 1, %v5481_v27 }
 0x288   :  { %v2040_v31 = vsel %vm2039_vm15, 1, %v5481_v27  ;;  %v3226_v60 = vsel %vm3225_vm13, %v3224_v43, 0  ;;  %v2032_v42 = vshrl.u32 %v2028_v24, 16  ;;  %v2064_v36 = vadd.s32 %v2062_v48, %v2060_v37 }
 0x289   :  { %v856_v33 = vxor.u32 2147483648, %v855_v56  ;;  %v2042_v53 = vadd.s32 %v2040_v31, %v2038_v54  ;;  %v3228_v9 = vand.u32 31, %v3226_v60  ;;  %v2013_v19 = vsel %vm2007_vm11, %v2010_v5, %v2012_v22 }
 0x28a   :  { %v2034_v29 = vshrl.u32 %v2029_v7, 16  ;;  %v2056_v62 = vshrl.u32 %v2051_v57, 16  ;;  %v2065_v49 = vadd.s32 %v2064_v36, %v2054_v41  ;;  %v878_v38 = vadd.s32 3, %v861_v26 }
 0x28b   :  { %v857_v51 = vsel %vm736_vm1, %v856_v33, %v855_v56  ;;  %v2043_v18 = vadd.s32 %v2042_v53, %v2032_v42  ;;  %v7173_v61 = vsub.s32 32, %v3228_v9  ;;  %v3221_v63 = vand.u32 8388607, %v3214_v39 }
 0x28c   :  { %v860_v13 = vsel %vm7112_vm9, %v6854_v2, %v857_v51  ;;  %v7179_v43 = vadd.s32 %v2059_v25, %v2055_v30  ;;  %v2066_v14 = vadd.s32 %v2065_v49, %v2056_v62  ;;  %v2067_v40 = vmul.u32 %v7074_v55, %v2013_v19 }
 0x28d   :  { %v862_v46 = vmul.f32 %v860_v13, %v860_v13  ;;  %v7177_v50 = vadd.s32 %v2043_v18, %v2034_v29  ;;  %v7182_v15 = vshrl.u32 %v3226_v60, 5  ;;  %v3234_v5 = vshll.u32 %v5476_v6, %v3228_v9 }
 0x28e   :  { %v2070_v26 = vadd.s32 1, %v2066_v14  ;;  %v3235_v22 = vshrl.u32 %v5477_v8, %v7173_v61  ;;  %v3238_v24 = vshrl.u32 %v5478_v10, %v7173_v61  ;;  %v3232_v55 = vshrl.u32 %v5476_v6, %v7173_v61 }
 0x28f   :  { %v863_v52 = vmul.f32 -0.001358992, %v862_v46  ;;  %v870_v57 = vmul.f32 -0.00019511016, %v862_v46  ;;  %vm2069_vm1 = vc.u32 %v7177_v50, %v7179_v43  ;;  %v3237_v23 = vshll.u32 %v5477_v8, %v3228_v9 }
 0x290   :  { %v2071_v16 = vsel %vm2069_vm1, %v2070_v26, %v2066_v14  ;;  %v3240_v11 = vshll.u32 %v5478_v10, %v3228_v9  ;;  %v3241_v44 = vshrl.u32 %v5479_v12, %v7173_v61  ;;  %v3243_v35 = vshll.u32 %v5479_v12, %v3228_v9  ;;  %v254_v26 = vpop.f32.mrf.mxu3 }
 0x291   :  { %v864_v7 = vadd.f32 0.041655596, %v863_v52  ;;  %v871_v32 = vadd.f32 0.008332121, %v870_v57  ;;  %v2072_v34 = vadd.s32 %v2071_v16, %v2067_v40  ;;  %v3244_v20 = vshrl.u32 %v5480_v21, %v7173_v61 }
 0x292   :  { %v3231_v30 = vshll.u32 %v5475_v4, %v3228_v9  ;;  %v7201_v0 = vor.u32 %v3235_v22, %v3234_v5  ;;  %v3239_v45 = vor.u32 %v3238_v24, %v3237_v23  ;;  %v3242_v25 = vor.u32 %v3241_v44, %v3240_v11 }
 0x293   :  { %v865_v28 = vmul.f32 %v864_v7, %v862_v46  ;;  %v872_v1 = vmul.f32 %v871_v32, %v862_v46  ;;  %v2073_v37 = vadd.s32 536870912, %v2072_v34  ;;  %v3245_v54 = vor.u32 %v3244_v20, %v3243_v35 }
 0x294   :  { %v879_v41 = vand.u32 3, %v878_v38  ;;  %v3222_v33 = vor.u32 8388608, %v3221_v63  ;;  %v7203_v31 = vor.u32 %v3232_v55, %v3231_v30  ;;  %vm3249_vm2 = vcmp.lt.s32.totalorder %v7182_v15, 4 }
 0x295   :  { %v866_v56 = vadd.f32 -0.4999988, %v865_v28  ;;  %v873_v58 = vadd.f32 -0.16666654, %v872_v1  ;;  %v7205_v42 = vshrl.u32 %v2073_v37, 30  ;;  %vm3246_vm3 = vcmp.lt.s32.totalorder %v7182_v15, 1 }
 0x296   :  { %vm3248_vm5 = vcmp.lt.s32.totalorder %v7182_v15, 3  ;;  %v3255_v53 = vsel %vm3249_vm2, %v3242_v25, 920167782  ;;  %v3259_v36 = vsel %vm3249_vm2, %v3245_v54, 1326507024  ;;  %v3258_v29 = vsel %vm3246_vm3, %v7201_v0, %v3239_v45 }
 0x297   :  { %v867_v48 = vmul.f32 %v866_v56, %v862_v46  ;;  %v874_v60 = vmul.f32 %v873_v58, %v862_v46  ;;  %v2075_v19 = vshll.u32 %v7205_v42, 30  ;;  %v3254_v62 = vsel %vm3246_vm3, %v7203_v31, %v7201_v0 }
 0x298   :  { %v3256_v18 = vsel %vm3248_vm5, %v3239_v45, %v3255_v53  ;;  %v3260_v49 = vsel %vm3248_vm5, %v3242_v25, %v3259_v36  ;;  %v7226_v46 = vshll.u32 %v3222_v33, 8  ;;  %vm3247_vm4 = vcmp.lt.s32.totalorder %v7182_v15, 2 }
 0x299   :  { %v868_v9 = vadd.f32 1.0, %v867_v48  ;;  %v875_v51 = vadd.f32 1.0, %v874_v60  ;;  %v2076_v14 = vsub.s32 %v2072_v34, %v2075_v19  ;;  %vm877_vm6 = vweird.f32 %v6854_v2 }
 0x29a   :  { %vm880_vm7 = vcmp.lt.s32.totalorder %v879_v41, 2  ;;  %vm881_vm9 = vcmp.eq.s32.totalorder %v879_v41, 0  ;;  %v3261_v40 = vsel %vm3247_vm4, %v3258_v29, %v3260_v49  ;;  %v3257_v5 = vsel %vm3247_vm4, %v3254_v62, %v3256_v18 }
 0x29b   :  { %v876_v38 = vmul.f32 %v875_v51, %v860_v13  ;;  %v885_v63 = vxor.u32 2147483648, %v868_v9  ;;  %vm2077_vm8 = vcmp.lt.s32.totalorder %v2076_v14, 0  ;;  %v2078_v57 = vsub.s32 0, %v2076_v14 }
 0x29c   :  { %vm884_vm11 = vcmp.eq.s32.totalorder %v879_v41, 2  ;;  %v3263_v13 = vand.u32 65535, %v7226_v46  ;;  %v3265_v22 = vand.u32 65535, %v3261_v40  ;;  %v3266_v24 = vshrl.u32 %v3261_v40, 16 }
 0x29d   :  { %v882_v52 = vxor.u32 2147483648, %v876_v38  ;;  %v886_v32 = vsel %vm884_vm11, %v885_v63, %v876_v38  ;;  %v2079_v55 = vsel %vm2077_vm8, %v2078_v57, %v2076_v14  ;;  %v3264_v23 = vshrl.u32 %v7226_v46, 16 }
 0x29e   :  { %v2080_v11 = vclz %v2079_v55  ;;  %v3288_v44 = vshrl.u32 %v3257_v5, 16  ;;  %v7238_v35 = vadd.f32 %v7039_v3, %v254_v26  ;;  %v3268_v1 = vmul.u32 %v3266_v24, %v3263_v13 }
 0x29f   :  { %v883_v7 = vsel %vm881_vm9, %v868_v9, %v882_v52  ;;  %v3269_v34 = vmul.u32 %v3265_v22, %v3264_v23  ;;  %v3287_v20 = vand.u32 65535, %v3257_v5  ;;  %v2068_v30 = vadd.s32 %v7179_v43, %v7177_v50 }
 0x2a0   :  { %v887_v16 = vsel %vm880_vm7, %v883_v7, %v886_v32  ;;  %v5345_v25 = vadd.s32 4294967294, %v2080_v11  ;;  %v3230_v56 = vshrl.u32 %v5475_v4, %v7173_v61  ;;  %v3251_v58 = vsel %vm3249_vm2, %v3239_v45, 2102212464 }
 0x2a1   :  { %v888_v28 = vsel %vm877_vm6, nan, %v887_v16  ;;  %v2098_v37 = vsub.s32 4, %v7205_v42  ;;  %v3267_v54 = vmul.u32 %v3265_v22, %v3263_v13  ;;  %v3270_v41 = vmul.u32 %v3266_v24, %v3264_v23  ;;  %v185_v16 = vpop.f32.mrf.mxu0 }
 0x2a2   :  { %5232 = vst [vmem:[#allocation2 + $0x18] sm:$0xff] %v888_v28  ;;  %v3271_v2 = vshll.u32 %v3268_v1, 16  ;;  %vm1976_vm10 = vcmp.lt.s32.totalorder %v7042_v59, 0  ;;  %vm5346_vm14 = vcmp.lt.s32.totalorder %v5345_v25, 0  ;;  %v3272_v33 = vshrl.u32 %v3268_v1, 16 }
 0x2a3   :  { %v3273_v48 = vshll.u32 %v3269_v34, 16  ;;  %v3290_v60 = vmul.u32 %v3288_v44, %v3263_v13  ;;  %v2083_v53 = vsel %vm5346_vm14, 0, %v5345_v25  ;;  %v3291_v43 = vmul.u32 %v3287_v20, %v3264_v23 }
 0x2a4   :  { %vm3275_vm12 = vc.u32 %v3267_v54, %v3271_v2  ;;  %v3277_v50 = vadd.s32 %v3271_v2, %v3267_v54  ;;  %v2084_v36 = vsub.s32 32, %v2083_v53  ;;  %v2088_v61 = vsub.s32 4294967266, %v2083_v53 }
 0x2a5   :  { %v3276_v9 = vsel %vm3275_vm12, 1, %v5481_v27  ;;  %v3289_v45 = vmul.u32 %v3287_v20, %v3263_v13  ;;  %v3292_v19 = vmul.u32 %v3288_v44, %v3264_v23  ;;  %v3293_v29 = vshll.u32 %v3290_v60, 16 }
 0x2a6   :  { %v3278_v51 = vadd.s32 %v3276_v9, %v3270_v41  ;;  %vm3279_vm13 = vc.u32 %v3277_v50, %v3273_v48  ;;  %v2085_v62 = vshll.u32 %v2076_v14, %v2083_v53  ;;  %v2086_v18 = vshrl.u32 %v2068_v30, %v2084_v36 }
 0x2a7   :  { %v2089_v49 = vadd.s32 127, %v2088_v61  ;;  %v3280_v38 = vsel %vm3279_vm13, 1, %v5481_v27  ;;  %v3295_v40 = vshll.u32 %v3291_v43, 16  ;;  %vm3297_vm15 = vc.u32 %v3289_v45, %v3293_v29 }
 0x2a8   :  { %v3282_v63 = vadd.s32 %v3280_v38, %v3278_v51  ;;  %v3299_v52 = vadd.s32 %v3293_v29, %v3289_v45  ;;  %v2087_v57 = vor.u32 %v2086_v18, %v2085_v62  ;;  %v3250_v26 = vsel %vm3246_vm3, %v3230_v56, %v7203_v31 }
 0x2a9   :  { %v2090_v5 = vshll.u32 %v2089_v49, 23  ;;  %v3298_v13 = vsel %vm3297_vm15, 1, %v5481_v27  ;;  %v4454_v14 = vand.u32 2147483647, %v7238_v35  ;;  %v3252_v32 = vsel %vm3248_vm5, %v7201_v0, %v3251_v58 }
 0x2aa   :  { %v3283_v22 = vadd.s32 %v3282_v63, %v3272_v33  ;;  %v3300_v24 = vadd.s32 %v3298_v13, %v3292_v19  ;;  %vm3301_vm0 = vc.u32 %v3299_v52, %v3295_v40  ;;  %v3274_v55 = vshrl.u32 %v3269_v34, 16 }
 0x2ab   :  { %v2091_v7 = vor.u32 4788187, %v2090_v5  ;;  %v3302_v23 = vsel %vm3301_vm0, 1, %v5481_v27  ;;  %v2099_v31 = vsel %vm1976_vm10, %v2098_v37, %v7205_v42  ;;  %v3294_v11 = vshrl.u32 %v3290_v60, 16 }
 0x2ac   :  { %v3304_v44 = vadd.s32 %v3302_v23, %v3300_v24  ;;  %v4457_v28 = vand.u32 2139095040, %v7238_v35  ;;  %v2094_v20 = vcvt.s32.f32 %v2087_v57  ;;  %v3284_v30 = vadd.s32 %v3283_v22, %v3274_v55 }
 0x2ad   :  { %v2092_v1 = vand.u32 2147483647, %v2091_v7  ;;  %v3296_v25 = vshrl.u32 %v3291_v43, 16  ;;  %v4461_v0 = vand.u32 8388607, %v4454_v14  ;;  %v7268_v34 = vadd.f32 %v7039_v3, %v185_v16 }
 0x2ae   :  { %v3305_v56 = vadd.s32 %v3304_v44, %v3294_v11  ;;  %v4458_v54 = vshrl.u32 %v4457_v28, 23  ;;  %v3303_v41 = vadd.s32 %v3299_v52, %v3295_v40  ;;  %vm7272_vm1 = vcmp.le.f32.partialorder %v1974_v47, 0.7853982 }
 0x2af   :  { %v2095_v58 = vmul.f32 %v2094_v20, %v2092_v1  ;;  %v3253_v37 = vsel %vm3247_vm4, %v3250_v26, %v3252_v32  ;;  %v2101_v60 = vsel %vm7272_vm1, 0, %v2099_v31  ;;  %v4462_v53 = vor.u32 8388608, %v4461_v0 }
 0x2b0   :  { %v3306_v2 = vadd.s32 %v3305_v56, %v3296_v25  ;;  %v5392_v33 = vadd.s32 4294967169, %v4458_v54  ;;  %vm3309_vm2 = vc.u32 %v3284_v30, %v3303_v41  ;;  %v892_v43 = vand.u32 2139095040, %v7268_v34 }
 0x2b1   :  { %v2096_v48 = vxor.u32 2147483648, %v2095_v58  ;;  %v3307_v36 = vmul.u32 %v7226_v46, %v3253_v37  ;;  %v2118_v45 = vadd.s32 3, %v2101_v60  ;;  %v7287_v62 = vshll.u32 %v4462_v53, 8 }
 0x2b2   :  { %v3310_v3 = vadd.s32 1, %v3306_v2  ;;  %v4464_v50 = vadd.s32 1, %v5392_v33  ;;  %v893_v18 = vshrl.u32 %v892_v43, 23  ;;  %v7293_v26 = vadd.s32 %v3303_v41, %v3284_v30 }
 0x2b3   :  { %v2097_v47 = vsel %vm1976_vm10, %v2096_v48, %v2095_v58  ;;  %v7289_v57 = vand.u32 3, %v2118_v45  ;;  %v7296_v13 = vand.u32 65535, %v7287_v62  ;;  %v7299_v22 = vshrl.u32 %v7287_v62, 16 }
 0x2b4   :  { %v2100_v15 = vsel %vm7272_vm1, %v7042_v59, %v2097_v47  ;;  %v3311_v61 = vsel %vm3309_vm2, %v3310_v3, %v3306_v2  ;;  %vm4465_vm3 = vcmp.gt.s32.totalorder %v4464_v50, 0  ;;  %v7301_v24 = vadd.s32 4294967169, %v893_v18 }
 0x2b5   :  { %v2102_v9 = vmul.f32 %v2100_v15, %v2100_v15  ;;  %v3312_v51 = vadd.s32 %v3311_v61, %v3307_v36  ;;  %v4466_v19 = vsel %vm4465_vm3, %v4464_v50, 0  ;;  %vm2124_vm5 = vcmp.eq.s32.totalorder %v7289_v57, 2 }
 0x2b6   :  { %v4468_v29 = vand.u32 31, %v4466_v19  ;;  %v7304_v23 = vshrl.u32 %v4466_v19, 5  ;;  %vm2121_vm4 = vcmp.eq.s32.totalorder %v7289_v57, 0  ;;  %vm2120_vm6 = vcmp.lt.s32.totalorder %v7289_v57, 2 }
 0x2b7   :  { %v2103_v49 = vmul.f32 -0.001358992, %v2102_v9  ;;  %v2110_v38 = vmul.f32 -0.00019511016, %v2102_v9  ;;  %v3313_v63 = vadd.s32 536870912, %v3312_v51  ;;  %vm2117_vm9 = vweird.f32 %v7042_v59 }
 0x2b8   :  { %v4469_v40 = vsub.s32 32, %v4468_v29  ;;  %v4471_v16 = vshll.u32 %v5475_v4, %v4468_v29  ;;  %v4474_v25 = vshll.u32 %v5476_v6, %v4468_v29  ;;  %v4477_v56 = vshll.u32 %v5477_v8, %v4468_v29 }
 0x2b9   :  { %v2104_v52 = vadd.f32 0.041655596, %v2103_v49  ;;  %v2111_v46 = vadd.f32 0.008332121, %v2110_v38  ;;  %v7291_v5 = vshrl.u32 %v3313_v63, 30  ;;  %v4480_v54 = vshll.u32 %v5478_v10, %v4468_v29 }
 0x2ba   :  { %v4472_v31 = vshrl.u32 %v5476_v6, %v4469_v40  ;;  %v4475_v11 = vshrl.u32 %v5477_v8, %v4469_v40  ;;  %v4478_v44 = vshrl.u32 %v5478_v10, %v4469_v40  ;;  %v4481_v30 = vshrl.u32 %v5479_v12, %v4469_v40 }
 0x2bb   :  { %v2105_v7 = vmul.f32 %v2104_v52, %v2102_v9  ;;  %v2112_v32 = vmul.f32 %v2111_v46, %v2102_v9  ;;  %v3315_v55 = vshll.u32 %v7291_v5, 30  ;;  %v4484_v0 = vshrl.u32 %v5480_v21, %v4469_v40 }
 0x2bc   :  { %v4473_v37 = vor.u32 %v4472_v31, %v4471_v16  ;;  %v4476_v2 = vor.u32 %v4475_v11, %v4474_v25  ;;  %v4479_v33 = vor.u32 %v4478_v44, %v4477_v56  ;;  %v4483_v48 = vshll.u32 %v5479_v12, %v4468_v29 }
 0x2bd   :  { %v2106_v28 = vadd.f32 -0.4999988, %v2105_v7  ;;  %v2113_v1 = vadd.f32 -0.16666654, %v2112_v32  ;;  %v7311_v20 = vsub.s32 %v3312_v51, %v3315_v55  ;;  %v4482_v50 = vor.u32 %v4481_v30, %v4480_v54 }
 0x2be   :  { %v3338_v47 = vsub.s32 4, %v7291_v5  ;;  %v4470_v36 = vshrl.u32 %v5475_v4, %v4469_v40  ;;  %v4485_v61 = vor.u32 %v4484_v0, %v4483_v48  ;;  %vm4486_vm8 = vcmp.lt.s32.totalorder %v7304_v23, 1 }
 0x2bf   :  { %v2107_v58 = vmul.f32 %v2106_v28, %v2102_v9  ;;  %v2114_v41 = vmul.f32 %v2113_v1, %v2102_v9  ;;  %vm3317_vm7 = vcmp.lt.s32.totalorder %v7311_v20, 0  ;;  %v3318_v42 = vsub.s32 0, %v7311_v20 }
 0x2c0   :  { %vm4487_vm11 = vcmp.lt.s32.totalorder %v7304_v23, 2  ;;  %vm3216_vm10 = vcmp.lt.s32.totalorder %v7068_v17, 0  ;;  %vm4488_vm14 = vcmp.lt.s32.totalorder %v7304_v23, 3  ;;  %vm4489_vm12 = vcmp.lt.s32.totalorder %v7304_v23, 4 }
 0x2c1   :  { %v2108_v60 = vadd.f32 1.0, %v2107_v58  ;;  %v2115_v3 = vadd.f32 1.0, %v2114_v41  ;;  %v3319_v53 = vsel %vm3317_vm7, %v3318_v42, %v7311_v20  ;;  %v4494_v19 = vsel %vm4486_vm8, %v4473_v37, %v4476_v2 }
 0x2c2   :  { %v3320_v43 = vclz %v3319_v53  ;;  %v4490_v18 = vsel %vm4486_vm8, %v4470_v36, %v4473_v37  ;;  %v4491_v49 = vsel %vm4489_vm12, %v4479_v33, 2102212464  ;;  %v4495_v38 = vsel %vm4489_vm12, %v4482_v50, 920167782 }
 0x2c3   :  { %v2116_v9 = vmul.f32 %v2115_v3, %v2100_v15  ;;  %v2125_v45 = vxor.u32 2147483648, %v2108_v60  ;;  %v4496_v63 = vsel %vm4488_vm14, %v4479_v33, %v4495_v38  ;;  %v4498_v40 = vsel %vm4486_vm8, %v4476_v2, %v4479_v33 }
 0x2c4   :  { %v5369_v51 = vadd.s32 4294967294, %v3320_v43  ;;  %v4497_v7 = vsel %vm4487_vm11, %v4494_v19, %v4496_v63  ;;  %v4499_v32 = vsel %vm4489_vm12, %v4485_v61, 1326507024  ;;  %v4492_v11 = vsel %vm4488_vm14, %v4476_v2, %v4491_v49 }
 0x2c5   :  { %v2122_v29 = vxor.u32 2147483648, %v2116_v9  ;;  %v2126_v15 = vsel %vm2124_vm5, %v2125_v45, %v2116_v9  ;;  %v4500_v28 = vsel %vm4488_vm14, %v4482_v50, %v4499_v32  ;;  %v4527_v1 = vand.u32 65535, %v4497_v7 }
 0x2c6   :  { %vm5370_vm13 = vcmp.lt.s32.totalorder %v5369_v51, 0  ;;  %v4528_v30 = vshrl.u32 %v4497_v7, 16  ;;  %v4501_v54 = vsel %vm4487_vm11, %v4498_v40, %v4500_v28  ;;  %v889_v59 = vand.u32 2147483647, %v7268_v34 }
 0x2c7   :  { %v2123_v52 = vsel %vm2121_vm4, %v2108_v60, %v2122_v29  ;;  %v3323_v46 = vsel %vm5370_vm13, 0, %v5369_v51  ;;  %v4505_v0 = vand.u32 65535, %v4501_v54  ;;  %v4506_v58 = vshrl.u32 %v4501_v54, 16 }
 0x2c8   :  { %v2127_v55 = vsel %vm2120_vm6, %v2123_v52, %v2126_v15  ;;  %v3324_v16 = vsub.s32 32, %v3323_v46  ;;  %v3328_v31 = vsub.s32 4294967266, %v3323_v46  ;;  %v3325_v25 = vshll.u32 %v7311_v20, %v3323_v46 }
 0x2c9   :  { %v2128_v44 = vsel %vm2117_vm9, nan, %v2127_v55  ;;  %v4530_v41 = vmul.u32 %v4528_v30, %v7296_v13  ;;  %v4531_v2 = vmul.u32 %v4527_v1, %v7299_v22  ;;  %v899_v33 = vadd.s32 1, %v7301_v24 }
 0x2ca   :  { %5240 = vst [vmem:[#allocation2 + $0x58] sm:$0xff] %v2128_v44  ;;  %v3326_v56 = vshrl.u32 %v7293_v26, %v3324_v16  ;;  %v3329_v57 = vadd.s32 127, %v3328_v31  ;;  %v7359_v26 = vsel %vm3216_vm10, %v3338_v47, %v7291_v5  ;;  %v7363_v20 = vsel %vm4487_vm11, %v4490_v18, %v4492_v11 }
 0x2cb   :  { %v4508_v48 = vmul.u32 %v4506_v58, %v7296_v13  ;;  %v4509_v60 = vmul.u32 %v4505_v0, %v7299_v22  ;;  %v4529_v53 = vmul.u32 %v4527_v1, %v7296_v13  ;;  %v4532_v50 = vmul.u32 %v4528_v30, %v7299_v22 }
 0x2cc   :  { %v3327_v42 = vor.u32 %v3326_v56, %v3325_v25  ;;  %v3330_v37 = vshll.u32 %v3329_v57, 23  ;;  %v4533_v43 = vshll.u32 %v4530_v41, 16  ;;  %v4507_v36 = vmul.u32 %v4505_v0, %v7296_v13 }
 0x2cd   :  { %v4510_v5 = vmul.u32 %v4506_v58, %v7299_v22  ;;  %v4511_v47 = vshll.u32 %v4508_v48, 16  ;;  %v4513_v23 = vshll.u32 %v4509_v60, 16  ;;  %v4535_v9 = vshll.u32 %v4531_v2, 16 }
 0x2ce   :  { %v3331_v3 = vor.u32 4788187, %v3330_v37  ;;  %v3334_v24 = vcvt.s32.f32 %v3327_v42  ;;  %vm4537_vm15 = vc.u32 %v4529_v53, %v4533_v43  ;;  %v4539_v19 = vadd.s32 %v4533_v43, %v4529_v53 }
 0x2cf   :  { %vm4515_vm0 = vc.u32 %v4507_v36, %v4511_v47  ;;  %v4517_v45 = vadd.s32 %v4511_v47, %v4507_v36  ;;  %v4538_v51 = vsel %vm4537_vm15, 1, %v5481_v27  ;;  %vm900_vm1 = vcmp.gt.s32.totalorder %v899_v33, 0 }
 0x2d0   :  { %v3332_v61 = vand.u32 2147483647, %v3331_v3  ;;  %v4516_v18 = vsel %vm4515_vm0, 1, %v5481_v27  ;;  %v4540_v49 = vadd.s32 %v4538_v51, %v4532_v50  ;;  %v4534_v13 = vshrl.u32 %v4530_v41, 16 }
 0x2d1   :  { %v4518_v38 = vadd.s32 %v4516_v18, %v4510_v5  ;;  %vm4519_vm2 = vc.u32 %v4517_v45, %v4513_v23  ;;  %vm4541_vm3 = vc.u32 %v4539_v19, %v4535_v9  ;;  %v901_v40 = vsel %vm900_vm1, %v899_v33, 0 }
 0x2d2   :  { %v3335_v29 = vmul.f32 %v3334_v24, %v3332_v61  ;;  %v4520_v15 = vsel %vm4519_vm2, 1, %v5481_v27  ;;  %v4542_v63 = vsel %vm4541_vm3, 1, %v5481_v27  ;;  %v4512_v52 = vshrl.u32 %v4508_v48, 16 }
 0x2d3   :  { %v4522_v46 = vadd.s32 %v4520_v15, %v4518_v38  ;;  %v4544_v7 = vadd.s32 %v4542_v63, %v4540_v49  ;;  %v903_v32 = vand.u32 31, %v901_v40  ;;  %vm7377_vm5 = vcmp.le.f32.partialorder %v3214_v39, 0.7853982 }
 0x2d4   :  { %v3336_v22 = vxor.u32 2147483648, %v3335_v29  ;;  %v4514_v31 = vshrl.u32 %v4509_v60, 16  ;;  %v4536_v11 = vshrl.u32 %v4531_v2, 16  ;;  %v3341_v39 = vsel %vm7377_vm5, 0, %v7359_v26 }
 0x2d5   :  { %v4523_v28 = vadd.s32 %v4522_v46, %v4512_v52  ;;  %v4545_v1 = vadd.s32 %v4544_v7, %v4534_v13  ;;  %v7386_v30 = vsub.s32 32, %v903_v32  ;;  %v4547_v56 = vmul.u32 %v7287_v62, %v7363_v20 }
 0x2d6   :  { %v3337_v16 = vsel %vm3216_vm10, %v3336_v22, %v3335_v29  ;;  %v896_v57 = vand.u32 8388607, %v889_v59  ;;  %v7397_v0 = vadd.s32 %v4539_v19, %v4535_v9  ;;  %v7399_v41 = vshrl.u32 %v901_v40, 5 }
 0x2d7   :  { %v3340_v44 = vsel %vm7377_vm5, %v7068_v17, %v3337_v16  ;;  %v7395_v54 = vadd.s32 %v4523_v28, %v4514_v31  ;;  %v4546_v58 = vadd.s32 %v4545_v1, %v4536_v11  ;;  %v909_v2 = vshll.u32 %v5476_v6, %v903_v32 }
 0x2d8   :  { %v3342_v25 = vmul.f32 %v3340_v44, %v3340_v44  ;;  %v912_v33 = vshll.u32 %v5477_v8, %v903_v32  ;;  %v910_v26 = vshrl.u32 %v5477_v8, %v7386_v30  ;;  %v913_v20 = vshrl.u32 %v5478_v10, %v7386_v30 }
 0x2d9   :  { %vm4549_vm4 = vc.u32 %v7395_v54, %v7397_v0  ;;  %v4550_v62 = vadd.s32 1, %v4546_v58  ;;  %v906_v3 = vshll.u32 %v5475_v4, %v903_v32  ;;  %v907_v53 = vshrl.u32 %v5476_v6, %v7386_v30 }
 0x2da   :  { %v3343_v42 = vmul.f32 -0.001358992, %v3342_v25  ;;  %v3350_v37 = vmul.f32 -0.00019511016, %v3342_v25  ;;  %v915_v43 = vshll.u32 %v5478_v10, %v903_v32  ;;  %v916_v24 = vshrl.u32 %v5479_v12, %v7386_v30 }
 0x2db   :  { %v4551_v50 = vsel %vm4549_vm4, %v4550_v62, %v4546_v58  ;;  %v918_v36 = vshll.u32 %v5479_v12, %v903_v32  ;;  %v919_v23 = vshrl.u32 %v5480_v21, %v7386_v30  ;;  %v3358_v9 = vadd.s32 3, %v3341_v39 }
 0x2dc   :  { %v3344_v48 = vadd.f32 0.041655596, %v3343_v42  ;;  %v3351_v60 = vadd.f32 0.008332121, %v3350_v37  ;;  %v4552_v61 = vadd.s32 %v4551_v50, %v4547_v56  ;;  %v7418_v45 = vor.u32 %v910_v26, %v909_v2 }
 0x2dd   :  { %v914_v51 = vor.u32 %v913_v20, %v912_v33  ;;  %v917_v19 = vor.u32 %v916_v24, %v915_v43  ;;  %v920_v38 = vor.u32 %v919_v23, %v918_v36  ;;  %v897_v13 = vor.u32 8388608, %v896_v57 }
 0x2de   :  { %v3345_v5 = vmul.f32 %v3344_v48, %v3342_v25  ;;  %v3352_v47 = vmul.f32 %v3351_v60, %v3342_v25  ;;  %v4553_v49 = vadd.s32 536870912, %v4552_v61  ;;  %v7420_v22 = vor.u32 %v907_v53, %v906_v3  ;;  %v209_v3 = vpop.f32.mrf.mxu1 }
 0x2df   :  { %vm921_vm6 = vcmp.lt.s32.totalorder %v7399_v41, 1  ;;  %vm924_vm7 = vcmp.lt.s32.totalorder %v7399_v41, 4  ;;  %vm923_vm9 = vcmp.lt.s32.totalorder %v7399_v41, 3  ;;  %v3359_v52 = vand.u32 3, %v3358_v9 }
 0x2e0   :  { %v3346_v29 = vadd.f32 -0.4999988, %v3345_v5  ;;  %v3353_v18 = vadd.f32 -0.16666654, %v3352_v47  ;;  %v7424_v40 = vshrl.u32 %v4553_v49, 30  ;;  %v933_v31 = vsel %vm921_vm6, %v7418_v45, %v914_v51 }
 0x2e1   :  { %v930_v46 = vsel %vm924_vm7, %v917_v19, 920167782  ;;  %v934_v7 = vsel %vm924_vm7, %v920_v38, 1326507024  ;;  %v929_v11 = vsel %vm921_vm6, %v7420_v22, %v7418_v45  ;;  %v7443_v39 = vshll.u32 %v897_v13, 8 }
 0x2e2   :  { %v3347_v15 = vmul.f32 %v3346_v29, %v3342_v25  ;;  %v3354_v63 = vmul.f32 %v3353_v18, %v3342_v25  ;;  %v4555_v16 = vshll.u32 %v7424_v40, 30  ;;  %v931_v28 = vsel %vm923_vm9, %v914_v51, %v930_v46 }
 0x2e3   :  { %v935_v1 = vsel %vm923_vm9, %v917_v19, %v934_v7  ;;  %vm922_vm8 = vcmp.lt.s32.totalorder %v7399_v41, 2  ;;  %vm3360_vm11 = vcmp.lt.s32.totalorder %v3359_v52, 2  ;;  %vm3361_vm10 = vcmp.eq.s32.totalorder %v3359_v52, 0 }
 0x2e4   :  { %v3348_v32 = vadd.f32 1.0, %v3347_v15  ;;  %v3355_v55 = vadd.f32 1.0, %v3354_v63  ;;  %v4556_v57 = vsub.s32 %v4552_v61, %v4555_v16  ;;  %v936_v58 = vsel %vm922_vm8, %v933_v31, %v935_v1 }
 0x2e5   :  { %v932_v2 = vsel %vm922_vm8, %v929_v11, %v931_v28  ;;  %vm3364_vm12 = vcmp.eq.s32.totalorder %v3359_v52, 2  ;;  %v938_v33 = vand.u32 65535, %v7443_v39  ;;  %v940_v62 = vand.u32 65535, %v936_v58 }
 0x2e6   :  { %v3356_v25 = vmul.f32 %v3355_v55, %v3340_v44  ;;  %v3365_v56 = vxor.u32 2147483648, %v3348_v32  ;;  %vm4557_vm14 = vcmp.lt.s32.totalorder %v4556_v57, 0  ;;  %v4558_v37 = vsub.s32 0, %v4556_v57 }
 0x2e7   :  { %v941_v44 = vshrl.u32 %v936_v58, 16  ;;  %v939_v60 = vshrl.u32 %v7443_v39, 16  ;;  %vm3357_vm13 = vweird.f32 %v7068_v17  ;;  %v963_v43 = vshrl.u32 %v932_v2, 16  ;;  %v7461_v17 = vld [vmem:[%s9088_s2] ss:$0 sm:$0xff] }
 0x2e8   :  { %v3362_v42 = vxor.u32 2147483648, %v3356_v25  ;;  %v3366_v20 = vsel %vm3364_vm12, %v3365_v56, %v3356_v25  ;;  %v4559_v48 = vsel %vm4557_vm14, %v4558_v37, %v4556_v57  ;;  %v962_v47 = vand.u32 65535, %v932_v2 }
 0x2e9   :  { %v4560_v50 = vclz %v4559_v48  ;;  %v943_v36 = vmul.u32 %v941_v44, %v938_v33  ;;  %v944_v5 = vmul.u32 %v940_v62, %v939_v60  ;;  %v4548_v61 = vadd.s32 %v7397_v0, %v7395_v54 }
 0x2ea   :  { %v3363_v26 = vsel %vm3361_vm10, %v3348_v32, %v3362_v42  ;;  %v905_v9 = vshrl.u32 %v5475_v4, %v7386_v30  ;;  %v7464_v19 = vadd.f32 %v7461_v17, %v209_v3  ;;  %v926_v29 = vsel %vm924_vm7, %v914_v51, 2102212464 }
 0x2eb   :  { %v3367_v53 = vsel %vm3360_vm11, %v3363_v26, %v3366_v20  ;;  %v5393_v23 = vadd.s32 4294967294, %v4560_v50  ;;  %v942_v18 = vmul.u32 %v940_v62, %v938_v33  ;;  %v945_v49 = vmul.u32 %v941_v44, %v939_v60 }
 0x2ec   :  { %v3368_v24 = vsel %vm3357_vm13, nan, %v3367_v53  ;;  %v946_v38 = vshll.u32 %v943_v36, 16  ;;  %v947_v54 = vshrl.u32 %v943_v36, 16  ;;  %v948_v0 = vshll.u32 %v944_v5, 16 }
 0x2ed   :  { %5248 = vst [vmem:[#allocation2 + $0x98] sm:$0xff] %v3368_v24  ;;  %vm5394_vm15 = vcmp.lt.s32.totalorder %v5393_v23, 0  ;;  %v965_v13 = vmul.u32 %v963_v43, %v938_v33  ;;  %vm4456_vm0 = vcmp.lt.s32.totalorder %v7238_v35, 0  ;;  %v966_v63 = vmul.u32 %v962_v47, %v939_v60 }
 0x2ee   :  { %v4563_v30 = vsel %vm5394_vm15, 0, %v5393_v23  ;;  %vm950_vm1 = vc.u32 %v942_v18, %v946_v38  ;;  %v952_v15 = vadd.s32 %v946_v38, %v942_v18  ;;  %v964_v32 = vmul.u32 %v962_v47, %v938_v33 }
 0x2ef   :  { %v4564_v52 = vsub.s32 32, %v4563_v30  ;;  %v4568_v46 = vsub.s32 4294967266, %v4563_v30  ;;  %v951_v7 = vsel %vm950_vm1, 1, %v5481_v27  ;;  %v967_v51 = vmul.u32 %v963_v43, %v939_v60 }
 0x2f0   :  { %v953_v55 = vadd.s32 %v951_v7, %v945_v49  ;;  %vm954_vm2 = vc.u32 %v952_v15, %v948_v0  ;;  %v968_v16 = vshll.u32 %v965_v13, 16  ;;  %v4565_v31 = vshll.u32 %v4556_v57, %v4563_v30 }
 0x2f1   :  { %v4566_v11 = vshrl.u32 %v4548_v61, %v4564_v52  ;;  %v4569_v28 = vadd.s32 127, %v4568_v46  ;;  %v955_v1 = vsel %vm954_vm2, 1, %v5481_v27  ;;  %v970_v56 = vshll.u32 %v966_v63, 16 }
 0x2f2   :  { %v957_v25 = vadd.s32 %v955_v1, %v953_v55  ;;  %vm972_vm3 = vc.u32 %v964_v32, %v968_v16  ;;  %v974_v58 = vadd.s32 %v968_v16, %v964_v32  ;;  %v4578_v2 = vsub.s32 4, %v7424_v40 }
 0x2f3   :  { %v4567_v42 = vor.u32 %v4566_v11, %v4565_v31  ;;  %v4570_v37 = vshll.u32 %v4569_v28, 23  ;;  %v973_v62 = vsel %vm972_vm3, 1, %v5481_v27  ;;  %v2129_v26 = vand.u32 2147483647, %v7464_v19 }
 0x2f4   :  { %v958_v33 = vadd.s32 %v957_v25, %v947_v54  ;;  %v975_v44 = vadd.s32 %v973_v62, %v967_v51  ;;  %vm976_vm5 = vc.u32 %v974_v58, %v970_v56  ;;  %v925_v20 = vsel %vm921_vm6, %v905_v9, %v7420_v22 }
 0x2f5   :  { %v4571_v57 = vor.u32 4788187, %v4570_v37  ;;  %v949_v48 = vshrl.u32 %v944_v5, 16  ;;  %v977_v60 = vsel %vm976_vm5, 1, %v5481_v27  ;;  %v927_v3 = vsel %vm923_vm9, %v7418_v45, %v926_v29  ;;  %v233_v45 = vpop.f32.mrf.mxu2 }
 0x2f6   :  { %v969_v53 = vshrl.u32 %v965_v13, 16  ;;  %v979_v50 = vadd.s32 %v977_v60, %v975_v44  ;;  %v2132_v43 = vand.u32 2139095040, %v7464_v19  ;;  %v4574_v36 = vcvt.s32.f32 %v4567_v42 }
 0x2f7   :  { %v4572_v24 = vand.u32 2147483647, %v4571_v57  ;;  %v4579_v47 = vsel %vm4456_vm0, %v4578_v2, %v7424_v40  ;;  %v959_v61 = vadd.s32 %v958_v33, %v949_v48  ;;  %v971_v23 = vshrl.u32 %v966_v63, 16 }
 0x2f8   :  { %v980_v22 = vadd.s32 %v979_v50, %v969_v53  ;;  %v2133_v5 = vshrl.u32 %v2132_v43, 23  ;;  %v2136_v9 = vand.u32 8388607, %v2129_v26  ;;  %v978_v49 = vadd.s32 %v974_v58, %v970_v56 }
 0x2f9   :  { %v4575_v18 = vmul.f32 %v4574_v36, %v4572_v24  ;;  %vm4455_vm4 = vcmp.le.f32.partialorder %v4454_v14, 0.7853982  ;;  %v928_v29 = vsel %vm922_vm8, %v925_v20, %v927_v3  ;;  %v7492_v63 = vadd.f32 %v7461_v17, %v233_v45 }
 0x2fa   :  { %v981_v38 = vadd.s32 %v980_v22, %v971_v23  ;;  %v5347_v54 = vadd.s32 4294967169, %v2133_v5  ;;  %v4581_v40 = vsel %vm4455_vm4, 0, %v4579_v47  ;;  %vm984_vm6 = vc.u32 %v959_v61, %v978_v49 }
 0x2fb   :  { %v4576_v0 = vxor.u32 2147483648, %v4575_v18  ;;  %v2137_v30 = vor.u32 8388608, %v2136_v9  ;;  %v982_v46 = vmul.u32 %v7443_v39, %v928_v29  ;;  %v4598_v41 = vadd.s32 3, %v4581_v40 }
 0x2fc   :  { %v985_v13 = vadd.s32 1, %v981_v38  ;;  %v2139_v15 = vadd.s32 1, %v5347_v54  ;;  %v3372_v11 = vand.u32 2139095040, %v7492_v63  ;;  %v7503_v37 = vadd.s32 %v978_v49, %v959_v61 }
 0x2fd   :  { %v4577_v52 = vsel %vm4456_vm0, %v4576_v0, %v4575_v18  ;;  %v7498_v31 = vshll.u32 %v2137_v30, 8  ;;  %v7501_v56 = vand.u32 3, %v4598_v41  ;;  %v3369_v44 = vand.u32 2147483647, %v7492_v63 }
 0x2fe   :  { %v4580_v14 = vsel %vm4455_vm4, %v7238_v35, %v4577_v52  ;;  %v986_v7 = vsel %vm984_vm6, %v985_v13, %v981_v38  ;;  %vm2140_vm7 = vcmp.gt.s32.totalorder %v2139_v15, 0  ;;  %v3373_v57 = vshrl.u32 %v3372_v11, 23 }
 0x2ff   :  { %v4582_v32 = vmul.f32 %v4580_v14, %v4580_v14  ;;  %v987_v55 = vadd.s32 %v986_v7, %v982_v46  ;;  %v2141_v51 = vsel %vm2140_vm7, %v2139_v15, 0  ;;  %v7507_v33 = vand.u32 65535, %v7498_v31 }
 0x300   :  { %v2143_v16 = vand.u32 31, %v2141_v51  ;;  %vm891_vm9 = vcmp.lt.s32.totalorder %v7268_v34, 0  ;;  %vm4604_vm8 = vcmp.eq.s32.totalorder %v7501_v56, 2  ;;  %v7519_v23 = vshrl.u32 %v2141_v51, 5 }
 0x301   :  { %v4583_v28 = vmul.f32 -0.001358992, %v4582_v32  ;;  %v4590_v1 = vmul.f32 -0.00019511016, %v4582_v32  ;;  %v988_v25 = vadd.s32 536870912, %v987_v55  ;;  %vm4601_vm11 = vcmp.eq.s32.totalorder %v7501_v56, 0 }
 0x302   :  { %v2144_v58 = vsub.s32 32, %v2143_v16  ;;  %v2146_v62 = vshll.u32 %v5475_v4, %v2143_v16  ;;  %v2149_v3 = vshll.u32 %v5476_v6, %v2143_v16  ;;  %v2155_v43 = vshll.u32 %v5478_v10, %v2143_v16 }
 0x303   :  { %v4584_v39 = vadd.f32 0.041655596, %v4583_v28  ;;  %v4591_v42 = vadd.f32 0.008332121, %v4590_v1  ;;  %v989_v2 = vshrl.u32 %v988_v25, 30  ;;  %v2152_v22 = vshll.u32 %v5477_v8, %v2143_v16 }
 0x304   :  { %v2147_v53 = vshrl.u32 %v5476_v6, %v2144_v58  ;;  %v2150_v50 = vshrl.u32 %v5477_v8, %v2144_v58  ;;  %v2156_v24 = vshrl.u32 %v5479_v12, %v2144_v58  ;;  %v2153_v5 = vshrl.u32 %v5478_v10, %v2144_v58 }
 0x305   :  { %v4585_v20 = vmul.f32 %v4584_v39, %v4582_v32  ;;  %v4592_v48 = vmul.f32 %v4591_v42, %v4582_v32  ;;  %v990_v60 = vshll.u32 %v989_v2, 30  ;;  %v2158_v9 = vshll.u32 %v5479_v12, %v2143_v16 }
 0x306   :  { %v2159_v18 = vshrl.u32 %v5480_v21, %v2144_v58  ;;  %vm4600_vm10 = vcmp.lt.s32.totalorder %v7501_v56, 2  ;;  %vm4597_vm12 = vweird.f32 %v7238_v35  ;;  %v1013_v38 = vsub.s32 4, %v989_v2 }
 0x307   :  { %v4586_v36 = vadd.f32 -0.4999988, %v4585_v20  ;;  %v4593_v47 = vadd.f32 -0.16666654, %v4592_v48  ;;  %v7517_v61 = vsub.s32 %v987_v55, %v990_v60  ;;  %v2148_v54 = vor.u32 %v2147_v53, %v2146_v62 }
 0x308   :  { %v2151_v0 = vor.u32 %v2150_v50, %v2149_v3  ;;  %v2157_v40 = vor.u32 %v2156_v24, %v2155_v43  ;;  %vm2161_vm13 = vcmp.lt.s32.totalorder %v7519_v23, 1  ;;  %v2154_v46 = vor.u32 %v2153_v5, %v2152_v22 }
 0x309   :  { %v4587_v49 = vmul.f32 %v4586_v36, %v4582_v32  ;;  %v4594_v45 = vmul.f32 %v4593_v47, %v4582_v32  ;;  %vm992_vm14 = vcmp.lt.s32.totalorder %v7517_v61, 0  ;;  %v993_v29 = vsub.s32 0, %v7517_v61 }
 0x30a   :  { %vm2164_vm15 = vcmp.lt.s32.totalorder %v7519_v23, 4  ;;  %v2179_v41 = vshrl.u32 %v7498_v31, 16  ;;  %vm7536_vm0 = vcmp.le.f32.partialorder %v889_v59, 0.7853982  ;;  %v2160_v51 = vor.u32 %v2159_v18, %v2158_v9 }
 0x30b   :  { %v4588_v13 = vadd.f32 1.0, %v4587_v49  ;;  %v4595_v30 = vadd.f32 1.0, %v4594_v45  ;;  %v994_v15 = vsel %vm992_vm14, %v993_v29, %v7517_v61  ;;  %vm2163_vm1 = vcmp.lt.s32.totalorder %v7519_v23, 3 }
 0x30c   :  { %v995_v52 = vclz %v994_v15  ;;  %v2145_v11 = vshrl.u32 %v5475_v4, %v2144_v58  ;;  %v2169_v28 = vsel %vm2161_vm13, %v2148_v54, %v2151_v0  ;;  %v5371_v1 = vadd.s32 4294967169, %v3373_v57 }
 0x30d   :  { %v4596_v7 = vmul.f32 %v4595_v30, %v4580_v14  ;;  %v4605_v32 = vxor.u32 2147483648, %v4588_v13  ;;  %v7546_v14 = vsel %vm891_vm9, %v1013_v38, %v989_v2  ;;  %vm2162_vm2 = vcmp.lt.s32.totalorder %v7519_v23, 2 }
 0x30e   :  { %v5324_v16 = vadd.s32 4294967294, %v995_v52  ;;  %v2170_v59 = vsel %vm2164_vm15, %v2157_v40, 920167782  ;;  %v2173_v42 = vsel %vm2161_vm13, %v2151_v0, %v2154_v46  ;;  %v2174_v20 = vsel %vm2164_vm15, %v2160_v51, 1326507024 }
 0x30f   :  { %v4602_v25 = vxor.u32 2147483648, %v4596_v7  ;;  %v4606_v39 = vsel %vm4604_vm8, %v4605_v32, %v4596_v7  ;;  %v2171_v58 = vsel %vm2163_vm1, %v2154_v46, %v2170_v59  ;;  %v2166_v53 = vsel %vm2164_vm15, %v2154_v46, 2102212464 }
 0x310   :  { %vm5325_vm3 = vcmp.lt.s32.totalorder %v5324_v16, 0  ;;  %v2172_v57 = vsel %vm2162_vm2, %v2169_v28, %v2171_v58  ;;  %v2175_v43 = vsel %vm2163_vm1, %v2157_v40, %v2174_v20  ;;  %v3379_v35 = vadd.s32 1, %v5371_v1 }
 0x311   :  { %v4603_v62 = vsel %vm4601_vm11, %v4588_v13, %v4602_v25  ;;  %v998_v2 = vsel %vm5325_vm3, 0, %v5324_v16  ;;  %v2202_v24 = vand.u32 65535, %v2172_v57  ;;  %v2203_v36 = vshrl.u32 %v2172_v57, 16 }
 0x312   :  { %v4607_v48 = vsel %vm4600_vm10, %v4603_v62, %v4606_v39  ;;  %v999_v60 = vsub.s32 32, %v998_v2  ;;  %v1003_v3 = vsub.s32 4294967266, %v998_v2  ;;  %v1000_v47 = vshll.u32 %v7517_v61, %v998_v2 }
 0x313   :  { %v4608_v50 = vsel %vm4597_vm12, nan, %v4607_v48  ;;  %v2176_v5 = vsel %vm2162_vm2, %v2173_v42, %v2175_v43  ;;  %v2205_v49 = vmul.u32 %v2203_v36, %v7507_v33  ;;  %v1016_v38 = vsel %vm7536_vm0, 0, %v7546_v14 }
 0x314   :  { %5256 = vst [vmem:[#allocation2 + $0xd8] sm:$0xff] %v4608_v50  ;;  %v1001_v22 = vshrl.u32 %v7503_v37, %v999_v60  ;;  %v1004_v56 = vadd.s32 127, %v1003_v3  ;;  %v2180_v9 = vand.u32 65535, %v2176_v5  ;;  %v2181_v18 = vshrl.u32 %v2176_v5, 16 }
 0x315   :  { %v2206_v40 = vmul.u32 %v2202_v24, %v2179_v41  ;;  %v2165_v61 = vsel %vm2161_vm13, %v2145_v11, %v2148_v54  ;;  %v2167_v37 = vsel %vm2163_vm1, %v2151_v0, %v2166_v53  ;;  %v2204_v52 = vmul.u32 %v2202_v24, %v7507_v33 }
 0x316   :  { %v1002_v45 = vor.u32 %v1001_v22, %v1000_v47  ;;  %v1005_v29 = vshll.u32 %v1004_v56, 23  ;;  %v2183_v13 = vmul.u32 %v2181_v18, %v7507_v33  ;;  %v2184_v30 = vmul.u32 %v2180_v9, %v2179_v41 }
 0x317   :  { %v2207_v46 = vmul.u32 %v2203_v36, %v2179_v41  ;;  %v2208_v7 = vshll.u32 %v2205_v49, 16  ;;  %v2182_v51 = vmul.u32 %v2180_v9, %v7507_v33  ;;  %v2185_v16 = vmul.u32 %v2181_v18, %v2179_v41 }
 0x318   :  { %v1006_v15 = vor.u32 4788187, %v1005_v29  ;;  %v1009_v32 = vcvt.s32.f32 %v1002_v45  ;;  %v2186_v28 = vshll.u32 %v2183_v13, 16  ;;  %v2188_v25 = vshll.u32 %v2184_v30, 16 }
 0x319   :  { %v2210_v14 = vshll.u32 %v2206_v40, 16  ;;  %vm2212_vm5 = vc.u32 %v2204_v52, %v2208_v7  ;;  %v2214_v11 = vadd.s32 %v2208_v7, %v2204_v52  ;;  %vm3380_vm6 = vcmp.gt.s32.totalorder %v3379_v35, 0 }
 0x31a   :  { %v1007_v1 = vand.u32 2147483647, %v1006_v15  ;;  %vm2190_vm4 = vc.u32 %v2182_v51, %v2186_v28  ;;  %v2192_v54 = vadd.s32 %v2186_v28, %v2182_v51  ;;  %v2213_v0 = vsel %vm2212_vm5, 1, %v5481_v27 }
 0x31b   :  { %v2191_v39 = vsel %vm2190_vm4, 1, %v5481_v27  ;;  %v2215_v58 = vadd.s32 %v2213_v0, %v2207_v46  ;;  %v2209_v62 = vshrl.u32 %v2205_v49, 16  ;;  %vm2216_vm8 = vc.u32 %v2214_v11, %v2210_v14 }
 0x31c   :  { %v1010_v59 = vmul.f32 %v1009_v32, %v1007_v1  ;;  %v2193_v42 = vadd.s32 %v2191_v39, %v2185_v16  ;;  %vm2194_vm7 = vc.u32 %v2192_v54, %v2188_v25  ;;  %v2217_v2 = vsel %vm2216_vm8, 1, %v5481_v27 }
 0x31d   :  { %v2195_v41 = vsel %vm2194_vm7, 1, %v5481_v27  ;;  %v3381_v57 = vsel %vm3380_vm6, %v3379_v35, 0  ;;  %v2187_v20 = vshrl.u32 %v2183_v13, 16  ;;  %v2219_v60 = vadd.s32 %v2217_v2, %v2215_v58 }
 0x31e   :  { %v1011_v33 = vxor.u32 2147483648, %v1010_v59  ;;  %v2197_v48 = vadd.s32 %v2195_v41, %v2193_v42  ;;  %v3383_v3 = vand.u32 31, %v3381_v57  ;;  %v2168_v50 = vsel %vm2162_vm2, %v2165_v61, %v2167_v37 }
 0x31f   :  { %v2189_v43 = vshrl.u32 %v2184_v30, 16  ;;  %v2211_v24 = vshrl.u32 %v2206_v40, 16  ;;  %v2220_v22 = vadd.s32 %v2219_v60, %v2209_v62  ;;  %v1033_v9 = vadd.s32 3, %v1016_v38 }
 0x320   :  { %v1012_v53 = vsel %vm891_vm9, %v1011_v33, %v1010_v59  ;;  %v2198_v47 = vadd.s32 %v2197_v48, %v2187_v20  ;;  %v7597_v56 = vsub.s32 32, %v3383_v3  ;;  %v3376_v18 = vand.u32 8388607, %v3369_v44 }
 0x321   :  { %v1015_v36 = vsel %vm7536_vm0, %v7268_v34, %v1012_v53  ;;  %v7603_v35 = vadd.s32 %v2214_v11, %v2210_v14  ;;  %v2221_v23 = vadd.s32 %v2220_v22, %v2211_v24  ;;  %v2222_v45 = vmul.u32 %v7498_v31, %v2168_v50 }
 0x322   :  { %v1017_v5 = vmul.f32 %v1015_v36, %v1015_v36  ;;  %v7601_v49 = vadd.s32 %v2198_v47, %v2189_v43  ;;  %v7606_v55 = vshrl.u32 %v3381_v57, 5  ;;  %v3389_v61 = vshll.u32 %v5476_v6, %v3383_v3 }
 0x323   :  { %v2225_v38 = vadd.s32 1, %v2221_v23  ;;  %v3390_v37 = vshrl.u32 %v5477_v8, %v7597_v56  ;;  %v3393_v13 = vshrl.u32 %v5478_v10, %v7597_v56  ;;  %v3387_v31 = vshrl.u32 %v5476_v6, %v7597_v56 }
 0x324   :  { %v1018_v29 = vmul.f32 -0.001358992, %v1017_v5  ;;  %v1025_v40 = vmul.f32 -0.00019511016, %v1017_v5  ;;  %vm2224_vm9 = vc.u32 %v7601_v49, %v7603_v35  ;;  %v3392_v52 = vshll.u32 %v5477_v8, %v3383_v3 }
 0x325   :  { %v2226_v46 = vsel %vm2224_vm9, %v2225_v38, %v2221_v23  ;;  %v3395_v7 = vshll.u32 %v5478_v10, %v3383_v3  ;;  %v3396_v32 = vshrl.u32 %v5479_v12, %v7597_v56  ;;  %v3398_v51 = vshll.u32 %v5479_v12, %v3383_v3  ;;  %v257_v38 = vpop.f32.mrf.mxu3 }
 0x326   :  { %v1019_v30 = vadd.f32 0.041655596, %v1018_v29  ;;  %v1026_v15 = vadd.f32 0.008332121, %v1025_v40  ;;  %v2227_v1 = vadd.s32 %v2226_v46, %v2222_v45  ;;  %v3399_v25 = vshrl.u32 %v5480_v21, %v7597_v56 }
 0x327   :  { %v3386_v14 = vshll.u32 %v5475_v4, %v3383_v3  ;;  %v7625_v54 = vor.u32 %v3390_v37, %v3389_v61  ;;  %v3394_v0 = vor.u32 %v3393_v13, %v3392_v52  ;;  %v3397_v11 = vor.u32 %v3396_v32, %v3395_v7 }
 0x328   :  { %v1020_v16 = vmul.f32 %v1019_v30, %v1017_v5  ;;  %v1027_v28 = vmul.f32 %v1026_v15, %v1017_v5  ;;  %v2228_v58 = vadd.s32 536870912, %v2227_v1  ;;  %v3400_v42 = vor.u32 %v3399_v25, %v3398_v51 }
 0x329   :  { %v1034_v62 = vand.u32 3, %v1033_v9  ;;  %v3377_v33 = vor.u32 8388608, %v3376_v18  ;;  %v7627_v41 = vor.u32 %v3387_v31, %v3386_v14  ;;  %vm3404_vm11 = vcmp.lt.s32.totalorder %v7606_v55, 4 }
 0x32a   :  { %v1021_v59 = vadd.f32 -0.4999988, %v1020_v16  ;;  %v1028_v39 = vadd.f32 -0.16666654, %v1027_v28  ;;  %v7629_v20 = vshrl.u32 %v2228_v58, 30  ;;  %vm3401_vm10 = vcmp.lt.s32.totalorder %v7606_v55, 1 }
 0x32b   :  { %vm3403_vm14 = vcmp.lt.s32.totalorder %v7606_v55, 3  ;;  %v3410_v48 = vsel %vm3404_vm11, %v3397_v11, 920167782  ;;  %v3414_v60 = vsel %vm3404_vm11, %v3400_v42, 1326507024  ;;  %v3413_v43 = vsel %vm3401_vm10, %v7625_v54, %v3394_v0 }
 0x32c   :  { %v1022_v2 = vmul.f32 %v1021_v59, %v1017_v5  ;;  %v1029_v57 = vmul.f32 %v1028_v39, %v1017_v5  ;;  %v2230_v50 = vshll.u32 %v7629_v20, 30  ;;  %v3409_v24 = vsel %vm3401_vm10, %v7627_v41, %v7625_v54 }
 0x32d   :  { %v3411_v47 = vsel %vm3403_vm14, %v3394_v0, %v3410_v48  ;;  %v3415_v22 = vsel %vm3403_vm14, %v3397_v11, %v3414_v60  ;;  %v7650_v5 = vshll.u32 %v3377_v33, 8  ;;  %vm3402_vm12 = vcmp.lt.s32.totalorder %v7606_v55, 2 }
 0x32e   :  { %v1023_v3 = vadd.f32 1.0, %v1022_v2  ;;  %v1030_v53 = vadd.f32 1.0, %v1029_v57  ;;  %v2231_v23 = vsub.s32 %v2227_v1, %v2230_v50  ;;  %vm1032_vm13 = vweird.f32 %v7268_v34 }
 0x32f   :  { %vm1035_vm15 = vcmp.lt.s32.totalorder %v1034_v62, 2  ;;  %vm1036_vm0 = vcmp.eq.s32.totalorder %v1034_v62, 0  ;;  %v3416_v45 = vsel %vm3402_vm12, %v3413_v43, %v3415_v22  ;;  %v3412_v61 = vsel %vm3402_vm12, %v3409_v24, %v3411_v47 }
 0x330   :  { %v1031_v9 = vmul.f32 %v1030_v53, %v1015_v36  ;;  %v1040_v18 = vxor.u32 2147483648, %v1023_v3  ;;  %vm2232_vm1 = vcmp.lt.s32.totalorder %v2231_v23, 0  ;;  %v2233_v40 = vsub.s32 0, %v2231_v23 }
 0x331   :  { %vm1039_vm2 = vcmp.eq.s32.totalorder %v1034_v62, 2  ;;  %v3418_v36 = vand.u32 65535, %v7650_v5  ;;  %v3420_v37 = vand.u32 65535, %v3416_v45  ;;  %v3421_v13 = vshrl.u32 %v3416_v45, 16 }
 0x332   :  { %v1037_v29 = vxor.u32 2147483648, %v1031_v9  ;;  %v1041_v15 = vsel %vm1039_vm2, %v1040_v18, %v1031_v9  ;;  %v2234_v31 = vsel %vm2232_vm1, %v2233_v40, %v2231_v23  ;;  %v3419_v52 = vshrl.u32 %v7650_v5, 16 }
 0x333   :  { %v2235_v7 = vclz %v2234_v31  ;;  %v3443_v32 = vshrl.u32 %v3412_v61, 16  ;;  %v7662_v51 = vadd.f32 %v7461_v17, %v257_v38  ;;  %v3423_v28 = vmul.u32 %v3421_v13, %v3418_v36 }
 0x334   :  { %v1038_v30 = vsel %vm1036_vm0, %v1023_v3, %v1037_v29  ;;  %v3424_v1 = vmul.u32 %v3420_v37, %v3419_v52  ;;  %v3442_v25 = vand.u32 65535, %v3412_v61  ;;  %v2223_v14 = vadd.s32 %v7603_v35, %v7601_v49 }
 0x335   :  { %v1042_v46 = vsel %vm1035_vm15, %v1038_v30, %v1041_v15  ;;  %v5348_v11 = vadd.s32 4294967294, %v2235_v7  ;;  %v3385_v59 = vshrl.u32 %v5475_v4, %v7597_v56  ;;  %v3406_v39 = vsel %vm3404_vm11, %v3394_v0, 2102212464 }
 0x336   :  { %v1043_v16 = vsel %vm1032_vm13, nan, %v1042_v46  ;;  %v2253_v58 = vsub.s32 4, %v7629_v20  ;;  %v3422_v42 = vmul.u32 %v3420_v37, %v3418_v36  ;;  %v3425_v62 = vmul.u32 %v3421_v13, %v3419_v52  ;;  %v188_v46 = vpop.f32.mrf.mxu0 }
 0x337   :  { %5233 = vst [vmem:[#allocation2 + $0x20] sm:$0xff] %v1043_v16  ;;  %v3426_v34 = vshll.u32 %v3423_v28, 16  ;;  %vm2131_vm3 = vcmp.lt.s32.totalorder %v7464_v19, 0  ;;  %vm5349_vm5 = vcmp.lt.s32.totalorder %v5348_v11, 0  ;;  %v3427_v33 = vshrl.u32 %v3423_v28, 16 }
 0x338   :  { %v3428_v2 = vshll.u32 %v3424_v1, 16  ;;  %v3445_v57 = vmul.u32 %v3443_v32, %v3418_v36  ;;  %v2238_v48 = vsel %vm5349_vm5, 0, %v5348_v11  ;;  %v3446_v35 = vmul.u32 %v3442_v25, %v3419_v52 }
 0x339   :  { %vm3430_vm4 = vc.u32 %v3422_v42, %v3426_v34  ;;  %v3432_v49 = vadd.s32 %v3426_v34, %v3422_v42  ;;  %v2239_v60 = vsub.s32 32, %v2238_v48  ;;  %v2243_v56 = vsub.s32 4294967266, %v2238_v48 }
 0x33a   :  { %v3431_v3 = vsel %vm3430_vm4, 1, %v5481_v27  ;;  %v3444_v0 = vmul.u32 %v3442_v25, %v3418_v36  ;;  %v3447_v50 = vmul.u32 %v3443_v32, %v3419_v52  ;;  %v3448_v43 = vshll.u32 %v3445_v57, 16 }
 0x33b   :  { %v3433_v53 = vadd.s32 %v3431_v3, %v3425_v62  ;;  %vm3434_vm6 = vc.u32 %v3432_v49, %v3428_v2  ;;  %v2240_v24 = vshll.u32 %v2231_v23, %v2238_v48  ;;  %v2241_v47 = vshrl.u32 %v2223_v14, %v2239_v60 }
 0x33c   :  { %v2244_v22 = vadd.s32 127, %v2243_v56  ;;  %v3435_v9 = vsel %vm3434_vm6, 1, %v5481_v27  ;;  %v3450_v45 = vshll.u32 %v3446_v35, 16  ;;  %vm3452_vm7 = vc.u32 %v3444_v0, %v3448_v43 }
 0x33d   :  { %v3437_v18 = vadd.s32 %v3435_v9, %v3433_v53  ;;  %v3454_v29 = vadd.s32 %v3448_v43, %v3444_v0  ;;  %v2242_v40 = vor.u32 %v2241_v47, %v2240_v24  ;;  %v3405_v38 = vsel %vm3401_vm10, %v3385_v59, %v7627_v41 }
 0x33e   :  { %v2245_v61 = vshll.u32 %v2244_v22, 23  ;;  %v3453_v36 = vsel %vm3452_vm7, 1, %v5481_v27  ;;  %v4609_v23 = vand.u32 2147483647, %v7662_v51  ;;  %v3407_v15 = vsel %vm3403_vm14, %v7625_v54, %v3406_v39 }
 0x33f   :  { %v3438_v37 = vadd.s32 %v3437_v18, %v3427_v33  ;;  %v3455_v13 = vadd.s32 %v3453_v36, %v3447_v50  ;;  %vm3456_vm8 = vc.u32 %v3454_v29, %v3450_v45  ;;  %v3429_v31 = vshrl.u32 %v3424_v1, 16 }
 0x340   :  { %v2246_v30 = vor.u32 4788187, %v2245_v61  ;;  %v3457_v52 = vsel %vm3456_vm8, 1, %v5481_v27  ;;  %v2254_v41 = vsel %vm2131_vm3, %v2253_v58, %v7629_v20  ;;  %v3449_v7 = vshrl.u32 %v3445_v57, 16 }
 0x341   :  { %v3459_v32 = vadd.s32 %v3457_v52, %v3455_v13  ;;  %v4612_v16 = vand.u32 2139095040, %v7662_v51  ;;  %v2249_v25 = vcvt.s32.f32 %v2242_v40  ;;  %v3439_v14 = vadd.s32 %v3438_v37, %v3429_v31 }
 0x342   :  { %v2247_v28 = vand.u32 2147483647, %v2246_v30  ;;  %v3451_v11 = vshrl.u32 %v3446_v35, 16  ;;  %v4616_v54 = vand.u32 8388607, %v4609_v23  ;;  %v7692_v1 = vadd.f32 %v7461_v17, %v188_v46 }
 0x343   :  { %v3460_v59 = vadd.s32 %v3459_v32, %v3449_v7  ;;  %v4613_v42 = vshrl.u32 %v4612_v16, 23  ;;  %v3458_v62 = vadd.s32 %v3454_v29, %v3450_v45  ;;  %vm7696_vm9 = vcmp.le.f32.partialorder %v2129_v26, 0.7853982 }
 0x344   :  { %v2250_v39 = vmul.f32 %v2249_v25, %v2247_v28  ;;  %v3408_v58 = vsel %vm3402_vm12, %v3405_v38, %v3407_v15  ;;  %v2256_v57 = vsel %vm7696_vm9, 0, %v2254_v41  ;;  %v4617_v48 = vor.u32 8388608, %v4616_v54 }
 0x345   :  { %v3461_v34 = vadd.s32 %v3460_v59, %v3451_v11  ;;  %v5395_v33 = vadd.s32 4294967169, %v4613_v42  ;;  %vm3464_vm11 = vc.u32 %v3439_v14, %v3458_v62  ;;  %v1047_v35 = vand.u32 2139095040, %v7692_v1 }
 0x346   :  { %v2251_v2 = vxor.u32 2147483648, %v2250_v39  ;;  %v3462_v60 = vmul.u32 %v7650_v5, %v3408_v58  ;;  %v2273_v0 = vadd.s32 3, %v2256_v57  ;;  %v7711_v24 = vshll.u32 %v4617_v48, 8 }
 0x347   :  { %v3465_v17 = vadd.s32 1, %v3461_v34  ;;  %v4619_v49 = vadd.s32 1, %v5395_v33  ;;  %v1048_v47 = vshrl.u32 %v1047_v35, 23  ;;  %v7717_v38 = vadd.s32 %v3458_v62, %v3439_v14 }
 0x348   :  { %v2252_v26 = vsel %vm2131_vm3, %v2251_v2, %v2250_v39  ;;  %v7713_v40 = vand.u32 3, %v2273_v0  ;;  %v7720_v36 = vand.u32 65535, %v7711_v24  ;;  %v7723_v37 = vshrl.u32 %v7711_v24, 16 }
 0x349   :  { %v2255_v55 = vsel %vm7696_vm9, %v7464_v19, %v2252_v26  ;;  %v3466_v56 = vsel %vm3464_vm11, %v3465_v17, %v3461_v34  ;;  %vm4620_vm10 = vcmp.gt.s32.totalorder %v4619_v49, 0  ;;  %v7725_v13 = vadd.s32 4294967169, %v1048_v47 }
 0x34a   :  { %v2257_v3 = vmul.f32 %v2255_v55, %v2255_v55  ;;  %v3467_v53 = vadd.s32 %v3466_v56, %v3462_v60  ;;  %v4621_v50 = vsel %vm4620_vm10, %v4619_v49, 0  ;;  %vm2279_vm14 = vcmp.eq.s32.totalorder %v7713_v40, 2 }
 0x34b   :  { %v4623_v43 = vand.u32 31, %v4621_v50  ;;  %v7728_v52 = vshrl.u32 %v4621_v50, 5  ;;  %vm2276_vm12 = vcmp.eq.s32.totalorder %v7713_v40, 0  ;;  %vm2275_vm13 = vcmp.lt.s32.totalorder %v7713_v40, 2 }
 0x34c   :  { %v2258_v22 = vmul.f32 -0.001358992, %v2257_v3  ;;  %v2265_v9 = vmul.f32 -0.00019511016, %v2257_v3  ;;  %v3468_v18 = vadd.s32 536870912, %v3467_v53  ;;  %vm2272_vm0 = vweird.f32 %v7464_v19 }
 0x34d   :  { %v4624_v45 = vsub.s32 32, %v4623_v43  ;;  %v4626_v46 = vshll.u32 %v5475_v4, %v4623_v43  ;;  %v4629_v11 = vshll.u32 %v5476_v6, %v4623_v43  ;;  %v4632_v59 = vshll.u32 %v5477_v8, %v4623_v43 }
 0x34e   :  { %v2259_v29 = vadd.f32 0.041655596, %v2258_v22  ;;  %v2266_v5 = vadd.f32 0.008332121, %v2265_v9  ;;  %v7715_v61 = vshrl.u32 %v3468_v18, 30  ;;  %v4635_v42 = vshll.u32 %v5478_v10, %v4623_v43 }
 0x34f   :  { %v4627_v41 = vshrl.u32 %v5476_v6, %v4624_v45  ;;  %v4630_v7 = vshrl.u32 %v5477_v8, %v4624_v45  ;;  %v4633_v32 = vshrl.u32 %v5478_v10, %v4624_v45  ;;  %v4636_v14 = vshrl.u32 %v5479_v12, %v4624_v45 }
 0x350   :  { %v2260_v30 = vmul.f32 %v2259_v29, %v2257_v3  ;;  %v2267_v15 = vmul.f32 %v2266_v5, %v2257_v3  ;;  %v3470_v31 = vshll.u32 %v7715_v61, 30  ;;  %v4639_v54 = vshrl.u32 %v5480_v21, %v4624_v45 }
 0x351   :  { %v4628_v58 = vor.u32 %v4627_v41, %v4626_v46  ;;  %v4631_v34 = vor.u32 %v4630_v7, %v4629_v11  ;;  %v4634_v33 = vor.u32 %v4633_v32, %v4632_v59  ;;  %v4638_v2 = vshll.u32 %v5479_v12, %v4623_v43 }
 0x352   :  { %v2261_v16 = vadd.f32 -0.4999988, %v2260_v30  ;;  %v2268_v28 = vadd.f32 -0.16666654, %v2267_v15  ;;  %v7735_v25 = vsub.s32 %v3467_v53, %v3470_v31  ;;  %v4637_v49 = vor.u32 %v4636_v14, %v4635_v42 }
 0x353   :  { %v3493_v26 = vsub.s32 4, %v7715_v61  ;;  %v4625_v60 = vshrl.u32 %v5475_v4, %v4624_v45  ;;  %v4640_v56 = vor.u32 %v4639_v54, %v4638_v2  ;;  %vm4641_vm1 = vcmp.lt.s32.totalorder %v7728_v52, 1 }
 0x354   :  { %v2262_v39 = vmul.f32 %v2261_v16, %v2257_v3  ;;  %v2269_v62 = vmul.f32 %v2268_v28, %v2257_v3  ;;  %vm3472_vm15 = vcmp.lt.s32.totalorder %v7735_v25, 0  ;;  %v3473_v20 = vsub.s32 0, %v7735_v25 }
 0x355   :  { %vm4642_vm2 = vcmp.lt.s32.totalorder %v7728_v52, 2  ;;  %vm3371_vm3 = vcmp.lt.s32.totalorder %v7492_v63, 0  ;;  %vm4643_vm5 = vcmp.lt.s32.totalorder %v7728_v52, 3  ;;  %vm4644_vm4 = vcmp.lt.s32.totalorder %v7728_v52, 4 }
 0x356   :  { %v2263_v57 = vadd.f32 1.0, %v2262_v39  ;;  %v2270_v17 = vadd.f32 1.0, %v2269_v62  ;;  %v3474_v48 = vsel %vm3472_vm15, %v3473_v20, %v7735_v25  ;;  %v4649_v50 = vsel %vm4641_vm1, %v4628_v58, %v4631_v34 }
 0x357   :  { %v3475_v35 = vclz %v3474_v48  ;;  %v4645_v47 = vsel %vm4641_vm1, %v4625_v60, %v4628_v58  ;;  %v4646_v22 = vsel %vm4644_vm4, %v4634_v33, 2102212464  ;;  %v4650_v9 = vsel %vm4644_vm4, %v4637_v49, 920167782 }
 0x358   :  { %v2271_v3 = vmul.f32 %v2270_v17, %v2255_v55  ;;  %v2280_v0 = vxor.u32 2147483648, %v2263_v57  ;;  %v4651_v18 = vsel %vm4643_vm5, %v4634_v33, %v4650_v9  ;;  %v4653_v45 = vsel %vm4641_vm1, %v4631_v34, %v4634_v33 }
 0x359   :  { %v5372_v53 = vadd.s32 4294967294, %v3475_v35  ;;  %v4652_v30 = vsel %vm4642_vm2, %v4649_v50, %v4651_v18  ;;  %v4654_v15 = vsel %vm4644_vm4, %v4640_v56, 1326507024  ;;  %v4647_v7 = vsel %vm4643_vm5, %v4631_v34, %v4646_v22 }
 0x35a   :  { %v2277_v43 = vxor.u32 2147483648, %v2271_v3  ;;  %v2281_v55 = vsel %vm2279_vm14, %v2280_v0, %v2271_v3  ;;  %v4655_v16 = vsel %vm4643_vm5, %v4637_v49, %v4654_v15  ;;  %v4682_v28 = vand.u32 65535, %v4652_v30 }
 0x35b   :  { %vm5373_vm6 = vcmp.lt.s32.totalorder %v5372_v53, 0  ;;  %v4683_v14 = vshrl.u32 %v4652_v30, 16  ;;  %v4656_v42 = vsel %vm4642_vm2, %v4653_v45, %v4655_v16  ;;  %v1044_v19 = vand.u32 2147483647, %v7692_v1 }
 0x35c   :  { %v2278_v29 = vsel %vm2276_vm12, %v2263_v57, %v2277_v43  ;;  %v3478_v5 = vsel %vm5373_vm6, 0, %v5372_v53  ;;  %v4660_v54 = vand.u32 65535, %v4656_v42  ;;  %v4661_v39 = vshrl.u32 %v4656_v42, 16 }
 0x35d   :  { %v2282_v31 = vsel %vm2275_vm13, %v2278_v29, %v2281_v55  ;;  %v3479_v46 = vsub.s32 32, %v3478_v5  ;;  %v3483_v41 = vsub.s32 4294967266, %v3478_v5  ;;  %v3480_v11 = vshll.u32 %v7735_v25, %v3478_v5 }
 0x35e   :  { %v2283_v32 = vsel %vm2272_vm0, nan, %v2282_v31  ;;  %v4685_v62 = vmul.u32 %v4683_v14, %v7720_v36  ;;  %v4686_v34 = vmul.u32 %v4682_v28, %v7723_v37  ;;  %v1054_v33 = vadd.s32 1, %v7725_v13 }
 0x35f   :  { %5241 = vst [vmem:[#allocation2 + $0x60] sm:$0xff] %v2283_v32  ;;  %v3481_v59 = vshrl.u32 %v7717_v38, %v3479_v46  ;;  %v3484_v40 = vadd.s32 127, %v3483_v41  ;;  %v7783_v38 = vsel %vm3371_vm3, %v3493_v26, %v7715_v61  ;;  %v7787_v25 = vsel %vm4642_vm2, %v4645_v47, %v4647_v7 }
 0x360   :  { %v4663_v2 = vmul.u32 %v4661_v39, %v7720_v36  ;;  %v4664_v57 = vmul.u32 %v4660_v54, %v7723_v37  ;;  %v4684_v48 = vmul.u32 %v4682_v28, %v7720_v36  ;;  %v4687_v49 = vmul.u32 %v4683_v14, %v7723_v37 }
 0x361   :  { %v3482_v20 = vor.u32 %v3481_v59, %v3480_v11  ;;  %v3485_v58 = vshll.u32 %v3484_v40, 23  ;;  %v4688_v35 = vshll.u32 %v4685_v62, 16  ;;  %v4662_v60 = vmul.u32 %v4660_v54, %v7720_v36 }
 0x362   :  { %v4665_v61 = vmul.u32 %v4661_v39, %v7723_v37  ;;  %v4666_v26 = vshll.u32 %v4663_v2, 16  ;;  %v4668_v52 = vshll.u32 %v4664_v57, 16  ;;  %v4690_v3 = vshll.u32 %v4686_v34, 16 }
 0x363   :  { %v3486_v17 = vor.u32 4788187, %v3485_v58  ;;  %v3489_v13 = vcvt.s32.f32 %v3482_v20  ;;  %vm4692_vm7 = vc.u32 %v4684_v48, %v4688_v35  ;;  %v4694_v50 = vadd.s32 %v4688_v35, %v4684_v48 }
 0x364   :  { %vm4670_vm8 = vc.u32 %v4662_v60, %v4666_v26  ;;  %v4672_v0 = vadd.s32 %v4666_v26, %v4662_v60  ;;  %v4693_v53 = vsel %vm4692_vm7, 1, %v5481_v27  ;;  %vm1055_vm9 = vcmp.gt.s32.totalorder %v1054_v33, 0 }
 0x365   :  { %v3487_v56 = vand.u32 2147483647, %v3486_v17  ;;  %v4671_v47 = vsel %vm4670_vm8, 1, %v5481_v27  ;;  %v4695_v22 = vadd.s32 %v4693_v53, %v4687_v49  ;;  %v4689_v36 = vshrl.u32 %v4685_v62, 16 }
 0x366   :  { %v4673_v9 = vadd.s32 %v4671_v47, %v4665_v61  ;;  %vm4674_vm11 = vc.u32 %v4672_v0, %v4668_v52  ;;  %vm4696_vm10 = vc.u32 %v4694_v50, %v4690_v3  ;;  %v1056_v45 = vsel %vm1055_vm9, %v1054_v33, 0 }
 0x367   :  { %v3490_v43 = vmul.f32 %v3489_v13, %v3487_v56  ;;  %v4675_v55 = vsel %vm4674_vm11, 1, %v5481_v27  ;;  %v4697_v18 = vsel %vm4696_vm10, 1, %v5481_v27  ;;  %v4667_v29 = vshrl.u32 %v4663_v2, 16 }
 0x368   :  { %v4677_v5 = vadd.s32 %v4675_v55, %v4673_v9  ;;  %v4699_v30 = vadd.s32 %v4697_v18, %v4695_v22  ;;  %v1058_v15 = vand.u32 31, %v1056_v45  ;;  %vm7801_vm14 = vcmp.le.f32.partialorder %v3369_v44, 0.7853982 }
 0x369   :  { %v3491_v37 = vxor.u32 2147483648, %v3490_v43  ;;  %v4669_v41 = vshrl.u32 %v4664_v57, 16  ;;  %v4691_v7 = vshrl.u32 %v4686_v34, 16  ;;  %v3496_v44 = vsel %vm7801_vm14, 0, %v7783_v38 }
 0x36a   :  { %v4678_v16 = vadd.s32 %v4677_v5, %v4667_v29  ;;  %v4700_v28 = vadd.s32 %v4699_v30, %v4689_v36  ;;  %v7810_v14 = vsub.s32 32, %v1058_v15  ;;  %v4702_v59 = vmul.u32 %v7711_v24, %v7787_v25 }
 0x36b   :  { %v3492_v46 = vsel %vm3371_vm3, %v3491_v37, %v3490_v43  ;;  %v1051_v40 = vand.u32 8388607, %v1044_v19  ;;  %v7821_v54 = vadd.s32 %v4694_v50, %v4690_v3  ;;  %v7823_v62 = vshrl.u32 %v1056_v45, 5 }
 0x36c   :  { %v3495_v32 = vsel %vm7801_vm14, %v7492_v63, %v3492_v46  ;;  %v7819_v42 = vadd.s32 %v4678_v16, %v4669_v41  ;;  %v4701_v39 = vadd.s32 %v4700_v28, %v4691_v7  ;;  %v1064_v34 = vshll.u32 %v5476_v6, %v1058_v15 }
 0x36d   :  { %v3497_v11 = vmul.f32 %v3495_v32, %v3495_v32  ;;  %v1067_v33 = vshll.u32 %v5477_v8, %v1058_v15  ;;  %v1065_v38 = vshrl.u32 %v5477_v8, %v7810_v14  ;;  %v1068_v25 = vshrl.u32 %v5478_v10, %v7810_v14 }
 0x36e   :  { %vm4704_vm12 = vc.u32 %v7819_v42, %v7821_v54  ;;  %v4705_v24 = vadd.s32 1, %v4701_v39  ;;  %v1061_v17 = vshll.u32 %v5475_v4, %v1058_v15  ;;  %v1062_v48 = vshrl.u32 %v5476_v6, %v7810_v14 }
 0x36f   :  { %v3498_v20 = vmul.f32 -0.001358992, %v3497_v11  ;;  %v3505_v58 = vmul.f32 -0.00019511016, %v3497_v11  ;;  %v1070_v35 = vshll.u32 %v5478_v10, %v1058_v15  ;;  %v1071_v13 = vshrl.u32 %v5479_v12, %v7810_v14 }
 0x370   :  { %v4706_v49 = vsel %vm4704_vm12, %v4705_v24, %v4701_v39  ;;  %v1073_v60 = vshll.u32 %v5479_v12, %v1058_v15  ;;  %v1074_v52 = vshrl.u32 %v5480_v21, %v7810_v14  ;;  %v3513_v3 = vadd.s32 3, %v3496_v44 }
 0x371   :  { %v3499_v2 = vadd.f32 0.041655596, %v3498_v20  ;;  %v3506_v57 = vadd.f32 0.008332121, %v3505_v58  ;;  %v4707_v56 = vadd.s32 %v4706_v49, %v4702_v59  ;;  %v7842_v0 = vor.u32 %v1065_v38, %v1064_v34 }
 0x372   :  { %v1069_v53 = vor.u32 %v1068_v25, %v1067_v33  ;;  %v1072_v50 = vor.u32 %v1071_v13, %v1070_v35  ;;  %v1075_v9 = vor.u32 %v1074_v52, %v1073_v60  ;;  %v1052_v36 = vor.u32 8388608, %v1051_v40 }
 0x373   :  { %v3500_v61 = vmul.f32 %v3499_v2, %v3497_v11  ;;  %v3507_v26 = vmul.f32 %v3506_v57, %v3497_v11  ;;  %v4708_v22 = vadd.s32 536870912, %v4707_v56  ;;  %v7844_v37 = vor.u32 %v1062_v48, %v1061_v17  ;;  %v212_v17 = vpop.f32.mrf.mxu1 }
 0x374   :  { %vm1076_vm13 = vcmp.lt.s32.totalorder %v7823_v62, 1  ;;  %vm1079_vm15 = vcmp.lt.s32.totalorder %v7823_v62, 4  ;;  %vm1078_vm0 = vcmp.lt.s32.totalorder %v7823_v62, 3  ;;  %v3514_v29 = vand.u32 3, %v3513_v3 }
 0x375   :  { %v3501_v43 = vadd.f32 -0.4999988, %v3500_v61  ;;  %v3508_v47 = vadd.f32 -0.16666654, %v3507_v26  ;;  %v7848_v45 = vshrl.u32 %v4708_v22, 30  ;;  %v1088_v41 = vsel %vm1076_vm13, %v7842_v0, %v1069_v53 }
 0x376   :  { %v1085_v5 = vsel %vm1079_vm15, %v1072_v50, 920167782  ;;  %v1089_v30 = vsel %vm1079_vm15, %v1075_v9, 1326507024  ;;  %v1084_v7 = vsel %vm1076_vm13, %v7844_v37, %v7842_v0  ;;  %v7867_v44 = vshll.u32 %v1052_v36, 8 }
 0x377   :  { %v3502_v55 = vmul.f32 %v3501_v43, %v3497_v11  ;;  %v3509_v18 = vmul.f32 %v3508_v47, %v3497_v11  ;;  %v4710_v46 = vshll.u32 %v7848_v45, 30  ;;  %v1086_v16 = vsel %vm1078_vm0, %v1069_v53, %v1085_v5 }
 0x378   :  { %v1090_v28 = vsel %vm1078_vm0, %v1072_v50, %v1089_v30  ;;  %vm1077_vm1 = vcmp.lt.s32.totalorder %v7823_v62, 2  ;;  %vm3515_vm2 = vcmp.lt.s32.totalorder %v3514_v29, 2  ;;  %vm3516_vm3 = vcmp.eq.s32.totalorder %v3514_v29, 0 }
 0x379   :  { %v3503_v15 = vadd.f32 1.0, %v3502_v55  ;;  %v3510_v31 = vadd.f32 1.0, %v3509_v18  ;;  %v4711_v40 = vsub.s32 %v4707_v56, %v4710_v46  ;;  %v1091_v39 = vsel %vm1077_vm1, %v1088_v41, %v1090_v28 }
 0x37a   :  { %v1087_v34 = vsel %vm1077_vm1, %v1084_v7, %v1086_v16  ;;  %vm3519_vm4 = vcmp.eq.s32.totalorder %v3514_v29, 2  ;;  %v1093_v33 = vand.u32 65535, %v7867_v44  ;;  %v1095_v24 = vand.u32 65535, %v1091_v39 }
 0x37b   :  { %v3511_v11 = vmul.f32 %v3510_v31, %v3495_v32  ;;  %v3520_v59 = vxor.u32 2147483648, %v3503_v15  ;;  %vm4712_vm5 = vcmp.lt.s32.totalorder %v4711_v40, 0  ;;  %v4713_v58 = vsub.s32 0, %v4711_v40 }
 0x37c   :  { %v1096_v32 = vshrl.u32 %v1091_v39, 16  ;;  %v1094_v57 = vshrl.u32 %v7867_v44, 16  ;;  %vm3512_vm6 = vweird.f32 %v7492_v63  ;;  %v1118_v35 = vshrl.u32 %v1087_v34, 16  ;;  %v7885_v63 = vld [vmem:[%s9088_s2] ss:$0 sm:$0xff] }
 0x37d   :  { %v3517_v20 = vxor.u32 2147483648, %v3511_v11  ;;  %v3521_v25 = vsel %vm3519_vm4, %v3520_v59, %v3511_v11  ;;  %v4714_v2 = vsel %vm4712_vm5, %v4713_v58, %v4711_v40  ;;  %v1117_v26 = vand.u32 65535, %v1087_v34 }
 0x37e   :  { %v4715_v49 = vclz %v4714_v2  ;;  %v1098_v60 = vmul.u32 %v1096_v32, %v1093_v33  ;;  %v1099_v61 = vmul.u32 %v1095_v24, %v1094_v57  ;;  %v4703_v56 = vadd.s32 %v7821_v54, %v7819_v42 }
 0x37f   :  { %v3518_v38 = vsel %vm3516_vm3, %v3503_v15, %v3517_v20  ;;  %v1060_v3 = vshrl.u32 %v5475_v4, %v7810_v14  ;;  %v7888_v50 = vadd.f32 %v7885_v63, %v212_v17  ;;  %v1081_v43 = vsel %vm1079_vm15, %v1069_v53, 2102212464 }
 0x380   :  { %v3522_v48 = vsel %vm3515_vm2, %v3518_v38, %v3521_v25  ;;  %v5396_v52 = vadd.s32 4294967294, %v4715_v49  ;;  %v1097_v47 = vmul.u32 %v1095_v24, %v1093_v33  ;;  %v1100_v22 = vmul.u32 %v1096_v32, %v1094_v57 }
 0x381   :  { %v3523_v13 = vsel %vm3512_vm6, nan, %v3522_v48  ;;  %v1101_v9 = vshll.u32 %v1098_v60, 16  ;;  %v1102_v42 = vshrl.u32 %v1098_v60, 16  ;;  %v1103_v54 = vshll.u32 %v1099_v61, 16 }
 0x382   :  { %5249 = vst [vmem:[#allocation2 + $0xa0] sm:$0xff] %v3523_v13  ;;  %vm5397_vm7 = vcmp.lt.s32.totalorder %v5396_v52, 0  ;;  %v1120_v36 = vmul.u32 %v1118_v35, %v1093_v33  ;;  %vm4611_vm8 = vcmp.lt.s32.totalorder %v7662_v51, 0  ;;  %v1121_v18 = vmul.u32 %v1117_v26, %v1094_v57 }
 0x383   :  { %v4718_v14 = vsel %vm5397_vm7, 0, %v5396_v52  ;;  %vm1105_vm9 = vc.u32 %v1097_v47, %v1101_v9  ;;  %v1107_v55 = vadd.s32 %v1101_v9, %v1097_v47  ;;  %v1119_v15 = vmul.u32 %v1117_v26, %v1093_v33 }
 0x384   :  { %v4719_v29 = vsub.s32 32, %v4718_v14  ;;  %v4723_v5 = vsub.s32 4294967266, %v4718_v14  ;;  %v1106_v30 = vsel %vm1105_vm9, 1, %v5481_v27  ;;  %v1122_v53 = vmul.u32 %v1118_v35, %v1094_v57 }
 0x385   :  { %v1108_v31 = vadd.s32 %v1106_v30, %v1100_v22  ;;  %vm1109_vm11 = vc.u32 %v1107_v55, %v1103_v54  ;;  %v1123_v46 = vshll.u32 %v1120_v36, 16  ;;  %v4720_v41 = vshll.u32 %v4711_v40, %v4718_v14 }
 0x386   :  { %v4721_v7 = vshrl.u32 %v4703_v56, %v4719_v29  ;;  %v4724_v16 = vadd.s32 127, %v4723_v5  ;;  %v1110_v28 = vsel %vm1109_vm11, 1, %v5481_v27  ;;  %v1125_v59 = vshll.u32 %v1121_v18, 16 }
 0x387   :  { %v1112_v11 = vadd.s32 %v1110_v28, %v1108_v31  ;;  %vm1127_vm10 = vc.u32 %v1119_v15, %v1123_v46  ;;  %v1129_v39 = vadd.s32 %v1123_v46, %v1119_v15  ;;  %v4733_v34 = vsub.s32 4, %v7848_v45 }
 0x388   :  { %v4722_v20 = vor.u32 %v4721_v7, %v4720_v41  ;;  %v4725_v58 = vshll.u32 %v4724_v16, 23  ;;  %v1128_v24 = vsel %vm1127_vm10, 1, %v5481_v27  ;;  %v2284_v38 = vand.u32 2147483647, %v7888_v50 }
 0x389   :  { %v1113_v33 = vadd.s32 %v1112_v11, %v1102_v42  ;;  %v1130_v32 = vadd.s32 %v1128_v24, %v1122_v53  ;;  %vm1131_vm14 = vc.u32 %v1129_v39, %v1125_v59  ;;  %v1080_v25 = vsel %vm1076_vm13, %v1060_v3, %v7844_v37 }
 0x38a   :  { %v4726_v40 = vor.u32 4788187, %v4725_v58  ;;  %v1104_v2 = vshrl.u32 %v1099_v61, 16  ;;  %v1132_v57 = vsel %vm1131_vm14, 1, %v5481_v27  ;;  %v1082_v17 = vsel %vm1078_vm0, %v7842_v0, %v1081_v43  ;;  %v236_v0 = vpop.f32.mrf.mxu2 }
 0x38b   :  { %v1124_v48 = vshrl.u32 %v1120_v36, 16  ;;  %v1134_v49 = vadd.s32 %v1132_v57, %v1130_v32  ;;  %v2287_v35 = vand.u32 2139095040, %v7888_v50  ;;  %v4729_v60 = vcvt.s32.f32 %v4722_v20 }
 0x38c   :  { %v4727_v13 = vand.u32 2147483647, %v4726_v40  ;;  %v4734_v26 = vsel %vm4611_vm8, %v4733_v34, %v7848_v45  ;;  %v1114_v56 = vadd.s32 %v1113_v33, %v1104_v2  ;;  %v1126_v52 = vshrl.u32 %v1121_v18, 16 }
 0x38d   :  { %v1135_v37 = vadd.s32 %v1134_v49, %v1124_v48  ;;  %v2288_v61 = vshrl.u32 %v2287_v35, 23  ;;  %v2291_v3 = vand.u32 8388607, %v2284_v38  ;;  %v1133_v22 = vadd.s32 %v1129_v39, %v1125_v59 }
 0x38e   :  { %v4730_v47 = vmul.f32 %v4729_v60, %v4727_v13  ;;  %vm4610_vm12 = vcmp.le.f32.partialorder %v4609_v23, 0.7853982  ;;  %v1083_v43 = vsel %vm1077_vm1, %v1080_v25, %v1082_v17  ;;  %v7916_v18 = vadd.f32 %v7885_v63, %v236_v0 }
 0x38f   :  { %v1136_v9 = vadd.s32 %v1135_v37, %v1126_v52  ;;  %v5350_v42 = vadd.s32 4294967169, %v2288_v61  ;;  %v4736_v45 = vsel %vm4610_vm12, 0, %v4734_v26  ;;  %vm1139_vm13 = vc.u32 %v1114_v56, %v1133_v22 }
 0x390   :  { %v4731_v54 = vxor.u32 2147483648, %v4730_v47  ;;  %v2292_v14 = vor.u32 8388608, %v2291_v3  ;;  %v1137_v5 = vmul.u32 %v7867_v44, %v1083_v43  ;;  %v4753_v62 = vadd.s32 3, %v4736_v45 }
 0x391   :  { %v1140_v36 = vadd.s32 1, %v1136_v9  ;;  %v2294_v55 = vadd.s32 1, %v5350_v42  ;;  %v3527_v7 = vand.u32 2139095040, %v7916_v18  ;;  %v7927_v58 = vadd.s32 %v1133_v22, %v1114_v56 }
 0x392   :  { %v4732_v29 = vsel %vm4611_vm8, %v4731_v54, %v4730_v47  ;;  %v7922_v41 = vshll.u32 %v2292_v14, 8  ;;  %v7925_v59 = vand.u32 3, %v4753_v62  ;;  %v3524_v32 = vand.u32 2147483647, %v7916_v18 }
 0x393   :  { %v4735_v23 = vsel %vm4610_vm12, %v7662_v51, %v4732_v29  ;;  %v1141_v30 = vsel %vm1139_vm13, %v1140_v36, %v1136_v9  ;;  %vm2295_vm15 = vcmp.gt.s32.totalorder %v2294_v55, 0  ;;  %v3528_v40 = vshrl.u32 %v3527_v7, 23 }
 0x394   :  { %v4737_v15 = vmul.f32 %v4735_v23, %v4735_v23  ;;  %v1142_v31 = vadd.s32 %v1141_v30, %v1137_v5  ;;  %v2296_v53 = vsel %vm2295_vm15, %v2294_v55, 0  ;;  %v7931_v33 = vand.u32 65535, %v7922_v41 }
 0x395   :  { %v2298_v46 = vand.u32 31, %v2296_v53  ;;  %vm1046_vm0 = vcmp.lt.s32.totalorder %v7692_v1, 0  ;;  %vm4759_vm1 = vcmp.eq.s32.totalorder %v7925_v59, 2  ;;  %v7943_v52 = vshrl.u32 %v2296_v53, 5 }
 0x396   :  { %v4738_v16 = vmul.f32 -0.001358992, %v4737_v15  ;;  %v4745_v28 = vmul.f32 -0.00019511016, %v4737_v15  ;;  %v1143_v11 = vadd.s32 536870912, %v1142_v31  ;;  %vm4756_vm2 = vcmp.eq.s32.totalorder %v7925_v59, 0 }
 0x397   :  { %v2299_v39 = vsub.s32 32, %v2298_v46  ;;  %v2301_v24 = vshll.u32 %v5475_v4, %v2298_v46  ;;  %v2304_v17 = vshll.u32 %v5476_v6, %v2298_v46  ;;  %v2310_v35 = vshll.u32 %v5478_v10, %v2298_v46 }
 0x398   :  { %v4739_v44 = vadd.f32 0.041655596, %v4738_v16  ;;  %v4746_v20 = vadd.f32 0.008332121, %v4745_v28  ;;  %v1144_v34 = vshrl.u32 %v1143_v11, 30  ;;  %v2307_v37 = vshll.u32 %v5477_v8, %v2298_v46 }
 0x399   :  { %v2302_v48 = vshrl.u32 %v5476_v6, %v2299_v39  ;;  %v2305_v49 = vshrl.u32 %v5477_v8, %v2299_v39  ;;  %v2311_v13 = vshrl.u32 %v5479_v12, %v2299_v39  ;;  %v2308_v61 = vshrl.u32 %v5478_v10, %v2299_v39 }
 0x39a   :  { %v4740_v25 = vmul.f32 %v4739_v44, %v4737_v15  ;;  %v4747_v2 = vmul.f32 %v4746_v20, %v4737_v15  ;;  %v1145_v57 = vshll.u32 %v1144_v34, 30  ;;  %v2313_v3 = vshll.u32 %v5479_v12, %v2298_v46 }
 0x39b   :  { %v2314_v47 = vshrl.u32 %v5480_v21, %v2299_v39  ;;  %vm4755_vm3 = vcmp.lt.s32.totalorder %v7925_v59, 2  ;;  %vm4752_vm4 = vweird.f32 %v7662_v51  ;;  %v1168_v9 = vsub.s32 4, %v1144_v34 }
 0x39c   :  { %v4741_v60 = vadd.f32 -0.4999988, %v4740_v25  ;;  %v4748_v26 = vadd.f32 -0.16666654, %v4747_v2  ;;  %v7941_v56 = vsub.s32 %v1142_v31, %v1145_v57  ;;  %v2303_v42 = vor.u32 %v2302_v48, %v2301_v24 }
 0x39d   :  { %v2306_v54 = vor.u32 %v2305_v49, %v2304_v17  ;;  %v2312_v45 = vor.u32 %v2311_v13, %v2310_v35  ;;  %vm2316_vm6 = vcmp.lt.s32.totalorder %v7943_v52, 1  ;;  %v2309_v5 = vor.u32 %v2308_v61, %v2307_v37 }
 0x39e   :  { %v4742_v22 = vmul.f32 %v4741_v60, %v4737_v15  ;;  %v4749_v0 = vmul.f32 %v4748_v26, %v4737_v15  ;;  %vm1147_vm5 = vcmp.lt.s32.totalorder %v7941_v56, 0  ;;  %v1148_v43 = vsub.s32 0, %v7941_v56 }
 0x39f   :  { %vm2319_vm7 = vcmp.lt.s32.totalorder %v7943_v52, 4  ;;  %v2334_v62 = vshrl.u32 %v7922_v41, 16  ;;  %vm7960_vm8 = vcmp.le.f32.partialorder %v1044_v19, 0.7853982  ;;  %v2315_v53 = vor.u32 %v2314_v47, %v2313_v3 }
 0x3a0   :  { %v4743_v36 = vadd.f32 1.0, %v4742_v22  ;;  %v4750_v14 = vadd.f32 1.0, %v4749_v0  ;;  %v1149_v55 = vsel %vm1147_vm5, %v1148_v43, %v7941_v56  ;;  %vm2318_vm9 = vcmp.lt.s32.totalorder %v7943_v52, 3 }
 0x3a1   :  { %v1150_v29 = vclz %v1149_v55  ;;  %v2300_v7 = vshrl.u32 %v5475_v4, %v2299_v39  ;;  %v2324_v16 = vsel %vm2316_vm6, %v2303_v42, %v2306_v54  ;;  %v5374_v28 = vadd.s32 4294967169, %v3528_v40 }
 0x3a2   :  { %v4751_v30 = vmul.f32 %v4750_v14, %v4735_v23  ;;  %v4760_v15 = vxor.u32 2147483648, %v4743_v36  ;;  %v7970_v23 = vsel %vm1046_vm0, %v1168_v9, %v1144_v34  ;;  %vm2317_vm11 = vcmp.lt.s32.totalorder %v7943_v52, 2 }
 0x3a3   :  { %v5327_v46 = vadd.s32 4294967294, %v1150_v29  ;;  %v2325_v19 = vsel %vm2319_vm7, %v2312_v45, 920167782  ;;  %v2328_v20 = vsel %vm2316_vm6, %v2306_v54, %v2309_v5  ;;  %v2329_v25 = vsel %vm2319_vm7, %v2315_v53, 1326507024 }
 0x3a4   :  { %v4757_v11 = vxor.u32 2147483648, %v4751_v30  ;;  %v4761_v44 = vsel %vm4759_vm1, %v4760_v15, %v4751_v30  ;;  %v2326_v39 = vsel %vm2318_vm9, %v2309_v5, %v2325_v19  ;;  %v2321_v48 = vsel %vm2319_vm7, %v2309_v5, 2102212464 }
 0x3a5   :  { %vm5328_vm10 = vcmp.lt.s32.totalorder %v5327_v46, 0  ;;  %v2327_v40 = vsel %vm2317_vm11, %v2324_v16, %v2326_v39  ;;  %v2330_v35 = vsel %vm2318_vm9, %v2312_v45, %v2329_v25  ;;  %v3534_v51 = vadd.s32 1, %v5374_v28 }
 0x3a6   :  { %v4758_v24 = vsel %vm4756_vm2, %v4743_v36, %v4757_v11  ;;  %v1153_v34 = vsel %vm5328_vm10, 0, %v5327_v46  ;;  %v2357_v13 = vand.u32 65535, %v2327_v40  ;;  %v2358_v60 = vshrl.u32 %v2327_v40, 16 }
 0x3a7   :  { %v4762_v2 = vsel %vm4755_vm3, %v4758_v24, %v4761_v44  ;;  %v1154_v57 = vsub.s32 32, %v1153_v34  ;;  %v1158_v17 = vsub.s32 4294967266, %v1153_v34  ;;  %v1155_v26 = vshll.u32 %v7941_v56, %v1153_v34 }
 0x3a8   :  { %v4763_v49 = vsel %vm4752_vm4, nan, %v4762_v2  ;;  %v2331_v61 = vsel %vm2317_vm11, %v2328_v20, %v2330_v35  ;;  %v2360_v22 = vmul.u32 %v2358_v60, %v7931_v33  ;;  %v1171_v9 = vsel %vm7960_vm8, 0, %v7970_v23 }
 0x3a9   :  { %5257 = vst [vmem:[#allocation2 + $0xe0] sm:$0xff] %v4763_v49  ;;  %v1156_v37 = vshrl.u32 %v7927_v58, %v1154_v57  ;;  %v1159_v59 = vadd.s32 127, %v1158_v17  ;;  %v2335_v3 = vand.u32 65535, %v2331_v61  ;;  %v2336_v47 = vshrl.u32 %v2331_v61, 16 }
 0x3aa   :  { %v2361_v45 = vmul.u32 %v2357_v13, %v2334_v62  ;;  %v2320_v56 = vsel %vm2316_vm6, %v2300_v7, %v2303_v42  ;;  %v2322_v58 = vsel %vm2318_vm9, %v2306_v54, %v2321_v48  ;;  %v2359_v29 = vmul.u32 %v2357_v13, %v7931_v33 }
 0x3ab   :  { %v1157_v0 = vor.u32 %v1156_v37, %v1155_v26  ;;  %v1160_v43 = vshll.u32 %v1159_v59, 23  ;;  %v2338_v36 = vmul.u32 %v2336_v47, %v7931_v33  ;;  %v2339_v14 = vmul.u32 %v2335_v3, %v2334_v62 }
 0x3ac   :  { %v2362_v5 = vmul.u32 %v2358_v60, %v2334_v62  ;;  %v2363_v30 = vshll.u32 %v2360_v22, 16  ;;  %v2337_v53 = vmul.u32 %v2335_v3, %v7931_v33  ;;  %v2340_v46 = vmul.u32 %v2336_v47, %v2334_v62 }
 0x3ad   :  { %v1161_v55 = vor.u32 4788187, %v1160_v43  ;;  %v1164_v15 = vcvt.s32.f32 %v1157_v0  ;;  %v2341_v16 = vshll.u32 %v2338_v36, 16  ;;  %v2343_v11 = vshll.u32 %v2339_v14, 16 }
 0x3ae   :  { %v2365_v23 = vshll.u32 %v2361_v45, 16  ;;  %vm2367_vm14 = vc.u32 %v2359_v29, %v2363_v30  ;;  %v2369_v7 = vadd.s32 %v2363_v30, %v2359_v29  ;;  %vm3535_vm13 = vcmp.gt.s32.totalorder %v3534_v51, 0 }
 0x3af   :  { %v1162_v28 = vand.u32 2147483647, %v1161_v55  ;;  %vm2345_vm12 = vc.u32 %v2337_v53, %v2341_v16  ;;  %v2347_v42 = vadd.s32 %v2341_v16, %v2337_v53  ;;  %v2368_v54 = vsel %vm2367_vm14, 1, %v5481_v27 }
 0x3b0   :  { %v2346_v44 = vsel %vm2345_vm12, 1, %v5481_v27  ;;  %v2370_v39 = vadd.s32 %v2368_v54, %v2362_v5  ;;  %v2364_v24 = vshrl.u32 %v2360_v22, 16  ;;  %vm2371_vm1 = vc.u32 %v2369_v7, %v2365_v23 }
 0x3b1   :  { %v1165_v19 = vmul.f32 %v1164_v15, %v1162_v28  ;;  %v2348_v20 = vadd.s32 %v2346_v44, %v2340_v46  ;;  %vm2349_vm15 = vc.u32 %v2347_v42, %v2343_v11  ;;  %v2372_v34 = vsel %vm2371_vm1, 1, %v5481_v27 }
 0x3b2   :  { %v2350_v62 = vsel %vm2349_vm15, 1, %v5481_v27  ;;  %v3536_v40 = vsel %vm3535_vm13, %v3534_v51, 0  ;;  %v2342_v25 = vshrl.u32 %v2338_v36, 16  ;;  %v2374_v57 = vadd.s32 %v2372_v34, %v2370_v39 }
 0x3b3   :  { %v1166_v33 = vxor.u32 2147483648, %v1165_v19  ;;  %v2352_v2 = vadd.s32 %v2350_v62, %v2348_v20  ;;  %v3538_v17 = vand.u32 31, %v3536_v40  ;;  %v2323_v49 = vsel %vm2317_vm11, %v2320_v56, %v2322_v58 }
 0x3b4   :  { %v2344_v35 = vshrl.u32 %v2339_v14, 16  ;;  %v2366_v13 = vshrl.u32 %v2361_v45, 16  ;;  %v2375_v37 = vadd.s32 %v2374_v57, %v2364_v24  ;;  %v1188_v3 = vadd.s32 3, %v1171_v9 }
 0x3b5   :  { %v1167_v48 = vsel %vm1046_vm0, %v1166_v33, %v1165_v19  ;;  %v2353_v26 = vadd.s32 %v2352_v2, %v2342_v25  ;;  %v8021_v59 = vsub.s32 32, %v3538_v17  ;;  %v3531_v47 = vand.u32 8388607, %v3524_v32 }
 0x3b6   :  { %v1170_v60 = vsel %vm7960_vm8, %v7692_v1, %v1167_v48  ;;  %v8027_v51 = vadd.s32 %v2369_v7, %v2365_v23  ;;  %v2376_v52 = vadd.s32 %v2375_v37, %v2366_v13  ;;  %v2377_v0 = vmul.u32 %v7922_v41, %v2323_v49 }
 0x3b7   :  { %v1172_v61 = vmul.f32 %v1170_v60, %v1170_v60  ;;  %v8025_v22 = vadd.s32 %v2353_v26, %v2344_v35  ;;  %v8030_v31 = vshrl.u32 %v3536_v40, 5  ;;  %v3544_v56 = vshll.u32 %v5476_v6, %v3538_v17 }
 0x3b8   :  { %v2380_v9 = vadd.s32 1, %v2376_v52  ;;  %v3545_v58 = vshrl.u32 %v5477_v8, %v8021_v59  ;;  %v3548_v36 = vshrl.u32 %v5478_v10, %v8021_v59  ;;  %v3542_v41 = vshrl.u32 %v5476_v6, %v8021_v59 }
 0x3b9   :  { %v1173_v43 = vmul.f32 -0.001358992, %v1172_v61  ;;  %v1180_v45 = vmul.f32 -0.00019511016, %v1172_v61  ;;  %vm2379_vm0 = vc.u32 %v8025_v22, %v8027_v51  ;;  %v3547_v29 = vshll.u32 %v5477_v8, %v3538_v17 }
 0x3ba   :  { %v2381_v5 = vsel %vm2379_vm0, %v2380_v9, %v2376_v52  ;;  %v3550_v30 = vshll.u32 %v5478_v10, %v3538_v17  ;;  %v3551_v15 = vshrl.u32 %v5479_v12, %v8021_v59  ;;  %v3553_v53 = vshll.u32 %v5479_v12, %v3538_v17  ;;  %v260_v9 = vpop.f32.mrf.mxu3 }
 0x3bb   :  { %v1174_v14 = vadd.f32 0.041655596, %v1173_v43  ;;  %v1181_v55 = vadd.f32 0.008332121, %v1180_v45  ;;  %v2382_v28 = vadd.s32 %v2381_v5, %v2377_v0  ;;  %v3554_v11 = vshrl.u32 %v5480_v21, %v8021_v59 }
 0x3bc   :  { %v3541_v23 = vshll.u32 %v5475_v4, %v3538_v17  ;;  %v8049_v42 = vor.u32 %v3545_v58, %v3544_v56  ;;  %v3549_v54 = vor.u32 %v3548_v36, %v3547_v29  ;;  %v3552_v7 = vor.u32 %v3551_v15, %v3550_v30 }
 0x3bd   :  { %v1175_v46 = vmul.f32 %v1174_v14, %v1172_v61  ;;  %v1182_v16 = vmul.f32 %v1181_v55, %v1172_v61  ;;  %v2383_v39 = vadd.s32 536870912, %v2382_v28  ;;  %v3555_v20 = vor.u32 %v3554_v11, %v3553_v53 }
 0x3be   :  { %v1189_v24 = vand.u32 3, %v1188_v3  ;;  %v3532_v33 = vor.u32 8388608, %v3531_v47  ;;  %v8051_v62 = vor.u32 %v3542_v41, %v3541_v23  ;;  %vm3559_vm2 = vcmp.lt.s32.totalorder %v8030_v31, 4 }
 0x3bf   :  { %v1176_v19 = vadd.f32 -0.4999988, %v1175_v46  ;;  %v1183_v44 = vadd.f32 -0.16666654, %v1182_v16  ;;  %v8053_v25 = vshrl.u32 %v2383_v39, 30  ;;  %vm3556_vm3 = vcmp.lt.s32.totalorder %v8030_v31, 1 }
 0x3c0   :  { %vm3558_vm5 = vcmp.lt.s32.totalorder %v8030_v31, 3  ;;  %v3565_v2 = vsel %vm3559_vm2, %v3552_v7, 920167782  ;;  %v3569_v57 = vsel %vm3559_vm2, %v3555_v20, 1326507024  ;;  %v3568_v35 = vsel %vm3556_vm3, %v8049_v42, %v3549_v54 }
 0x3c1   :  { %v1177_v34 = vmul.f32 %v1176_v19, %v1172_v61  ;;  %v1184_v40 = vmul.f32 %v1183_v44, %v1172_v61  ;;  %v2385_v49 = vshll.u32 %v8053_v25, 30  ;;  %v3564_v13 = vsel %vm3556_vm3, %v8051_v62, %v8049_v42 }
 0x3c2   :  { %v3566_v26 = vsel %vm3558_vm5, %v3549_v54, %v3565_v2  ;;  %v3570_v37 = vsel %vm3558_vm5, %v3552_v7, %v3569_v57  ;;  %v8074_v61 = vshll.u32 %v3532_v33, 8  ;;  %vm3557_vm4 = vcmp.lt.s32.totalorder %v8030_v31, 2 }
 0x3c3   :  { %v1178_v17 = vadd.f32 1.0, %v1177_v34  ;;  %v1185_v48 = vadd.f32 1.0, %v1184_v40  ;;  %v2386_v52 = vsub.s32 %v2382_v28, %v2385_v49  ;;  %vm1187_vm6 = vweird.f32 %v7692_v1 }
 0x3c4   :  { %vm1190_vm7 = vcmp.lt.s32.totalorder %v1189_v24, 2  ;;  %vm1191_vm8 = vcmp.eq.s32.totalorder %v1189_v24, 0  ;;  %v3571_v0 = vsel %vm3557_vm4, %v3568_v35, %v3570_v37  ;;  %v3567_v56 = vsel %vm3557_vm4, %v3564_v13, %v3566_v26 }
 0x3c5   :  { %v1186_v3 = vmul.f32 %v1185_v48, %v1170_v60  ;;  %v1195_v47 = vxor.u32 2147483648, %v1178_v17  ;;  %vm2387_vm9 = vcmp.lt.s32.totalorder %v2386_v52, 0  ;;  %v2388_v45 = vsub.s32 0, %v2386_v52 }
 0x3c6   :  { %vm1194_vm11 = vcmp.eq.s32.totalorder %v1189_v24, 2  ;;  %v3573_v60 = vand.u32 65535, %v8074_v61  ;;  %v3575_v58 = vand.u32 65535, %v3571_v0  ;;  %v3576_v36 = vshrl.u32 %v3571_v0, 16 }
 0x3c7   :  { %v1192_v43 = vxor.u32 2147483648, %v1186_v3  ;;  %v1196_v55 = vsel %vm1194_vm11, %v1195_v47, %v1186_v3  ;;  %v2389_v41 = vsel %vm2387_vm9, %v2388_v45, %v2386_v52  ;;  %v3574_v29 = vshrl.u32 %v8074_v61, 16 }
 0x3c8   :  { %v2390_v30 = vclz %v2389_v41  ;;  %v3598_v15 = vshrl.u32 %v3567_v56, 16  ;;  %v8086_v53 = vadd.f32 %v7885_v63, %v260_v9  ;;  %v3578_v16 = vmul.u32 %v3576_v36, %v3573_v60 }
 0x3c9   :  { %v1193_v14 = vsel %vm1191_vm8, %v1178_v17, %v1192_v43  ;;  %v3579_v28 = vmul.u32 %v3575_v58, %v3574_v29  ;;  %v3597_v11 = vand.u32 65535, %v3567_v56  ;;  %v2378_v23 = vadd.s32 %v8027_v51, %v8025_v22 }
 0x3ca   :  { %v1197_v5 = vsel %vm1190_vm7, %v1193_v14, %v1196_v55  ;;  %v5351_v7 = vadd.s32 4294967294, %v2390_v30  ;;  %v3540_v19 = vshrl.u32 %v5475_v4, %v8021_v59  ;;  %v3561_v44 = vsel %vm3559_vm2, %v3549_v54, 2102212464 }
 0x3cb   :  { %v1198_v46 = vsel %vm1187_vm6, nan, %v1197_v5  ;;  %v2408_v39 = vsub.s32 4, %v8053_v25  ;;  %v3577_v20 = vmul.u32 %v3575_v58, %v3573_v60  ;;  %v3580_v24 = vmul.u32 %v3576_v36, %v3574_v29  ;;  %v191_v5 = vpop.f32.mrf.mxu0 }
 0x3cc   :  { %5234 = vst [vmem:[#allocation2 + $0x28] sm:$0xff] %v1198_v46  ;;  %v3581_v1 = vshll.u32 %v3578_v16, 16  ;;  %vm2286_vm10 = vcmp.lt.s32.totalorder %v7888_v50, 0  ;;  %vm5352_vm14 = vcmp.lt.s32.totalorder %v5351_v7, 0  ;;  %v3582_v33 = vshrl.u32 %v3578_v16, 16 }
 0x3cd   :  { %v3583_v34 = vshll.u32 %v3579_v28, 16  ;;  %v3600_v40 = vmul.u32 %v3598_v15, %v3573_v60  ;;  %v2393_v2 = vsel %vm5352_vm14, 0, %v5351_v7  ;;  %v3601_v51 = vmul.u32 %v3597_v11, %v3574_v29 }
 0x3ce   :  { %vm3585_vm12 = vc.u32 %v3577_v20, %v3581_v1  ;;  %v3587_v22 = vadd.s32 %v3581_v1, %v3577_v20  ;;  %v2394_v57 = vsub.s32 32, %v2393_v2  ;;  %v2398_v59 = vsub.s32 4294967266, %v2393_v2 }
 0x3cf   :  { %v3586_v17 = vsel %vm3585_vm12, 1, %v5481_v27  ;;  %v3599_v54 = vmul.u32 %v3597_v11, %v3573_v60  ;;  %v3602_v49 = vmul.u32 %v3598_v15, %v3574_v29  ;;  %v3603_v35 = vshll.u32 %v3600_v40, 16 }
 0x3d0   :  { %v3588_v48 = vadd.s32 %v3586_v17, %v3580_v24  ;;  %vm3589_vm13 = vc.u32 %v3587_v22, %v3583_v34  ;;  %v2395_v13 = vshll.u32 %v2386_v52, %v2393_v2  ;;  %v2396_v26 = vshrl.u32 %v2378_v23, %v2394_v57 }
 0x3d1   :  { %v2399_v37 = vadd.s32 127, %v2398_v59  ;;  %v3590_v3 = vsel %vm3589_vm13, 1, %v5481_v27  ;;  %v3605_v0 = vshll.u32 %v3601_v51, 16  ;;  %vm3607_vm15 = vc.u32 %v3599_v54, %v3603_v35 }
 0x3d2   :  { %v3592_v47 = vadd.s32 %v3590_v3, %v3588_v48  ;;  %v3609_v43 = vadd.s32 %v3603_v35, %v3599_v54  ;;  %v2397_v45 = vor.u32 %v2396_v26, %v2395_v13  ;;  %v3560_v9 = vsel %vm3556_vm3, %v3540_v19, %v8051_v62 }
 0x3d3   :  { %v2400_v56 = vshll.u32 %v2399_v37, 23  ;;  %v3608_v60 = vsel %vm3607_vm15, 1, %v5481_v27  ;;  %v4764_v52 = vand.u32 2147483647, %v8086_v53  ;;  %v3562_v55 = vsel %vm3558_vm5, %v8049_v42, %v3561_v44 }
 0x3d4   :  { %v3593_v58 = vadd.s32 %v3592_v47, %v3582_v33  ;;  %v3610_v36 = vadd.s32 %v3608_v60, %v3602_v49  ;;  %vm3611_vm1 = vc.u32 %v3609_v43, %v3605_v0  ;;  %v3584_v41 = vshrl.u32 %v3579_v28, 16 }
 0x3d5   :  { %v2401_v14 = vor.u32 4788187, %v2400_v56  ;;  %v3612_v29 = vsel %vm3611_vm1, 1, %v5481_v27  ;;  %v2409_v62 = vsel %vm2286_vm10, %v2408_v39, %v8053_v25  ;;  %v3604_v30 = vshrl.u32 %v3600_v40, 16 }
 0x3d6   :  { %v3614_v15 = vadd.s32 %v3612_v29, %v3610_v36  ;;  %v4767_v46 = vand.u32 2139095040, %v8086_v53  ;;  %v2404_v11 = vcvt.s32.f32 %v2397_v45  ;;  %v3594_v23 = vadd.s32 %v3593_v58, %v3584_v41 }
 0x3d7   :  { %v2402_v16 = vand.u32 2147483647, %v2401_v14  ;;  %v3606_v7 = vshrl.u32 %v3601_v51, 16  ;;  %v4771_v42 = vand.u32 8388607, %v4764_v52  ;;  %v8116_v28 = vadd.f32 %v7885_v63, %v191_v5 }
 0x3d8   :  { %v3615_v19 = vadd.s32 %v3614_v15, %v3604_v30  ;;  %v4768_v20 = vshrl.u32 %v4767_v46, 23  ;;  %v3613_v24 = vadd.s32 %v3609_v43, %v3605_v0  ;;  %vm8120_vm0 = vcmp.le.f32.partialorder %v2284_v38, 0.7853982 }
 0x3d9   :  { %v2405_v44 = vmul.f32 %v2404_v11, %v2402_v16  ;;  %v3563_v39 = vsel %vm3557_vm4, %v3560_v9, %v3562_v55  ;;  %v2411_v40 = vsel %vm8120_vm0, 0, %v2409_v62  ;;  %v4772_v2 = vor.u32 8388608, %v4771_v42 }
 0x3da   :  { %v3616_v1 = vadd.s32 %v3615_v19, %v3606_v7  ;;  %v5398_v33 = vadd.s32 4294967169, %v4768_v20  ;;  %vm3619_vm2 = vc.u32 %v3594_v23, %v3613_v24  ;;  %v1202_v51 = vand.u32 2139095040, %v8116_v28 }
 0x3db   :  { %v2406_v34 = vxor.u32 2147483648, %v2405_v44  ;;  %v3617_v57 = vmul.u32 %v8074_v61, %v3563_v39  ;;  %v2428_v54 = vadd.s32 3, %v2411_v40  ;;  %v8135_v13 = vshll.u32 %v4772_v2, 8 }
 0x3dc   :  { %v3620_v63 = vadd.s32 1, %v3616_v1  ;;  %v4774_v22 = vadd.s32 1, %v5398_v33  ;;  %v1203_v26 = vshrl.u32 %v1202_v51, 23  ;;  %v8141_v9 = vadd.s32 %v3613_v24, %v3594_v23 }
 0x3dd   :  { %v2407_v38 = vsel %vm2286_vm10, %v2406_v34, %v2405_v44  ;;  %v8137_v45 = vand.u32 3, %v2428_v54  ;;  %v8144_v60 = vand.u32 65535, %v8135_v13  ;;  %v8147_v58 = vshrl.u32 %v8135_v13, 16 }
 0x3de   :  { %v2410_v31 = vsel %vm8120_vm0, %v7888_v50, %v2407_v38  ;;  %v3621_v59 = vsel %vm3619_vm2, %v3620_v63, %v3616_v1  ;;  %vm4775_vm3 = vcmp.gt.s32.totalorder %v4774_v22, 0  ;;  %v8149_v36 = vadd.s32 4294967169, %v1203_v26 }
 0x3df   :  { %v2412_v17 = vmul.f32 %v2410_v31, %v2410_v31  ;;  %v3622_v48 = vadd.s32 %v3621_v59, %v3617_v57  ;;  %v4776_v49 = vsel %vm4775_vm3, %v4774_v22, 0  ;;  %vm2434_vm5 = vcmp.eq.s32.totalorder %v8137_v45, 2 }
 0x3e0   :  { %v4778_v35 = vand.u32 31, %v4776_v49  ;;  %v8152_v29 = vshrl.u32 %v4776_v49, 5  ;;  %vm2431_vm4 = vcmp.eq.s32.totalorder %v8137_v45, 0  ;;  %vm2430_vm6 = vcmp.lt.s32.totalorder %v8137_v45, 2 }
 0x3e1   :  { %v2413_v37 = vmul.f32 -0.001358992, %v2412_v17  ;;  %v2420_v3 = vmul.f32 -0.00019511016, %v2412_v17  ;;  %v3623_v47 = vadd.s32 536870912, %v3622_v48  ;;  %vm2427_vm8 = vweird.f32 %v7888_v50 }
 0x3e2   :  { %v4779_v0 = vsub.s32 32, %v4778_v35  ;;  %v4781_v5 = vshll.u32 %v5475_v4, %v4778_v35  ;;  %v4784_v7 = vshll.u32 %v5476_v6, %v4778_v35  ;;  %v4787_v19 = vshll.u32 %v5477_v8, %v4778_v35 }
 0x3e3   :  { %v2414_v43 = vadd.f32 0.041655596, %v2413_v37  ;;  %v2421_v61 = vadd.f32 0.008332121, %v2420_v3  ;;  %v8139_v56 = vshrl.u32 %v3623_v47, 30  ;;  %v4790_v20 = vshll.u32 %v5478_v10, %v4778_v35 }
 0x3e4   :  { %v4782_v62 = vshrl.u32 %v5476_v6, %v4779_v0  ;;  %v4785_v30 = vshrl.u32 %v5477_v8, %v4779_v0  ;;  %v4788_v15 = vshrl.u32 %v5478_v10, %v4779_v0  ;;  %v4791_v23 = vshrl.u32 %v5479_v12, %v4779_v0 }
 0x3e5   :  { %v2415_v14 = vmul.f32 %v2414_v43, %v2412_v17  ;;  %v2422_v55 = vmul.f32 %v2421_v61, %v2412_v17  ;;  %v3625_v41 = vshll.u32 %v8139_v56, 30  ;;  %v4794_v42 = vshrl.u32 %v5480_v21, %v4779_v0 }
 0x3e6   :  { %v4783_v39 = vor.u32 %v4782_v62, %v4781_v5  ;;  %v4786_v1 = vor.u32 %v4785_v30, %v4784_v7  ;;  %v4789_v33 = vor.u32 %v4788_v15, %v4787_v19  ;;  %v4793_v34 = vshll.u32 %v5479_v12, %v4778_v35 }
 0x3e7   :  { %v2416_v46 = vadd.f32 -0.4999988, %v2415_v14  ;;  %v2423_v16 = vadd.f32 -0.16666654, %v2422_v55  ;;  %v8159_v11 = vsub.s32 %v3622_v48, %v3625_v41  ;;  %v4792_v22 = vor.u32 %v4791_v23, %v4790_v20 }
 0x3e8   :  { %v3648_v38 = vsub.s32 4, %v8139_v56  ;;  %v4780_v57 = vshrl.u32 %v5475_v4, %v4779_v0  ;;  %v4795_v59 = vor.u32 %v4794_v42, %v4793_v34  ;;  %vm4796_vm9 = vcmp.lt.s32.totalorder %v8152_v29, 1 }
 0x3e9   :  { %v2417_v44 = vmul.f32 %v2416_v46, %v2412_v17  ;;  %v2424_v24 = vmul.f32 %v2423_v16, %v2412_v17  ;;  %vm3627_vm7 = vcmp.lt.s32.totalorder %v8159_v11, 0  ;;  %v3628_v25 = vsub.s32 0, %v8159_v11 }
 0x3ea   :  { %vm4797_vm11 = vcmp.lt.s32.totalorder %v8152_v29, 2  ;;  %vm3526_vm10 = vcmp.lt.s32.totalorder %v7916_v18, 0  ;;  %vm4798_vm14 = vcmp.lt.s32.totalorder %v8152_v29, 3  ;;  %vm4799_vm12 = vcmp.lt.s32.totalorder %v8152_v29, 4 }
 0x3eb   :  { %v2418_v40 = vadd.f32 1.0, %v2417_v44  ;;  %v2425_v63 = vadd.f32 1.0, %v2424_v24  ;;  %v3629_v2 = vsel %vm3627_vm7, %v3628_v25, %v8159_v11  ;;  %v4804_v49 = vsel %vm4796_vm9, %v4783_v39, %v4786_v1 }
 0x3ec   :  { %v3630_v51 = vclz %v3629_v2  ;;  %v4800_v26 = vsel %vm4796_vm9, %v4780_v57, %v4783_v39  ;;  %v4801_v37 = vsel %vm4799_vm12, %v4789_v33, 2102212464  ;;  %v4805_v3 = vsel %vm4799_vm12, %v4792_v22, 920167782 }
 0x3ed   :  { %v2426_v17 = vmul.f32 %v2425_v63, %v2410_v31  ;;  %v2435_v54 = vxor.u32 2147483648, %v2418_v40  ;;  %v4806_v47 = vsel %vm4798_vm14, %v4789_v33, %v4805_v3  ;;  %v4808_v0 = vsel %vm4796_vm9, %v4786_v1, %v4789_v33 }
 0x3ee   :  { %v5375_v48 = vadd.s32 4294967294, %v3630_v51  ;;  %v4807_v14 = vsel %vm4797_vm11, %v4804_v49, %v4806_v47  ;;  %v4809_v55 = vsel %vm4799_vm12, %v4795_v59, 1326507024  ;;  %v4802_v30 = vsel %vm4798_vm14, %v4786_v1, %v4801_v37 }
 0x3ef   :  { %v2432_v35 = vxor.u32 2147483648, %v2426_v17  ;;  %v2436_v31 = vsel %vm2434_vm5, %v2435_v54, %v2426_v17  ;;  %v4810_v46 = vsel %vm4798_vm14, %v4792_v22, %v4809_v55  ;;  %v4837_v16 = vand.u32 65535, %v4807_v14 }
 0x3f0   :  { %vm5376_vm13 = vcmp.lt.s32.totalorder %v5375_v48, 0  ;;  %v4838_v23 = vshrl.u32 %v4807_v14, 16  ;;  %v4811_v20 = vsel %vm4797_vm11, %v4808_v0, %v4810_v46  ;;  %v1199_v50 = vand.u32 2147483647, %v8116_v28 }
 0x3f1   :  { %v2433_v43 = vsel %vm2431_vm4, %v2418_v40, %v2432_v35  ;;  %v3633_v61 = vsel %vm5376_vm13, 0, %v5375_v48  ;;  %v4815_v42 = vand.u32 65535, %v4811_v20  ;;  %v4816_v44 = vshrl.u32 %v4811_v20, 16 }
 0x3f2   :  { %v2437_v41 = vsel %vm2430_vm6, %v2433_v43, %v2436_v31  ;;  %v3634_v5 = vsub.s32 32, %v3633_v61  ;;  %v3638_v62 = vsub.s32 4294967266, %v3633_v61  ;;  %v3635_v7 = vshll.u32 %v8159_v11, %v3633_v61 }
 0x3f3   :  { %v2438_v15 = vsel %vm2427_vm8, nan, %v2437_v41  ;;  %v4840_v24 = vmul.u32 %v4838_v23, %v8144_v60  ;;  %v4841_v1 = vmul.u32 %v4837_v16, %v8147_v58  ;;  %v1209_v33 = vadd.s32 1, %v8149_v36 }
 0x3f4   :  { %5242 = vst [vmem:[#allocation2 + $0x68] sm:$0xff] %v2438_v15  ;;  %v3636_v19 = vshrl.u32 %v8141_v9, %v3634_v5  ;;  %v3639_v45 = vadd.s32 127, %v3638_v62  ;;  %v8207_v9 = vsel %vm3526_vm10, %v3648_v38, %v8139_v56  ;;  %v8211_v11 = vsel %vm4797_vm11, %v4800_v26, %v4802_v30 }
 0x3f5   :  { %v4818_v34 = vmul.u32 %v4816_v44, %v8144_v60  ;;  %v4819_v40 = vmul.u32 %v4815_v42, %v8147_v58  ;;  %v4839_v2 = vmul.u32 %v4837_v16, %v8144_v60  ;;  %v4842_v22 = vmul.u32 %v4838_v23, %v8147_v58 }
 0x3f6   :  { %v3637_v25 = vor.u32 %v3636_v19, %v3635_v7  ;;  %v3640_v39 = vshll.u32 %v3639_v45, 23  ;;  %v4843_v51 = vshll.u32 %v4840_v24, 16  ;;  %v4817_v57 = vmul.u32 %v4815_v42, %v8144_v60 }
 0x3f7   :  { %v4820_v56 = vmul.u32 %v4816_v44, %v8147_v58  ;;  %v4821_v38 = vshll.u32 %v4818_v34, 16  ;;  %v4823_v29 = vshll.u32 %v4819_v40, 16  ;;  %v4845_v17 = vshll.u32 %v4841_v1, 16 }
 0x3f8   :  { %v3641_v63 = vor.u32 4788187, %v3640_v39  ;;  %v3644_v36 = vcvt.s32.f32 %v3637_v25  ;;  %vm4847_vm15 = vc.u32 %v4839_v2, %v4843_v51  ;;  %v4849_v49 = vadd.s32 %v4843_v51, %v4839_v2 }
 0x3f9   :  { %vm4825_vm1 = vc.u32 %v4817_v57, %v4821_v38  ;;  %v4827_v54 = vadd.s32 %v4821_v38, %v4817_v57  ;;  %v4848_v48 = vsel %vm4847_vm15, 1, %v5481_v27  ;;  %vm1210_vm0 = vcmp.gt.s32.totalorder %v1209_v33, 0 }
 0x3fa   :  { %v3642_v59 = vand.u32 2147483647, %v3641_v63  ;;  %v4826_v26 = vsel %vm4825_vm1, 1, %v5481_v27  ;;  %v4850_v37 = vadd.s32 %v4848_v48, %v4842_v22  ;;  %v4844_v60 = vshrl.u32 %v4840_v24, 16 }
 0x3fb   :  { %v4828_v3 = vadd.s32 %v4826_v26, %v4820_v56  ;;  %vm4829_vm2 = vc.u32 %v4827_v54, %v4823_v29  ;;  %vm4851_vm3 = vc.u32 %v4849_v49, %v4845_v17  ;;  %v1211_v0 = vsel %vm1210_vm0, %v1209_v33, 0 }
 0x3fc   :  { %v3645_v35 = vmul.f32 %v3644_v36, %v3642_v59  ;;  %v4830_v31 = vsel %vm4829_vm2, 1, %v5481_v27  ;;  %v4852_v47 = vsel %vm4851_vm3, 1, %v5481_v27  ;;  %v4822_v43 = vshrl.u32 %v4818_v34, 16 }
 0x3fd   :  { %v4832_v61 = vadd.s32 %v4830_v31, %v4828_v3  ;;  %v4854_v14 = vadd.s32 %v4852_v47, %v4850_v37  ;;  %v1213_v55 = vand.u32 31, %v1211_v0  ;;  %vm8225_vm5 = vcmp.le.f32.partialorder %v3524_v32, 0.7853982 }
 0x3fe   :  { %v3646_v58 = vxor.u32 2147483648, %v3645_v35  ;;  %v4824_v62 = vshrl.u32 %v4819_v40, 16  ;;  %v4846_v30 = vshrl.u32 %v4841_v1, 16  ;;  %v3651_v32 = vsel %vm8225_vm5, 0, %v8207_v9 }
 0x3ff   :  { %v4833_v46 = vadd.s32 %v4832_v61, %v4822_v43  ;;  %v4855_v16 = vadd.s32 %v4854_v14, %v4844_v60  ;;  %v8234_v23 = vsub.s32 32, %v1213_v55  ;;  %v4857_v19 = vmul.u32 %v8135_v13, %v8211_v11 }
 0x400   :  { %v3647_v5 = vsel %vm3526_vm10, %v3646_v58, %v3645_v35  ;;  %v1206_v45 = vand.u32 8388607, %v1199_v50  ;;  %v8245_v42 = vadd.s32 %v4849_v49, %v4845_v17  ;;  %v8247_v24 = vshrl.u32 %v1211_v0, 5 }
 0x401   :  { %v3650_v15 = vsel %vm8225_vm5, %v7916_v18, %v3647_v5  ;;  %v8243_v20 = vadd.s32 %v4833_v46, %v4824_v62  ;;  %v4856_v44 = vadd.s32 %v4855_v16, %v4846_v30  ;;  %v1219_v1 = vshll.u32 %v5476_v6, %v1213_v55 }
 0x402   :  { %v3652_v7 = vmul.f32 %v3650_v15, %v3650_v15  ;;  %v1222_v33 = vshll.u32 %v5477_v8, %v1213_v55  ;;  %v1220_v9 = vshrl.u32 %v5477_v8, %v8234_v23  ;;  %v1223_v11 = vshrl.u32 %v5478_v10, %v8234_v23 }
 0x403   :  { %vm4859_vm4 = vc.u32 %v8243_v20, %v8245_v42  ;;  %v4860_v13 = vadd.s32 1, %v4856_v44  ;;  %v1216_v63 = vshll.u32 %v5475_v4, %v1213_v55  ;;  %v1217_v2 = vshrl.u32 %v5476_v6, %v8234_v23 }
 0x404   :  { %v3653_v25 = vmul.f32 -0.001358992, %v3652_v7  ;;  %v3660_v39 = vmul.f32 -0.00019511016, %v3652_v7  ;;  %v1225_v51 = vshll.u32 %v5478_v10, %v1213_v55  ;;  %v1226_v36 = vshrl.u32 %v5479_v12, %v8234_v23 }
 0x405   :  { %v4861_v22 = vsel %vm4859_vm4, %v4860_v13, %v4856_v44  ;;  %v1228_v57 = vshll.u32 %v5479_v12, %v1213_v55  ;;  %v1229_v29 = vshrl.u32 %v5480_v21, %v8234_v23  ;;  %v3668_v17 = vadd.s32 3, %v3651_v32 }
 0x406   :  { %v3654_v34 = vadd.f32 0.041655596, %v3653_v25  ;;  %v3661_v40 = vadd.f32 0.008332121, %v3660_v39  ;;  %v4862_v59 = vadd.s32 %v4861_v22, %v4857_v19  ;;  %v8266_v54 = vor.u32 %v1220_v9, %v1219_v1 }
 0x407   :  { %v1224_v48 = vor.u32 %v1223_v11, %v1222_v33  ;;  %v1227_v49 = vor.u32 %v1226_v36, %v1225_v51  ;;  %v1230_v3 = vor.u32 %v1229_v29, %v1228_v57  ;;  %v1207_v60 = vor.u32 8388608, %v1206_v45 }
 0x408   :  { %v3655_v56 = vmul.f32 %v3654_v34, %v3652_v7  ;;  %v3662_v38 = vmul.f32 %v3661_v40, %v3652_v7  ;;  %v4863_v37 = vadd.s32 536870912, %v4862_v59  ;;  %v8268_v58 = vor.u32 %v1217_v2, %v1216_v63  ;;  %v215_v63 = vpop.f32.mrf.mxu1 }
 0x409   :  { %vm1231_vm6 = vcmp.lt.s32.totalorder %v8247_v24, 1  ;;  %vm1234_vm7 = vcmp.lt.s32.totalorder %v8247_v24, 4  ;;  %vm1233_vm8 = vcmp.lt.s32.totalorder %v8247_v24, 3  ;;  %v3669_v43 = vand.u32 3, %v3668_v17 }
 0x40a   :  { %v3656_v35 = vadd.f32 -0.4999988, %v3655_v56  ;;  %v3663_v26 = vadd.f32 -0.16666654, %v3662_v38  ;;  %v8272_v0 = vshrl.u32 %v4863_v37, 30  ;;  %v1243_v62 = vsel %vm1231_vm6, %v8266_v54, %v1224_v48 }
 0x40b   :  { %v1240_v61 = vsel %vm1234_vm7, %v1227_v49, 920167782  ;;  %v1244_v14 = vsel %vm1234_vm7, %v1230_v3, 1326507024  ;;  %v1239_v30 = vsel %vm1231_vm6, %v8268_v58, %v8266_v54  ;;  %v8291_v32 = vshll.u32 %v1207_v60, 8 }
 0x40c   :  { %v3657_v31 = vmul.f32 %v3656_v35, %v3652_v7  ;;  %v3664_v47 = vmul.f32 %v3663_v26, %v3652_v7  ;;  %v4865_v5 = vshll.u32 %v8272_v0, 30  ;;  %v1241_v46 = vsel %vm1233_vm8, %v1224_v48, %v1240_v61 }
 0x40d   :  { %v1245_v16 = vsel %vm1233_vm8, %v1227_v49, %v1244_v14  ;;  %vm1232_vm9 = vcmp.lt.s32.totalorder %v8247_v24, 2  ;;  %vm3670_vm11 = vcmp.lt.s32.totalorder %v3669_v43, 2  ;;  %vm3671_vm10 = vcmp.eq.s32.totalorder %v3669_v43, 0 }
 0x40e   :  { %v3658_v55 = vadd.f32 1.0, %v3657_v31  ;;  %v3665_v41 = vadd.f32 1.0, %v3664_v47  ;;  %v4866_v45 = vsub.s32 %v4862_v59, %v4865_v5  ;;  %v1246_v44 = vsel %vm1232_vm9, %v1243_v62, %v1245_v16 }
 0x40f   :  { %v1242_v1 = vsel %vm1232_vm9, %v1239_v30, %v1241_v46  ;;  %vm3674_vm12 = vcmp.eq.s32.totalorder %v3669_v43, 2  ;;  %v1248_v33 = vand.u32 65535, %v8291_v32  ;;  %v1250_v13 = vand.u32 65535, %v1246_v44 }
 0x410   :  { %v3666_v7 = vmul.f32 %v3665_v41, %v3650_v15  ;;  %v3675_v19 = vxor.u32 2147483648, %v3658_v55  ;;  %vm4867_vm14 = vcmp.lt.s32.totalorder %v4866_v45, 0  ;;  %v4868_v39 = vsub.s32 0, %v4866_v45 }
 0x411   :  { %v1251_v15 = vshrl.u32 %v1246_v44, 16  ;;  %v1249_v40 = vshrl.u32 %v8291_v32, 16  ;;  %vm3667_vm13 = vweird.f32 %v7916_v18  ;;  %v1273_v51 = vshrl.u32 %v1242_v1, 16  ;;  %v8309_v18 = vld [vmem:[%s9088_s2] ss:$0 sm:$0xff] }
 0x412   :  { %v3672_v25 = vxor.u32 2147483648, %v3666_v7  ;;  %v3676_v11 = vsel %vm3674_vm12, %v3675_v19, %v3666_v7  ;;  %v4869_v34 = vsel %vm4867_vm14, %v4868_v39, %v4866_v45  ;;  %v1272_v38 = vand.u32 65535, %v1242_v1 }
 0x413   :  { %v4870_v22 = vclz %v4869_v34  ;;  %v1253_v57 = vmul.u32 %v1251_v15, %v1248_v33  ;;  %v1254_v56 = vmul.u32 %v1250_v13, %v1249_v40  ;;  %v4858_v59 = vadd.s32 %v8245_v42, %v8243_v20 }
 0x414   :  { %v3673_v9 = vsel %vm3671_vm10, %v3658_v55, %v3672_v25  ;;  %v1215_v17 = vshrl.u32 %v5475_v4, %v8234_v23  ;;  %v8312_v49 = vadd.f32 %v8309_v18, %v215_v63  ;;  %v1236_v35 = vsel %vm1234_vm7, %v1224_v48, 2102212464 }
 0x415   :  { %v3677_v2 = vsel %vm3670_vm11, %v3673_v9, %v3676_v11  ;;  %v5399_v29 = vadd.s32 4294967294, %v4870_v22  ;;  %v1252_v26 = vmul.u32 %v1250_v13, %v1248_v33  ;;  %v1255_v37 = vmul.u32 %v1251_v15, %v1249_v40 }
 0x416   :  { %v3678_v36 = vsel %vm3667_vm13, nan, %v3677_v2  ;;  %v1256_v3 = vshll.u32 %v1253_v57, 16  ;;  %v1257_v20 = vshrl.u32 %v1253_v57, 16  ;;  %v1258_v42 = vshll.u32 %v1254_v56, 16 }
 0x417   :  { %5250 = vst [vmem:[#allocation2 + $0xa8] sm:$0xff] %v3678_v36  ;;  %vm5400_vm15 = vcmp.lt.s32.totalorder %v5399_v29, 0  ;;  %v1275_v60 = vmul.u32 %v1273_v51, %v1248_v33  ;;  %vm4766_vm1 = vcmp.lt.s32.totalorder %v8086_v53, 0  ;;  %v1276_v47 = vmul.u32 %v1272_v38, %v1249_v40 }
 0x418   :  { %v4873_v23 = vsel %vm5400_vm15, 0, %v5399_v29  ;;  %vm1260_vm0 = vc.u32 %v1252_v26, %v1256_v3  ;;  %v1262_v31 = vadd.s32 %v1256_v3, %v1252_v26  ;;  %v1274_v55 = vmul.u32 %v1272_v38, %v1248_v33 }
 0x419   :  { %v4874_v43 = vsub.s32 32, %v4873_v23  ;;  %v4878_v61 = vsub.s32 4294967266, %v4873_v23  ;;  %v1261_v14 = vsel %vm1260_vm0, 1, %v5481_v27  ;;  %v1277_v48 = vmul.u32 %v1273_v51, %v1249_v40 }
 0x41a   :  { %v1263_v41 = vadd.s32 %v1261_v14, %v1255_v37  ;;  %vm1264_vm2 = vc.u32 %v1262_v31, %v1258_v42  ;;  %v1278_v5 = vshll.u32 %v1275_v60, 16  ;;  %v4875_v62 = vshll.u32 %v4866_v45, %v4873_v23 }
 0x41b   :  { %v4876_v30 = vshrl.u32 %v4858_v59, %v4874_v43  ;;  %v4879_v46 = vadd.s32 127, %v4878_v61  ;;  %v1265_v16 = vsel %vm1264_vm2, 1, %v5481_v27  ;;  %v1280_v19 = vshll.u32 %v1276_v47, 16 }
 0x41c   :  { %v1267_v7 = vadd.s32 %v1265_v16, %v1263_v41  ;;  %vm1282_vm3 = vc.u32 %v1274_v55, %v1278_v5  ;;  %v1284_v44 = vadd.s32 %v1278_v5, %v1274_v55  ;;  %v4888_v1 = vsub.s32 4, %v8272_v0 }
 0x41d   :  { %v4877_v25 = vor.u32 %v4876_v30, %v4875_v62  ;;  %v4880_v39 = vshll.u32 %v4879_v46, 23  ;;  %v1283_v13 = vsel %vm1282_vm3, 1, %v5481_v27  ;;  %v2439_v9 = vand.u32 2147483647, %v8312_v49 }
 0x41e   :  { %v1268_v33 = vadd.s32 %v1267_v7, %v1257_v20  ;;  %v1285_v15 = vadd.s32 %v1283_v13, %v1277_v48  ;;  %vm1286_vm5 = vc.u32 %v1284_v44, %v1280_v19  ;;  %v1235_v11 = vsel %vm1231_vm6, %v1215_v17, %v8268_v58 }
 0x41f   :  { %v4881_v45 = vor.u32 4788187, %v4880_v39  ;;  %v1259_v34 = vshrl.u32 %v1254_v56, 16  ;;  %v1287_v40 = vsel %vm1286_vm5, 1, %v5481_v27  ;;  %v1237_v63 = vsel %vm1233_vm8, %v8266_v54, %v1236_v35  ;;  %v239_v54 = vpop.f32.mrf.mxu2 }
 0x420   :  { %v1279_v2 = vshrl.u32 %v1275_v60, 16  ;;  %v1289_v22 = vadd.s32 %v1287_v40, %v1285_v15  ;;  %v2442_v51 = vand.u32 2139095040, %v8312_v49  ;;  %v4884_v57 = vcvt.s32.f32 %v4877_v25 }
 0x421   :  { %v4882_v36 = vand.u32 2147483647, %v4881_v45  ;;  %v4889_v38 = vsel %vm4766_vm1, %v4888_v1, %v8272_v0  ;;  %v1269_v59 = vadd.s32 %v1268_v33, %v1259_v34  ;;  %v1281_v29 = vshrl.u32 %v1276_v47, 16 }
 0x422   :  { %v1290_v58 = vadd.s32 %v1289_v22, %v1279_v2  ;;  %v2443_v56 = vshrl.u32 %v2442_v51, 23  ;;  %v2446_v17 = vand.u32 8388607, %v2439_v9  ;;  %v1288_v37 = vadd.s32 %v1284_v44, %v1280_v19 }
 0x423   :  { %v4885_v26 = vmul.f32 %v4884_v57, %v4882_v36  ;;  %vm4765_vm4 = vcmp.le.f32.partialorder %v4764_v52, 0.7853982  ;;  %v1238_v35 = vsel %vm1232_vm9, %v1235_v11, %v1237_v63  ;;  %v8340_v47 = vadd.f32 %v8309_v18, %v239_v54 }
 0x424   :  { %v1291_v3 = vadd.s32 %v1290_v58, %v1281_v29  ;;  %v5353_v20 = vadd.s32 4294967169, %v2443_v56  ;;  %v4891_v0 = vsel %vm4765_vm4, 0, %v4889_v38  ;;  %vm1294_vm6 = vc.u32 %v1269_v59, %v1288_v37 }
 0x425   :  { %v4886_v42 = vxor.u32 2147483648, %v4885_v26  ;;  %v2447_v23 = vor.u32 8388608, %v2446_v17  ;;  %v1292_v61 = vmul.u32 %v8291_v32, %v1238_v35  ;;  %v4908_v24 = vadd.s32 3, %v4891_v0 }
 0x426   :  { %v1295_v60 = vadd.s32 1, %v1291_v3  ;;  %v2449_v31 = vadd.s32 1, %v5353_v20  ;;  %v3682_v30 = vand.u32 2139095040, %v8340_v47  ;;  %v8351_v39 = vadd.s32 %v1288_v37, %v1269_v59 }
 0x427   :  { %v4887_v43 = vsel %vm4766_vm1, %v4886_v42, %v4885_v26  ;;  %v8346_v62 = vshll.u32 %v2447_v23, 8  ;;  %v8349_v19 = vand.u32 3, %v4908_v24  ;;  %v3679_v15 = vand.u32 2147483647, %v8340_v47 }
 0x428   :  { %v4890_v52 = vsel %vm4765_vm4, %v8086_v53, %v4887_v43  ;;  %v1296_v14 = vsel %vm1294_vm6, %v1295_v60, %v1291_v3  ;;  %vm2450_vm7 = vcmp.gt.s32.totalorder %v2449_v31, 0  ;;  %v3683_v45 = vshrl.u32 %v3682_v30, 23 }
 0x429   :  { %v4892_v55 = vmul.f32 %v4890_v52, %v4890_v52  ;;  %v1297_v41 = vadd.s32 %v1296_v14, %v1292_v61  ;;  %v2451_v48 = vsel %vm2450_vm7, %v2449_v31, 0  ;;  %v8355_v33 = vand.u32 65535, %v8346_v62 }
 0x42a   :  { %v2453_v5 = vand.u32 31, %v2451_v48  ;;  %vm1201_vm8 = vcmp.lt.s32.totalorder %v8116_v28, 0  ;;  %vm4914_vm9 = vcmp.eq.s32.totalorder %v8349_v19, 2  ;;  %v8367_v29 = vshrl.u32 %v2451_v48, 5 }
 0x42b   :  { %v4893_v46 = vmul.f32 -0.001358992, %v4892_v55  ;;  %v4900_v16 = vmul.f32 -0.00019511016, %v4892_v55  ;;  %v1298_v7 = vadd.s32 536870912, %v1297_v41  ;;  %vm4911_vm11 = vcmp.eq.s32.totalorder %v8349_v19, 0 }
 0x42c   :  { %v2454_v44 = vsub.s32 32, %v2453_v5  ;;  %v2456_v13 = vshll.u32 %v5475_v4, %v2453_v5  ;;  %v2459_v63 = vshll.u32 %v5476_v6, %v2453_v5  ;;  %v2465_v51 = vshll.u32 %v5478_v10, %v2453_v5 }
 0x42d   :  { %v4894_v32 = vadd.f32 0.041655596, %v4893_v46  ;;  %v4901_v25 = vadd.f32 0.008332121, %v4900_v16  ;;  %v1299_v1 = vshrl.u32 %v1298_v7, 30  ;;  %v2462_v58 = vshll.u32 %v5477_v8, %v2453_v5 }
 0x42e   :  { %v2457_v2 = vshrl.u32 %v5476_v6, %v2454_v44  ;;  %v2460_v22 = vshrl.u32 %v5477_v8, %v2454_v44  ;;  %v2466_v36 = vshrl.u32 %v5479_v12, %v2454_v44  ;;  %v2463_v56 = vshrl.u32 %v5478_v10, %v2454_v44 }
 0x42f   :  { %v4895_v11 = vmul.f32 %v4894_v32, %v4892_v55  ;;  %v4902_v34 = vmul.f32 %v4901_v25, %v4892_v55  ;;  %v1300_v40 = vshll.u32 %v1299_v1, 30  ;;  %v2468_v17 = vshll.u32 %v5479_v12, %v2453_v5 }
 0x430   :  { %v2469_v26 = vshrl.u32 %v5480_v21, %v2454_v44  ;;  %vm4910_vm10 = vcmp.lt.s32.totalorder %v8349_v19, 2  ;;  %vm4907_vm12 = vweird.f32 %v8086_v53  ;;  %v1323_v3 = vsub.s32 4, %v1299_v1 }
 0x431   :  { %v4896_v57 = vadd.f32 -0.4999988, %v4895_v11  ;;  %v4903_v38 = vadd.f32 -0.16666654, %v4902_v34  ;;  %v8365_v59 = vsub.s32 %v1297_v41, %v1300_v40  ;;  %v2458_v20 = vor.u32 %v2457_v2, %v2456_v13 }
 0x432   :  { %v2461_v42 = vor.u32 %v2460_v22, %v2459_v63  ;;  %v2467_v0 = vor.u32 %v2466_v36, %v2465_v51  ;;  %vm2471_vm13 = vcmp.lt.s32.totalorder %v8367_v29, 1  ;;  %v2464_v61 = vor.u32 %v2463_v56, %v2462_v58 }
 0x433   :  { %v4897_v37 = vmul.f32 %v4896_v57, %v4892_v55  ;;  %v4904_v54 = vmul.f32 %v4903_v38, %v4892_v55  ;;  %vm1302_vm14 = vcmp.lt.s32.totalorder %v8365_v59, 0  ;;  %v1303_v35 = vsub.s32 0, %v8365_v59 }
 0x434   :  { %vm2474_vm15 = vcmp.lt.s32.totalorder %v8367_v29, 4  ;;  %v2489_v24 = vshrl.u32 %v8346_v62, 16  ;;  %vm8384_vm1 = vcmp.le.f32.partialorder %v1199_v50, 0.7853982  ;;  %v2470_v48 = vor.u32 %v2469_v26, %v2468_v17 }
 0x435   :  { %v4898_v60 = vadd.f32 1.0, %v4897_v37  ;;  %v4905_v23 = vadd.f32 1.0, %v4904_v54  ;;  %v1304_v31 = vsel %vm1302_vm14, %v1303_v35, %v8365_v59  ;;  %vm2473_vm0 = vcmp.lt.s32.totalorder %v8367_v29, 3 }
 0x436   :  { %v1305_v43 = vclz %v1304_v31  ;;  %v2455_v30 = vshrl.u32 %v5475_v4, %v2454_v44  ;;  %v2479_v46 = vsel %vm2471_vm13, %v2458_v20, %v2461_v42  ;;  %v5377_v16 = vadd.s32 4294967169, %v3683_v45 }
 0x437   :  { %v4906_v14 = vmul.f32 %v4905_v23, %v4890_v52  ;;  %v4915_v55 = vxor.u32 2147483648, %v4898_v60  ;;  %v8394_v52 = vsel %vm1201_vm8, %v1323_v3, %v1299_v1  ;;  %vm2472_vm2 = vcmp.lt.s32.totalorder %v8367_v29, 2 }
 0x438   :  { %v5330_v5 = vadd.s32 4294967294, %v1305_v43  ;;  %v2480_v50 = vsel %vm2474_vm15, %v2467_v0, 920167782  ;;  %v2483_v25 = vsel %vm2471_vm13, %v2461_v42, %v2464_v61  ;;  %v2484_v11 = vsel %vm2474_vm15, %v2470_v48, 1326507024 }
 0x439   :  { %v4912_v7 = vxor.u32 2147483648, %v4906_v14  ;;  %v4916_v32 = vsel %vm4914_vm9, %v4915_v55, %v4906_v14  ;;  %v2481_v44 = vsel %vm2473_vm0, %v2464_v61, %v2480_v50  ;;  %v2476_v2 = vsel %vm2474_vm15, %v2464_v61, 2102212464 }
 0x43a   :  { %vm5331_vm3 = vcmp.lt.s32.totalorder %v5330_v5, 0  ;;  %v2482_v45 = vsel %vm2472_vm2, %v2479_v46, %v2481_v44  ;;  %v2485_v51 = vsel %vm2473_vm0, %v2467_v0, %v2484_v11  ;;  %v3689_v53 = vadd.s32 1, %v5377_v16 }
 0x43b   :  { %v4913_v13 = vsel %vm4911_vm11, %v4898_v60, %v4912_v7  ;;  %v1308_v1 = vsel %vm5331_vm3, 0, %v5330_v5  ;;  %v2512_v36 = vand.u32 65535, %v2482_v45  ;;  %v2513_v57 = vshrl.u32 %v2482_v45, 16 }
 0x43c   :  { %v4917_v34 = vsel %vm4910_vm10, %v4913_v13, %v4916_v32  ;;  %v1309_v40 = vsub.s32 32, %v1308_v1  ;;  %v1313_v63 = vsub.s32 4294967266, %v1308_v1  ;;  %v1310_v38 = vshll.u32 %v8365_v59, %v1308_v1 }
 0x43d   :  { %v4918_v22 = vsel %vm4907_vm12, nan, %v4917_v34  ;;  %v2486_v56 = vsel %vm2472_vm2, %v2483_v25, %v2485_v51  ;;  %v2515_v37 = vmul.u32 %v2513_v57, %v8355_v33  ;;  %v1326_v3 = vsel %vm8384_vm1, 0, %v8394_v52 }
 0x43e   :  { %5258 = vst [vmem:[#allocation2 + $0xe8] sm:$0xff] %v4918_v22  ;;  %v1311_v58 = vshrl.u32 %v8351_v39, %v1309_v40  ;;  %v1314_v19 = vadd.s32 127, %v1313_v63  ;;  %v2490_v17 = vand.u32 65535, %v2486_v56  ;;  %v2491_v26 = vshrl.u32 %v2486_v56, 16 }
 0x43f   :  { %v2516_v0 = vmul.u32 %v2512_v36, %v2489_v24  ;;  %v2475_v59 = vsel %vm2471_vm13, %v2455_v30, %v2458_v20  ;;  %v2477_v39 = vsel %vm2473_vm0, %v2461_v42, %v2476_v2  ;;  %v2514_v43 = vmul.u32 %v2512_v36, %v8355_v33 }
 0x440   :  { %v1312_v54 = vor.u32 %v1311_v58, %v1310_v38  ;;  %v1315_v35 = vshll.u32 %v1314_v19, 23  ;;  %v2493_v60 = vmul.u32 %v2491_v26, %v8355_v33  ;;  %v2494_v23 = vmul.u32 %v2490_v17, %v2489_v24 }
 0x441   :  { %v2517_v61 = vmul.u32 %v2513_v57, %v2489_v24  ;;  %v2518_v14 = vshll.u32 %v2515_v37, 16  ;;  %v2492_v48 = vmul.u32 %v2490_v17, %v8355_v33  ;;  %v2495_v5 = vmul.u32 %v2491_v26, %v2489_v24 }
 0x442   :  { %v1316_v31 = vor.u32 4788187, %v1315_v35  ;;  %v1319_v55 = vcvt.s32.f32 %v1312_v54  ;;  %v2496_v46 = vshll.u32 %v2493_v60, 16  ;;  %v2498_v7 = vshll.u32 %v2494_v23, 16 }
 0x443   :  { %v2520_v52 = vshll.u32 %v2516_v0, 16  ;;  %vm2522_vm5 = vc.u32 %v2514_v43, %v2518_v14  ;;  %v2524_v30 = vadd.s32 %v2518_v14, %v2514_v43  ;;  %vm3690_vm6 = vcmp.gt.s32.totalorder %v3689_v53, 0 }
 0x444   :  { %v1317_v16 = vand.u32 2147483647, %v1316_v31  ;;  %vm2500_vm4 = vc.u32 %v2492_v48, %v2496_v46  ;;  %v2502_v20 = vadd.s32 %v2496_v46, %v2492_v48  ;;  %v2523_v42 = vsel %vm2522_vm5, 1, %v5481_v27 }
 0x445   :  { %v2501_v32 = vsel %vm2500_vm4, 1, %v5481_v27  ;;  %v2525_v44 = vadd.s32 %v2523_v42, %v2517_v61  ;;  %v2519_v13 = vshrl.u32 %v2515_v37, 16  ;;  %vm2526_vm9 = vc.u32 %v2524_v30, %v2520_v52 }
 0x446   :  { %v1320_v50 = vmul.f32 %v1319_v55, %v1317_v16  ;;  %v2503_v25 = vadd.s32 %v2501_v32, %v2495_v5  ;;  %vm2504_vm7 = vc.u32 %v2502_v20, %v2498_v7  ;;  %v2527_v1 = vsel %vm2526_vm9, 1, %v5481_v27 }
 0x447   :  { %v2505_v24 = vsel %vm2504_vm7, 1, %v5481_v27  ;;  %v3691_v45 = vsel %vm3690_vm6, %v3689_v53, 0  ;;  %v2497_v11 = vshrl.u32 %v2493_v60, 16  ;;  %v2529_v40 = vadd.s32 %v2527_v1, %v2525_v44 }
 0x448   :  { %v1321_v33 = vxor.u32 2147483648, %v1320_v50  ;;  %v2507_v34 = vadd.s32 %v2505_v24, %v2503_v25  ;;  %v3693_v63 = vand.u32 31, %v3691_v45  ;;  %v2478_v22 = vsel %vm2472_vm2, %v2475_v59, %v2477_v39 }
 0x449   :  { %v2499_v51 = vshrl.u32 %v2494_v23, 16  ;;  %v2521_v36 = vshrl.u32 %v2516_v0, 16  ;;  %v2530_v58 = vadd.s32 %v2529_v40, %v2519_v13  ;;  %v1343_v17 = vadd.s32 3, %v1326_v3 }
 0x44a   :  { %v1322_v2 = vsel %vm1201_vm8, %v1321_v33, %v1320_v50  ;;  %v2508_v38 = vadd.s32 %v2507_v34, %v2497_v11  ;;  %v8445_v19 = vsub.s32 32, %v3693_v63  ;;  %v3686_v26 = vand.u32 8388607, %v3679_v15 }
 0x44b   :  { %v1325_v57 = vsel %vm8384_vm1, %v8116_v28, %v1322_v2  ;;  %v8451_v53 = vadd.s32 %v2524_v30, %v2520_v52  ;;  %v2531_v29 = vadd.s32 %v2530_v58, %v2521_v36  ;;  %v2532_v54 = vmul.u32 %v8346_v62, %v2478_v22 }
 0x44c   :  { %v1327_v56 = vmul.f32 %v1325_v57, %v1325_v57  ;;  %v8449_v37 = vadd.s32 %v2508_v38, %v2499_v51  ;;  %v8454_v41 = vshrl.u32 %v3691_v45, 5  ;;  %v3699_v59 = vshll.u32 %v5476_v6, %v3693_v63 }
 0x44d   :  { %v2535_v3 = vadd.s32 1, %v2531_v29  ;;  %v3700_v39 = vshrl.u32 %v5477_v8, %v8445_v19  ;;  %v3703_v60 = vshrl.u32 %v5478_v10, %v8445_v19  ;;  %v3697_v62 = vshrl.u32 %v5476_v6, %v8445_v19 }
 0x44e   :  { %v1328_v35 = vmul.f32 -0.001358992, %v1327_v56  ;;  %v1335_v0 = vmul.f32 -0.00019511016, %v1327_v56  ;;  %vm2534_vm8 = vc.u32 %v8449_v37, %v8451_v53  ;;  %v3702_v43 = vshll.u32 %v5477_v8, %v3693_v63 }
 0x44f   :  { %v2536_v61 = vsel %vm2534_vm8, %v2535_v3, %v2531_v29  ;;  %v3705_v14 = vshll.u32 %v5478_v10, %v3693_v63  ;;  %v3706_v55 = vshrl.u32 %v5479_v12, %v8445_v19  ;;  %v3708_v48 = vshll.u32 %v5479_v12, %v3693_v63  ;;  %v263_v3 = vpop.f32.mrf.mxu3 }
 0x450   :  { %v1329_v23 = vadd.f32 0.041655596, %v1328_v35  ;;  %v1336_v31 = vadd.f32 0.008332121, %v1335_v0  ;;  %v2537_v16 = vadd.s32 %v2536_v61, %v2532_v54  ;;  %v3709_v7 = vshrl.u32 %v5480_v21, %v8445_v19 }
 0x451   :  { %v3696_v52 = vshll.u32 %v5475_v4, %v3693_v63  ;;  %v8473_v20 = vor.u32 %v3700_v39, %v3699_v59  ;;  %v3704_v42 = vor.u32 %v3703_v60, %v3702_v43  ;;  %v3707_v30 = vor.u32 %v3706_v55, %v3705_v14 }
 0x452   :  { %v1330_v5 = vmul.f32 %v1329_v23, %v1327_v56  ;;  %v1337_v46 = vmul.f32 %v1336_v31, %v1327_v56  ;;  %v2538_v44 = vadd.s32 536870912, %v2537_v16  ;;  %v3710_v25 = vor.u32 %v3709_v7, %v3708_v48 }
 0x453   :  { %v1344_v13 = vand.u32 3, %v1343_v17  ;;  %v3687_v33 = vor.u32 8388608, %v3686_v26  ;;  %v8475_v24 = vor.u32 %v3697_v62, %v3696_v52  ;;  %vm3714_vm11 = vcmp.lt.s32.totalorder %v8454_v41, 4 }
 0x454   :  { %v1331_v50 = vadd.f32 -0.4999988, %v1330_v5  ;;  %v1338_v32 = vadd.f32 -0.16666654, %v1337_v46  ;;  %v8477_v11 = vshrl.u32 %v2538_v44, 30  ;;  %vm3711_vm10 = vcmp.lt.s32.totalorder %v8454_v41, 1 }
 0x455   :  { %vm3713_vm14 = vcmp.lt.s32.totalorder %v8454_v41, 3  ;;  %v3720_v34 = vsel %vm3714_vm11, %v3707_v30, 920167782  ;;  %v3724_v40 = vsel %vm3714_vm11, %v3710_v25, 1326507024  ;;  %v3723_v51 = vsel %vm3711_vm10, %v8473_v20, %v3704_v42 }
 0x456   :  { %v1332_v1 = vmul.f32 %v1331_v50, %v1327_v56  ;;  %v1339_v45 = vmul.f32 %v1338_v32, %v1327_v56  ;;  %v2540_v22 = vshll.u32 %v8477_v11, 30  ;;  %v3719_v36 = vsel %vm3711_vm10, %v8475_v24, %v8473_v20 }
 0x457   :  { %v3721_v38 = vsel %vm3713_vm14, %v3704_v42, %v3720_v34  ;;  %v3725_v58 = vsel %vm3713_vm14, %v3707_v30, %v3724_v40  ;;  %v8498_v56 = vshll.u32 %v3687_v33, 8  ;;  %vm3712_vm12 = vcmp.lt.s32.totalorder %v8454_v41, 2 }
 0x458   :  { %v1333_v63 = vadd.f32 1.0, %v1332_v1  ;;  %v1340_v2 = vadd.f32 1.0, %v1339_v45  ;;  %v2541_v29 = vsub.s32 %v2537_v16, %v2540_v22  ;;  %vm1342_vm13 = vweird.f32 %v8116_v28 }
 0x459   :  { %vm1345_vm15 = vcmp.lt.s32.totalorder %v1344_v13, 2  ;;  %vm1346_vm1 = vcmp.eq.s32.totalorder %v1344_v13, 0  ;;  %v3726_v54 = vsel %vm3712_vm12, %v3723_v51, %v3725_v58  ;;  %v3722_v59 = vsel %vm3712_vm12, %v3719_v36, %v3721_v38 }
 0x45a   :  { %v1341_v17 = vmul.f32 %v1340_v2, %v1325_v57  ;;  %v1350_v26 = vxor.u32 2147483648, %v1333_v63  ;;  %vm2542_vm0 = vcmp.lt.s32.totalorder %v2541_v29, 0  ;;  %v2543_v0 = vsub.s32 0, %v2541_v29 }
 0x45b   :  { %vm1349_vm2 = vcmp.eq.s32.totalorder %v1344_v13, 2  ;;  %v3728_v57 = vand.u32 65535, %v8498_v56  ;;  %v3730_v39 = vand.u32 65535, %v3726_v54  ;;  %v3731_v60 = vshrl.u32 %v3726_v54, 16 }
 0x45c   :  { %v1347_v35 = vxor.u32 2147483648, %v1341_v17  ;;  %v1351_v31 = vsel %vm1349_vm2, %v1350_v26, %v1341_v17  ;;  %v2544_v62 = vsel %vm2542_vm0, %v2543_v0, %v2541_v29  ;;  %v3729_v43 = vshrl.u32 %v8498_v56, 16 }
 0x45d   :  { %v2545_v14 = vclz %v2544_v62  ;;  %v3753_v55 = vshrl.u32 %v3722_v59, 16  ;;  %v8510_v48 = vadd.f32 %v8309_v18, %v263_v3  ;;  %v3733_v46 = vmul.u32 %v3731_v60, %v3728_v57 }
 0x45e   :  { %v1348_v23 = vsel %vm1346_vm1, %v1333_v63, %v1347_v35  ;;  %v3734_v16 = vmul.u32 %v3730_v39, %v3729_v43  ;;  %v3752_v7 = vand.u32 65535, %v3722_v59  ;;  %v2533_v52 = vadd.s32 %v8451_v53, %v8449_v37 }
 0x45f   :  { %v1352_v61 = vsel %vm1345_vm15, %v1348_v23, %v1351_v31  ;;  %v5354_v30 = vadd.s32 4294967294, %v2545_v14  ;;  %v3695_v50 = vshrl.u32 %v5475_v4, %v8445_v19  ;;  %v3716_v32 = vsel %vm3714_vm11, %v3704_v42, 2102212464 }
 0x460   :  { %v1353_v5 = vsel %vm1342_vm13, nan, %v1352_v61  ;;  %v2563_v44 = vsub.s32 4, %v8477_v11  ;;  %v3732_v25 = vmul.u32 %v3730_v39, %v3728_v57  ;;  %v3735_v13 = vmul.u32 %v3731_v60, %v3729_v43  ;;  %v194_v61 = vpop.f32.mrf.mxu0 }
 0x461   :  { %5235 = vst [vmem:[#allocation2 + $0x30] sm:$0xff] %v1353_v5  ;;  %v3736_v28 = vshll.u32 %v3733_v46, 16  ;;  %vm2441_vm3 = vcmp.lt.s32.totalorder %v8312_v49, 0  ;;  %vm5355_vm5 = vcmp.lt.s32.totalorder %v5354_v30, 0  ;;  %v3737_v33 = vshrl.u32 %v3733_v46, 16 }
 0x462   :  { %v3738_v1 = vshll.u32 %v3734_v16, 16  ;;  %v3755_v45 = vmul.u32 %v3753_v55, %v3728_v57  ;;  %v2548_v34 = vsel %vm5355_vm5, 0, %v5354_v30  ;;  %v3756_v53 = vmul.u32 %v3752_v7, %v3729_v43 }
 0x463   :  { %vm3740_vm4 = vc.u32 %v3732_v25, %v3736_v28  ;;  %v3742_v37 = vadd.s32 %v3736_v28, %v3732_v25  ;;  %v2549_v40 = vsub.s32 32, %v2548_v34  ;;  %v2553_v19 = vsub.s32 4294967266, %v2548_v34 }
 0x464   :  { %v3741_v63 = vsel %vm3740_vm4, 1, %v5481_v27  ;;  %v3754_v42 = vmul.u32 %v3752_v7, %v3728_v57  ;;  %v3757_v22 = vmul.u32 %v3753_v55, %v3729_v43  ;;  %v3758_v51 = vshll.u32 %v3755_v45, 16 }
 0x465   :  { %v3743_v2 = vadd.s32 %v3741_v63, %v3735_v13  ;;  %vm3744_vm6 = vc.u32 %v3742_v37, %v3738_v1  ;;  %v2550_v36 = vshll.u32 %v2541_v29, %v2548_v34  ;;  %v2551_v38 = vshrl.u32 %v2533_v52, %v2549_v40 }
 0x466   :  { %v2554_v58 = vadd.s32 127, %v2553_v19  ;;  %v3745_v17 = vsel %vm3744_vm6, 1, %v5481_v27  ;;  %v3760_v54 = vshll.u32 %v3756_v53, 16  ;;  %vm3762_vm7 = vc.u32 %v3754_v42, %v3758_v51 }
 0x467   :  { %v3747_v26 = vadd.s32 %v3745_v17, %v3743_v2  ;;  %v3764_v35 = vadd.s32 %v3758_v51, %v3754_v42  ;;  %v2552_v0 = vor.u32 %v2551_v38, %v2550_v36  ;;  %v3715_v3 = vsel %vm3711_vm10, %v3695_v50, %v8475_v24 }
 0x468   :  { %v2555_v59 = vshll.u32 %v2554_v58, 23  ;;  %v3763_v57 = vsel %vm3762_vm7, 1, %v5481_v27  ;;  %v4919_v29 = vand.u32 2147483647, %v8510_v48  ;;  %v3717_v31 = vsel %vm3713_vm14, %v8473_v20, %v3716_v32 }
 0x469   :  { %v3748_v39 = vadd.s32 %v3747_v26, %v3737_v33  ;;  %v3765_v60 = vadd.s32 %v3763_v57, %v3757_v22  ;;  %vm3766_vm9 = vc.u32 %v3764_v35, %v3760_v54  ;;  %v3739_v62 = vshrl.u32 %v3734_v16, 16 }
 0x46a   :  { %v2556_v23 = vor.u32 4788187, %v2555_v59  ;;  %v3767_v43 = vsel %vm3766_vm9, 1, %v5481_v27  ;;  %v2564_v24 = vsel %vm2441_vm3, %v2563_v44, %v8477_v11  ;;  %v3759_v14 = vshrl.u32 %v3755_v45, 16 }
 0x46b   :  { %v3769_v55 = vadd.s32 %v3767_v43, %v3765_v60  ;;  %v4922_v5 = vand.u32 2139095040, %v8510_v48  ;;  %v2559_v7 = vcvt.s32.f32 %v2552_v0  ;;  %v3749_v52 = vadd.s32 %v3748_v39, %v3739_v62 }
 0x46c   :  { %v2557_v46 = vand.u32 2147483647, %v2556_v23  ;;  %v3761_v30 = vshrl.u32 %v3756_v53, 16  ;;  %v4926_v20 = vand.u32 8388607, %v4919_v29  ;;  %v8540_v16 = vadd.f32 %v8309_v18, %v194_v61 }
 0x46d   :  { %v3770_v50 = vadd.s32 %v3769_v55, %v3759_v14  ;;  %v4923_v25 = vshrl.u32 %v4922_v5, 23  ;;  %v3768_v13 = vadd.s32 %v3764_v35, %v3760_v54  ;;  %vm8544_vm8 = vcmp.le.f32.partialorder %v2439_v9, 0.7853982 }
 0x46e   :  { %v2560_v32 = vmul.f32 %v2559_v7, %v2557_v46  ;;  %v3718_v44 = vsel %vm3712_vm12, %v3715_v3, %v3717_v31  ;;  %v2566_v45 = vsel %vm8544_vm8, 0, %v2564_v24  ;;  %v4927_v34 = vor.u32 8388608, %v4926_v20 }
 0x46f   :  { %v3771_v28 = vadd.s32 %v3770_v50, %v3761_v30  ;;  %v5401_v33 = vadd.s32 4294967169, %v4923_v25  ;;  %vm3774_vm11 = vc.u32 %v3749_v52, %v3768_v13  ;;  %v1357_v53 = vand.u32 2139095040, %v8540_v16 }
 0x470   :  { %v2561_v1 = vxor.u32 2147483648, %v2560_v32  ;;  %v3772_v40 = vmul.u32 %v8498_v56, %v3718_v44  ;;  %v2583_v42 = vadd.s32 3, %v2566_v45  ;;  %v8559_v36 = vshll.u32 %v4927_v34, 8 }
 0x471   :  { %v3775_v18 = vadd.s32 1, %v3771_v28  ;;  %v4929_v37 = vadd.s32 1, %v5401_v33  ;;  %v1358_v38 = vshrl.u32 %v1357_v53, 23  ;;  %v8565_v3 = vadd.s32 %v3768_v13, %v3749_v52 }
 0x472   :  { %v2562_v9 = vsel %vm2441_vm3, %v2561_v1, %v2560_v32  ;;  %v8561_v0 = vand.u32 3, %v2583_v42  ;;  %v8568_v57 = vand.u32 65535, %v8559_v36  ;;  %v8571_v39 = vshrl.u32 %v8559_v36, 16 }
 0x473   :  { %v2565_v41 = vsel %vm8544_vm8, %v8312_v49, %v2562_v9  ;;  %v3776_v19 = vsel %vm3774_vm11, %v3775_v18, %v3771_v28  ;;  %vm4930_vm10 = vcmp.gt.s32.totalorder %v4929_v37, 0  ;;  %v8573_v60 = vadd.s32 4294967169, %v1358_v38 }
 0x474   :  { %v2567_v63 = vmul.f32 %v2565_v41, %v2565_v41  ;;  %v3777_v2 = vadd.s32 %v3776_v19, %v3772_v40  ;;  %v4931_v22 = vsel %vm4930_vm10, %v4929_v37, 0  ;;  %vm2589_vm14 = vcmp.eq.s32.totalorder %v8561_v0, 2 }
 0x475   :  { %v4933_v51 = vand.u32 31, %v4931_v22  ;;  %v8576_v43 = vshrl.u32 %v4931_v22, 5  ;;  %vm2586_vm12 = vcmp.eq.s32.totalorder %v8561_v0, 0  ;;  %vm2585_vm13 = vcmp.lt.s32.totalorder %v8561_v0, 2 }
 0x476   :  { %v2568_v58 = vmul.f32 -0.001358992, %v2567_v63  ;;  %v2575_v17 = vmul.f32 -0.00019511016, %v2567_v63  ;;  %v3778_v26 = vadd.s32 536870912, %v3777_v2  ;;  %vm2582_vm1 = vweird.f32 %v8312_v49 }
 0x477   :  { %v4934_v54 = vsub.s32 32, %v4933_v51  ;;  %v4936_v61 = vshll.u32 %v5475_v4, %v4933_v51  ;;  %v4939_v30 = vshll.u32 %v5476_v6, %v4933_v51  ;;  %v4942_v50 = vshll.u32 %v5477_v8, %v4933_v51 }
 0x478   :  { %v2569_v35 = vadd.f32 0.041655596, %v2568_v58  ;;  %v2576_v56 = vadd.f32 0.008332121, %v2575_v17  ;;  %v8563_v59 = vshrl.u32 %v3778_v26, 30  ;;  %v4945_v25 = vshll.u32 %v5478_v10, %v4933_v51 }
 0x479   :  { %v4937_v24 = vshrl.u32 %v5476_v6, %v4934_v54  ;;  %v4940_v14 = vshrl.u32 %v5477_v8, %v4934_v54  ;;  %v4943_v55 = vshrl.u32 %v5478_v10, %v4934_v54  ;;  %v4946_v52 = vshrl.u32 %v5479_v12, %v4934_v54 }
 0x47a   :  { %v2570_v23 = vmul.f32 %v2569_v35, %v2567_v63  ;;  %v2577_v31 = vmul.f32 %v2576_v56, %v2567_v63  ;;  %v3780_v62 = vshll.u32 %v8563_v59, 30  ;;  %v4949_v20 = vshrl.u32 %v5480_v21, %v4934_v54 }
 0x47b   :  { %v4938_v44 = vor.u32 %v4937_v24, %v4936_v61  ;;  %v4941_v28 = vor.u32 %v4940_v14, %v4939_v30  ;;  %v4944_v33 = vor.u32 %v4943_v55, %v4942_v50  ;;  %v4948_v1 = vshll.u32 %v5479_v12, %v4933_v51 }
 0x47c   :  { %v2571_v5 = vadd.f32 -0.4999988, %v2570_v23  ;;  %v2578_v46 = vadd.f32 -0.16666654, %v2577_v31  ;;  %v8583_v7 = vsub.s32 %v3777_v2, %v3780_v62  ;;  %v4947_v37 = vor.u32 %v4946_v52, %v4945_v25 }
 0x47d   :  { %v3803_v9 = vsub.s32 4, %v8563_v59  ;;  %v4935_v40 = vshrl.u32 %v5475_v4, %v4934_v54  ;;  %v4950_v19 = vor.u32 %v4949_v20, %v4948_v1  ;;  %vm4951_vm0 = vcmp.lt.s32.totalorder %v8576_v43, 1 }
 0x47e   :  { %v2572_v32 = vmul.f32 %v2571_v5, %v2567_v63  ;;  %v2579_v13 = vmul.f32 %v2578_v46, %v2567_v63  ;;  %vm3782_vm15 = vcmp.lt.s32.totalorder %v8583_v7, 0  ;;  %v3783_v11 = vsub.s32 0, %v8583_v7 }
 0x47f   :  { %vm4952_vm2 = vcmp.lt.s32.totalorder %v8576_v43, 2  ;;  %vm3681_vm3 = vcmp.lt.s32.totalorder %v8340_v47, 0  ;;  %vm4953_vm5 = vcmp.lt.s32.totalorder %v8576_v43, 3  ;;  %vm4954_vm4 = vcmp.lt.s32.totalorder %v8576_v43, 4 }
 0x480   :  { %v2573_v45 = vadd.f32 1.0, %v2572_v32  ;;  %v2580_v18 = vadd.f32 1.0, %v2579_v13  ;;  %v3784_v34 = vsel %vm3782_vm15, %v3783_v11, %v8583_v7  ;;  %v4959_v22 = vsel %vm4951_vm0, %v4938_v44, %v4941_v28 }
 0x481   :  { %v3785_v53 = vclz %v3784_v34  ;;  %v4955_v38 = vsel %vm4951_vm0, %v4935_v40, %v4938_v44  ;;  %v4956_v58 = vsel %vm4954_vm4, %v4944_v33, 2102212464  ;;  %v4960_v17 = vsel %vm4954_vm4, %v4947_v37, 920167782 }
 0x482   :  { %v2581_v63 = vmul.f32 %v2580_v18, %v2565_v41  ;;  %v2590_v42 = vxor.u32 2147483648, %v2573_v45  ;;  %v4961_v26 = vsel %vm4953_vm5, %v4944_v33, %v4960_v17  ;;  %v4963_v54 = vsel %vm4951_vm0, %v4941_v28, %v4944_v33 }
 0x483   :  { %v5378_v2 = vadd.s32 4294967294, %v3785_v53  ;;  %v4962_v23 = vsel %vm4952_vm2, %v4959_v22, %v4961_v26  ;;  %v4964_v31 = vsel %vm4954_vm4, %v4950_v19, 1326507024  ;;  %v4957_v14 = vsel %vm4953_vm5, %v4941_v28, %v4956_v58 }
 0x484   :  { %v2587_v51 = vxor.u32 2147483648, %v2581_v63  ;;  %v2591_v41 = vsel %vm2589_vm14, %v2590_v42, %v2581_v63  ;;  %v4965_v5 = vsel %vm4953_vm5, %v4947_v37, %v4964_v31  ;;  %v4992_v46 = vand.u32 65535, %v4962_v23 }
 0x485   :  { %vm5379_vm6 = vcmp.lt.s32.totalorder %v5378_v2, 0  ;;  %v4993_v52 = vshrl.u32 %v4962_v23, 16  ;;  %v4966_v25 = vsel %vm4952_vm2, %v4963_v54, %v4965_v5  ;;  %v1354_v49 = vand.u32 2147483647, %v8540_v16 }
 0x486   :  { %v2588_v35 = vsel %vm2586_vm12, %v2573_v45, %v2587_v51  ;;  %v3788_v56 = vsel %vm5379_vm6, 0, %v5378_v2  ;;  %v4970_v20 = vand.u32 65535, %v4966_v25  ;;  %v4971_v32 = vshrl.u32 %v4966_v25, 16 }
 0x487   :  { %v2592_v62 = vsel %vm2585_vm13, %v2588_v35, %v2591_v41  ;;  %v3789_v61 = vsub.s32 32, %v3788_v56  ;;  %v3793_v24 = vsub.s32 4294967266, %v3788_v56  ;;  %v3790_v30 = vshll.u32 %v8583_v7, %v3788_v56 }
 0x488   :  { %v2593_v55 = vsel %vm2582_vm1, nan, %v2592_v62  ;;  %v4995_v13 = vmul.u32 %v4993_v52, %v8568_v57  ;;  %v4996_v28 = vmul.u32 %v4992_v46, %v8571_v39  ;;  %v1364_v33 = vadd.s32 1, %v8573_v60 }
 0x489   :  { %5243 = vst [vmem:[#allocation2 + $0x70] sm:$0xff] %v2593_v55  ;;  %v3791_v50 = vshrl.u32 %v8565_v3, %v3789_v61  ;;  %v3794_v0 = vadd.s32 127, %v3793_v24  ;;  %v8631_v3 = vsel %vm3681_vm3, %v3803_v9, %v8563_v59  ;;  %v8635_v7 = vsel %vm4952_vm2, %v4955_v38, %v4957_v14 }
 0x48a   :  { %v4973_v1 = vmul.u32 %v4971_v32, %v8568_v57  ;;  %v4974_v45 = vmul.u32 %v4970_v20, %v8571_v39  ;;  %v4994_v34 = vmul.u32 %v4992_v46, %v8568_v57  ;;  %v4997_v37 = vmul.u32 %v4993_v52, %v8571_v39 }
 0x48b   :  { %v3792_v11 = vor.u32 %v3791_v50, %v3790_v30  ;;  %v3795_v44 = vshll.u32 %v3794_v0, 23  ;;  %v4998_v53 = vshll.u32 %v4995_v13, 16  ;;  %v4972_v40 = vmul.u32 %v4970_v20, %v8568_v57 }
 0x48c   :  { %v4975_v59 = vmul.u32 %v4971_v32, %v8571_v39  ;;  %v4976_v9 = vshll.u32 %v4973_v1, 16  ;;  %v4978_v43 = vshll.u32 %v4974_v45, 16  ;;  %v5000_v63 = vshll.u32 %v4996_v28, 16 }
 0x48d   :  { %v3796_v18 = vor.u32 4788187, %v3795_v44  ;;  %v3799_v60 = vcvt.s32.f32 %v3792_v11  ;;  %vm5002_vm7 = vc.u32 %v4994_v34, %v4998_v53  ;;  %v5004_v22 = vadd.s32 %v4998_v53, %v4994_v34 }
 0x48e   :  { %vm4980_vm9 = vc.u32 %v4972_v40, %v4976_v9  ;;  %v4982_v42 = vadd.s32 %v4976_v9, %v4972_v40  ;;  %v5003_v2 = vsel %vm5002_vm7, 1, %v5481_v27  ;;  %vm1365_vm8 = vcmp.gt.s32.totalorder %v1364_v33, 0 }
 0x48f   :  { %v3797_v19 = vand.u32 2147483647, %v3796_v18  ;;  %v4981_v38 = vsel %vm4980_vm9, 1, %v5481_v27  ;;  %v5005_v58 = vadd.s32 %v5003_v2, %v4997_v37  ;;  %v4999_v57 = vshrl.u32 %v4995_v13, 16 }
 0x490   :  { %v4983_v17 = vadd.s32 %v4981_v38, %v4975_v59  ;;  %vm4984_vm11 = vc.u32 %v4982_v42, %v4978_v43  ;;  %vm5006_vm10 = vc.u32 %v5004_v22, %v5000_v63  ;;  %v1366_v54 = vsel %vm1365_vm8, %v1364_v33, 0 }
 0x491   :  { %v3800_v51 = vmul.f32 %v3799_v60, %v3797_v19  ;;  %v4985_v41 = vsel %vm4984_vm11, 1, %v5481_v27  ;;  %v5007_v26 = vsel %vm5006_vm10, 1, %v5481_v27  ;;  %v4977_v35 = vshrl.u32 %v4973_v1, 16 }
 0x492   :  { %v4987_v56 = vadd.s32 %v4985_v41, %v4983_v17  ;;  %v5009_v23 = vadd.s32 %v5007_v26, %v5005_v58  ;;  %v1368_v31 = vand.u32 31, %v1366_v54  ;;  %vm8649_vm14 = vcmp.le.f32.partialorder %v3679_v15, 0.7853982 }
 0x493   :  { %v3801_v39 = vxor.u32 2147483648, %v3800_v51  ;;  %v4979_v24 = vshrl.u32 %v4974_v45, 16  ;;  %v5001_v14 = vshrl.u32 %v4996_v28, 16  ;;  %v3806_v15 = vsel %vm8649_vm14, 0, %v8631_v3 }
 0x494   :  { %v4988_v5 = vadd.s32 %v4987_v56, %v4977_v35  ;;  %v5010_v46 = vadd.s32 %v5009_v23, %v4999_v57  ;;  %v8658_v52 = vsub.s32 32, %v1368_v31  ;;  %v5012_v50 = vmul.u32 %v8559_v36, %v8635_v7 }
 0x495   :  { %v3802_v61 = vsel %vm3681_vm3, %v3801_v39, %v3800_v51  ;;  %v1361_v0 = vand.u32 8388607, %v1354_v49  ;;  %v8669_v20 = vadd.s32 %v5004_v22, %v5000_v63  ;;  %v8671_v13 = vshrl.u32 %v1366_v54, 5 }
 0x496   :  { %v3805_v55 = vsel %vm8649_vm14, %v8340_v47, %v3802_v61  ;;  %v8667_v25 = vadd.s32 %v4988_v5, %v4979_v24  ;;  %v5011_v32 = vadd.s32 %v5010_v46, %v5001_v14  ;;  %v1374_v28 = vshll.u32 %v5476_v6, %v1368_v31 }
 0x497   :  { %v3807_v30 = vmul.f32 %v3805_v55, %v3805_v55  ;;  %v1377_v33 = vshll.u32 %v5477_v8, %v1368_v31  ;;  %v1375_v3 = vshrl.u32 %v5477_v8, %v8658_v52  ;;  %v1378_v7 = vshrl.u32 %v5478_v10, %v8658_v52 }
 0x498   :  { %vm5014_vm12 = vc.u32 %v8667_v25, %v8669_v20  ;;  %v5015_v36 = vadd.s32 1, %v5011_v32  ;;  %v1371_v18 = vshll.u32 %v5475_v4, %v1368_v31  ;;  %v1372_v34 = vshrl.u32 %v5476_v6, %v8658_v52 }
 0x499   :  { %v3808_v11 = vmul.f32 -0.001358992, %v3807_v30  ;;  %v3815_v44 = vmul.f32 -0.00019511016, %v3807_v30  ;;  %v1380_v53 = vshll.u32 %v5478_v10, %v1368_v31  ;;  %v1381_v60 = vshrl.u32 %v5479_v12, %v8658_v52 }
 0x49a   :  { %v5016_v37 = vsel %vm5014_vm12, %v5015_v36, %v5011_v32  ;;  %v1383_v40 = vshll.u32 %v5479_v12, %v1368_v31  ;;  %v1384_v43 = vshrl.u32 %v5480_v21, %v8658_v52  ;;  %v3823_v63 = vadd.s32 3, %v3806_v15 }
 0x49b   :  { %v3809_v1 = vadd.f32 0.041655596, %v3808_v11  ;;  %v3816_v45 = vadd.f32 0.008332121, %v3815_v44  ;;  %v5017_v19 = vadd.s32 %v5016_v37, %v5012_v50  ;;  %v8690_v42 = vor.u32 %v1375_v3, %v1374_v28 }
 0x49c   :  { %v1379_v2 = vor.u32 %v1378_v7, %v1377_v33  ;;  %v1382_v22 = vor.u32 %v1381_v60, %v1380_v53  ;;  %v1385_v17 = vor.u32 %v1384_v43, %v1383_v40  ;;  %v1362_v57 = vor.u32 8388608, %v1361_v0 }
 0x49d   :  { %v3810_v59 = vmul.f32 %v3809_v1, %v3807_v30  ;;  %v3817_v9 = vmul.f32 %v3816_v45, %v3807_v30  ;;  %v5018_v58 = vadd.s32 536870912, %v5017_v19  ;;  %v8692_v39 = vor.u32 %v1372_v34, %v1371_v18  ;;  %v218_v18 = vpop.f32.mrf.mxu1 }
 0x49e   :  { %vm1386_vm13 = vcmp.lt.s32.totalorder %v8671_v13, 1  ;;  %vm1389_vm15 = vcmp.lt.s32.totalorder %v8671_v13, 4  ;;  %vm1388_vm1 = vcmp.lt.s32.totalorder %v8671_v13, 3  ;;  %v3824_v35 = vand.u32 3, %v3823_v63 }
 0x49f   :  { %v3811_v51 = vadd.f32 -0.4999988, %v3810_v59  ;;  %v3818_v38 = vadd.f32 -0.16666654, %v3817_v9  ;;  %v8696_v54 = vshrl.u32 %v5018_v58, 30  ;;  %v1398_v24 = vsel %vm1386_vm13, %v8690_v42, %v1379_v2 }
 0x4a0   :  { %v1395_v56 = vsel %vm1389_vm15, %v1382_v22, 920167782  ;;  %v1399_v23 = vsel %vm1389_vm15, %v1385_v17, 1326507024  ;;  %v1394_v14 = vsel %vm1386_vm13, %v8692_v39, %v8690_v42  ;;  %v8715_v15 = vshll.u32 %v1362_v57, 8 }
 0x4a1   :  { %v3812_v41 = vmul.f32 %v3811_v51, %v3807_v30  ;;  %v3819_v26 = vmul.f32 %v3818_v38, %v3807_v30  ;;  %v5020_v61 = vshll.u32 %v8696_v54, 30  ;;  %v1396_v5 = vsel %vm1388_vm1, %v1379_v2, %v1395_v56 }
 0x4a2   :  { %v1400_v46 = vsel %vm1388_vm1, %v1382_v22, %v1399_v23  ;;  %vm1387_vm0 = vcmp.lt.s32.totalorder %v8671_v13, 2  ;;  %vm3825_vm2 = vcmp.lt.s32.totalorder %v3824_v35, 2  ;;  %vm3826_vm3 = vcmp.eq.s32.totalorder %v3824_v35, 0 }
 0x4a3   :  { %v3813_v31 = vadd.f32 1.0, %v3812_v41  ;;  %v3820_v62 = vadd.f32 1.0, %v3819_v26  ;;  %v5021_v0 = vsub.s32 %v5017_v19, %v5020_v61  ;;  %v1401_v32 = vsel %vm1387_vm0, %v1398_v24, %v1400_v46 }
 0x4a4   :  { %v1397_v28 = vsel %vm1387_vm0, %v1394_v14, %v1396_v5  ;;  %vm3829_vm4 = vcmp.eq.s32.totalorder %v3824_v35, 2  ;;  %v1403_v33 = vand.u32 65535, %v8715_v15  ;;  %v1405_v36 = vand.u32 65535, %v1401_v32 }
 0x4a5   :  { %v3821_v30 = vmul.f32 %v3820_v62, %v3805_v55  ;;  %v3830_v50 = vxor.u32 2147483648, %v3813_v31  ;;  %vm5022_vm5 = vcmp.lt.s32.totalorder %v5021_v0, 0  ;;  %v5023_v44 = vsub.s32 0, %v5021_v0 }
 0x4a6   :  { %v1406_v55 = vshrl.u32 %v1401_v32, 16  ;;  %v1404_v45 = vshrl.u32 %v8715_v15, 16  ;;  %vm3822_vm6 = vweird.f32 %v8340_v47  ;;  %v1428_v53 = vshrl.u32 %v1397_v28, 16  ;;  %v8733_v47 = vld [vmem:[%s9088_s2] ss:$0 sm:$0xff]  ;;  %s5482_s2 = smov [#allocation2]  }
 0x4a7   :  { %v3827_v11 = vxor.u32 2147483648, %v3821_v30  ;;  %v3831_v7 = vsel %vm3829_vm4, %v3830_v50, %v3821_v30  ;;  %v5024_v1 = vsel %vm5022_vm5, %v5023_v44, %v5021_v0  ;;  %v1427_v9 = vand.u32 65535, %v1397_v28  ;;  %s5265_s23 = sshll.u32 %s5482_s2, 4  ;;  %s5266_s23 = int_to_ptr.vmem [resolvable:$true] %s5265_s23 }
 0x4a8   :  { %v5025_v37 = vclz %v5024_v1  ;;  %v1408_v40 = vmul.u32 %v1406_v55, %v1403_v33  ;;  %v1409_v59 = vmul.u32 %v1405_v36, %v1404_v45  ;;  %v5013_v19 = vadd.s32 %v8669_v20, %v8667_v25 }
 0x4a9   :  { %v3828_v3 = vsel %vm3826_vm3, %v3813_v31, %v3827_v11  ;;  %v1370_v63 = vshrl.u32 %v5475_v4, %v8658_v52  ;;  %v8736_v22 = vadd.f32 %v8733_v47, %v218_v18  ;;  %v1391_v51 = vsel %vm1389_vm15, %v1379_v2, 2102212464 }
 0x4aa   :  { %v3832_v34 = vsel %vm3825_vm2, %v3828_v3, %v3831_v7  ;;  %v5402_v43 = vadd.s32 4294967294, %v5025_v37  ;;  %v1407_v38 = vmul.u32 %v1405_v36, %v1403_v33  ;;  %v1410_v58 = vmul.u32 %v1406_v55, %v1404_v45 }
 0x4ab   :  { %v3833_v60 = vsel %vm3822_vm6, nan, %v3832_v34  ;;  %v1411_v17 = vshll.u32 %v1408_v40, 16  ;;  %v1412_v25 = vshrl.u32 %v1408_v40, 16  ;;  %v1413_v20 = vshll.u32 %v1409_v59, 16 }
 0x4ac   :  { %5251 = vst [vmem:[#allocation2 + $0xb0] sm:$0xff] %v3833_v60  ;;  %vm5403_vm7 = vcmp.lt.s32.totalorder %v5402_v43, 0  ;;  %v1430_v57 = vmul.u32 %v1428_v53, %v1403_v33  ;;  %vm4921_vm9 = vcmp.lt.s32.totalorder %v8510_v48, 0  ;;  %v1431_v26 = vmul.u32 %v1427_v9, %v1404_v45 }
 0x4ad   :  { %v5028_v52 = vsel %vm5403_vm7, 0, %v5402_v43  ;;  %vm1415_vm8 = vc.u32 %v1407_v38, %v1411_v17  ;;  %v1417_v41 = vadd.s32 %v1411_v17, %v1407_v38  ;;  %v1429_v31 = vmul.u32 %v1427_v9, %v1403_v33 }
 0x4ae   :  { %v5029_v35 = vsub.s32 32, %v5028_v52  ;;  %v5033_v56 = vsub.s32 4294967266, %v5028_v52  ;;  %v1416_v23 = vsel %vm1415_vm8, 1, %v5481_v27  ;;  %v1432_v2 = vmul.u32 %v1428_v53, %v1404_v45 }
 0x4af   :  { %v1418_v62 = vadd.s32 %v1416_v23, %v1410_v58  ;;  %vm1419_vm11 = vc.u32 %v1417_v41, %v1413_v20  ;;  %v1433_v61 = vshll.u32 %v1430_v57, 16  ;;  %v5030_v24 = vshll.u32 %v5021_v0, %v5028_v52 }
 0x4b0   :  { %v5031_v14 = vshrl.u32 %v5013_v19, %v5029_v35  ;;  %v5034_v5 = vadd.s32 127, %v5033_v56  ;;  %v1420_v46 = vsel %vm1419_vm11, 1, %v5481_v27  ;;  %v1435_v50 = vshll.u32 %v1431_v26, 16 }
 0x4b1   :  { %v1422_v30 = vadd.s32 %v1420_v46, %v1418_v62  ;;  %vm1437_vm10 = vc.u32 %v1429_v31, %v1433_v61  ;;  %v1439_v32 = vadd.s32 %v1433_v61, %v1429_v31  ;;  %v5043_v28 = vsub.s32 4, %v8696_v54 }
 0x4b2   :  { %v5032_v11 = vor.u32 %v5031_v14, %v5030_v24  ;;  %v5035_v44 = vshll.u32 %v5034_v5, 23  ;;  %v1438_v36 = vsel %vm1437_vm10, 1, %v5481_v27  ;;  %v2594_v3 = vand.u32 2147483647, %v8736_v22 }
 0x4b3   :  { %v1423_v33 = vadd.s32 %v1422_v30, %v1412_v25  ;;  %v1440_v55 = vadd.s32 %v1438_v36, %v1432_v2  ;;  %vm1441_vm14 = vc.u32 %v1439_v32, %v1435_v50  ;;  %v1390_v7 = vsel %vm1386_vm13, %v1370_v63, %v8692_v39 }
 0x4b4   :  { %v5036_v0 = vor.u32 4788187, %v5035_v44  ;;  %v1414_v1 = vshrl.u32 %v1409_v59, 16  ;;  %v1442_v45 = vsel %vm1441_vm14, 1, %v5481_v27  ;;  %v1392_v18 = vsel %vm1388_vm1, %v8690_v42, %v1391_v51  ;;  %v242_v42 = vpop.f32.mrf.mxu2 }
 0x4b5   :  { %v1434_v34 = vshrl.u32 %v1430_v57, 16  ;;  %v1444_v37 = vadd.s32 %v1442_v45, %v1440_v55  ;;  %v2597_v53 = vand.u32 2139095040, %v8736_v22  ;;  %v5039_v40 = vcvt.s32.f32 %v5032_v11 }
 0x4b6   :  { %v5037_v60 = vand.u32 2147483647, %v5036_v0  ;;  %v5044_v9 = vsel %vm4921_vm9, %v5043_v28, %v8696_v54  ;;  %v1424_v19 = vadd.s32 %v1423_v33, %v1414_v1  ;;  %v1436_v43 = vshrl.u32 %v1431_v26, 16 }
 0x4b7   :  { %v1445_v39 = vadd.s32 %v1444_v37, %v1434_v34  ;;  %v2598_v59 = vshrl.u32 %v2597_v53, 23  ;;  %v2601_v63 = vand.u32 8388607, %v2594_v3  ;;  %v1443_v58 = vadd.s32 %v1439_v32, %v1435_v50 }
 0x4b8   :  { %v5040_v38 = vmul.f32 %v5039_v40, %v5037_v60  ;;  %vm4920_vm12 = vcmp.le.f32.partialorder %v4919_v29, 0.7853982  ;;  %v1393_v51 = vsel %vm1387_vm0, %v1390_v7, %v1392_v18  ;;  %v8764_v26 = vadd.f32 %v8733_v47, %v242_v42 }
 0x4b9   :  { %v1446_v17 = vadd.s32 %v1445_v39, %v1436_v43  ;;  %v5356_v25 = vadd.s32 4294967169, %v2598_v59  ;;  %v5046_v54 = vsel %vm4920_vm12, 0, %v5044_v9  ;;  %vm1449_vm13 = vc.u32 %v1424_v19, %v1443_v58 }
 0x4ba   :  { %v5041_v20 = vxor.u32 2147483648, %v5040_v38  ;;  %v2602_v52 = vor.u32 8388608, %v2601_v63  ;;  %v1447_v56 = vmul.u32 %v8715_v15, %v1393_v51  ;;  %v5063_v13 = vadd.s32 3, %v5046_v54 }
 0x4bb   :  { %v1450_v57 = vadd.s32 1, %v1446_v17  ;;  %v2604_v41 = vadd.s32 1, %v5356_v25  ;;  %v3837_v14 = vand.u32 2139095040, %v8764_v26  ;;  %v8775_v44 = vadd.s32 %v1443_v58, %v1424_v19 }
 0x4bc   :  { %v5042_v35 = vsel %vm4921_vm9, %v5041_v20, %v5040_v38  ;;  %v8770_v24 = vshll.u32 %v2602_v52, 8  ;;  %v8773_v50 = vand.u32 3, %v5063_v13  ;;  %v3834_v55 = vand.u32 2147483647, %v8764_v26 }
 0x4bd   :  { %v5045_v29 = vsel %vm4920_vm12, %v8510_v48, %v5042_v35  ;;  %v1451_v23 = vsel %vm1449_vm13, %v1450_v57, %v1446_v17  ;;  %vm2605_vm15 = vcmp.gt.s32.totalorder %v2604_v41, 0  ;;  %v3838_v0 = vshrl.u32 %v3837_v14, 23 }
 0x4be   :  { %v5047_v31 = vmul.f32 %v5045_v29, %v5045_v29  ;;  %v1452_v62 = vadd.s32 %v1451_v23, %v1447_v56  ;;  %v2606_v2 = vsel %vm2605_vm15, %v2604_v41, 0  ;;  %v8779_v33 = vand.u32 65535, %v8770_v24 }
 0x4bf   :  { %v2608_v61 = vand.u32 31, %v2606_v2  ;;  %vm1356_vm1 = vcmp.lt.s32.totalorder %v8540_v16, 0  ;;  %vm5069_vm0 = vcmp.eq.s32.totalorder %v8773_v50, 2  ;;  %v8791_v43 = vshrl.u32 %v2606_v2, 5 }
 0x4c0   :  { %v5048_v5 = vmul.f32 -0.001358992, %v5047_v31  ;;  %v5055_v46 = vmul.f32 -0.00019511016, %v5047_v31  ;;  %v1453_v30 = vadd.s32 536870912, %v1452_v62  ;;  %vm5066_vm2 = vcmp.eq.s32.totalorder %v8773_v50, 0 }
 0x4c1   :  { %v2609_v32 = vsub.s32 32, %v2608_v61  ;;  %v2611_v36 = vshll.u32 %v5475_v4, %v2608_v61  ;;  %v2614_v18 = vshll.u32 %v5476_v6, %v2608_v61  ;;  %v2620_v53 = vshll.u32 %v5478_v10, %v2608_v61 }
 0x4c2   :  { %v5049_v15 = vadd.f32 0.041655596, %v5048_v5  ;;  %v5056_v11 = vadd.f32 0.008332121, %v5055_v46  ;;  %v1454_v28 = vshrl.u32 %v1453_v30, 30  ;;  %v2617_v39 = vshll.u32 %v5477_v8, %v2608_v61 }
 0x4c3   :  { %v2612_v34 = vshrl.u32 %v5476_v6, %v2609_v32  ;;  %v2615_v37 = vshrl.u32 %v5477_v8, %v2609_v32  ;;  %v2621_v60 = vshrl.u32 %v5479_v12, %v2609_v32  ;;  %v2618_v59 = vshrl.u32 %v5478_v10, %v2609_v32 }
 0x4c4   :  { %v5050_v7 = vmul.f32 %v5049_v15, %v5047_v31  ;;  %v5057_v1 = vmul.f32 %v5056_v11, %v5047_v31  ;;  %v1455_v45 = vshll.u32 %v1454_v28, 30  ;;  %v2623_v63 = vshll.u32 %v5479_v12, %v2608_v61 }
 0x4c5   :  { %v2624_v38 = vshrl.u32 %v5480_v21, %v2609_v32  ;;  %vm5065_vm3 = vcmp.lt.s32.totalorder %v8773_v50, 2  ;;  %vm5062_vm4 = vweird.f32 %v8510_v48  ;;  %v1478_v17 = vsub.s32 4, %v1454_v28 }
 0x4c6   :  { %v5051_v40 = vadd.f32 -0.4999988, %v5050_v7  ;;  %v5058_v9 = vadd.f32 -0.16666654, %v5057_v1  ;;  %v8789_v19 = vsub.s32 %v1452_v62, %v1455_v45  ;;  %v2613_v25 = vor.u32 %v2612_v34, %v2611_v36 }
 0x4c7   :  { %v2616_v20 = vor.u32 %v2615_v37, %v2614_v18  ;;  %v2622_v54 = vor.u32 %v2621_v60, %v2620_v53  ;;  %vm2626_vm6 = vcmp.lt.s32.totalorder %v8791_v43, 1  ;;  %v2619_v56 = vor.u32 %v2618_v59, %v2617_v39 }
 0x4c8   :  { %v5052_v58 = vmul.f32 %v5051_v40, %v5047_v31  ;;  %v5059_v42 = vmul.f32 %v5058_v9, %v5047_v31  ;;  %vm1457_vm5 = vcmp.lt.s32.totalorder %v8789_v19, 0  ;;  %v1458_v51 = vsub.s32 0, %v8789_v19 }
 0x4c9   :  { %vm2629_vm7 = vcmp.lt.s32.totalorder %v8791_v43, 4  ;;  %v2644_v13 = vshrl.u32 %v8770_v24, 16  ;;  %vm8808_vm9 = vcmp.le.f32.partialorder %v1354_v49, 0.7853982  ;;  %v2625_v2 = vor.u32 %v2624_v38, %v2623_v63 }
 0x4ca   :  { %v5053_v57 = vadd.f32 1.0, %v5052_v58  ;;  %v5060_v52 = vadd.f32 1.0, %v5059_v42  ;;  %v1459_v41 = vsel %vm1457_vm5, %v1458_v51, %v8789_v19  ;;  %vm2628_vm8 = vcmp.lt.s32.totalorder %v8791_v43, 3 }
 0x4cb   :  { %v1460_v35 = vclz %v1459_v41  ;;  %v2610_v14 = vshrl.u32 %v5475_v4, %v2609_v32  ;;  %v2634_v5 = vsel %vm2626_vm6, %v2613_v25, %v2616_v20  ;;  %v5380_v46 = vadd.s32 4294967169, %v3838_v0 }
 0x4cc   :  { %v5061_v23 = vmul.f32 %v5060_v52, %v5045_v29  ;;  %v5070_v31 = vxor.u32 2147483648, %v5053_v57  ;;  %v8818_v29 = vsel %vm1356_vm1, %v1478_v17, %v1454_v28  ;;  %vm2627_vm11 = vcmp.lt.s32.totalorder %v8791_v43, 2 }
 0x4cd   :  { %v5333_v61 = vadd.s32 4294967294, %v1460_v35  ;;  %v2635_v49 = vsel %vm2629_vm7, %v2622_v54, 920167782  ;;  %v2638_v11 = vsel %vm2626_vm6, %v2616_v20, %v2619_v56  ;;  %v2639_v7 = vsel %vm2629_vm7, %v2625_v2, 1326507024 }
 0x4ce   :  { %v5067_v30 = vxor.u32 2147483648, %v5061_v23  ;;  %v5071_v15 = vsel %vm5069_vm0, %v5070_v31, %v5061_v23  ;;  %v2636_v32 = vsel %vm2628_vm8, %v2619_v56, %v2635_v49  ;;  %v2631_v34 = vsel %vm2629_vm7, %v2619_v56, 2102212464 }
 0x4cf   :  { %vm5334_vm10 = vcmp.lt.s32.totalorder %v5333_v61, 0  ;;  %v2637_v0 = vsel %vm2627_vm11, %v2634_v5, %v2636_v32  ;;  %v2640_v53 = vsel %vm2628_vm8, %v2622_v54, %v2639_v7  ;;  %v3844_v48 = vadd.s32 1, %v5380_v46 }
 0x4d0   :  { %v5068_v36 = vsel %vm5066_vm2, %v5053_v57, %v5067_v30  ;;  %v1463_v28 = vsel %vm5334_vm10, 0, %v5333_v61  ;;  %v2667_v60 = vand.u32 65535, %v2637_v0  ;;  %v2668_v40 = vshrl.u32 %v2637_v0, 16 }
 0x4d1   :  { %v5072_v1 = vsel %vm5065_vm3, %v5068_v36, %v5071_v15  ;;  %v1464_v45 = vsub.s32 32, %v1463_v28  ;;  %v1468_v18 = vsub.s32 4294967266, %v1463_v28  ;;  %v1465_v9 = vshll.u32 %v8789_v19, %v1463_v28 }
 0x4d2   :  { %v5073_v37 = vsel %vm5062_vm4, nan, %v5072_v1  ;;  %v2641_v59 = vsel %vm2627_vm11, %v2638_v11, %v2640_v53  ;;  %v2670_v58 = vmul.u32 %v2668_v40, %v8779_v33  ;;  %v1481_v17 = vsel %vm8808_vm9, 0, %v8818_v29 }
 0x4d3   :  { %5259 = vst [vmem:[#allocation2 + $0xf0] sm:$0xff] %v5073_v37  ;;  %v1466_v39 = vshrl.u32 %v8775_v44, %v1464_v45  ;;  %v1469_v50 = vadd.s32 127, %v1468_v18  ;;  %v2645_v63 = vand.u32 65535, %v2641_v59  ;;  %v2646_v38 = vshrl.u32 %v2641_v59, 16 }
 0x4d4   :  { %v2671_v54 = vmul.u32 %v2667_v60, %v2644_v13  ;;  %v2630_v19 = vsel %vm2626_vm6, %v2610_v14, %v2613_v25  ;;  %v2632_v44 = vsel %vm2628_vm8, %v2616_v20, %v2631_v34  ;;  %v2669_v35 = vmul.u32 %v2667_v60, %v8779_v33 }
 0x4d5   :  { %v1467_v42 = vor.u32 %v1466_v39, %v1465_v9  ;;  %v1470_v51 = vshll.u32 %v1469_v50, 23  ;;  %v2648_v57 = vmul.u32 %v2646_v38, %v8779_v33  ;;  %v2649_v52 = vmul.u32 %v2645_v63, %v2644_v13 }
 0x4d6   :  { %v2672_v56 = vmul.u32 %v2668_v40, %v2644_v13  ;;  %v2673_v23 = vshll.u32 %v2670_v58, 16  ;;  %v2647_v2 = vmul.u32 %v2645_v63, %v8779_v33  ;;  %v2650_v61 = vmul.u32 %v2646_v38, %v2644_v13 }
 0x4d7   :  { %v1471_v41 = vor.u32 4788187, %v1470_v51  ;;  %v1474_v31 = vcvt.s32.f32 %v1467_v42  ;;  %v2651_v5 = vshll.u32 %v2648_v57, 16  ;;  %v2653_v30 = vshll.u32 %v2649_v52, 16 }
 0x4d8   :  { %v2675_v29 = vshll.u32 %v2671_v54, 16  ;;  %vm2677_vm14 = vc.u32 %v2669_v35, %v2673_v23  ;;  %v2679_v14 = vadd.s32 %v2673_v23, %v2669_v35  ;;  %vm3845_vm13 = vcmp.gt.s32.totalorder %v3844_v48, 0 }
 0x4d9   :  { %v1472_v46 = vand.u32 2147483647, %v1471_v41  ;;  %vm2655_vm12 = vc.u32 %v2647_v2, %v2651_v5  ;;  %v2657_v25 = vadd.s32 %v2651_v5, %v2647_v2  ;;  %v2678_v20 = vsel %vm2677_vm14, 1, %v5481_v27 }
 0x4da   :  { %v2656_v15 = vsel %vm2655_vm12, 1, %v5481_v27  ;;  %v2680_v32 = vadd.s32 %v2678_v20, %v2672_v56  ;;  %v2674_v36 = vshrl.u32 %v2670_v58, 16  ;;  %vm2681_vm0 = vc.u32 %v2679_v14, %v2675_v29 }
 0x4db   :  { %v1475_v49 = vmul.f32 %v1474_v31, %v1472_v46  ;;  %v2658_v11 = vadd.s32 %v2656_v15, %v2650_v61  ;;  %vm2659_vm15 = vc.u32 %v2657_v25, %v2653_v30  ;;  %v2682_v28 = vsel %vm2681_vm0, 1, %v5481_v27 }
 0x4dc   :  { %v2660_v13 = vsel %vm2659_vm15, 1, %v5481_v27  ;;  %v3846_v0 = vsel %vm3845_vm13, %v3844_v48, 0  ;;  %v2652_v7 = vshrl.u32 %v2648_v57, 16  ;;  %v2684_v45 = vadd.s32 %v2682_v28, %v2680_v32 }
 0x4dd   :  { %v1476_v33 = vxor.u32 2147483648, %v1475_v49  ;;  %v2662_v1 = vadd.s32 %v2660_v13, %v2658_v11  ;;  %v3848_v18 = vand.u32 31, %v3846_v0  ;;  %v2633_v37 = vsel %vm2627_vm11, %v2630_v19, %v2632_v44 }
 0x4de   :  { %v2654_v53 = vshrl.u32 %v2649_v52, 16  ;;  %v2676_v60 = vshrl.u32 %v2671_v54, 16  ;;  %v2685_v39 = vadd.s32 %v2684_v45, %v2674_v36  ;;  %v1498_v63 = vadd.s32 3, %v1481_v17 }
 0x4df   :  { %v1477_v34 = vsel %vm1356_vm1, %v1476_v33, %v1475_v49  ;;  %v2663_v9 = vadd.s32 %v2662_v1, %v2652_v7  ;;  %v8869_v50 = vsub.s32 32, %v3848_v18  ;;  %v3841_v38 = vand.u32 8388607, %v3834_v55 }
 0x4e0   :  { %v1480_v40 = vsel %vm8808_vm9, %v8540_v16, %v1477_v34  ;;  %v8875_v48 = vadd.s32 %v2679_v14, %v2675_v29  ;;  %v2686_v43 = vadd.s32 %v2685_v39, %v2676_v60  ;;  %v2687_v42 = vmul.u32 %v8770_v24, %v2633_v37 }
 0x4e1   :  { %v1482_v59 = vmul.f32 %v1480_v40, %v1480_v40  ;;  %v8873_v58 = vadd.s32 %v2663_v9, %v2654_v53  ;;  %v8878_v62 = vshrl.u32 %v3846_v0, 5  ;;  %v3854_v19 = vshll.u32 %v5476_v6, %v3848_v18 }
 0x4e2   :  { %v2690_v17 = vadd.s32 1, %v2686_v43  ;;  %v3855_v44 = vshrl.u32 %v5477_v8, %v8869_v50  ;;  %v3858_v57 = vshrl.u32 %v5478_v10, %v8869_v50  ;;  %v3852_v24 = vshrl.u32 %v5476_v6, %v8869_v50 }
 0x4e3   :  { %v1483_v51 = vmul.f32 -0.001358992, %v1482_v59  ;;  %v1490_v54 = vmul.f32 -0.00019511016, %v1482_v59  ;;  %vm2689_vm1 = vc.u32 %v8873_v58, %v8875_v48  ;;  %v3857_v35 = vshll.u32 %v5477_v8, %v3848_v18 }
 0x4e4   :  { %v2691_v56 = vsel %vm2689_vm1, %v2690_v17, %v2686_v43  ;;  %v3860_v23 = vshll.u32 %v5478_v10, %v3848_v18  ;;  %v3861_v31 = vshrl.u32 %v5479_v12, %v8869_v50  ;;  %v3863_v2 = vshll.u32 %v5479_v12, %v3848_v18 }
 0x4e5   :  { %v1484_v52 = vadd.f32 0.041655596, %v1483_v51  ;;  %v1491_v41 = vadd.f32 0.008332121, %v1490_v54  ;;  %v2692_v46 = vadd.s32 %v2691_v56, %v2687_v42  ;;  %v3864_v30 = vshrl.u32 %v5480_v21, %v8869_v50 }
 0x4e6   :  { %v3851_v29 = vshll.u32 %v5475_v4, %v3848_v18  ;;  %v8897_v25 = vor.u32 %v3855_v44, %v3854_v19  ;;  %v8899_v20 = vor.u32 %v3858_v57, %v3857_v35  ;;  %v3862_v14 = vor.u32 %v3861_v31, %v3860_v23  ;;  %v266_v35 = vpop.f32.mrf.mxu3 }
 0x4e7   :  { %v1485_v61 = vmul.f32 %v1484_v52, %v1482_v59  ;;  %v1492_v5 = vmul.f32 %v1491_v41, %v1482_v59  ;;  %v2693_v32 = vadd.s32 536870912, %v2692_v46  ;;  %v3865_v11 = vor.u32 %v3864_v30, %v3863_v2 }
 0x4e8   :  { %v1499_v36 = vand.u32 3, %v1498_v63  ;;  %v3842_v33 = vor.u32 8388608, %v3841_v38  ;;  %v8901_v13 = vor.u32 %v3852_v24, %v3851_v29  ;;  %vm3869_vm2 = vcmp.lt.s32.totalorder %v8878_v62, 4 }
 0x4e9   :  { %v1486_v49 = vadd.f32 -0.4999988, %v1485_v61  ;;  %v1493_v15 = vadd.f32 -0.16666654, %v1492_v5  ;;  %v8903_v7 = vshrl.u32 %v2693_v32, 30  ;;  %vm3866_vm3 = vcmp.lt.s32.totalorder %v8878_v62, 1 }
 0x4ea   :  { %vm3868_vm5 = vcmp.lt.s32.totalorder %v8878_v62, 3  ;;  %v3875_v1 = vsel %vm3869_vm2, %v3862_v14, 920167782  ;;  %v3879_v45 = vsel %vm3869_vm2, %v3865_v11, 1326507024  ;;  %v3878_v53 = vsel %vm3866_vm3, %v8897_v25, %v8899_v20 }
 0x4eb   :  { %v1487_v28 = vmul.f32 %v1486_v49, %v1482_v59  ;;  %v1494_v0 = vmul.f32 %v1493_v15, %v1482_v59  ;;  %v2695_v37 = vshll.u32 %v8903_v7, 30  ;;  %v3874_v60 = vsel %vm3866_vm3, %v8901_v13, %v8897_v25 }
 0x4ec   :  { %v3876_v9 = vsel %vm3868_vm5, %v8899_v20, %v3875_v1  ;;  %v3880_v39 = vsel %vm3868_vm5, %v3862_v14, %v3879_v45  ;;  %v8926_v59 = vshll.u32 %v3842_v33, 8  ;;  %vm3867_vm4 = vcmp.lt.s32.totalorder %v8878_v62, 2 }
 0x4ed   :  { %v1488_v18 = vadd.f32 1.0, %v1487_v28  ;;  %v1495_v34 = vadd.f32 1.0, %v1494_v0  ;;  %v2696_v43 = vsub.s32 %v2692_v46, %v2695_v37  ;;  %vm1500_vm6 = vcmp.lt.s32.totalorder %v1499_v36, 2 }
 0x4ee   :  { %vm1501_vm7 = vcmp.eq.s32.totalorder %v1499_v36, 0  ;;  %v3881_v42 = vsel %vm3867_vm4, %v3878_v53, %v3880_v39  ;;  %v3877_v19 = vsel %vm3867_vm4, %v3874_v60, %v3876_v9  ;;  %vm1504_vm8 = vcmp.eq.s32.totalorder %v1499_v36, 2 }
 0x4ef   :  { %v1496_v63 = vmul.f32 %v1495_v34, %v1480_v40  ;;  %v1505_v38 = vxor.u32 2147483648, %v1488_v18  ;;  %vm2697_vm9 = vcmp.lt.s32.totalorder %v2696_v43, 0  ;;  %v2698_v54 = vsub.s32 0, %v2696_v43 }
 0x4f0   :  { %v3883_v17 = vand.u32 65535, %v8926_v59  ;;  %v3885_v44 = vand.u32 65535, %v3881_v42  ;;  %v3886_v40 = vshrl.u32 %v3881_v42, 16  ;;  %v3884_v24 = vshrl.u32 %v8926_v59, 16 }
 0x4f1   :  { %v1502_v51 = vxor.u32 2147483648, %v1496_v63  ;;  %v1506_v52 = vsel %vm1504_vm8, %v1505_v38, %v1496_v63  ;;  %v2699_v41 = vsel %vm2697_vm9, %v2698_v54, %v2696_v43  ;;  %vm1497_vm11 = vweird.f32 %v8540_v16 }
 0x4f2   :  { %v2700_v23 = vclz %v2699_v41  ;;  %v3908_v31 = vshrl.u32 %v3877_v19, 16  ;;  %v3888_v61 = vmul.u32 %v3886_v40, %v3883_v17  ;;  %v3889_v5 = vmul.u32 %v3885_v44, %v3884_v24 }
 0x4f3   :  { %v1503_v57 = vsel %vm1501_vm7, %v1488_v18, %v1502_v51  ;;  %v3907_v46 = vand.u32 65535, %v3877_v19  ;;  %v8938_v29 = vadd.f32 %v8733_v47, %v266_v35  ;;  %v2688_v14 = vadd.s32 %v8875_v48, %v8873_v58 }
 0x4f4   :  { %v1507_v56 = vsel %vm1500_vm6, %v1503_v57, %v1506_v52  ;;  %v5357_v30 = vadd.s32 4294967294, %v2700_v23  ;;  %v3887_v49 = vmul.u32 %v3885_v44, %v3883_v17  ;;  %v3890_v15 = vmul.u32 %v3886_v40, %v3884_v24 }
 0x4f5   :  { %v1508_v2 = vsel %vm1497_vm11, nan, %v1507_v56  ;;  %v3891_v32 = vshll.u32 %v3888_v61, 16  ;;  %v3892_v16 = vshrl.u32 %v3888_v61, 16  ;;  %v3893_v11 = vshll.u32 %v3889_v5, 16 }
 0x4f6   :  { %5236 = vst [vmem:[#allocation2 + $0x38] sm:$0xff] %v1508_v2  ;;  %vm5358_vm10 = vcmp.lt.s32.totalorder %v5357_v30, 0  ;;  %v3910_v36 = vmul.u32 %v3908_v31, %v3883_v17  ;;  %v3911_v0 = vmul.u32 %v3907_v46, %v3884_v24  ;;  %v3909_v47 = vmul.u32 %v3907_v46, %v3883_v17 }
 0x4f7   :  { %v2703_v33 = vsel %vm5358_vm10, 0, %v5357_v30  ;;  %vm3895_vm14 = vc.u32 %v3887_v49, %v3891_v32  ;;  %v3897_v28 = vadd.s32 %v3891_v32, %v3887_v49  ;;  %v3912_v37 = vmul.u32 %v3908_v31, %v3884_v24 }
 0x4f8   :  { %v2704_v1 = vsub.s32 32, %v2703_v33  ;;  %v2708_v45 = vsub.s32 4294967266, %v2703_v33  ;;  %v3896_v18 = vsel %vm3895_vm14, 1, %v5481_v27  ;;  %v3913_v58 = vshll.u32 %v3910_v36, 16 }
 0x4f9   :  { %v3898_v34 = vadd.s32 %v3896_v18, %v3890_v15  ;;  %vm3899_vm12 = vc.u32 %v3897_v28, %v3893_v11  ;;  %v2705_v48 = vshll.u32 %v2696_v43, %v2703_v33  ;;  %v3915_v63 = vshll.u32 %v3911_v0, 16 }
 0x4fa   :  { %v2706_v53 = vshrl.u32 %v2688_v14, %v2704_v1  ;;  %v2709_v60 = vadd.s32 127, %v2708_v45  ;;  %v3900_v9 = vsel %vm3899_vm12, 1, %v5481_v27  ;;  %vm3917_vm13 = vc.u32 %v3909_v47, %v3913_v58 }
 0x4fb   :  { %v3902_v39 = vadd.s32 %v3900_v9, %v3898_v34  ;;  %v3919_v38 = vadd.s32 %v3913_v58, %v3909_v47  ;;  %v3850_v54 = vshrl.u32 %v5475_v4, %v8869_v50  ;;  %v3918_v19 = vsel %vm3917_vm13, 1, %v5481_v27 }
 0x4fc   :  { %v2707_v42 = vor.u32 %v2706_v53, %v2705_v48  ;;  %v2710_v51 = vshll.u32 %v2709_v60, 23  ;;  %v3871_v17 = vsel %vm3869_vm2, %v8899_v20, 2102212464  ;;  %v3920_v44 = vadd.s32 %v3918_v19, %v3912_v37 }
 0x4fd   :  { %v3903_v43 = vadd.s32 %v3902_v39, %v3892_v16  ;;  %vm3921_vm15 = vc.u32 %v3919_v38, %v3915_v63  ;;  %v3870_v57 = vsel %vm3866_vm3, %v3850_v54, %v8901_v13  ;;  %v3894_v52 = vshrl.u32 %v3889_v5, 16 }
 0x4fe   :  { %v2711_v40 = vor.u32 4788187, %v2710_v51  ;;  %v3922_v41 = vsel %vm3921_vm15, 1, %v5481_v27  ;;  %v2718_v24 = vsub.s32 4, %v8903_v7  ;;  %v3914_v50 = vshrl.u32 %v3910_v36, 16 }
 0x4ff   :  { %v3924_v35 = vadd.s32 %v3922_v41, %v3920_v44  ;;  %v5077_v56 = vand.u32 2139095040, %v8938_v29  ;;  %v2714_v31 = vcvt.s32.f32 %v2707_v42  ;;  %v3872_v20 = vsel %vm3868_vm5, %v8897_v25, %v3871_v17 }
 0x500   :  { %v2712_v23 = vand.u32 2147483647, %v2711_v40  ;;  %v8959_v2 = vadd.s32 %v3903_v43, %v3894_v52  ;;  %v3916_v61 = vshrl.u32 %v3911_v0, 16  ;;  %vm2596_vm0 = vcmp.lt.s32.totalorder %v8736_v22, 0 }
 0x501   :  { %v3925_v46 = vadd.s32 %v3924_v35, %v3914_v50  ;;  %v5078_v13 = vshrl.u32 %v5077_v56, 23  ;;  %v8962_v30 = vadd.s32 %v3919_v38, %v3915_v63  ;;  %v5074_v14 = vand.u32 2147483647, %v8938_v29 }
 0x502   :  { %v2715_v5 = vmul.f32 %v2714_v31, %v2712_v23  ;;  %v2719_v49 = vsel %vm2596_vm0, %v2718_v24, %v8903_v7  ;;  %v3873_v15 = vsel %vm3867_vm4, %v3870_v57, %v3872_v20  ;;  %vm2595_vm2 = vcmp.le.f32.partialorder %v2594_v3, 0.7853982 }
 0x503   :  { %v3926_v32 = vadd.s32 %v3925_v46, %v3916_v61  ;;  %v5404_v16 = vadd.s32 4294967169, %v5078_v13  ;;  %vm3929_vm1 = vc.u32 %v8959_v2, %v8962_v30  ;;  %v2721_v28 = vsel %vm2595_vm2, 0, %v2719_v49 }
 0x504   :  { %v2716_v25 = vxor.u32 2147483648, %v2715_v5  ;;  %v3927_v0 = vmul.u32 %v8926_v59, %v3873_v15  ;;  %v5081_v7 = vand.u32 8388607, %v5074_v14  ;;  %v2738_v34 = vadd.s32 3, %v2721_v28 }
 0x505   :  { %v3930_v11 = vadd.s32 1, %v3926_v32  ;;  %v5084_v36 = vadd.s32 1, %v5404_v16  ;;  %vm2737_vm7 = vweird.f32 %v8736_v22  ;;  %vm3836_vm13 = vcmp.lt.s32.totalorder %v8764_v26, 0 }
 0x506   :  { %v2717_v33 = vsel %vm2596_vm0, %v2716_v25, %v2715_v5  ;;  %v5082_v53 = vor.u32 8388608, %v5081_v7  ;;  %v2739_v63 = vand.u32 3, %v2738_v34  ;;  %vm9044_vm15 = vcmp.le.f32.partialorder %v3834_v55, 0.7853982 }
 0x507   :  { %v2720_v62 = vsel %vm2595_vm2, %v8736_v22, %v2717_v33  ;;  %v3931_v1 = vsel %vm3929_vm1, %v3930_v11, %v3926_v32  ;;  %vm5085_vm3 = vcmp.gt.s32.totalorder %v5084_v36, 0 }
 0x508   :  { %v2722_v45 = vmul.f32 %v2720_v62, %v2720_v62  ;;  %v3932_v18 = vadd.s32 %v3931_v1, %v3927_v0  ;;  %v5086_v47 = vsel %vm5085_vm3, %v5084_v36, 0  ;;  %v8981_v54 = vshll.u32 %v5082_v53, 8 }
 0x509   :  { %v5088_v37 = vand.u32 31, %v5086_v47  ;;  %v8983_v19 = vshrl.u32 %v5086_v47, 5  ;;  %vm2741_vm5 = vcmp.eq.s32.totalorder %v2739_v63, 0  ;;  %vm2740_vm4 = vcmp.lt.s32.totalorder %v2739_v63, 2 }
 0x50a   :  { %v2723_v58 = vmul.f32 -0.001358992, %v2722_v45  ;;  %v2730_v3 = vmul.f32 -0.00019511016, %v2722_v45  ;;  %v3933_v48 = vadd.s32 536870912, %v3932_v18  ;;  %vm2744_vm9 = vcmp.eq.s32.totalorder %v2739_v63, 2 }
 0x50b   :  { %v8976_v60 = vsub.s32 32, %v5088_v37  ;;  %v5091_v41 = vshll.u32 %v5475_v4, %v5088_v37  ;;  %v5094_v24 = vshll.u32 %v5476_v6, %v5088_v37  ;;  %v5100_v35 = vshll.u32 %v5478_v10, %v5088_v37 }
 0x50c   :  { %v2724_v9 = vadd.f32 0.041655596, %v2723_v58  ;;  %v2731_v59 = vadd.f32 0.008332121, %v2730_v3  ;;  %v8978_v39 = vshrl.u32 %v3933_v48, 30  ;;  %v5103_v15 = vshll.u32 %v5479_v12, %v5088_v37 }
 0x50d   :  { %v5092_v17 = vshrl.u32 %v5476_v6, %v8976_v60  ;;  %v5095_v43 = vshrl.u32 %v5477_v8, %v8976_v60  ;;  %v5101_v44 = vshrl.u32 %v5479_v12, %v8976_v60  ;;  %v5098_v50 = vshrl.u32 %v5478_v10, %v8976_v60 }
 0x50e   :  { %v2725_v38 = vmul.f32 %v2724_v9, %v2722_v45  ;;  %v2732_v42 = vmul.f32 %v2731_v59, %v2722_v45  ;;  %v3935_v51 = vshll.u32 %v8978_v39, 30  ;;  %v5104_v56 = vshrl.u32 %v5480_v21, %v8976_v60 }
 0x50f   :  { %v8999_v61 = vor.u32 %v5092_v17, %v5091_v41  ;;  %v9001_v46 = vor.u32 %v5095_v43, %v5094_v24  ;;  %v5097_v6 = vshll.u32 %v5477_v8, %v5088_v37  ;;  %v5102_v13 = vor.u32 %v5101_v44, %v5100_v35 }
 0x510   :  { %v2726_v40 = vadd.f32 -0.4999988, %v2725_v38  ;;  %v2733_v57 = vadd.f32 -0.16666654, %v2732_v42  ;;  %v3936_v52 = vsub.s32 %v3932_v18, %v3935_v51  ;;  %v3928_v21 = vadd.s32 %v8962_v30, %v8959_v2 }
 0x511   :  { %v9007_v16 = vor.u32 %v5098_v50, %v5097_v6  ;;  %v5105_v36 = vor.u32 %v5104_v56, %v5103_v15  ;;  %vm5106_vm8 = vcmp.lt.s32.totalorder %v8983_v19, 1  ;;  %vm5109_vm11 = vcmp.lt.s32.totalorder %v8983_v19, 4 }
 0x512   :  { %v2727_v23 = vmul.f32 %v2726_v40, %v2722_v45  ;;  %v2734_v31 = vmul.f32 %v2733_v57, %v2722_v45  ;;  %vm3937_vm6 = vcmp.lt.s32.totalorder %v3936_v52, 0  ;;  %v3938_v20 = vsub.s32 0, %v3936_v52 }
 0x513   :  { %v5114_v8 = vsel %vm5106_vm8, %v8999_v61, %v9001_v46  ;;  %v5123_v12 = vand.u32 65535, %v8981_v54  ;;  %vm5107_vm10 = vcmp.lt.s32.totalorder %v8983_v19, 2  ;;  %vm5108_vm14 = vcmp.lt.s32.totalorder %v8983_v19, 3 }
 0x514   :  { %v2728_v5 = vadd.f32 1.0, %v2727_v23  ;;  %v2735_v49 = vadd.f32 1.0, %v2734_v31  ;;  %v3939_v10 = vsel %vm3937_vm6, %v3938_v20, %v3936_v52  ;;  %v5115_v2 = vsel %vm5109_vm11, %v5102_v13, 920167782 }
 0x515   :  { %v3940_v32 = vclz %v3939_v10  ;;  %v5116_v0 = vsel %vm5108_vm14, %v9007_v16, %v5115_v2  ;;  %v5118_v7 = vsel %vm5106_vm8, %v9001_v46, %v9007_v16  ;;  %v5119_v18 = vsel %vm5109_vm11, %v5105_v36, 1326507024 }
 0x516   :  { %v2736_v25 = vmul.f32 %v2735_v49, %v2720_v62  ;;  %v2745_v11 = vxor.u32 2147483648, %v2728_v5  ;;  %v5117_v45 = vsel %vm5107_vm10, %v5114_v8, %v5116_v0  ;;  %v5124_v58 = vshrl.u32 %v8981_v54, 16 }
 0x517   :  { %v5381_v33 = vadd.s32 4294967294, %v3940_v32  ;;  %v5120_v48 = vsel %vm5108_vm14, %v5102_v13, %v5119_v18  ;;  %v5147_v53 = vand.u32 65535, %v5117_v45  ;;  %v5148_v9 = vshrl.u32 %v5117_v45, 16 }
 0x518   :  { %v2742_v28 = vxor.u32 2147483648, %v2736_v25  ;;  %v2746_v30 = vsel %vm2744_vm9, %v2745_v11, %v2736_v25  ;;  %v5121_v63 = vsel %vm5107_vm10, %v5118_v7, %v5120_v48  ;;  %v5090_v32 = vshrl.u32 %v5475_v4, %v8976_v60 }
 0x519   :  { %vm5382_vm12 = vcmp.lt.s32.totalorder %v5381_v33, 0  ;;  %v5125_v51 = vand.u32 65535, %v5121_v63  ;;  %v5126_v17 = vshrl.u32 %v5121_v63, 16  ;;  %v5150_v43 = vmul.u32 %v5148_v9, %v5123_v12 }
 0x51a   :  { %v2743_v62 = vsel %vm2741_vm5, %v2728_v5, %v2742_v28  ;;  %v3943_v1 = vsel %vm5382_vm12, 0, %v5381_v33  ;;  %v5151_v57 = vmul.u32 %v5147_v53, %v5124_v58  ;;  %v5149_v50 = vmul.u32 %v5147_v53, %v5123_v12 }
 0x51b   :  { %v2747_v47 = vsel %vm2740_vm4, %v2743_v62, %v2746_v30  ;;  %v3944_v34 = vsub.s32 32, %v3943_v1  ;;  %v3948_v37 = vsub.s32 4294967266, %v3943_v1  ;;  %v3945_v59 = vshll.u32 %v3936_v52, %v3943_v1 }
 0x51c   :  { %v2748_v3 = vsel %vm2737_vm7, nan, %v2747_v47  ;;  %v5128_v22 = vmul.u32 %v5126_v17, %v5123_v12  ;;  %v5129_v41 = vmul.u32 %v5125_v51, %v5124_v58  ;;  %v5152_v35 = vmul.u32 %v5148_v9, %v5124_v58 }
 0x51d   :  { %5244 = vst [vmem:[#allocation2 + $0x78] sm:$0xff] %v2748_v3  ;;  %v3946_v38 = vshrl.u32 %v3928_v21, %v3944_v34  ;;  %v3949_v42 = vadd.s32 127, %v3948_v37  ;;  %v5153_v56 = vshll.u32 %v5150_v43, 16  ;;  %v5127_v31 = vmul.u32 %v5125_v51, %v5123_v12 }
 0x51e   :  { %v5130_v20 = vmul.u32 %v5126_v17, %v5124_v58  ;;  %v5131_v6 = vshll.u32 %v5128_v22, 16  ;;  %v5133_v5 = vshll.u32 %v5129_v41, 16  ;;  %v5155_v49 = vshll.u32 %v5151_v57, 16 }
 0x51f   :  { %v3947_v44 = vor.u32 %v3946_v38, %v3945_v59  ;;  %v3950_v40 = vshll.u32 %v3949_v42, 23  ;;  %vm5157_vm0 = vc.u32 %v5149_v50, %v5153_v56  ;;  %v5159_v55 = vadd.s32 %v5153_v56, %v5149_v50 }
 0x520   :  { %vm5135_vm1 = vc.u32 %v5127_v31, %v5131_v6  ;;  %v5137_v10 = vadd.s32 %v5131_v6, %v5127_v31  ;;  %v5158_v15 = vsel %vm5157_vm0, 1, %v5481_v27  ;;  %v5111_v36 = vsel %vm5109_vm11, %v9007_v16, 2102212464 }
 0x521   :  { %v3951_v52 = vor.u32 4788187, %v3950_v40  ;;  %v3954_v23 = vcvt.s32.f32 %v3947_v44  ;;  %v5136_v25 = vsel %vm5135_vm1, 1, %v5481_v27  ;;  %v5160_v11 = vadd.s32 %v5158_v15, %v5152_v35 }
 0x522   :  { %v5138_v33 = vadd.s32 %v5136_v25, %v5130_v20  ;;  %vm5139_vm2 = vc.u32 %v5137_v10, %v5133_v5  ;;  %vm5161_vm3 = vc.u32 %v5159_v55, %v5155_v49  ;;  %v3958_v12 = vsub.s32 4, %v8978_v39 }
 0x523   :  { %v3952_v13 = vand.u32 2147483647, %v3951_v52  ;;  %v5140_v28 = vsel %vm5139_vm2, 1, %v5481_v27  ;;  %v5162_v2 = vsel %vm5161_vm3, 1, %v5481_v27  ;;  %v5132_v30 = vshrl.u32 %v5128_v22, 16 }
 0x524   :  { %v5142_v0 = vadd.s32 %v5140_v28, %v5138_v33  ;;  %v5154_v4 = vshrl.u32 %v5150_v43, 16  ;;  %v5164_v60 = vadd.s32 %v5162_v2, %v5160_v11  ;;  %v5110_v16 = vsel %vm5106_vm8, %v5090_v32, %v8999_v61 }
 0x525   :  { %v3955_v21 = vmul.f32 %v3954_v23, %v3952_v13  ;;  %v5112_v62 = vsel %vm5108_vm14, %v9001_v46, %v5111_v36  ;;  %v5134_v1 = vshrl.u32 %v5129_v41, 16  ;;  %v5156_v18 = vshrl.u32 %v5151_v57, 16 }
 0x526   :  { %v5143_v45 = vadd.s32 %v5142_v0, %v5132_v30  ;;  %v5165_v47 = vadd.s32 %v5164_v60, %v5154_v4  ;;  %v5113_v37 = vsel %vm5107_vm10, %v5110_v16, %v5112_v62  ;;  %v5163_v3 = vadd.s32 %v5159_v55, %v5155_v49 }
 0x527   :  { %v3956_v8 = vxor.u32 2147483648, %v3955_v21  ;;  %v3959_v46 = vsel %vm3836_vm13, %v3958_v12, %v8978_v39  ;;  %v5167_v42 = vmul.u32 %v8981_v54, %v5113_v37  ;;  %vm3977_vm8 = vweird.f32 %v8764_v26 }
 0x528   :  { %v5144_v58 = vadd.s32 %v5143_v45, %v5134_v1  ;;  %v5166_v48 = vadd.s32 %v5165_v47, %v5156_v18  ;;  %v3961_v19 = vsel %vm9044_vm15, 0, %v3959_v46  ;;  %vm5076_vm10 = vcmp.lt.s32.totalorder %v8938_v29, 0 }
 0x529   :  { %v3957_v7 = vsel %vm3836_vm13, %v3956_v8, %v3955_v21  ;;  %v3978_v22 = vadd.s32 3, %v3961_v19  ;;  %vm5075_vm14 = vcmp.le.f32.partialorder %v5074_v14, 0.7853982  ;;  %vm5217_vm0 = vweird.f32 %v8938_v29 }
 0x52a   :  { %v3960_v27 = vsel %vm9044_vm15, %v8764_v26, %v3957_v7  ;;  %vm5169_vm5 = vc.u32 %v5144_v58, %v5163_v3  ;;  %v5170_v9 = vadd.s32 1, %v5166_v48  ;;  %v5168_v25 = vadd.s32 %v5163_v3, %v5144_v58 }
 0x52b   :  { %v3962_v34 = vmul.f32 %v3960_v27, %v3960_v27  ;;  %v3979_v23 = vand.u32 3, %v3978_v22 }
 0x52c   :  { %v5171_v63 = vsel %vm5169_vm5, %v5170_v9, %v5166_v48 }
 0x52d   :  { %v3963_v61 = vmul.f32 -0.001358992, %v3962_v34  ;;  %v3970_v53 = vmul.f32 -0.00019511016, %v3962_v34  ;;  %v5172_v43 = vadd.s32 %v5171_v63, %v5167_v42  ;;  %vm3981_vm6 = vcmp.eq.s32.totalorder %v3979_v23, 0 }
 0x52e   :  { %vm3984_vm7 = vcmp.eq.s32.totalorder %v3979_v23, 2  ;;  %vm3980_vm9 = vcmp.lt.s32.totalorder %v3979_v23, 2 }
 0x52f   :  { %v3964_v59 = vadd.f32 0.041655596, %v3963_v61  ;;  %v3971_v38 = vadd.f32 0.008332121, %v3970_v53  ;;  %v5173_v57 = vadd.s32 536870912, %v5172_v43 }
 0x531   :  { %v3965_v51 = vmul.f32 %v3964_v59, %v3962_v34  ;;  %v3972_v17 = vmul.f32 %v3971_v38, %v3962_v34  ;;  %v5174_v39 = vshrl.u32 %v5173_v57, 30 }
 0x533   :  { %v3966_v44 = vadd.f32 -0.4999988, %v3965_v51  ;;  %v3973_v40 = vadd.f32 -0.16666654, %v3972_v17  ;;  %v5175_v56 = vshll.u32 %v5174_v39, 30  ;;  %v5198_v16 = vsub.s32 4, %v5174_v39 }
 0x535   :  { %v3967_v41 = vmul.f32 %v3966_v44, %v3962_v34  ;;  %v3974_v52 = vmul.f32 %v3973_v40, %v3962_v34  ;;  %v5176_v20 = vsub.s32 %v5172_v43, %v5175_v56  ;;  %v5199_v18 = vsel %vm5076_vm10, %v5198_v16, %v5174_v39 }
 0x536   :  { %v5201_v37 = vsel %vm5075_vm14, 0, %v5199_v18 }
 0x537   :  { %v3968_v50 = vadd.f32 1.0, %v3967_v41  ;;  %v3975_v35 = vadd.f32 1.0, %v3974_v52  ;;  %vm5177_vm4 = vcmp.lt.s32.totalorder %v5176_v20, 0  ;;  %v5178_v24 = vsub.s32 0, %v5176_v20 }
 0x538   :  { %v5218_v53 = vadd.s32 3, %v5201_v37 }
 0x539   :  { %v3976_v31 = vmul.f32 %v3975_v35, %v3960_v27  ;;  %v3985_v54 = vxor.u32 2147483648, %v3968_v50  ;;  %v5179_v49 = vsel %vm5177_vm4, %v5178_v24, %v5176_v20 }
 0x53a   :  { %v5180_v15 = vclz %v5179_v49  ;;  %v5219_v38 = vand.u32 3, %v5218_v53 }
 0x53b   :  { %v3982_v6 = vxor.u32 2147483648, %v3976_v31  ;;  %v3986_v5 = vsel %vm3984_vm7, %v3985_v54, %v3976_v31 }
 0x53c   :  { %v5405_v21 = vadd.s32 4294967294, %v5180_v15  ;;  %vm5221_vm12 = vcmp.eq.s32.totalorder %v5219_v38, 0  ;;  %vm5224_vm13 = vcmp.eq.s32.totalorder %v5219_v38, 2  ;;  %vm5220_vm15 = vcmp.lt.s32.totalorder %v5219_v38, 2 }
 0x53d   :  { %v3983_v13 = vsel %vm3981_vm6, %v3968_v50, %v3982_v6 }
 0x53e   :  { %v3987_v10 = vsel %vm3980_vm9, %v3983_v13, %v3986_v5  ;;  %vm5406_vm11 = vcmp.lt.s32.totalorder %v5405_v21, 0 }
 0x53f   :  { %v3988_v55 = vsel %vm3977_vm8, nan, %v3987_v10  ;;  %v5183_v32 = vsel %vm5406_vm11, 0, %v5405_v21 }
 0x540   :  { %5252 = vst [vmem:[#allocation2 + $0xb8] sm:$0xff] %v3988_v55  ;;  %v5184_v11 = vsub.s32 32, %v5183_v32  ;;  %v5188_v36 = vsub.s32 4294967266, %v5183_v32  ;;  %v5185_v33 = vshll.u32 %v5176_v20, %v5183_v32 }
 0x542   :  { %v5186_v8 = vshrl.u32 %v5168_v25, %v5184_v11  ;;  %v5189_v12 = vadd.s32 127, %v5188_v36 }
 0x544   :  { %v5187_v28 = vor.u32 %v5186_v8, %v5185_v33  ;;  %v5190_v2 = vshll.u32 %v5189_v12, 23 }
 0x546   :  { %v5191_v30 = vor.u32 4788187, %v5190_v2  ;;  %v5194_v4 = vcvt.s32.f32 %v5187_v28 }
 0x548   :  { %v5192_v0 = vand.u32 2147483647, %v5191_v30 }
 0x54a   :  { %v5195_v60 = vmul.f32 %v5194_v4, %v5192_v0 }
 0x54c   :  { %v5196_v26 = vxor.u32 2147483648, %v5195_v60 }
 0x54e   :  { %v5197_v7 = vsel %vm5076_vm10, %v5196_v26, %v5195_v60 }
 0x54f   :  { %v5200_v62 = vsel %vm5075_vm14, %v8938_v29, %v5197_v7 }
 0x550   :  { %v5202_v1 = vmul.f32 %v5200_v62, %v5200_v62 }
 0x552   :  { %v5203_v27 = vmul.f32 -0.001358992, %v5202_v1  ;;  %v5210_v45 = vmul.f32 -0.00019511016, %v5202_v1 }
 0x554   :  { %v5204_v47 = vadd.f32 0.041655596, %v5203_v27  ;;  %v5211_v34 = vadd.f32 0.008332121, %v5210_v45 }
 0x556   :  { %v5205_v58 = vmul.f32 %v5204_v47, %v5202_v1  ;;  %v5212_v3 = vmul.f32 %v5211_v34, %v5202_v1 }
 0x558   :  { %v5206_v48 = vadd.f32 -0.4999988, %v5205_v58  ;;  %v5213_v61 = vadd.f32 -0.16666654, %v5212_v3 }
 0x55a   :  { %v5207_v46 = vmul.f32 %v5206_v48, %v5202_v1  ;;  %v5214_v9 = vmul.f32 %v5213_v61, %v5202_v1 }
 0x55c   :  { %v5208_v59 = vadd.f32 1.0, %v5207_v46  ;;  %v5215_v14 = vadd.f32 1.0, %v5214_v9 }
 0x55e   :  { %v5216_v42 = vmul.f32 %v5215_v14, %v5200_v62  ;;  %v5225_v63 = vxor.u32 2147483648, %v5208_v59 }
 0x560   :  { %v5222_v19 = vxor.u32 2147483648, %v5216_v42  ;;  %v5226_v17 = vsel %vm5224_vm13, %v5225_v63, %v5216_v42 }
 0x562   :  { %v5223_v51 = vsel %vm5221_vm12, %v5208_v59, %v5222_v19 }
 0x563   :  { %v5227_v43 = vsel %vm5220_vm15, %v5223_v51, %v5226_v17 }
 0x564   :  { %v5228_v44 = vsel %vm5217_vm0, nan, %v5227_v43 }
 0x565   :  { %5260 = vst [vmem:[#allocation2 + $0xf8] sm:$0xff] %v5228_v44 }
 0x566   :  { %5273 = dma.vmem_to_hbm [thread:$0]  %s5266_s23, 4096, %s5268_s26, [#allocation3], %s5483_s27, %s5483_s27, %s5484_s28  }
 0x567   :  { %5473 = dma.done.wait [#allocation3], 4096  }
 0x568   :  { %5474 = vsyncadd [#allocation3], 4294963200 }
 0x569   :  { %5278 = vsyncpa [#allocation3], 1 }

</bundles_post_ra>
